<compile_context>
chip_gen: v7x
topology: tpu7x:2x2x1
jax: 0.10.0
libtpu: 0.0.40
codegen_flags: <defaults>
</compile_context>

<pallas_src>
import functools

import jax
import jax.numpy as jnp
from jax.experimental import pallas as pl
from jax.experimental.pallas import tpu as pltpu

_VMEM = pl.BlockSpec(memory_space=pltpu.MemorySpace.VMEM)


# ----------------------------- small helpers --------------------------------

def _rup(x, m):
    return ((x + m - 1) // m) * m


def _pad2(a, rows, cols):
    return jnp.pad(a, ((0, rows - a.shape[0]), (0, cols - a.shape[1])))


def _pick(dim, candidates):
    for c in candidates:
        if dim % c == 0:
            return c
    return dim


# ----------------------------- Pallas kernels -------------------------------

def _mm_kernel(x_ref, w_ref, b_ref, o_ref, acc_ref, *, relu):
    """Tiled maybe_relu(x @ w + b) with f32 accumulation over the K grid axis."""
    @pl.when(pl.program_id(2) == 0)
    def _init():
        acc_ref[...] = jnp.zeros_like(acc_ref)

    acc_ref[...] += jnp.dot(x_ref[...], w_ref[...],
                            preferred_element_type=jnp.float32)

    @pl.when(pl.program_id(2) == pl.num_programs(2) - 1)
    def _fin():
        out = acc_ref[...] + b_ref[...]
        if relu:
            out = jnp.maximum(out, 0.0)
        o_ref[...] = out.astype(o_ref.dtype)


def _mm_res_kernel(x_ref, w_ref, b_ref, r_ref, o_ref, acc_ref, *, relu):
    """Tiled maybe_relu(x @ w + b + residual)."""
    @pl.when(pl.program_id(2) == 0)
    def _init():
        acc_ref[...] = jnp.zeros_like(acc_ref)

    acc_ref[...] += jnp.dot(x_ref[...], w_ref[...],
                            preferred_element_type=jnp.float32)

    @pl.when(pl.program_id(2) == pl.num_programs(2) - 1)
    def _fin():
        out = acc_ref[...] + b_ref[...] + r_ref[...].astype(jnp.float32)
        if relu:
            out = jnp.maximum(out, 0.0)
        o_ref[...] = out.astype(o_ref.dtype)


def _avgpool_kernel(x_ref, o_ref):
    # global average pool over flattened spatial axis: (N, H*W, C) -> (N, C)
    o_ref[...] = jnp.mean(x_ref[...].astype(jnp.float32), axis=1).astype(o_ref.dtype)


def _kp_mlp_kernel(x_ref, w1_ref, b1_ref, w2_ref, b2_ref, w3_ref, b3_ref, o_ref):
    # Fused 3-layer keypoint MLP (BN folded into weights; Dropout = identity).
    h = jnp.dot(x_ref[...], w1_ref[...], preferred_element_type=jnp.float32) + b1_ref[...]
    h = jnp.maximum(h, 0.0).astype(jnp.bfloat16)
    h = jnp.dot(h, w2_ref[...], preferred_element_type=jnp.float32) + b2_ref[...]
    h = jnp.maximum(h, 0.0).astype(jnp.bfloat16)
    h = jnp.dot(h, w3_ref[...], preferred_element_type=jnp.float32) + b3_ref[...]
    o_ref[...] = jnp.maximum(h, 0.0).astype(o_ref.dtype)


def _classifier_kernel(img_ref, kp_ref, w1a_ref, w1b_ref, b1_ref,
                       w2_ref, b2_ref, w3_ref, b3_ref, o_ref):
    # Fused 3-layer classifier.  The concat([image_feats, kp_feats]) @ W1 is
    # expressed as a split matmul so no concatenation is materialized.
    h = (jnp.dot(img_ref[...], w1a_ref[...], preferred_element_type=jnp.float32)
         + jnp.dot(kp_ref[...], w1b_ref[...], preferred_element_type=jnp.float32)
         + b1_ref[...])
    h = jnp.maximum(h, 0.0).astype(jnp.bfloat16)
    h = jnp.dot(h, w2_ref[...], preferred_element_type=jnp.float32) + b2_ref[...]
    h = jnp.maximum(h, 0.0).astype(jnp.bfloat16)
    o_ref[...] = (jnp.dot(h, w3_ref[...], preferred_element_type=jnp.float32)
                  + b3_ref[...]).astype(o_ref.dtype)


# ------------------------------ kernel wrappers ------------------------------

def fused_matmul(x, w_padded, bias, residual=None, relu=True,
                 out_dtype=jnp.bfloat16):
    """Tiled Pallas:  maybe_relu(x @ w + bias [+ residual]).

    x:        (M, K)       activations (any float dtype, cast to bf16)
    w_padded: (Kp, Np)     bf16, BN-scale folded in, pre-padded at init time
    bias:     (1, N)       f32 (BN shift)
    residual: (M, N) or None
    Returns (M, N) in out_dtype.
    """
    M, K = x.shape
    Kp, Np = w_padded.shape
    N = bias.shape[1]

    Mp = _rup(M, 16)
    xp = jnp.pad(x.astype(jnp.bfloat16), ((0, Mp - M), (0, Kp - K)))
    bp = _pad2(bias.astype(jnp.float32), 1, Np)

    tm = _pick(Mp, (512, 256, 128, 64, 32, 16))
    tn = Np if Np <= 512 else _pick(Np, (512, 256, 128))
    tk = Kp if Kp <= 1024 else _pick(Kp, (512, 384, 256, 128))
    grid = (Mp // tm, Np // tn, Kp // tk)

    x_spec = pl.BlockSpec((tm, tk), lambda i, j, k: (i, k))
    w_spec = pl.BlockSpec((tk, tn), lambda i, j, k: (k, j))
    b_spec = pl.BlockSpec((1, tn), lambda i, j, k: (0, j))
    o_spec = pl.BlockSpec((tm, tn), lambda i, j, k: (i, j))
    scratch = [pltpu.VMEM((tm, tn), jnp.float32)]
    cparams = pltpu.CompilerParams(
        dimension_semantics=("parallel", "parallel", "arbitrary"))

    if residual is None:
        out = pl.pallas_call(
            functools.partial(_mm_kernel, relu=relu),
            out_shape=jax.ShapeDtypeStruct((Mp, Np), out_dtype),
            grid=grid,
            in_specs=[x_spec, w_spec, b_spec],
            out_specs=o_spec,
            scratch_shapes=scratch,
            compiler_params=cparams,
        )(xp, w_padded, bp)
    else:
        rM, rN = residual.shape
        rp = jnp.pad(residual.astype(jnp.bfloat16), ((0, Mp - rM), (0, Np - rN)))
        r_spec = pl.BlockSpec((tm, tn), lambda i, j, k: (i, j))
        out = pl.pallas_call(
            functools.partial(_mm_res_kernel, relu=relu),
            out_shape=jax.ShapeDtypeStruct((Mp, Np), out_dtype),
            grid=grid,
            in_specs=[x_spec, w_spec, b_spec, r_spec],
            out_specs=o_spec,
            scratch_shapes=scratch,
            compiler_params=cparams,
        )(xp, w_padded, bp, rp)
    return out[:M, :N]


def global_avg_pool(x_nhwc):
    n, h, w, c = x_nhwc.shape
    x3 = x_nhwc.reshape(n, h * w, c)
    return pl.pallas_call(
        _avgpool_kernel,
        out_shape=jax.ShapeDtypeStruct((n, c), jnp.bfloat16),
        in_specs=[_VMEM],
        out_specs=_VMEM,
    )(x3)


# ------------------------------- conv helpers --------------------------------

def im2col(x_nhwc, ksize, stride, pad):
    """Extract (kh, kw, Cin)-ordered patches -> (N*Ho*Wo, k*k*C)."""
    n, h, w, c = x_nhwc.shape
    ho = (h + 2 * pad - ksize) // stride + 1
    wo = (w + 2 * pad - ksize) // stride + 1
    xp = jnp.pad(x_nhwc, ((0, 0), (pad, pad), (pad, pad), (0, 0)))
    cols = []
    for i in range(ksize):
        for j in range(ksize):
            cols.append(xp[:, i:i + stride * ho:stride, j:j + stride * wo:stride, :])
    patches = jnp.concatenate(cols, axis=-1)              # (N, Ho, Wo, k*k*C)
    return patches.reshape(n * ho * wo, ksize * ksize * c), ho, wo


def conv_bn(x_nhwc, layer, kh, stride, relu=True, residual=None):
    """Conv2d(bias=False) + folded eval-mode BatchNorm (+residual) (+ReLU)."""
    pad = 1 if kh == 3 else 0
    cols, ho, wo = im2col(x_nhwc, kh, stride, pad)
    n_out = layer["b"].shape[1]
    res2 = None if residual is None else residual.reshape(-1, n_out)
    out = fused_matmul(cols, layer["w"], layer["b"], residual=res2, relu=relu)
    return out.reshape(x_nhwc.shape[0], ho, wo, n_out)


def residual_block(x, p, stride):
    out = conv_bn(x, p["conv1"], kh=3, stride=stride, relu=True)
    if "sc" in p:
        shortcut = conv_bn(x, p["sc"], kh=1, stride=stride, relu=False)
    else:
        shortcut = x
    # out = relu(bn2(conv2(out)) + shortcut)  -- residual add fused in kernel
    return conv_bn(out, p["conv2"], kh=3, stride=1, relu=True, residual=shortcut)


# ------------------------------ parameter build -------------------------------
# BN (eval mode) is folded at build time: scale -> weight columns, shift -> bias.
# Weights are padded to (Kp, Np) multiples of 128 and cast to bf16 ONCE here.

def _bn_fold(key, c):
    k1, k2, k3, k4 = jax.random.split(key, 4)
    gamma = 1.0 + 0.1 * jax.random.normal(k1, (c,), jnp.float32)
    beta = 0.1 * jax.random.normal(k2, (c,), jnp.float32)
    mean = 0.1 * jax.random.normal(k3, (c,), jnp.float32)
    var = 1.0 + 0.1 * jax.random.uniform(k4, (c,), jnp.float32)
    scale = gamma / jnp.sqrt(var + 1e-5)
    bias = beta - mean * scale
    return scale, bias


def _conv_w(key, kh, kw, cin, cout):
    fan_in = kh * kw * cin
    return jax.random.normal(key, (kh, kw, cin, cout), jnp.float32) / jnp.sqrt(fan_in)


def _make_conv_layer(key, kh, cin, cout):
    kw_, kb_ = jax.random.split(key)
    w_hwio = _conv_w(kw_, kh, kh, cin, cout)
    s, t = _bn_fold(kb_, cout)
    K, N = kh * kh * cin, cout
    w2 = w_hwio.reshape(K, N) * s[None, :]                 # fold BN scale
    return {"w": _pad2(w2, _rup(K, 128), _rup(N, 128)).astype(jnp.bfloat16),
            "b": t.reshape(1, N).astype(jnp.float32)}


def _make_resblock(key, cin, cout, stride):
    k1, k2, k3 = jax.random.split(key, 3)
    p = {"conv1": _make_conv_layer(k1, 3, cin, cout),
         "conv2": _make_conv_layer(k2, 3, cout, cout)}
    if stride != 1 or cin != cout:
        p["sc"] = _make_conv_layer(k3, 1, cin, cout)
    return p


def _make_linear(key, cin, cout, with_bn=True):
    kw_, kb_, kbn = jax.random.split(key, 3)
    w = jax.random.normal(kw_, (cin, cout), jnp.float32) / jnp.sqrt(cin)
    b = 0.1 * jax.random.normal(kb_, (cout,), jnp.float32)
    if with_bn:
        s, t = _bn_fold(kbn, cout)
        w = w * s[None, :]
        b = b * s + t
    return w, b


def init_params(key, num_classes=5):
    ks = jax.random.split(key, 12)
    p = {}
    # ----- image branch -----
    p["stem"] = _make_conv_layer(ks[0], 3, 3, 64)
    p["rb1"] = _make_resblock(ks[1], 64, 64, 1)
    p["rb2"] = _make_resblock(ks[2], 64, 128, 2)
    p["rb3"] = _make_resblock(ks[3], 128, 256, 2)
    p["rb4"] = _make_resblock(ks[4], 256, 512, 2)
    # ----- keypoints branch (Linear + BN + ReLU x3, fused into one kernel) ----
    w, b = _make_linear(ks[5], 21 * 3, 256)                 # K=63 -> pad 128
    p["kp1_w"] = _pad2(w, 128, 256).astype(jnp.bfloat16)
    p["kp1_b"] = b.reshape(1, 256).astype(jnp.float32)
    w, b = _make_linear(ks[6], 256, 128)
    p["kp2_w"] = w.astype(jnp.bfloat16)
    p["kp2_b"] = b.reshape(1, 128).astype(jnp.float32)
    w, b = _make_linear(ks[7], 128, 64)                     # N=64 -> pad 128
    p["kp3_w"] = _pad2(w, 128, 128).astype(jnp.bfloat16)
    p["kp3_b"] = _pad2(b.reshape(1, 64), 1, 128).astype(jnp.float32)
    # ----- classifier (fused into one kernel; concat expressed as split W1) --
    w, b = _make_linear(ks[8], 512 + 64, 256)
    p["cls1_wa"] = w[:512].astype(jnp.bfloat16)             # image-feature rows
    p["cls1_wb"] = _pad2(w[512:], 128, 256).astype(jnp.bfloat16)  # kp rows (64->128, zero pad)
    p["cls1_b"] = b.reshape(1, 256).astype(jnp.float32)
    w, b = _make_linear(ks[9], 256, 128)
    p["cls2_w"] = w.astype(jnp.bfloat16)
    p["cls2_b"] = b.reshape(1, 128).astype(jnp.float32)
    w, b = _make_linear(ks[10], 128, num_classes, with_bn=False)
    p["cls3_w"] = _pad2(w, 128, _rup(num_classes, 128)).astype(jnp.bfloat16)
    p["cls3_b"] = b.reshape(1, num_classes).astype(jnp.float32)   # unpadded (keeps N)
    return p


# --------------------------------- forward ------------------------------------

def hand_gesture_forward(params, image_nchw, key_points, valid_points=None):
    # valid_points accepted but unused, matching the PyTorch forward.
    x = jnp.transpose(image_nchw, (0, 2, 3, 1)).astype(jnp.bfloat16)  # NCHW -> NHWC
    B = x.shape[0]

    # ---- image branch ----
    x = conv_bn(x, params["stem"], kh=3, stride=1, relu=True)
    x = residual_block(x, params["rb1"], 1)
    x = residual_block(x, params["rb2"], 2)
    x = residual_block(x, params["rb3"], 2)
    x = residual_block(x, params["rb4"], 2)
    img_feat = global_avg_pool(x)                                    # (B, 512) bf16

    # ---- keypoints branch: single fused Pallas kernel ----
    Bp = _rup(B, 8)
    kp = key_points.reshape(B, -1).astype(jnp.bfloat16)              # (B, 63)
    kp_in = jnp.pad(kp, ((0, Bp - B), (0, params["kp1_w"].shape[0] - kp.shape[1])))
    kp_feat = pl.pallas_call(
        _kp_mlp_kernel,
        out_shape=jax.ShapeDtypeStruct((Bp, params["kp3_w"].shape[1]), jnp.bfloat16),
        in_specs=[_VMEM] * 7,
        out_specs=_VMEM,
    )(kp_in, params["kp1_w"], params["kp1_b"], params["kp2_w"], params["kp2_b"],
      params["kp3_w"], params["kp3_b"])                              # (Bp, 128), cols 64.. are 0

    # ---- classifier: single fused Pallas kernel (split-matmul concat) ----
    img_in = jnp.pad(img_feat, ((0, Bp - B), (0, 0)))                # (Bp, 512)
    num_classes = params["cls3_b"].shape[1]
    Np3 = params["cls3_w"].shape[1]
    b3p = _pad2(params["cls3_b"], 1, Np3)
    logits = pl.pallas_call(
        _classifier_kernel,
        out_shape=jax.ShapeDtypeStruct((Bp, Np3), jnp.float32),
        in_specs=[_VMEM] * 9,
        out_specs=_VMEM,
    )(img_in, kp_feat, params["cls1_wa"], params["cls1_wb"], params["cls1_b"],
      params["cls2_w"], params["cls2_b"], params["cls3_w"], b3p)
    return logits[:B, :num_classes]                                  # (B, num_classes)


# ----------------------------------- main --------------------------------------

if __name__ == "__main__":
    key = jax.random.PRNGKey(0)
    k_params, k_img, k_kp = jax.random.split(key, 3)

    num_classes = 5
    params = init_params(k_params, num_classes)

    # Small shapes consistent with the module: image NCHW with 3 channels
    # (module doc says 224x224; we use 16x16 so the 3 stride-2 residual stages
    # still leave a 2x2 map for the adaptive average pool), keypoints (B,21,3).
    B, H = 2, 16
    image = jax.random.normal(k_img, (B, 3, H, H), jnp.float32)      # NCHW
    key_points = jax.random.normal(k_kp, (B, 21, 3), jnp.float32)

    fwd = jax.jit(hand_gesture_forward)
    logits = fwd(params, image, key_points)
    jax.block_until_ready(logits)
    assert logits.shape == (B, num_classes), logits.shape
    print("KERNEL_OK")
</pallas_src>

<mosaic_0001>
module attributes {stable_mosaic.version = 11 : i64} {
  func.func @_mm_kernel(%arg0: i32, %arg1: i32, %arg2: i32, %arg3: memref<512x128xbf16, #tpu.memory_space<vmem>>, %arg4: memref<128x128xbf16, #tpu.memory_space<vmem>>, %arg5: memref<1x128xf32, #tpu.memory_space<vmem>>, %arg6: memref<512x128xbf16, #tpu.memory_space<vmem>>, %arg7: memref<512x128xf32, #tpu.memory_space<vmem>>) attributes {dimension_semantics = [#tpu.dimension_semantics<parallel>, #tpu.dimension_semantics<parallel>, #tpu.dimension_semantics<arbitrary>], iteration_bounds = array<i64: 1, 1, 1>, scalar_prefetch = 0 : i64, scratch_operands = 1 : i64, tpu.core_type = #tpu.core_type<tc>, window_params = [{transform_indices = @transform_0, window_bounds = array<i64: 512, 128>}, {transform_indices = @transform_1, window_bounds = array<i64: 128, 128>}, {transform_indices = @transform_2, window_bounds = array<i64: 1, 128>}, {transform_indices = @transform_3, window_bounds = array<i64: 512, 128>}]} {
    %c0_i32 = arith.constant 0 : i32
    %0 = arith.cmpi eq, %arg2, %c0_i32 : i32
    %1 = arith.extui %0 : i1 to i32
    %c0_i32_0 = arith.constant 0 : i32
    %2 = arith.cmpi ne, %1, %c0_i32_0 : i32
    scf.if %2 {
      %cst_10 = arith.constant 0.000000e+00 : f32
      %12 = vector.broadcast %cst_10 : f32 to vector<512x128xf32>
      %c0_11 = arith.constant 0 : index
      %c0_12 = arith.constant 0 : index
      %13 = vector.load %arg7[%c0_11, %c0_12] : memref<512x128xf32, #tpu.memory_space<vmem>>, vector<512x128xf32>
      tpu.vector_store %arg7[%c0_11, %c0_12], %12 {strides = array<i32>} : memref<512x128xf32, #tpu.memory_space<vmem>>, vector<512x128xf32>,
    } else {
    }
    %c0 = arith.constant 0 : index
    %c0_1 = arith.constant 0 : index
    %3 = vector.load %arg7[%c0, %c0_1] : memref<512x128xf32, #tpu.memory_space<vmem>>, vector<512x128xf32>
    %c0_2 = arith.constant 0 : index
    %c0_3 = arith.constant 0 : index
    %4 = vector.load %arg3[%c0_2, %c0_3] : memref<512x128xbf16, #tpu.memory_space<vmem>>, vector<512x128xbf16>
    %c0_4 = arith.constant 0 : index
    %c0_5 = arith.constant 0 : index
    %5 = vector.load %arg4[%c0_4, %c0_5] : memref<128x128xbf16, #tpu.memory_space<vmem>>, vector<128x128xbf16>
    %cst = arith.constant dense<0.000000e+00> : vector<512x128xf32>
    %6 = tpu.matmul %4, %5, %cst {dimension_numbers = #tpu.dot_dimension_numbers<[1], [0], [0], [1], [0, 0, 1, 1], [], []>} : vector<512x128xbf16>, vector<128x128xbf16>, vector<512x128xf32> -> vector<512x128xf32>
    %7 = arith.addf %3, %6 : vector<512x128xf32>
    %c0_6 = arith.constant 0 : index
    %c0_7 = arith.constant 0 : index
    %8 = vector.load %arg7[%c0_6, %c0_7] : memref<512x128xf32, #tpu.memory_space<vmem>>, vector<512x128xf32>
    tpu.vector_store %arg7[%c0_6, %c0_7], %7 {strides = array<i32>} : memref<512x128xf32, #tpu.memory_space<vmem>>, vector<512x128xf32>,
    %c0_i32_8 = arith.constant 0 : i32
    %9 = arith.cmpi eq, %arg2, %c0_i32_8 : i32
    %10 = arith.extui %9 : i1 to i32
    %c0_i32_9 = arith.constant 0 : i32
    %11 = arith.cmpi ne, %10, %c0_i32_9 : i32
    scf.if %11 {
      %c0_10 = arith.constant 0 : index
      %c0_11 = arith.constant 0 : index
      %12 = vector.load %arg7[%c0_10, %c0_11] : memref<512x128xf32, #tpu.memory_space<vmem>>, vector<512x128xf32>
      %c0_12 = arith.constant 0 : index
      %c0_13 = arith.constant 0 : index
      %13 = vector.load %arg5[%c0_12, %c0_13] : memref<1x128xf32, #tpu.memory_space<vmem>>, vector<1x128xf32>
      %14 = vector.broadcast %13 : vector<1x128xf32> to vector<512x128xf32>
      %15 = arith.addf %12, %14 : vector<512x128xf32>
      %cst_14 = arith.constant 0.000000e+00 : f32
      %16 = vector.broadcast %cst_14 : f32 to vector<512x128xf32>
      %17 = arith.maximumf %15, %16 : vector<512x128xf32>
      %18 = arith.truncf %17 : vector<512x128xf32> to vector<512x128xbf16>
      %c0_15 = arith.constant 0 : index
      %c0_16 = arith.constant 0 : index
      %19 = vector.load %arg6[%c0_15, %c0_16] : memref<512x128xbf16, #tpu.memory_space<vmem>>, vector<512x128xbf16>
      tpu.vector_store %arg6[%c0_15, %c0_16], %18 {strides = array<i32>} : memref<512x128xbf16, #tpu.memory_space<vmem>>, vector<512x128xbf16>,
    } else {
    }
    return
  }
  func.func @transform_0(%arg0: i32, %arg1: i32, %arg2: i32) -> (i32, i32) {
    %c0_i32 = arith.constant 0 : i32
    return %arg0, %arg2 : i32, i32
  }
  func.func @transform_1(%arg0: i32, %arg1: i32, %arg2: i32) -> (i32, i32) {
    %c0_i32 = arith.constant 0 : i32
    return %arg2, %arg1 : i32, i32
  }
  func.func @transform_2(%arg0: i32, %arg1: i32, %arg2: i32) -> (i32, i32) {
    %c0_i32 = arith.constant 0 : i32
    %c0_i32_0 = arith.constant 0 : i32
    return %c0_i32, %arg1 : i32, i32
  }
  func.func @transform_3(%arg0: i32, %arg1: i32, %arg2: i32) -> (i32, i32) {
    %c0_i32 = arith.constant 0 : i32
    return %arg0, %arg1 : i32, i32
  }
}

module attributes {stable_mosaic.version = 11 : i64} {
  func.func @_mm_kernel(%arg0: i32, %arg1: i32, %arg2: i32, %arg3: memref<512x640xbf16, #tpu.memory_space<vmem>>, %arg4: memref<640x128xbf16, #tpu.memory_space<vmem>>, %arg5: memref<1x128xf32, #tpu.memory_space<vmem>>, %arg6: memref<512x128xbf16, #tpu.memory_space<vmem>>, %arg7: memref<512x128xf32, #tpu.memory_space<vmem>>) attributes {dimension_semantics = [#tpu.dimension_semantics<parallel>, #tpu.dimension_semantics<parallel>, #tpu.dimension_semantics<arbitrary>], iteration_bounds = array<i64: 1, 1, 1>, scalar_prefetch = 0 : i64, scratch_operands = 1 : i64, tpu.core_type = #tpu.core_type<tc>, window_params = [{transform_indices = @transform_0, window_bounds = array<i64: 512, 640>}, {transform_indices = @transform_1, window_bounds = array<i64: 640, 128>}, {transform_indices = @transform_2, window_bounds = array<i64: 1, 128>}, {transform_indices = @transform_3, window_bounds = array<i64: 512, 128>}]} {
    %c0_i32 = arith.constant 0 : i32
    %0 = arith.cmpi eq, %arg2, %c0_i32 : i32
    %1 = arith.extui %0 : i1 to i32
    %c0_i32_0 = arith.constant 0 : i32
    %2 = arith.cmpi ne, %1, %c0_i32_0 : i32
    scf.if %2 {
      %cst_10 = arith.constant 0.000000e+00 : f32
      %12 = vector.broadcast %cst_10 : f32 to vector<512x128xf32>
      %c0_11 = arith.constant 0 : index
      %c0_12 = arith.constant 0 : index
      %13 = vector.load %arg7[%c0_11, %c0_12] : memref<512x128xf32, #tpu.memory_space<vmem>>, vector<512x128xf32>
      tpu.vector_store %arg7[%c0_11, %c0_12], %12 {strides = array<i32>} : memref<512x128xf32, #tpu.memory_space<vmem>>, vector<512x128xf32>,
    } else {
    }
    %c0 = arith.constant 0 : index
    %c0_1 = arith.constant 0 : index
    %3 = vector.load %arg7[%c0, %c0_1] : memref<512x128xf32, #tpu.memory_space<vmem>>, vector<512x128xf32>
    %c0_2 = arith.constant 0 : index
    %c0_3 = arith.constant 0 : index
    %4 = vector.load %arg3[%c0_2, %c0_3] : memref<512x640xbf16, #tpu.memory_space<vmem>>, vector<512x640xbf16>
    %c0_4 = arith.constant 0 : index
    %c0_5 = arith.constant 0 : index
    %5 = vector.load %arg4[%c0_4, %c0_5] : memref<640x128xbf16, #tpu.memory_space<vmem>>, vector<640x128xbf16>
    %cst = arith.constant dense<0.000000e+00> : vector<512x128xf32>
    %6 = tpu.matmul %4, %5, %cst {dimension_numbers = #tpu.dot_dimension_numbers<[1], [0], [0], [1], [0, 0, 1, 1], [], []>} : vector<512x640xbf16>, vector<640x128xbf16>, vector<512x128xf32> -> vector<512x128xf32>
    %7 = arith.addf %3, %6 : vector<512x128xf32>
    %c0_6 = arith.constant 0 : index
    %c0_7 = arith.constant 0 : index
    %8 = vector.load %arg7[%c0_6, %c0_7] : memref<512x128xf32, #tpu.memory_space<vmem>>, vector<512x128xf32>
    tpu.vector_store %arg7[%c0_6, %c0_7], %7 {strides = array<i32>} : memref<512x128xf32, #tpu.memory_space<vmem>>, vector<512x128xf32>,
    %c0_i32_8 = arith.constant 0 : i32
    %9 = arith.cmpi eq, %arg2, %c0_i32_8 : i32
    %10 = arith.extui %9 : i1 to i32
    %c0_i32_9 = arith.constant 0 : i32
    %11 = arith.cmpi ne, %10, %c0_i32_9 : i32
    scf.if %11 {
      %c0_10 = arith.constant 0 : index
      %c0_11 = arith.constant 0 : index
      %12 = vector.load %arg7[%c0_10, %c0_11] : memref<512x128xf32, #tpu.memory_space<vmem>>, vector<512x128xf32>
      %c0_12 = arith.constant 0 : index
      %c0_13 = arith.constant 0 : index
      %13 = vector.load %arg5[%c0_12, %c0_13] : memref<1x128xf32, #tpu.memory_space<vmem>>, vector<1x128xf32>
      %14 = vector.broadcast %13 : vector<1x128xf32> to vector<512x128xf32>
      %15 = arith.addf %12, %14 : vector<512x128xf32>
      %cst_14 = arith.constant 0.000000e+00 : f32
      %16 = vector.broadcast %cst_14 : f32 to vector<512x128xf32>
      %17 = arith.maximumf %15, %16 : vector<512x128xf32>
      %18 = arith.truncf %17 : vector<512x128xf32> to vector<512x128xbf16>
      %c0_15 = arith.constant 0 : index
      %c0_16 = arith.constant 0 : index
      %19 = vector.load %arg6[%c0_15, %c0_16] : memref<512x128xbf16, #tpu.memory_space<vmem>>, vector<512x128xbf16>
      tpu.vector_store %arg6[%c0_15, %c0_16], %18 {strides = array<i32>} : memref<512x128xbf16, #tpu.memory_space<vmem>>, vector<512x128xbf16>,
    } else {
    }
    return
  }
  func.func @transform_0(%arg0: i32, %arg1: i32, %arg2: i32) -> (i32, i32) {
    %c0_i32 = arith.constant 0 : i32
    return %arg0, %arg2 : i32, i32
  }
  func.func @transform_1(%arg0: i32, %arg1: i32, %arg2: i32) -> (i32, i32) {
    %c0_i32 = arith.constant 0 : i32
    return %arg2, %arg1 : i32, i32
  }
  func.func @transform_2(%arg0: i32, %arg1: i32, %arg2: i32) -> (i32, i32) {
    %c0_i32 = arith.constant 0 : i32
    %c0_i32_0 = arith.constant 0 : i32
    return %c0_i32, %arg1 : i32, i32
  }
  func.func @transform_3(%arg0: i32, %arg1: i32, %arg2: i32) -> (i32, i32) {
    %c0_i32 = arith.constant 0 : i32
    return %arg0, %arg1 : i32, i32
  }
}

module attributes {stable_mosaic.version = 11 : i64} {
  func.func @_mm_res_kernel(%arg0: i32, %arg1: i32, %arg2: i32, %arg3: memref<512x640xbf16, #tpu.memory_space<vmem>>, %arg4: memref<640x128xbf16, #tpu.memory_space<vmem>>, %arg5: memref<1x128xf32, #tpu.memory_space<vmem>>, %arg6: memref<512x128xbf16, #tpu.memory_space<vmem>>, %arg7: memref<512x128xbf16, #tpu.memory_space<vmem>>, %arg8: memref<512x128xf32, #tpu.memory_space<vmem>>) attributes {dimension_semantics = [#tpu.dimension_semantics<parallel>, #tpu.dimension_semantics<parallel>, #tpu.dimension_semantics<arbitrary>], iteration_bounds = array<i64: 1, 1, 1>, scalar_prefetch = 0 : i64, scratch_operands = 1 : i64, tpu.core_type = #tpu.core_type<tc>, window_params = [{transform_indices = @transform_0, window_bounds = array<i64: 512, 640>}, {transform_indices = @transform_1, window_bounds = array<i64: 640, 128>}, {transform_indices = @transform_2, window_bounds = array<i64: 1, 128>}, {transform_indices = @transform_3, window_bounds = array<i64: 512, 128>}, {transform_indices = @transform_4, window_bounds = array<i64: 512, 128>}]} {
    %c0_i32 = arith.constant 0 : i32
    %0 = arith.cmpi eq, %arg2, %c0_i32 : i32
    %1 = arith.extui %0 : i1 to i32
    %c0_i32_0 = arith.constant 0 : i32
    %2 = arith.cmpi ne, %1, %c0_i32_0 : i32
    scf.if %2 {
      %cst_10 = arith.constant 0.000000e+00 : f32
      %12 = vector.broadcast %cst_10 : f32 to vector<512x128xf32>
      %c0_11 = arith.constant 0 : index
      %c0_12 = arith.constant 0 : index
      %13 = vector.load %arg8[%c0_11, %c0_12] : memref<512x128xf32, #tpu.memory_space<vmem>>, vector<512x128xf32>
      tpu.vector_store %arg8[%c0_11, %c0_12], %12 {strides = array<i32>} : memref<512x128xf32, #tpu.memory_space<vmem>>, vector<512x128xf32>,
    } else {
    }
    %c0 = arith.constant 0 : index
    %c0_1 = arith.constant 0 : index
    %3 = vector.load %arg8[%c0, %c0_1] : memref<512x128xf32, #tpu.memory_space<vmem>>, vector<512x128xf32>
    %c0_2 = arith.constant 0 : index
    %c0_3 = arith.constant 0 : index
    %4 = vector.load %arg3[%c0_2, %c0_3] : memref<512x640xbf16, #tpu.memory_space<vmem>>, vector<512x640xbf16>
    %c0_4 = arith.constant 0 : index
    %c0_5 = arith.constant 0 : index
    %5 = vector.load %arg4[%c0_4, %c0_5] : memref<640x128xbf16, #tpu.memory_space<vmem>>, vector<640x128xbf16>
    %cst = arith.constant dense<0.000000e+00> : vector<512x128xf32>
    %6 = tpu.matmul %4, %5, %cst {dimension_numbers = #tpu.dot_dimension_numbers<[1], [0], [0], [1], [0, 0, 1, 1], [], []>} : vector<512x640xbf16>, vector<640x128xbf16>, vector<512x128xf32> -> vector<512x128xf32>
    %7 = arith.addf %3, %6 : vector<512x128xf32>
    %c0_6 = arith.constant 0 : index
    %c0_7 = arith.constant 0 : index
    %8 = vector.load %arg8[%c0_6, %c0_7] : memref<512x128xf32, #tpu.memory_space<vmem>>, vector<512x128xf32>
    tpu.vector_store %arg8[%c0_6, %c0_7], %7 {strides = array<i32>} : memref<512x128xf32, #tpu.memory_space<vmem>>, vector<512x128xf32>,
    %c0_i32_8 = arith.constant 0 : i32
    %9 = arith.cmpi eq, %arg2, %c0_i32_8 : i32
    %10 = arith.extui %9 : i1 to i32
    %c0_i32_9 = arith.constant 0 : i32
    %11 = arith.cmpi ne, %10, %c0_i32_9 : i32
    scf.if %11 {
      %c0_10 = arith.constant 0 : index
      %c0_11 = arith.constant 0 : index
      %12 = vector.load %arg8[%c0_10, %c0_11] : memref<512x128xf32, #tpu.memory_space<vmem>>, vector<512x128xf32>
      %c0_12 = arith.constant 0 : index
      %c0_13 = arith.constant 0 : index
      %13 = vector.load %arg5[%c0_12, %c0_13] : memref<1x128xf32, #tpu.memory_space<vmem>>, vector<1x128xf32>
      %14 = vector.broadcast %13 : vector<1x128xf32> to vector<512x128xf32>
      %15 = arith.addf %12, %14 : vector<512x128xf32>
      %c0_14 = arith.constant 0 : index
      %c0_15 = arith.constant 0 : index
      %16 = vector.load %arg6[%c0_14, %c0_15] : memref<512x128xbf16, #tpu.memory_space<vmem>>, vector<512x128xbf16>
      %17 = arith.extf %16 : vector<512x128xbf16> to vector<512x128xf32>
      %18 = arith.addf %15, %17 : vector<512x128xf32>
      %cst_16 = arith.constant 0.000000e+00 : f32
      %19 = vector.broadcast %cst_16 : f32 to vector<512x128xf32>
      %20 = arith.maximumf %18, %19 : vector<512x128xf32>
      %21 = arith.truncf %20 : vector<512x128xf32> to vector<512x128xbf16>
      %c0_17 = arith.constant 0 : index
      %c0_18 = arith.constant 0 : index
      %22 = vector.load %arg7[%c0_17, %c0_18] : memref<512x128xbf16, #tpu.memory_space<vmem>>, vector<512x128xbf16>
      tpu.vector_store %arg7[%c0_17, %c0_18], %21 {strides = array<i32>} : memref<512x128xbf16, #tpu.memory_space<vmem>>, vector<512x128xbf16>,
    } else {
    }
    return
  }
  func.func @transform_0(%arg0: i32, %arg1: i32, %arg2: i32) -> (i32, i32) {
    %c0_i32 = arith.constant 0 : i32
    return %arg0, %arg2 : i32, i32
  }
  func.func @transform_1(%arg0: i32, %arg1: i32, %arg2: i32) -> (i32, i32) {
    %c0_i32 = arith.constant 0 : i32
    return %arg2, %arg1 : i32, i32
  }
  func.func @transform_2(%arg0: i32, %arg1: i32, %arg2: i32) -> (i32, i32) {
    %c0_i32 = arith.constant 0 : i32
    %c0_i32_0 = arith.constant 0 : i32
    return %c0_i32, %arg1 : i32, i32
  }
  func.func @transform_3(%arg0: i32, %arg1: i32, %arg2: i32) -> (i32, i32) {
    %c0_i32 = arith.constant 0 : i32
    return %arg0, %arg1 : i32, i32
  }
  func.func @transform_4(%arg0: i32, %arg1: i32, %arg2: i32) -> (i32, i32) {
    %c0_i32 = arith.constant 0 : i32
    return %arg0, %arg1 : i32, i32
  }
}

module attributes {stable_mosaic.version = 11 : i64} {
  func.func @_mm_kernel(%arg0: i32, %arg1: i32, %arg2: i32, %arg3: memref<128x640xbf16, #tpu.memory_space<vmem>>, %arg4: memref<640x128xbf16, #tpu.memory_space<vmem>>, %arg5: memref<1x128xf32, #tpu.memory_space<vmem>>, %arg6: memref<128x128xbf16, #tpu.memory_space<vmem>>, %arg7: memref<128x128xf32, #tpu.memory_space<vmem>>) attributes {dimension_semantics = [#tpu.dimension_semantics<parallel>, #tpu.dimension_semantics<parallel>, #tpu.dimension_semantics<arbitrary>], iteration_bounds = array<i64: 1, 1, 1>, scalar_prefetch = 0 : i64, scratch_operands = 1 : i64, tpu.core_type = #tpu.core_type<tc>, window_params = [{transform_indices = @transform_0, window_bounds = array<i64: 128, 640>}, {transform_indices = @transform_1, window_bounds = array<i64: 640, 128>}, {transform_indices = @transform_2, window_bounds = array<i64: 1, 128>}, {transform_indices = @transform_3, window_bounds = array<i64: 128, 128>}]} {
    %c0_i32 = arith.constant 0 : i32
    %0 = arith.cmpi eq, %arg2, %c0_i32 : i32
    %1 = arith.extui %0 : i1 to i32
    %c0_i32_0 = arith.constant 0 : i32
    %2 = arith.cmpi ne, %1, %c0_i32_0 : i32
    scf.if %2 {
      %cst_10 = arith.constant 0.000000e+00 : f32
      %12 = vector.broadcast %cst_10 : f32 to vector<128x128xf32>
      %c0_11 = arith.constant 0 : index
      %c0_12 = arith.constant 0 : index
      %13 = vector.load %arg7[%c0_11, %c0_12] : memref<128x128xf32, #tpu.memory_space<vmem>>, vector<128x128xf32>
      tpu.vector_store %arg7[%c0_11, %c0_12], %12 {strides = array<i32>} : memref<128x128xf32, #tpu.memory_space<vmem>>, vector<128x128xf32>,
    } else {
    }
    %c0 = arith.constant 0 : index
    %c0_1 = arith.constant 0 : index
    %3 = vector.load %arg7[%c0, %c0_1] : memref<128x128xf32, #tpu.memory_space<vmem>>, vector<128x128xf32>
    %c0_2 = arith.constant 0 : index
    %c0_3 = arith.constant 0 : index
    %4 = vector.load %arg3[%c0_2, %c0_3] : memref<128x640xbf16, #tpu.memory_space<vmem>>, vector<128x640xbf16>
    %c0_4 = arith.constant 0 : index
    %c0_5 = arith.constant 0 : index
    %5 = vector.load %arg4[%c0_4, %c0_5] : memref<640x128xbf16, #tpu.memory_space<vmem>>, vector<640x128xbf16>
    %cst = arith.constant dense<0.000000e+00> : vector<128x128xf32>
    %6 = tpu.matmul %4, %5, %cst {dimension_numbers = #tpu.dot_dimension_numbers<[1], [0], [0], [1], [0, 0, 1, 1], [], []>} : vector<128x640xbf16>, vector<640x128xbf16>, vector<128x128xf32> -> vector<128x128xf32>
    %7 = arith.addf %3, %6 : vector<128x128xf32>
    %c0_6 = arith.constant 0 : index
    %c0_7 = arith.constant 0 : index
    %8 = vector.load %arg7[%c0_6, %c0_7] : memref<128x128xf32, #tpu.memory_space<vmem>>, vector<128x128xf32>
    tpu.vector_store %arg7[%c0_6, %c0_7], %7 {strides = array<i32>} : memref<128x128xf32, #tpu.memory_space<vmem>>, vector<128x128xf32>,
    %c0_i32_8 = arith.constant 0 : i32
    %9 = arith.cmpi eq, %arg2, %c0_i32_8 : i32
    %10 = arith.extui %9 : i1 to i32
    %c0_i32_9 = arith.constant 0 : i32
    %11 = arith.cmpi ne, %10, %c0_i32_9 : i32
    scf.if %11 {
      %c0_10 = arith.constant 0 : index
      %c0_11 = arith.constant 0 : index
      %12 = vector.load %arg7[%c0_10, %c0_11] : memref<128x128xf32, #tpu.memory_space<vmem>>, vector<128x128xf32>
      %c0_12 = arith.constant 0 : index
      %c0_13 = arith.constant 0 : index
      %13 = vector.load %arg5[%c0_12, %c0_13] : memref<1x128xf32, #tpu.memory_space<vmem>>, vector<1x128xf32>
      %14 = vector.broadcast %13 : vector<1x128xf32> to vector<128x128xf32>
      %15 = arith.addf %12, %14 : vector<128x128xf32>
      %cst_14 = arith.constant 0.000000e+00 : f32
      %16 = vector.broadcast %cst_14 : f32 to vector<128x128xf32>
      %17 = arith.maximumf %15, %16 : vector<128x128xf32>
      %18 = arith.truncf %17 : vector<128x128xf32> to vector<128x128xbf16>
      %c0_15 = arith.constant 0 : index
      %c0_16 = arith.constant 0 : index
      %19 = vector.load %arg6[%c0_15, %c0_16] : memref<128x128xbf16, #tpu.memory_space<vmem>>, vector<128x128xbf16>
      tpu.vector_store %arg6[%c0_15, %c0_16], %18 {strides = array<i32>} : memref<128x128xbf16, #tpu.memory_space<vmem>>, vector<128x128xbf16>,
    } else {
    }
    return
  }
  func.func @transform_0(%arg0: i32, %arg1: i32, %arg2: i32) -> (i32, i32) {
    %c0_i32 = arith.constant 0 : i32
    return %arg0, %arg2 : i32, i32
  }
  func.func @transform_1(%arg0: i32, %arg1: i32, %arg2: i32) -> (i32, i32) {
    %c0_i32 = arith.constant 0 : i32
    return %arg2, %arg1 : i32, i32
  }
  func.func @transform_2(%arg0: i32, %arg1: i32, %arg2: i32) -> (i32, i32) {
    %c0_i32 = arith.constant 0 : i32
    %c0_i32_0 = arith.constant 0 : i32
    return %c0_i32, %arg1 : i32, i32
  }
  func.func @transform_3(%arg0: i32, %arg1: i32, %arg2: i32) -> (i32, i32) {
    %c0_i32 = arith.constant 0 : i32
    return %arg0, %arg1 : i32, i32
  }
}

module attributes {stable_mosaic.version = 11 : i64} {
  func.func @_mm_kernel(%arg0: i32, %arg1: i32, %arg2: i32, %arg3: memref<128x128xbf16, #tpu.memory_space<vmem>>, %arg4: memref<128x128xbf16, #tpu.memory_space<vmem>>, %arg5: memref<1x128xf32, #tpu.memory_space<vmem>>, %arg6: memref<128x128xbf16, #tpu.memory_space<vmem>>, %arg7: memref<128x128xf32, #tpu.memory_space<vmem>>) attributes {dimension_semantics = [#tpu.dimension_semantics<parallel>, #tpu.dimension_semantics<parallel>, #tpu.dimension_semantics<arbitrary>], iteration_bounds = array<i64: 1, 1, 1>, scalar_prefetch = 0 : i64, scratch_operands = 1 : i64, tpu.core_type = #tpu.core_type<tc>, window_params = [{transform_indices = @transform_0, window_bounds = array<i64: 128, 128>}, {transform_indices = @transform_1, window_bounds = array<i64: 128, 128>}, {transform_indices = @transform_2, window_bounds = array<i64: 1, 128>}, {transform_indices = @transform_3, window_bounds = array<i64: 128, 128>}]} {
    %c0_i32 = arith.constant 0 : i32
    %0 = arith.cmpi eq, %arg2, %c0_i32 : i32
    %1 = arith.extui %0 : i1 to i32
    %c0_i32_0 = arith.constant 0 : i32
    %2 = arith.cmpi ne, %1, %c0_i32_0 : i32
    scf.if %2 {
      %cst_10 = arith.constant 0.000000e+00 : f32
      %12 = vector.broadcast %cst_10 : f32 to vector<128x128xf32>
      %c0_11 = arith.constant 0 : index
      %c0_12 = arith.constant 0 : index
      %13 = vector.load %arg7[%c0_11, %c0_12] : memref<128x128xf32, #tpu.memory_space<vmem>>, vector<128x128xf32>
      tpu.vector_store %arg7[%c0_11, %c0_12], %12 {strides = array<i32>} : memref<128x128xf32, #tpu.memory_space<vmem>>, vector<128x128xf32>,
    } else {
    }
    %c0 = arith.constant 0 : index
    %c0_1 = arith.constant 0 : index
    %3 = vector.load %arg7[%c0, %c0_1] : memref<128x128xf32, #tpu.memory_space<vmem>>, vector<128x128xf32>
    %c0_2 = arith.constant 0 : index
    %c0_3 = arith.constant 0 : index
    %4 = vector.load %arg3[%c0_2, %c0_3] : memref<128x128xbf16, #tpu.memory_space<vmem>>, vector<128x128xbf16>
    %c0_4 = arith.constant 0 : index
    %c0_5 = arith.constant 0 : index
    %5 = vector.load %arg4[%c0_4, %c0_5] : memref<128x128xbf16, #tpu.memory_space<vmem>>, vector<128x128xbf16>
    %cst = arith.constant dense<0.000000e+00> : vector<128x128xf32>
    %6 = tpu.matmul %4, %5, %cst {dimension_numbers = #tpu.dot_dimension_numbers<[1], [0], [0], [1], [0, 0, 1, 1], [], []>} : vector<128x128xbf16>, vector<128x128xbf16>, vector<128x128xf32> -> vector<128x128xf32>
    %7 = arith.addf %3, %6 : vector<128x128xf32>
    %c0_6 = arith.constant 0 : index
    %c0_7 = arith.constant 0 : index
    %8 = vector.load %arg7[%c0_6, %c0_7] : memref<128x128xf32, #tpu.memory_space<vmem>>, vector<128x128xf32>
    tpu.vector_store %arg7[%c0_6, %c0_7], %7 {strides = array<i32>} : memref<128x128xf32, #tpu.memory_space<vmem>>, vector<128x128xf32>,
    %c0_i32_8 = arith.constant 0 : i32
    %9 = arith.cmpi eq, %arg2, %c0_i32_8 : i32
    %10 = arith.extui %9 : i1 to i32
    %c0_i32_9 = arith.constant 0 : i32
    %11 = arith.cmpi ne, %10, %c0_i32_9 : i32
    scf.if %11 {
      %c0_10 = arith.constant 0 : index
      %c0_11 = arith.constant 0 : index
      %12 = vector.load %arg7[%c0_10, %c0_11] : memref<128x128xf32, #tpu.memory_space<vmem>>, vector<128x128xf32>
      %c0_12 = arith.constant 0 : index
      %c0_13 = arith.constant 0 : index
      %13 = vector.load %arg5[%c0_12, %c0_13] : memref<1x128xf32, #tpu.memory_space<vmem>>, vector<1x128xf32>
      %14 = vector.broadcast %13 : vector<1x128xf32> to vector<128x128xf32>
      %15 = arith.addf %12, %14 : vector<128x128xf32>
      %16 = arith.truncf %15 : vector<128x128xf32> to vector<128x128xbf16>
      %c0_14 = arith.constant 0 : index
      %c0_15 = arith.constant 0 : index
      %17 = vector.load %arg6[%c0_14, %c0_15] : memref<128x128xbf16, #tpu.memory_space<vmem>>, vector<128x128xbf16>
      tpu.vector_store %arg6[%c0_14, %c0_15], %16 {strides = array<i32>} : memref<128x128xbf16, #tpu.memory_space<vmem>>, vector<128x128xbf16>,
    } else {
    }
    return
  }
  func.func @transform_0(%arg0: i32, %arg1: i32, %arg2: i32) -> (i32, i32) {
    %c0_i32 = arith.constant 0 : i32
    return %arg0, %arg2 : i32, i32
  }
  func.func @transform_1(%arg0: i32, %arg1: i32, %arg2: i32) -> (i32, i32) {
    %c0_i32 = arith.constant 0 : i32
    return %arg2, %arg1 : i32, i32
  }
  func.func @transform_2(%arg0: i32, %arg1: i32, %arg2: i32) -> (i32, i32) {
    %c0_i32 = arith.constant 0 : i32
    %c0_i32_0 = arith.constant 0 : i32
    return %c0_i32, %arg1 : i32, i32
  }
  func.func @transform_3(%arg0: i32, %arg1: i32, %arg2: i32) -> (i32, i32) {
    %c0_i32 = arith.constant 0 : i32
    return %arg0, %arg1 : i32, i32
  }
}

module attributes {stable_mosaic.version = 11 : i64} {
  func.func @_mm_res_kernel(%arg0: i32, %arg1: i32, %arg2: i32, %arg3: memref<128x384xbf16, #tpu.memory_space<vmem>>, %arg4: memref<384x128xbf16, #tpu.memory_space<vmem>>, %arg5: memref<1x128xf32, #tpu.memory_space<vmem>>, %arg6: memref<128x128xbf16, #tpu.memory_space<vmem>>, %arg7: memref<128x128xbf16, #tpu.memory_space<vmem>>, %arg8: memref<128x128xf32, #tpu.memory_space<vmem>>) attributes {dimension_semantics = [#tpu.dimension_semantics<parallel>, #tpu.dimension_semantics<parallel>, #tpu.dimension_semantics<arbitrary>], iteration_bounds = array<i64: 1, 1, 3>, scalar_prefetch = 0 : i64, scratch_operands = 1 : i64, tpu.core_type = #tpu.core_type<tc>, window_params = [{transform_indices = @transform_0, window_bounds = array<i64: 128, 384>}, {transform_indices = @transform_1, window_bounds = array<i64: 384, 128>}, {transform_indices = @transform_2, window_bounds = array<i64: 1, 128>}, {transform_indices = @transform_3, window_bounds = array<i64: 128, 128>}, {transform_indices = @transform_4, window_bounds = array<i64: 128, 128>}]} {
    %c0_i32 = arith.constant 0 : i32
    %0 = arith.cmpi eq, %arg2, %c0_i32 : i32
    %1 = arith.extui %0 : i1 to i32
    %c0_i32_0 = arith.constant 0 : i32
    %2 = arith.cmpi ne, %1, %c0_i32_0 : i32
    scf.if %2 {
      %cst_9 = arith.constant 0.000000e+00 : f32
      %12 = vector.broadcast %cst_9 : f32 to vector<128x128xf32>
      %c0_10 = arith.constant 0 : index
      %c0_11 = arith.constant 0 : index
      %13 = vector.load %arg8[%c0_10, %c0_11] : memref<128x128xf32, #tpu.memory_space<vmem>>, vector<128x128xf32>
      tpu.vector_store %arg8[%c0_10, %c0_11], %12 {strides = array<i32>} : memref<128x128xf32, #tpu.memory_space<vmem>>, vector<128x128xf32>,
    } else {
    }
    %c0 = arith.constant 0 : index
    %c0_1 = arith.constant 0 : index
    %3 = vector.load %arg8[%c0, %c0_1] : memref<128x128xf32, #tpu.memory_space<vmem>>, vector<128x128xf32>
    %c0_2 = arith.constant 0 : index
    %c0_3 = arith.constant 0 : index
    %4 = vector.load %arg3[%c0_2, %c0_3] : memref<128x384xbf16, #tpu.memory_space<vmem>>, vector<128x384xbf16>
    %c0_4 = arith.constant 0 : index
    %c0_5 = arith.constant 0 : index
    %5 = vector.load %arg4[%c0_4, %c0_5] : memref<384x128xbf16, #tpu.memory_space<vmem>>, vector<384x128xbf16>
    %cst = arith.constant dense<0.000000e+00> : vector<128x128xf32>
    %6 = tpu.matmul %4, %5, %cst {dimension_numbers = #tpu.dot_dimension_numbers<[1], [0], [0], [1], [0, 0, 1, 1], [], []>} : vector<128x384xbf16>, vector<384x128xbf16>, vector<128x128xf32> -> vector<128x128xf32>
    %7 = arith.addf %3, %6 : vector<128x128xf32>
    %c0_6 = arith.constant 0 : index
    %c0_7 = arith.constant 0 : index
    %8 = vector.load %arg8[%c0_6, %c0_7] : memref<128x128xf32, #tpu.memory_space<vmem>>, vector<128x128xf32>
    tpu.vector_store %arg8[%c0_6, %c0_7], %7 {strides = array<i32>} : memref<128x128xf32, #tpu.memory_space<vmem>>, vector<128x128xf32>,
    %c2_i32 = arith.constant 2 : i32
    %9 = arith.cmpi eq, %arg2, %c2_i32 : i32
    %10 = arith.extui %9 : i1 to i32
    %c0_i32_8 = arith.constant 0 : i32
    %11 = arith.cmpi ne, %10, %c0_i32_8 : i32
    scf.if %11 {
      %c0_9 = arith.constant 0 : index
      %c0_10 = arith.constant 0 : index
      %12 = vector.load %arg8[%c0_9, %c0_10] : memref<128x128xf32, #tpu.memory_space<vmem>>, vector<128x128xf32>
      %c0_11 = arith.constant 0 : index
      %c0_12 = arith.constant 0 : index
      %13 = vector.load %arg5[%c0_11, %c0_12] : memref<1x128xf32, #tpu.memory_space<vmem>>, vector<1x128xf32>
      %14 = vector.broadcast %13 : vector<1x128xf32> to vector<128x128xf32>
      %15 = arith.addf %12, %14 : vector<128x128xf32>
      %c0_13 = arith.constant 0 : index
      %c0_14 = arith.constant 0 : index
      %16 = vector.load %arg6[%c0_13, %c0_14] : memref<128x128xbf16, #tpu.memory_space<vmem>>, vector<128x128xbf16>
      %17 = arith.extf %16 : vector<128x128xbf16> to vector<128x128xf32>
      %18 = arith.addf %15, %17 : vector<128x128xf32>
      %cst_15 = arith.constant 0.000000e+00 : f32
      %19 = vector.broadcast %cst_15 : f32 to vector<128x128xf32>
      %20 = arith.maximumf %18, %19 : vector<128x128xf32>
      %21 = arith.truncf %20 : vector<128x128xf32> to vector<128x128xbf16>
      %c0_16 = arith.constant 0 : index
      %c0_17 = arith.constant 0 : index
      %22 = vector.load %arg7[%c0_16, %c0_17] : memref<128x128xbf16, #tpu.memory_space<vmem>>, vector<128x128xbf16>
      tpu.vector_store %arg7[%c0_16, %c0_17], %21 {strides = array<i32>} : memref<128x128xbf16, #tpu.memory_space<vmem>>, vector<128x128xbf16>,
    } else {
    }
    return
  }
  func.func @transform_0(%arg0: i32, %arg1: i32, %arg2: i32) -> (i32, i32) {
    %c0_i32 = arith.constant 0 : i32
    return %arg0, %arg2 : i32, i32
  }
  func.func @transform_1(%arg0: i32, %arg1: i32, %arg2: i32) -> (i32, i32) {
    %c0_i32 = arith.constant 0 : i32
    return %arg2, %arg1 : i32, i32
  }
  func.func @transform_2(%arg0: i32, %arg1: i32, %arg2: i32) -> (i32, i32) {
    %c0_i32 = arith.constant 0 : i32
    %c0_i32_0 = arith.constant 0 : i32
    return %c0_i32, %arg1 : i32, i32
  }
  func.func @transform_3(%arg0: i32, %arg1: i32, %arg2: i32) -> (i32, i32) {
    %c0_i32 = arith.constant 0 : i32
    return %arg0, %arg1 : i32, i32
  }
  func.func @transform_4(%arg0: i32, %arg1: i32, %arg2: i32) -> (i32, i32) {
    %c0_i32 = arith.constant 0 : i32
    return %arg0, %arg1 : i32, i32
  }
}

module attributes {stable_mosaic.version = 11 : i64} {
  func.func @_mm_kernel(%arg0: i32, %arg1: i32, %arg2: i32, %arg3: memref<32x384xbf16, #tpu.memory_space<vmem>>, %arg4: memref<384x256xbf16, #tpu.memory_space<vmem>>, %arg5: memref<1x256xf32, #tpu.memory_space<vmem>>, %arg6: memref<32x256xbf16, #tpu.memory_space<vmem>>, %arg7: memref<32x256xf32, #tpu.memory_space<vmem>>) attributes {dimension_semantics = [#tpu.dimension_semantics<parallel>, #tpu.dimension_semantics<parallel>, #tpu.dimension_semantics<arbitrary>], iteration_bounds = array<i64: 1, 1, 3>, scalar_prefetch = 0 : i64, scratch_operands = 1 : i64, tpu.core_type = #tpu.core_type<tc>, window_params = [{transform_indices = @transform_0, window_bounds = array<i64: 32, 384>}, {transform_indices = @transform_1, window_bounds = array<i64: 384, 256>}, {transform_indices = @transform_2, window_bounds = array<i64: 1, 256>}, {transform_indices = @transform_3, window_bounds = array<i64: 32, 256>}]} {
    %c0_i32 = arith.constant 0 : i32
    %0 = arith.cmpi eq, %arg2, %c0_i32 : i32
    %1 = arith.extui %0 : i1 to i32
    %c0_i32_0 = arith.constant 0 : i32
    %2 = arith.cmpi ne, %1, %c0_i32_0 : i32
    scf.if %2 {
      %cst_9 = arith.constant 0.000000e+00 : f32
      %12 = vector.broadcast %cst_9 : f32 to vector<32x256xf32>
      %c0_10 = arith.constant 0 : index
      %c0_11 = arith.constant 0 : index
      %13 = vector.load %arg7[%c0_10, %c0_11] : memref<32x256xf32, #tpu.memory_space<vmem>>, vector<32x256xf32>
      tpu.vector_store %arg7[%c0_10, %c0_11], %12 {strides = array<i32>} : memref<32x256xf32, #tpu.memory_space<vmem>>, vector<32x256xf32>,
    } else {
    }
    %c0 = arith.constant 0 : index
    %c0_1 = arith.constant 0 : index
    %3 = vector.load %arg7[%c0, %c0_1] : memref<32x256xf32, #tpu.memory_space<vmem>>, vector<32x256xf32>
    %c0_2 = arith.constant 0 : index
    %c0_3 = arith.constant 0 : index
    %4 = vector.load %arg3[%c0_2, %c0_3] : memref<32x384xbf16, #tpu.memory_space<vmem>>, vector<32x384xbf16>
    %c0_4 = arith.constant 0 : index
    %c0_5 = arith.constant 0 : index
    %5 = vector.load %arg4[%c0_4, %c0_5] : memref<384x256xbf16, #tpu.memory_space<vmem>>, vector<384x256xbf16>
    %cst = arith.constant dense<0.000000e+00> : vector<32x256xf32>
    %6 = tpu.matmul %4, %5, %cst {dimension_numbers = #tpu.dot_dimension_numbers<[1], [0], [0], [1], [0, 0, 1, 1], [], []>} : vector<32x384xbf16>, vector<384x256xbf16>, vector<32x256xf32> -> vector<32x256xf32>
    %7 = arith.addf %3, %6 : vector<32x256xf32>
    %c0_6 = arith.constant 0 : index
    %c0_7 = arith.constant 0 : index
    %8 = vector.load %arg7[%c0_6, %c0_7] : memref<32x256xf32, #tpu.memory_space<vmem>>, vector<32x256xf32>
    tpu.vector_store %arg7[%c0_6, %c0_7], %7 {strides = array<i32>} : memref<32x256xf32, #tpu.memory_space<vmem>>, vector<32x256xf32>,
    %c2_i32 = arith.constant 2 : i32
    %9 = arith.cmpi eq, %arg2, %c2_i32 : i32
    %10 = arith.extui %9 : i1 to i32
    %c0_i32_8 = arith.constant 0 : i32
    %11 = arith.cmpi ne, %10, %c0_i32_8 : i32
    scf.if %11 {
      %c0_9 = arith.constant 0 : index
      %c0_10 = arith.constant 0 : index
      %12 = vector.load %arg7[%c0_9, %c0_10] : memref<32x256xf32, #tpu.memory_space<vmem>>, vector<32x256xf32>
      %c0_11 = arith.constant 0 : index
      %c0_12 = arith.constant 0 : index
      %13 = vector.load %arg5[%c0_11, %c0_12] : memref<1x256xf32, #tpu.memory_space<vmem>>, vector<1x256xf32>
      %14 = vector.broadcast %13 : vector<1x256xf32> to vector<32x256xf32>
      %15 = arith.addf %12, %14 : vector<32x256xf32>
      %cst_13 = arith.constant 0.000000e+00 : f32
      %16 = vector.broadcast %cst_13 : f32 to vector<32x256xf32>
      %17 = arith.maximumf %15, %16 : vector<32x256xf32>
      %18 = arith.truncf %17 : vector<32x256xf32> to vector<32x256xbf16>
      %c0_14 = arith.constant 0 : index
      %c0_15 = arith.constant 0 : index
      %19 = vector.load %arg6[%c0_14, %c0_15] : memref<32x256xbf16, #tpu.memory_space<vmem>>, vector<32x256xbf16>
      tpu.vector_store %arg6[%c0_14, %c0_15], %18 {strides = array<i32>} : memref<32x256xbf16, #tpu.memory_space<vmem>>, vector<32x256xbf16>,
    } else {
    }
    return
  }
  func.func @transform_0(%arg0: i32, %arg1: i32, %arg2: i32) -> (i32, i32) {
    %c0_i32 = arith.constant 0 : i32
    return %arg0, %arg2 : i32, i32
  }
  func.func @transform_1(%arg0: i32, %arg1: i32, %arg2: i32) -> (i32, i32) {
    %c0_i32 = arith.constant 0 : i32
    return %arg2, %arg1 : i32, i32
  }
  func.func @transform_2(%arg0: i32, %arg1: i32, %arg2: i32) -> (i32, i32) {
    %c0_i32 = arith.constant 0 : i32
    %c0_i32_0 = arith.constant 0 : i32
    return %c0_i32, %arg1 : i32, i32
  }
  func.func @transform_3(%arg0: i32, %arg1: i32, %arg2: i32) -> (i32, i32) {
    %c0_i32 = arith.constant 0 : i32
    return %arg0, %arg1 : i32, i32
  }
}

module attributes {stable_mosaic.version = 11 : i64} {
  func.func @_mm_kernel(%arg0: i32, %arg1: i32, %arg2: i32, %arg3: memref<32x128xbf16, #tpu.memory_space<vmem>>, %arg4: memref<128x256xbf16, #tpu.memory_space<vmem>>, %arg5: memref<1x256xf32, #tpu.memory_space<vmem>>, %arg6: memref<32x256xbf16, #tpu.memory_space<vmem>>, %arg7: memref<32x256xf32, #tpu.memory_space<vmem>>) attributes {dimension_semantics = [#tpu.dimension_semantics<parallel>, #tpu.dimension_semantics<parallel>, #tpu.dimension_semantics<arbitrary>], iteration_bounds = array<i64: 1, 1, 1>, scalar_prefetch = 0 : i64, scratch_operands = 1 : i64, tpu.core_type = #tpu.core_type<tc>, window_params = [{transform_indices = @transform_0, window_bounds = array<i64: 32, 128>}, {transform_indices = @transform_1, window_bounds = array<i64: 128, 256>}, {transform_indices = @transform_2, window_bounds = array<i64: 1, 256>}, {transform_indices = @transform_3, window_bounds = array<i64: 32, 256>}]} {
    %c0_i32 = arith.constant 0 : i32
    %0 = arith.cmpi eq, %arg2, %c0_i32 : i32
    %1 = arith.extui %0 : i1 to i32
    %c0_i32_0 = arith.constant 0 : i32
    %2 = arith.cmpi ne, %1, %c0_i32_0 : i32
    scf.if %2 {
      %cst_10 = arith.constant 0.000000e+00 : f32
      %12 = vector.broadcast %cst_10 : f32 to vector<32x256xf32>
      %c0_11 = arith.constant 0 : index
      %c0_12 = arith.constant 0 : index
      %13 = vector.load %arg7[%c0_11, %c0_12] : memref<32x256xf32, #tpu.memory_space<vmem>>, vector<32x256xf32>
      tpu.vector_store %arg7[%c0_11, %c0_12], %12 {strides = array<i32>} : memref<32x256xf32, #tpu.memory_space<vmem>>, vector<32x256xf32>,
    } else {
    }
    %c0 = arith.constant 0 : index
    %c0_1 = arith.constant 0 : index
    %3 = vector.load %arg7[%c0, %c0_1] : memref<32x256xf32, #tpu.memory_space<vmem>>, vector<32x256xf32>
    %c0_2 = arith.constant 0 : index
    %c0_3 = arith.constant 0 : index
    %4 = vector.load %arg3[%c0_2, %c0_3] : memref<32x128xbf16, #tpu.memory_space<vmem>>, vector<32x128xbf16>
    %c0_4 = arith.constant 0 : index
    %c0_5 = arith.constant 0 : index
    %5 = vector.load %arg4[%c0_4, %c0_5] : memref<128x256xbf16, #tpu.memory_space<vmem>>, vector<128x256xbf16>
    %cst = arith.constant dense<0.000000e+00> : vector<32x256xf32>
    %6 = tpu.matmul %4, %5, %cst {dimension_numbers = #tpu.dot_dimension_numbers<[1], [0], [0], [1], [0, 0, 1, 1], [], []>} : vector<32x128xbf16>, vector<128x256xbf16>, vector<32x256xf32> -> vector<32x256xf32>
    %7 = arith.addf %3, %6 : vector<32x256xf32>
    %c0_6 = arith.constant 0 : index
    %c0_7 = arith.constant 0 : index
    %8 = vector.load %arg7[%c0_6, %c0_7] : memref<32x256xf32, #tpu.memory_space<vmem>>, vector<32x256xf32>
    tpu.vector_store %arg7[%c0_6, %c0_7], %7 {strides = array<i32>} : memref<32x256xf32, #tpu.memory_space<vmem>>, vector<32x256xf32>,
    %c0_i32_8 = arith.constant 0 : i32
    %9 = arith.cmpi eq, %arg2, %c0_i32_8 : i32
    %10 = arith.extui %9 : i1 to i32
    %c0_i32_9 = arith.constant 0 : i32
    %11 = arith.cmpi ne, %10, %c0_i32_9 : i32
    scf.if %11 {
      %c0_10 = arith.constant 0 : index
      %c0_11 = arith.constant 0 : index
      %12 = vector.load %arg7[%c0_10, %c0_11] : memref<32x256xf32, #tpu.memory_space<vmem>>, vector<32x256xf32>
      %c0_12 = arith.constant 0 : index
      %c0_13 = arith.constant 0 : index
      %13 = vector.load %arg5[%c0_12, %c0_13] : memref<1x256xf32, #tpu.memory_space<vmem>>, vector<1x256xf32>
      %14 = vector.broadcast %13 : vector<1x256xf32> to vector<32x256xf32>
      %15 = arith.addf %12, %14 : vector<32x256xf32>
      %16 = arith.truncf %15 : vector<32x256xf32> to vector<32x256xbf16>
      %c0_14 = arith.constant 0 : index
      %c0_15 = arith.constant 0 : index
      %17 = vector.load %arg6[%c0_14, %c0_15] : memref<32x256xbf16, #tpu.memory_space<vmem>>, vector<32x256xbf16>
      tpu.vector_store %arg6[%c0_14, %c0_15], %16 {strides = array<i32>} : memref<32x256xbf16, #tpu.memory_space<vmem>>, vector<32x256xbf16>,
    } else {
    }
    return
  }
  func.func @transform_0(%arg0: i32, %arg1: i32, %arg2: i32) -> (i32, i32) {
    %c0_i32 = arith.constant 0 : i32
    return %arg0, %arg2 : i32, i32
  }
  func.func @transform_1(%arg0: i32, %arg1: i32, %arg2: i32) -> (i32, i32) {
    %c0_i32 = arith.constant 0 : i32
    return %arg2, %arg1 : i32, i32
  }
  func.func @transform_2(%arg0: i32, %arg1: i32, %arg2: i32) -> (i32, i32) {
    %c0_i32 = arith.constant 0 : i32
    %c0_i32_0 = arith.constant 0 : i32
    return %c0_i32, %arg1 : i32, i32
  }
  func.func @transform_3(%arg0: i32, %arg1: i32, %arg2: i32) -> (i32, i32) {
    %c0_i32 = arith.constant 0 : i32
    return %arg0, %arg1 : i32, i32
  }
}

module attributes {stable_mosaic.version = 11 : i64} {
  func.func @_mm_res_kernel(%arg0: i32, %arg1: i32, %arg2: i32, %arg3: memref<32x384xbf16, #tpu.memory_space<vmem>>, %arg4: memref<384x256xbf16, #tpu.memory_space<vmem>>, %arg5: memref<1x256xf32, #tpu.memory_space<vmem>>, %arg6: memref<32x256xbf16, #tpu.memory_space<vmem>>, %arg7: memref<32x256xbf16, #tpu.memory_space<vmem>>, %arg8: memref<32x256xf32, #tpu.memory_space<vmem>>) attributes {dimension_semantics = [#tpu.dimension_semantics<parallel>, #tpu.dimension_semantics<parallel>, #tpu.dimension_semantics<arbitrary>], iteration_bounds = array<i64: 1, 1, 6>, scalar_prefetch = 0 : i64, scratch_operands = 1 : i64, tpu.core_type = #tpu.core_type<tc>, window_params = [{transform_indices = @transform_0, window_bounds = array<i64: 32, 384>}, {transform_indices = @transform_1, window_bounds = array<i64: 384, 256>}, {transform_indices = @transform_2, window_bounds = array<i64: 1, 256>}, {transform_indices = @transform_3, window_bounds = array<i64: 32, 256>}, {transform_indices = @transform_4, window_bounds = array<i64: 32, 256>}]} {
    %c0_i32 = arith.constant 0 : i32
    %0 = arith.cmpi eq, %arg2, %c0_i32 : i32
    %1 = arith.extui %0 : i1 to i32
    %c0_i32_0 = arith.constant 0 : i32
    %2 = arith.cmpi ne, %1, %c0_i32_0 : i32
    scf.if %2 {
      %cst_9 = arith.constant 0.000000e+00 : f32
      %12 = vector.broadcast %cst_9 : f32 to vector<32x256xf32>
      %c0_10 = arith.constant 0 : index
      %c0_11 = arith.constant 0 : index
      %13 = vector.load %arg8[%c0_10, %c0_11] : memref<32x256xf32, #tpu.memory_space<vmem>>, vector<32x256xf32>
      tpu.vector_store %arg8[%c0_10, %c0_11], %12 {strides = array<i32>} : memref<32x256xf32, #tpu.memory_space<vmem>>, vector<32x256xf32>,
    } else {
    }
    %c0 = arith.constant 0 : index
    %c0_1 = arith.constant 0 : index
    %3 = vector.load %arg8[%c0, %c0_1] : memref<32x256xf32, #tpu.memory_space<vmem>>, vector<32x256xf32>
    %c0_2 = arith.constant 0 : index
    %c0_3 = arith.constant 0 : index
    %4 = vector.load %arg3[%c0_2, %c0_3] : memref<32x384xbf16, #tpu.memory_space<vmem>>, vector<32x384xbf16>
    %c0_4 = arith.constant 0 : index
    %c0_5 = arith.constant 0 : index
    %5 = vector.load %arg4[%c0_4, %c0_5] : memref<384x256xbf16, #tpu.memory_space<vmem>>, vector<384x256xbf16>
    %cst = arith.constant dense<0.000000e+00> : vector<32x256xf32>
    %6 = tpu.matmul %4, %5, %cst {dimension_numbers = #tpu.dot_dimension_numbers<[1], [0], [0], [1], [0, 0, 1, 1], [], []>} : vector<32x384xbf16>, vector<384x256xbf16>, vector<32x256xf32> -> vector<32x256xf32>
    %7 = arith.addf %3, %6 : vector<32x256xf32>
    %c0_6 = arith.constant 0 : index
    %c0_7 = arith.constant 0 : index
    %8 = vector.load %arg8[%c0_6, %c0_7] : memref<32x256xf32, #tpu.memory_space<vmem>>, vector<32x256xf32>
    tpu.vector_store %arg8[%c0_6, %c0_7], %7 {strides = array<i32>} : memref<32x256xf32, #tpu.memory_space<vmem>>, vector<32x256xf32>,
    %c5_i32 = arith.constant 5 : i32
    %9 = arith.cmpi eq, %arg2, %c5_i32 : i32
    %10 = arith.extui %9 : i1 to i32
    %c0_i32_8 = arith.constant 0 : i32
    %11 = arith.cmpi ne, %10, %c0_i32_8 : i32
    scf.if %11 {
      %c0_9 = arith.constant 0 : index
      %c0_10 = arith.constant 0 : index
      %12 = vector.load %arg8[%c0_9, %c0_10] : memref<32x256xf32, #tpu.memory_space<vmem>>, vector<32x256xf32>
      %c0_11 = arith.constant 0 : index
      %c0_12 = arith.constant 0 : index
      %13 = vector.load %arg5[%c0_11, %c0_12] : memref<1x256xf32, #tpu.memory_space<vmem>>, vector<1x256xf32>
      %14 = vector.broadcast %13 : vector<1x256xf32> to vector<32x256xf32>
      %15 = arith.addf %12, %14 : vector<32x256xf32>
      %c0_13 = arith.constant 0 : index
      %c0_14 = arith.constant 0 : index
      %16 = vector.load %arg6[%c0_13, %c0_14] : memref<32x256xbf16, #tpu.memory_space<vmem>>, vector<32x256xbf16>
      %17 = arith.extf %16 : vector<32x256xbf16> to vector<32x256xf32>
      %18 = arith.addf %15, %17 : vector<32x256xf32>
      %cst_15 = arith.constant 0.000000e+00 : f32
      %19 = vector.broadcast %cst_15 : f32 to vector<32x256xf32>
      %20 = arith.maximumf %18, %19 : vector<32x256xf32>
      %21 = arith.truncf %20 : vector<32x256xf32> to vector<32x256xbf16>
      %c0_16 = arith.constant 0 : index
      %c0_17 = arith.constant 0 : index
      %22 = vector.load %arg7[%c0_16, %c0_17] : memref<32x256xbf16, #tpu.memory_space<vmem>>, vector<32x256xbf16>
      tpu.vector_store %arg7[%c0_16, %c0_17], %21 {strides = array<i32>} : memref<32x256xbf16, #tpu.memory_space<vmem>>, vector<32x256xbf16>,
    } else {
    }
    return
  }
  func.func @transform_0(%arg0: i32, %arg1: i32, %arg2: i32) -> (i32, i32) {
    %c0_i32 = arith.constant 0 : i32
    return %arg0, %arg2 : i32, i32
  }
  func.func @transform_1(%arg0: i32, %arg1: i32, %arg2: i32) -> (i32, i32) {
    %c0_i32 = arith.constant 0 : i32
    return %arg2, %arg1 : i32, i32
  }
  func.func @transform_2(%arg0: i32, %arg1: i32, %arg2: i32) -> (i32, i32) {
    %c0_i32 = arith.constant 0 : i32
    %c0_i32_0 = arith.constant 0 : i32
    return %c0_i32, %arg1 : i32, i32
  }
  func.func @transform_3(%arg0: i32, %arg1: i32, %arg2: i32) -> (i32, i32) {
    %c0_i32 = arith.constant 0 : i32
    return %arg0, %arg1 : i32, i32
  }
  func.func @transform_4(%arg0: i32, %arg1: i32, %arg2: i32) -> (i32, i32) {
    %c0_i32 = arith.constant 0 : i32
    return %arg0, %arg1 : i32, i32
  }
}

module attributes {stable_mosaic.version = 11 : i64} {
  func.func @_mm_kernel(%arg0: i32, %arg1: i32, %arg2: i32, %arg3: memref<16x384xbf16, #tpu.memory_space<vmem>>, %arg4: memref<384x512xbf16, #tpu.memory_space<vmem>>, %arg5: memref<1x512xf32, #tpu.memory_space<vmem>>, %arg6: memref<16x512xbf16, #tpu.memory_space<vmem>>, %arg7: memref<16x512xf32, #tpu.memory_space<vmem>>) attributes {dimension_semantics = [#tpu.dimension_semantics<parallel>, #tpu.dimension_semantics<parallel>, #tpu.dimension_semantics<arbitrary>], iteration_bounds = array<i64: 1, 1, 6>, scalar_prefetch = 0 : i64, scratch_operands = 1 : i64, tpu.core_type = #tpu.core_type<tc>, window_params = [{transform_indices = @transform_0, window_bounds = array<i64: 16, 384>}, {transform_indices = @transform_1, window_bounds = array<i64: 384, 512>}, {transform_indices = @transform_2, window_bounds = array<i64: 1, 512>}, {transform_indices = @transform_3, window_bounds = array<i64: 16, 512>}]} {
    %c0_i32 = arith.constant 0 : i32
    %0 = arith.cmpi eq, %arg2, %c0_i32 : i32
    %1 = arith.extui %0 : i1 to i32
    %c0_i32_0 = arith.constant 0 : i32
    %2 = arith.cmpi ne, %1, %c0_i32_0 : i32
    scf.if %2 {
      %cst_9 = arith.constant 0.000000e+00 : f32
      %12 = vector.broadcast %cst_9 : f32 to vector<16x512xf32>
      %c0_10 = arith.constant 0 : index
      %c0_11 = arith.constant 0 : index
      %13 = vector.load %arg7[%c0_10, %c0_11] : memref<16x512xf32, #tpu.memory_space<vmem>>, vector<16x512xf32>
      tpu.vector_store %arg7[%c0_10, %c0_11], %12 {strides = array<i32>} : memref<16x512xf32, #tpu.memory_space<vmem>>, vector<16x512xf32>,
    } else {
    }
    %c0 = arith.constant 0 : index
    %c0_1 = arith.constant 0 : index
    %3 = vector.load %arg7[%c0, %c0_1] : memref<16x512xf32, #tpu.memory_space<vmem>>, vector<16x512xf32>
    %c0_2 = arith.constant 0 : index
    %c0_3 = arith.constant 0 : index
    %4 = vector.load %arg3[%c0_2, %c0_3] : memref<16x384xbf16, #tpu.memory_space<vmem>>, vector<16x384xbf16>
    %c0_4 = arith.constant 0 : index
    %c0_5 = arith.constant 0 : index
    %5 = vector.load %arg4[%c0_4, %c0_5] : memref<384x512xbf16, #tpu.memory_space<vmem>>, vector<384x512xbf16>
    %cst = arith.constant dense<0.000000e+00> : vector<16x512xf32>
    %6 = tpu.matmul %4, %5, %cst {dimension_numbers = #tpu.dot_dimension_numbers<[1], [0], [0], [1], [0, 0, 1, 1], [], []>} : vector<16x384xbf16>, vector<384x512xbf16>, vector<16x512xf32> -> vector<16x512xf32>
    %7 = arith.addf %3, %6 : vector<16x512xf32>
    %c0_6 = arith.constant 0 : index
    %c0_7 = arith.constant 0 : index
    %8 = vector.load %arg7[%c0_6, %c0_7] : memref<16x512xf32, #tpu.memory_space<vmem>>, vector<16x512xf32>
    tpu.vector_store %arg7[%c0_6, %c0_7], %7 {strides = array<i32>} : memref<16x512xf32, #tpu.memory_space<vmem>>, vector<16x512xf32>,
    %c5_i32 = arith.constant 5 : i32
    %9 = arith.cmpi eq, %arg2, %c5_i32 : i32
    %10 = arith.extui %9 : i1 to i32
    %c0_i32_8 = arith.constant 0 : i32
    %11 = arith.cmpi ne, %10, %c0_i32_8 : i32
    scf.if %11 {
      %c0_9 = arith.constant 0 : index
      %c0_10 = arith.constant 0 : index
      %12 = vector.load %arg7[%c0_9, %c0_10] : memref<16x512xf32, #tpu.memory_space<vmem>>, vector<16x512xf32>
      %c0_11 = arith.constant 0 : index
      %c0_12 = arith.constant 0 : index
      %13 = vector.load %arg5[%c0_11, %c0_12] : memref<1x512xf32, #tpu.memory_space<vmem>>, vector<1x512xf32>
      %14 = vector.broadcast %13 : vector<1x512xf32> to vector<16x512xf32>
      %15 = arith.addf %12, %14 : vector<16x512xf32>
      %cst_13 = arith.constant 0.000000e+00 : f32
      %16 = vector.broadcast %cst_13 : f32 to vector<16x512xf32>
      %17 = arith.maximumf %15, %16 : vector<16x512xf32>
      %18 = arith.truncf %17 : vector<16x512xf32> to vector<16x512xbf16>
      %c0_14 = arith.constant 0 : index
      %c0_15 = arith.constant 0 : index
      %19 = vector.load %arg6[%c0_14, %c0_15] : memref<16x512xbf16, #tpu.memory_space<vmem>>, vector<16x512xbf16>
      tpu.vector_store %arg6[%c0_14, %c0_15], %18 {strides = array<i32>} : memref<16x512xbf16, #tpu.memory_space<vmem>>, vector<16x512xbf16>,
    } else {
    }
    return
  }
  func.func @transform_0(%arg0: i32, %arg1: i32, %arg2: i32) -> (i32, i32) {
    %c0_i32 = arith.constant 0 : i32
    return %arg0, %arg2 : i32, i32
  }
  func.func @transform_1(%arg0: i32, %arg1: i32, %arg2: i32) -> (i32, i32) {
    %c0_i32 = arith.constant 0 : i32
    return %arg2, %arg1 : i32, i32
  }
  func.func @transform_2(%arg0: i32, %arg1: i32, %arg2: i32) -> (i32, i32) {
    %c0_i32 = arith.constant 0 : i32
    %c0_i32_0 = arith.constant 0 : i32
    return %c0_i32, %arg1 : i32, i32
  }
  func.func @transform_3(%arg0: i32, %arg1: i32, %arg2: i32) -> (i32, i32) {
    %c0_i32 = arith.constant 0 : i32
    return %arg0, %arg1 : i32, i32
  }
}

module attributes {stable_mosaic.version = 11 : i64} {
  func.func @_mm_kernel(%arg0: i32, %arg1: i32, %arg2: i32, %arg3: memref<16x256xbf16, #tpu.memory_space<vmem>>, %arg4: memref<256x512xbf16, #tpu.memory_space<vmem>>, %arg5: memref<1x512xf32, #tpu.memory_space<vmem>>, %arg6: memref<16x512xbf16, #tpu.memory_space<vmem>>, %arg7: memref<16x512xf32, #tpu.memory_space<vmem>>) attributes {dimension_semantics = [#tpu.dimension_semantics<parallel>, #tpu.dimension_semantics<parallel>, #tpu.dimension_semantics<arbitrary>], iteration_bounds = array<i64: 1, 1, 1>, scalar_prefetch = 0 : i64, scratch_operands = 1 : i64, tpu.core_type = #tpu.core_type<tc>, window_params = [{transform_indices = @transform_0, window_bounds = array<i64: 16, 256>}, {transform_indices = @transform_1, window_bounds = array<i64: 256, 512>}, {transform_indices = @transform_2, window_bounds = array<i64: 1, 512>}, {transform_indices = @transform_3, window_bounds = array<i64: 16, 512>}]} {
    %c0_i32 = arith.constant 0 : i32
    %0 = arith.cmpi eq, %arg2, %c0_i32 : i32
    %1 = arith.extui %0 : i1 to i32
    %c0_i32_0 = arith.constant 0 : i32
    %2 = arith.cmpi ne, %1, %c0_i32_0 : i32
    scf.if %2 {
      %cst_10 = arith.constant 0.000000e+00 : f32
      %12 = vector.broadcast %cst_10 : f32 to vector<16x512xf32>
      %c0_11 = arith.constant 0 : index
      %c0_12 = arith.constant 0 : index
      %13 = vector.load %arg7[%c0_11, %c0_12] : memref<16x512xf32, #tpu.memory_space<vmem>>, vector<16x512xf32>
      tpu.vector_store %arg7[%c0_11, %c0_12], %12 {strides = array<i32>} : memref<16x512xf32, #tpu.memory_space<vmem>>, vector<16x512xf32>,
    } else {
    }
    %c0 = arith.constant 0 : index
    %c0_1 = arith.constant 0 : index
    %3 = vector.load %arg7[%c0, %c0_1] : memref<16x512xf32, #tpu.memory_space<vmem>>, vector<16x512xf32>
    %c0_2 = arith.constant 0 : index
    %c0_3 = arith.constant 0 : index
    %4 = vector.load %arg3[%c0_2, %c0_3] : memref<16x256xbf16, #tpu.memory_space<vmem>>, vector<16x256xbf16>
    %c0_4 = arith.constant 0 : index
    %c0_5 = arith.constant 0 : index
    %5 = vector.load %arg4[%c0_4, %c0_5] : memref<256x512xbf16, #tpu.memory_space<vmem>>, vector<256x512xbf16>
    %cst = arith.constant dense<0.000000e+00> : vector<16x512xf32>
    %6 = tpu.matmul %4, %5, %cst {dimension_numbers = #tpu.dot_dimension_numbers<[1], [0], [0], [1], [0, 0, 1, 1], [], []>} : vector<16x256xbf16>, vector<256x512xbf16>, vector<16x512xf32> -> vector<16x512xf32>
    %7 = arith.addf %3, %6 : vector<16x512xf32>
    %c0_6 = arith.constant 0 : index
    %c0_7 = arith.constant 0 : index
    %8 = vector.load %arg7[%c0_6, %c0_7] : memref<16x512xf32, #tpu.memory_space<vmem>>, vector<16x512xf32>
    tpu.vector_store %arg7[%c0_6, %c0_7], %7 {strides = array<i32>} : memref<16x512xf32, #tpu.memory_space<vmem>>, vector<16x512xf32>,
    %c0_i32_8 = arith.constant 0 : i32
    %9 = arith.cmpi eq, %arg2, %c0_i32_8 : i32
    %10 = arith.extui %9 : i1 to i32
    %c0_i32_9 = arith.constant 0 : i32
    %11 = arith.cmpi ne, %10, %c0_i32_9 : i32
    scf.if %11 {
      %c0_10 = arith.constant 0 : index
      %c0_11 = arith.constant 0 : index
      %12 = vector.load %arg7[%c0_10, %c0_11] : memref<16x512xf32, #tpu.memory_space<vmem>>, vector<16x512xf32>
      %c0_12 = arith.constant 0 : index
      %c0_13 = arith.constant 0 : index
      %13 = vector.load %arg5[%c0_12, %c0_13] : memref<1x512xf32, #tpu.memory_space<vmem>>, vector<1x512xf32>
      %14 = vector.broadcast %13 : vector<1x512xf32> to vector<16x512xf32>
      %15 = arith.addf %12, %14 : vector<16x512xf32>
      %16 = arith.truncf %15 : vector<16x512xf32> to vector<16x512xbf16>
      %c0_14 = arith.constant 0 : index
      %c0_15 = arith.constant 0 : index
      %17 = vector.load %arg6[%c0_14, %c0_15] : memref<16x512xbf16, #tpu.memory_space<vmem>>, vector<16x512xbf16>
      tpu.vector_store %arg6[%c0_14, %c0_15], %16 {strides = array<i32>} : memref<16x512xbf16, #tpu.memory_space<vmem>>, vector<16x512xbf16>,
    } else {
    }
    return
  }
  func.func @transform_0(%arg0: i32, %arg1: i32, %arg2: i32) -> (i32, i32) {
    %c0_i32 = arith.constant 0 : i32
    return %arg0, %arg2 : i32, i32
  }
  func.func @transform_1(%arg0: i32, %arg1: i32, %arg2: i32) -> (i32, i32) {
    %c0_i32 = arith.constant 0 : i32
    return %arg2, %arg1 : i32, i32
  }
  func.func @transform_2(%arg0: i32, %arg1: i32, %arg2: i32) -> (i32, i32) {
    %c0_i32 = arith.constant 0 : i32
    %c0_i32_0 = arith.constant 0 : i32
    return %c0_i32, %arg1 : i32, i32
  }
  func.func @transform_3(%arg0: i32, %arg1: i32, %arg2: i32) -> (i32, i32) {
    %c0_i32 = arith.constant 0 : i32
    return %arg0, %arg1 : i32, i32
  }
}

module attributes {stable_mosaic.version = 11 : i64} {
  func.func @_mm_res_kernel(%arg0: i32, %arg1: i32, %arg2: i32, %arg3: memref<16x512xbf16, #tpu.memory_space<vmem>>, %arg4: memref<512x512xbf16, #tpu.memory_space<vmem>>, %arg5: memref<1x512xf32, #tpu.memory_space<vmem>>, %arg6: memref<16x512xbf16, #tpu.memory_space<vmem>>, %arg7: memref<16x512xbf16, #tpu.memory_space<vmem>>, %arg8: memref<16x512xf32, #tpu.memory_space<vmem>>) attributes {dimension_semantics = [#tpu.dimension_semantics<parallel>, #tpu.dimension_semantics<parallel>, #tpu.dimension_semantics<arbitrary>], iteration_bounds = array<i64: 1, 1, 9>, scalar_prefetch = 0 : i64, scratch_operands = 1 : i64, tpu.core_type = #tpu.core_type<tc>, window_params = [{transform_indices = @transform_0, window_bounds = array<i64: 16, 512>}, {transform_indices = @transform_1, window_bounds = array<i64: 512, 512>}, {transform_indices = @transform_2, window_bounds = array<i64: 1, 512>}, {transform_indices = @transform_3, window_bounds = array<i64: 16, 512>}, {transform_indices = @transform_4, window_bounds = array<i64: 16, 512>}]} {
    %c0_i32 = arith.constant 0 : i32
    %0 = arith.cmpi eq, %arg2, %c0_i32 : i32
    %1 = arith.extui %0 : i1 to i32
    %c0_i32_0 = arith.constant 0 : i32
    %2 = arith.cmpi ne, %1, %c0_i32_0 : i32
    scf.if %2 {
      %cst_9 = arith.constant 0.000000e+00 : f32
      %12 = vector.broadcast %cst_9 : f32 to vector<16x512xf32>
      %c0_10 = arith.constant 0 : index
      %c0_11 = arith.constant 0 : index
      %13 = vector.load %arg8[%c0_10, %c0_11] : memref<16x512xf32, #tpu.memory_space<vmem>>, vector<16x512xf32>
      tpu.vector_store %arg8[%c0_10, %c0_11], %12 {strides = array<i32>} : memref<16x512xf32, #tpu.memory_space<vmem>>, vector<16x512xf32>,
    } else {
    }
    %c0 = arith.constant 0 : index
    %c0_1 = arith.constant 0 : index
    %3 = vector.load %arg8[%c0, %c0_1] : memref<16x512xf32, #tpu.memory_space<vmem>>, vector<16x512xf32>
    %c0_2 = arith.constant 0 : index
    %c0_3 = arith.constant 0 : index
    %4 = vector.load %arg3[%c0_2, %c0_3] : memref<16x512xbf16, #tpu.memory_space<vmem>>, vector<16x512xbf16>
    %c0_4 = arith.constant 0 : index
    %c0_5 = arith.constant 0 : index
    %5 = vector.load %arg4[%c0_4, %c0_5] : memref<512x512xbf16, #tpu.memory_space<vmem>>, vector<512x512xbf16>
    %cst = arith.constant dense<0.000000e+00> : vector<16x512xf32>
    %6 = tpu.matmul %4, %5, %cst {dimension_numbers = #tpu.dot_dimension_numbers<[1], [0], [0], [1], [0, 0, 1, 1], [], []>} : vector<16x512xbf16>, vector<512x512xbf16>, vector<16x512xf32> -> vector<16x512xf32>
    %7 = arith.addf %3, %6 : vector<16x512xf32>
    %c0_6 = arith.constant 0 : index
    %c0_7 = arith.constant 0 : index
    %8 = vector.load %arg8[%c0_6, %c0_7] : memref<16x512xf32, #tpu.memory_space<vmem>>, vector<16x512xf32>
    tpu.vector_store %arg8[%c0_6, %c0_7], %7 {strides = array<i32>} : memref<16x512xf32, #tpu.memory_space<vmem>>, vector<16x512xf32>,
    %c8_i32 = arith.constant 8 : i32
    %9 = arith.cmpi eq, %arg2, %c8_i32 : i32
    %10 = arith.extui %9 : i1 to i32
    %c0_i32_8 = arith.constant 0 : i32
    %11 = arith.cmpi ne, %10, %c0_i32_8 : i32
    scf.if %11 {
      %c0_9 = arith.constant 0 : index
      %c0_10 = arith.constant 0 : index
      %12 = vector.load %arg8[%c0_9, %c0_10] : memref<16x512xf32, #tpu.memory_space<vmem>>, vector<16x512xf32>
      %c0_11 = arith.constant 0 : index
      %c0_12 = arith.constant 0 : index
      %13 = vector.load %arg5[%c0_11, %c0_12] : memref<1x512xf32, #tpu.memory_space<vmem>>, vector<1x512xf32>
      %14 = vector.broadcast %13 : vector<1x512xf32> to vector<16x512xf32>
      %15 = arith.addf %12, %14 : vector<16x512xf32>
      %c0_13 = arith.constant 0 : index
      %c0_14 = arith.constant 0 : index
      %16 = vector.load %arg6[%c0_13, %c0_14] : memref<16x512xbf16, #tpu.memory_space<vmem>>, vector<16x512xbf16>
      %17 = arith.extf %16 : vector<16x512xbf16> to vector<16x512xf32>
      %18 = arith.addf %15, %17 : vector<16x512xf32>
      %cst_15 = arith.constant 0.000000e+00 : f32
      %19 = vector.broadcast %cst_15 : f32 to vector<16x512xf32>
      %20 = arith.maximumf %18, %19 : vector<16x512xf32>
      %21 = arith.truncf %20 : vector<16x512xf32> to vector<16x512xbf16>
      %c0_16 = arith.constant 0 : index
      %c0_17 = arith.constant 0 : index
      %22 = vector.load %arg7[%c0_16, %c0_17] : memref<16x512xbf16, #tpu.memory_space<vmem>>, vector<16x512xbf16>
      tpu.vector_store %arg7[%c0_16, %c0_17], %21 {strides = array<i32>} : memref<16x512xbf16, #tpu.memory_space<vmem>>, vector<16x512xbf16>,
    } else {
    }
    return
  }
  func.func @transform_0(%arg0: i32, %arg1: i32, %arg2: i32) -> (i32, i32) {
    %c0_i32 = arith.constant 0 : i32
    return %arg0, %arg2 : i32, i32
  }
  func.func @transform_1(%arg0: i32, %arg1: i32, %arg2: i32) -> (i32, i32) {
    %c0_i32 = arith.constant 0 : i32
    return %arg2, %arg1 : i32, i32
  }
  func.func @transform_2(%arg0: i32, %arg1: i32, %arg2: i32) -> (i32, i32) {
    %c0_i32 = arith.constant 0 : i32
    %c0_i32_0 = arith.constant 0 : i32
    return %c0_i32, %arg1 : i32, i32
  }
  func.func @transform_3(%arg0: i32, %arg1: i32, %arg2: i32) -> (i32, i32) {
    %c0_i32 = arith.constant 0 : i32
    return %arg0, %arg1 : i32, i32
  }
  func.func @transform_4(%arg0: i32, %arg1: i32, %arg2: i32) -> (i32, i32) {
    %c0_i32 = arith.constant 0 : i32
    return %arg0, %arg1 : i32, i32
  }
}

module attributes {stable_mosaic.version = 11 : i64} {
  func.func @_avgpool_kernel(%arg0: memref<2x4x512xbf16, #tpu.memory_space<vmem>>, %arg1: memref<2x512xbf16, #tpu.memory_space<vmem>>) attributes {dimension_semantics = [], scalar_prefetch = 0 : i64, scratch_operands = 0 : i64, tpu.core_type = #tpu.core_type<tc>} {
    %c0 = arith.constant 0 : index
    %c0_0 = arith.constant 0 : index
    %c0_1 = arith.constant 0 : index
    %0 = vector.load %arg0[%c0, %c0_0, %c0_1] : memref<2x4x512xbf16, #tpu.memory_space<vmem>>, vector<2x4x512xbf16>
    %1 = arith.extf %0 : vector<2x4x512xbf16> to vector<2x4x512xf32>
    %cst = arith.constant dense<0.000000e+00> : vector<2x512xf32>
    %2 = vector.multi_reduction <add>, %1, %cst [1] : vector<2x4x512xf32> to vector<2x512xf32>
    %cst_2 = arith.constant 4.000000e+00 : f32
    %3 = vector.broadcast %cst_2 : f32 to vector<2x512xf32>
    %4 = arith.divf %2, %3 : vector<2x512xf32>
    %5 = arith.truncf %4 : vector<2x512xf32> to vector<2x512xbf16>
    %c0_3 = arith.constant 0 : index
    %c0_4 = arith.constant 0 : index
    %6 = vector.load %arg1[%c0_3, %c0_4] : memref<2x512xbf16, #tpu.memory_space<vmem>>, vector<2x512xbf16>
    tpu.vector_store %arg1[%c0_3, %c0_4], %5 {strides = array<i32>} : memref<2x512xbf16, #tpu.memory_space<vmem>>, vector<2x512xbf16>,
    return
  }
}

module attributes {stable_mosaic.version = 11 : i64} {
  func.func @_classifier_kernel(%arg0: memref<8x512xbf16, #tpu.memory_space<vmem>>, %arg1: memref<8x128xbf16, #tpu.memory_space<vmem>>, %arg2: memref<512x256xbf16, #tpu.memory_space<vmem>>, %arg3: memref<128x256xbf16, #tpu.memory_space<vmem>>, %arg4: memref<1x256xf32, #tpu.memory_space<vmem>>, %arg5: memref<256x128xbf16, #tpu.memory_space<vmem>>, %arg6: memref<1x128xf32, #tpu.memory_space<vmem>>, %arg7: memref<128x128xbf16, #tpu.memory_space<vmem>>, %arg8: memref<1x128xf32, #tpu.memory_space<vmem>>, %arg9: memref<8x128xf32, #tpu.memory_space<vmem>>) attributes {dimension_semantics = [], scalar_prefetch = 0 : i64, scratch_operands = 0 : i64, tpu.core_type = #tpu.core_type<tc>} {
    %c0 = arith.constant 0 : index
    %c0_0 = arith.constant 0 : index
    %0 = vector.load %arg0[%c0, %c0_0] : memref<8x512xbf16, #tpu.memory_space<vmem>>, vector<8x512xbf16>
    %c0_1 = arith.constant 0 : index
    %c0_2 = arith.constant 0 : index
    %1 = vector.load %arg2[%c0_1, %c0_2] : memref<512x256xbf16, #tpu.memory_space<vmem>>, vector<512x256xbf16>
    %cst = arith.constant dense<0.000000e+00> : vector<8x256xf32>
    %2 = tpu.matmul %0, %1, %cst {dimension_numbers = #tpu.dot_dimension_numbers<[1], [0], [0], [1], [0, 0, 1, 1], [], []>} : vector<8x512xbf16>, vector<512x256xbf16>, vector<8x256xf32> -> vector<8x256xf32>
    %c0_3 = arith.constant 0 : index
    %c0_4 = arith.constant 0 : index
    %3 = vector.load %arg1[%c0_3, %c0_4] : memref<8x128xbf16, #tpu.memory_space<vmem>>, vector<8x128xbf16>
    %c0_5 = arith.constant 0 : index
    %c0_6 = arith.constant 0 : index
    %4 = vector.load %arg3[%c0_5, %c0_6] : memref<128x256xbf16, #tpu.memory_space<vmem>>, vector<128x256xbf16>
    %cst_7 = arith.constant dense<0.000000e+00> : vector<8x256xf32>
    %5 = tpu.matmul %3, %4, %cst_7 {dimension_numbers = #tpu.dot_dimension_numbers<[1], [0], [0], [1], [0, 0, 1, 1], [], []>} : vector<8x128xbf16>, vector<128x256xbf16>, vector<8x256xf32> -> vector<8x256xf32>
    %6 = arith.addf %2, %5 : vector<8x256xf32>
    %c0_8 = arith.constant 0 : index
    %c0_9 = arith.constant 0 : index
    %7 = vector.load %arg4[%c0_8, %c0_9] : memref<1x256xf32, #tpu.memory_space<vmem>>, vector<1x256xf32>
    %8 = vector.broadcast %7 : vector<1x256xf32> to vector<8x256xf32>
    %9 = arith.addf %6, %8 : vector<8x256xf32>
    %cst_10 = arith.constant 0.000000e+00 : f32
    %10 = vector.broadcast %cst_10 : f32 to vector<8x256xf32>
    %11 = arith.maximumf %9, %10 : vector<8x256xf32>
    %12 = arith.truncf %11 : vector<8x256xf32> to vector<8x256xbf16>
    %c0_11 = arith.constant 0 : index
    %c0_12 = arith.constant 0 : index
    %13 = vector.load %arg5[%c0_11, %c0_12] : memref<256x128xbf16, #tpu.memory_space<vmem>>, vector<256x128xbf16>
    %cst_13 = arith.constant dense<0.000000e+00> : vector<8x128xf32>
    %14 = tpu.matmul %12, %13, %cst_13 {dimension_numbers = #tpu.dot_dimension_numbers<[1], [0], [0], [1], [0, 0, 1, 1], [], []>} : vector<8x256xbf16>, vector<256x128xbf16>, vector<8x128xf32> -> vector<8x128xf32>
    %c0_14 = arith.constant 0 : index
    %c0_15 = arith.constant 0 : index
    %15 = vector.load %arg6[%c0_14, %c0_15] : memref<1x128xf32, #tpu.memory_space<vmem>>, vector<1x128xf32>
    %16 = vector.broadcast %15 : vector<1x128xf32> to vector<8x128xf32>
    %17 = arith.addf %14, %16 : vector<8x128xf32>
    %cst_16 = arith.constant 0.000000e+00 : f32
    %18 = vector.broadcast %cst_16 : f32 to vector<8x128xf32>
    %19 = arith.maximumf %17, %18 : vector<8x128xf32>
    %20 = arith.truncf %19 : vector<8x128xf32> to vector<8x128xbf16>
    %c0_17 = arith.constant 0 : index
    %c0_18 = arith.constant 0 : index
    %21 = vector.load %arg7[%c0_17, %c0_18] : memref<128x128xbf16, #tpu.memory_space<vmem>>, vector<128x128xbf16>
    %cst_19 = arith.constant dense<0.000000e+00> : vector<8x128xf32>
    %22 = tpu.matmul %20, %21, %cst_19 {dimension_numbers = #tpu.dot_dimension_numbers<[1], [0], [0], [1], [0, 0, 1, 1], [], []>} : vector<8x128xbf16>, vector<128x128xbf16>, vector<8x128xf32> -> vector<8x128xf32>
    %c0_20 = arith.constant 0 : index
    %c0_21 = arith.constant 0 : index
    %23 = vector.load %arg8[%c0_20, %c0_21] : memref<1x128xf32, #tpu.memory_space<vmem>>, vector<1x128xf32>
    %24 = vector.broadcast %23 : vector<1x128xf32> to vector<8x128xf32>
    %25 = arith.addf %22, %24 : vector<8x128xf32>
    %c0_22 = arith.constant 0 : index
    %c0_23 = arith.constant 0 : index
    %26 = vector.load %arg9[%c0_22, %c0_23] : memref<8x128xf32, #tpu.memory_space<vmem>>, vector<8x128xf32>
    tpu.vector_store %arg9[%c0_22, %c0_23], %25 {strides = array<i32>} : memref<8x128xf32, #tpu.memory_space<vmem>>, vector<8x128xf32>,
    return
  }
}

module attributes {stable_mosaic.version = 11 : i64} {
  func.func @_kp_mlp_kernel(%arg0: memref<8x128xbf16, #tpu.memory_space<vmem>>, %arg1: memref<128x256xbf16, #tpu.memory_space<vmem>>, %arg2: memref<1x256xf32, #tpu.memory_space<vmem>>, %arg3: memref<256x128xbf16, #tpu.memory_space<vmem>>, %arg4: memref<1x128xf32, #tpu.memory_space<vmem>>, %arg5: memref<128x128xbf16, #tpu.memory_space<vmem>>, %arg6: memref<1x128xf32, #tpu.memory_space<vmem>>, %arg7: memref<8x128xbf16, #tpu.memory_space<vmem>>) attributes {dimension_semantics = [], scalar_prefetch = 0 : i64, scratch_operands = 0 : i64, tpu.core_type = #tpu.core_type<tc>} {
    %c0 = arith.constant 0 : index
    %c0_0 = arith.constant 0 : index
    %0 = vector.load %arg0[%c0, %c0_0] : memref<8x128xbf16, #tpu.memory_space<vmem>>, vector<8x128xbf16>
    %c0_1 = arith.constant 0 : index
    %c0_2 = arith.constant 0 : index
    %1 = vector.load %arg1[%c0_1, %c0_2] : memref<128x256xbf16, #tpu.memory_space<vmem>>, vector<128x256xbf16>
    %cst = arith.constant dense<0.000000e+00> : vector<8x256xf32>
    %2 = tpu.matmul %0, %1, %cst {dimension_numbers = #tpu.dot_dimension_numbers<[1], [0], [0], [1], [0, 0, 1, 1], [], []>} : vector<8x128xbf16>, vector<128x256xbf16>, vector<8x256xf32> -> vector<8x256xf32>
    %c0_3 = arith.constant 0 : index
    %c0_4 = arith.constant 0 : index
    %3 = vector.load %arg2[%c0_3, %c0_4] : memref<1x256xf32, #tpu.memory_space<vmem>>, vector<1x256xf32>
    %4 = vector.broadcast %3 : vector<1x256xf32> to vector<8x256xf32>
    %5 = arith.addf %2, %4 : vector<8x256xf32>
    %cst_5 = arith.constant 0.000000e+00 : f32
    %6 = vector.broadcast %cst_5 : f32 to vector<8x256xf32>
    %7 = arith.maximumf %5, %6 : vector<8x256xf32>
    %8 = arith.truncf %7 : vector<8x256xf32> to vector<8x256xbf16>
    %c0_6 = arith.constant 0 : index
    %c0_7 = arith.constant 0 : index
    %9 = vector.load %arg3[%c0_6, %c0_7] : memref<256x128xbf16, #tpu.memory_space<vmem>>, vector<256x128xbf16>
    %cst_8 = arith.constant dense<0.000000e+00> : vector<8x128xf32>
    %10 = tpu.matmul %8, %9, %cst_8 {dimension_numbers = #tpu.dot_dimension_numbers<[1], [0], [0], [1], [0, 0, 1, 1], [], []>} : vector<8x256xbf16>, vector<256x128xbf16>, vector<8x128xf32> -> vector<8x128xf32>
    %c0_9 = arith.constant 0 : index
    %c0_10 = arith.constant 0 : index
    %11 = vector.load %arg4[%c0_9, %c0_10] : memref<1x128xf32, #tpu.memory_space<vmem>>, vector<1x128xf32>
    %12 = vector.broadcast %11 : vector<1x128xf32> to vector<8x128xf32>
    %13 = arith.addf %10, %12 : vector<8x128xf32>
    %cst_11 = arith.constant 0.000000e+00 : f32
    %14 = vector.broadcast %cst_11 : f32 to vector<8x128xf32>
    %15 = arith.maximumf %13, %14 : vector<8x128xf32>
    %16 = arith.truncf %15 : vector<8x128xf32> to vector<8x128xbf16>
    %c0_12 = arith.constant 0 : index
    %c0_13 = arith.constant 0 : index
    %17 = vector.load %arg5[%c0_12, %c0_13] : memref<128x128xbf16, #tpu.memory_space<vmem>>, vector<128x128xbf16>
    %cst_14 = arith.constant dense<0.000000e+00> : vector<8x128xf32>
    %18 = tpu.matmul %16, %17, %cst_14 {dimension_numbers = #tpu.dot_dimension_numbers<[1], [0], [0], [1], [0, 0, 1, 1], [], []>} : vector<8x128xbf16>, vector<128x128xbf16>, vector<8x128xf32> -> vector<8x128xf32>
    %c0_15 = arith.constant 0 : index
    %c0_16 = arith.constant 0 : index
    %19 = vector.load %arg6[%c0_15, %c0_16] : memref<1x128xf32, #tpu.memory_space<vmem>>, vector<1x128xf32>
    %20 = vector.broadcast %19 : vector<1x128xf32> to vector<8x128xf32>
    %21 = arith.addf %18, %20 : vector<8x128xf32>
    %cst_17 = arith.constant 0.000000e+00 : f32
    %22 = vector.broadcast %cst_17 : f32 to vector<8x128xf32>
    %23 = arith.maximumf %21, %22 : vector<8x128xf32>
    %24 = arith.truncf %23 : vector<8x128xf32> to vector<8x128xbf16>
    %c0_18 = arith.constant 0 : index
    %c0_19 = arith.constant 0 : index
    %25 = vector.load %arg7[%c0_18, %c0_19] : memref<8x128xbf16, #tpu.memory_space<vmem>>, vector<8x128xbf16>
    tpu.vector_store %arg7[%c0_18, %c0_19], %24 {strides = array<i32>} : memref<8x128xbf16, #tpu.memory_space<vmem>>, vector<8x128xbf16>,
    return
  }
}

</mosaic_0001>

<bundles_post_ra>
// kernel: hand_gesture_forward.15
= control target key start
LH: loop header
LB: loop body
LE: loop exit
PB: predicated region body
PF: predicated region fallthrough
CT: control target
= control target key end

     0   :  { %8 = vsyncpa [#allocation4], 0  ;;  %s1988_s12 = smov [#allocation3]   ;;  %s2284_s0 = inlined_call_operand.vmem [shape: bf16[512,128], index: 0, kind: input, shape index: {}]   ;;  %s2285_s1 = inlined_call_operand.hbm [shape: bf16[128,128], index: 1, kind: input, shape index: {}]   ;;  %s2286_s2 = inlined_call_operand.vmem [shape: f32[1,128], index: 2, kind: input, shape index: {}]   ;;  %s2287_s3 = inlined_call_operand.vmem [shape: bf16[512,128], index: 3, kind: output, shape index: {}]  }
   0x1   :  { %s16_s13 = sshll.u32 %s1988_s12, 4  ;;  %s1964_s16 = scalar_lea.hbm %s2285_s1, 1024  ;;  %s17_s13 = int_to_ptr.vmem [resolvable:$true] %s16_s13 }
   0x2   :  { %p1965_p0 = scmp.ne.s32.totalorder %s2285_s1, %s1964_s16  ;;  %p1968_p1 = scmp.lt.u32.totalorder %s1964_s16, %s2285_s1 }
   0x4   :  { %p1970_p2 = pnand %p1968_p1, %p1965_p0 }
   0x6   :  { %1973 = shalt.err (!%p1970_p2)
}
   0x7   :  { %s1974_s21 = scalar_lea.vmem %s17_s13, 1024  ;;  %p1979_p4 = scmp.lt.s32.totalorder %s17_s13, %s17_s13 }
   0x8   :  { %p1975_p3 = scmp.ne.s32.totalorder %s17_s13, %s1974_s21  ;;  %p1980_p5 = scmp.lt.s32.totalorder %s1974_s21, %s1974_s21 }
   0xa   :  { %p1981_p6 = por %p1980_p5, %p1979_p4 }
   0xc   :  { %p1982_p7 = pnand %p1981_p6, %p1975_p3 }
   0xe   :  { %1985 = shalt.err (!%p1982_p7)
}
   0xf   :  { %s1989_s22 = smov 64   ;;  %s1990_s23 = smov 4  }
  0x10   :  { %22 = dma.hbm_to_vmem [thread:$0]  %s2285_s1, 1024, %s17_s13, [#allocation4], %s1989_s22, %s1989_s22, %s1990_s23  }
  0x11   :  { %1986 = dma.done.wait [#allocation4], 1024  }
  0x12   :  { %1987 = vsyncadd [#allocation4], 4294966272  ;;  %v1924_v0 = vld [vmem:[#allocation3] sm:$0xff]   ;;  %v1925_v1 = vld [vmem:[#allocation3 + $0x8] sm:$0xff]  }
  0x13   :  { %1825 = vmatprep.subr.bf16.mxu0 %v1924_v0  ;;  %1905 = vmatprep.subr.bf16.mxu1 %v1924_v0  ;;  %v1926_v2 = vld [vmem:[#allocation3 + $0x10] sm:$0xff]   ;;  %v1927_v3 = vld [vmem:[#allocation3 + $0x18] sm:$0xff]   ;;  %v1932_v4 = vld [vmem:[%s2284_s0] sm:$0xff]  }
  0x14   :  { %1826 = vmatpush3.bf16.msra.mxu0 %v1924_v0  ;;  %1913 = vmatpush3.bf16.msra.mxu1 %v1924_v0  ;;  %v1933_v5 = vld [vmem:[%s2284_s0 + $0x80] sm:$0xff]   ;;  %v1929_v7 = vld [vmem:[#allocation3 + $0x28] sm:$0xff]   ;;  %v1930_v8 = vld [vmem:[#allocation3 + $0x30] sm:$0xff]  }
  0x15   :  { %1827 = vmatprep.subr.bf16.mxu0 %v1925_v1  ;;  %1906 = vmatprep.subr.bf16.mxu1 %v1925_v1  ;;  %v1928_v6 = vld [vmem:[#allocation3 + $0x20] sm:$0xff]   ;;  %v1931_v9 = vld [vmem:[#allocation3 + $0x38] sm:$0xff]   ;;  %v1934_v10 = vld [vmem:[%s2284_s0 + $0x8] sm:$0xff]  }
  0x16   :  { %1841 = vmatprep.mubr.bf16.mxu0 %v1932_v4  ;;  %1873 = vmatprep.mubr.bf16.mxu1 %v1933_v5  ;;  %v1935_v11 = vld [vmem:[%s2284_s0 + $0x88] sm:$0xff]   ;;  %v1936_v12 = vld [vmem:[%s2284_s0 + $0x10] sm:$0xff]   ;;  %v1938_v14 = vld [vmem:[%s2284_s0 + $0x18] sm:$0xff]  }
  0x17   :  { %v1937_v13 = vld [vmem:[%s2284_s0 + $0x90] sm:$0xff]   ;;  %v1939_v15 = vld [vmem:[%s2284_s0 + $0x98] sm:$0xff]   ;;  %v1940_v16 = vld [vmem:[%s2284_s0 + $0x20] sm:$0xff]  }
  0x18   :  { %1828 = vmatpush3.bf16.msra.mxu0 %v1925_v1  ;;  %1914 = vmatpush3.bf16.msra.mxu1 %v1925_v1  ;;  %v1941_v17 = vld [vmem:[%s2284_s0 + $0xa0] sm:$0xff]   ;;  %v1942_v18 = vld [vmem:[%s2284_s0 + $0x28] sm:$0xff]   ;;  %v1944_v20 = vld [vmem:[%s2284_s0 + $0x30] sm:$0xff]  }
  0x19   :  { %1829 = vmatprep.subr.bf16.mxu0 %v1926_v2  ;;  %1907 = vmatprep.subr.bf16.mxu1 %v1926_v2  ;;  %v1943_v19 = vld [vmem:[%s2284_s0 + $0xa8] sm:$0xff]   ;;  %v1945_v21 = vld [vmem:[%s2284_s0 + $0xb0] sm:$0xff]   ;;  %v1946_v22 = vld [vmem:[%s2284_s0 + $0x38] sm:$0xff]  }
  0x1a   :  { %v1947_v23 = vld [vmem:[%s2284_s0 + $0xb8] sm:$0xff]   ;;  %v1948_v24 = vld [vmem:[%s2284_s0 + $0x40] sm:$0xff]   ;;  %v1950_v26 = vld [vmem:[%s2284_s0 + $0x48] sm:$0xff]  }
  0x1b   :  { %v1949_v25 = vld [vmem:[%s2284_s0 + $0xc0] sm:$0xff]   ;;  %v1951_v27 = vld [vmem:[%s2284_s0 + $0xc8] sm:$0xff]   ;;  %v1952_v28 = vld [vmem:[%s2284_s0 + $0x50] sm:$0xff]  }
  0x1c   :  { %1830 = vmatpush3.bf16.msra.mxu0 %v1926_v2  ;;  %1915 = vmatpush3.bf16.msra.mxu1 %v1926_v2  ;;  %v1953_v29 = vld [vmem:[%s2284_s0 + $0xd0] sm:$0xff]   ;;  %v1954_v30 = vld [vmem:[%s2284_s0 + $0x58] sm:$0xff]   ;;  %v1956_v32 = vld [vmem:[%s2284_s0 + $0x60] sm:$0xff]  }
  0x1d   :  { %1831 = vmatprep.subr.bf16.mxu0 %v1927_v3  ;;  %1908 = vmatprep.subr.bf16.mxu1 %v1927_v3  ;;  %v1955_v31 = vld [vmem:[%s2284_s0 + $0xd8] sm:$0xff]   ;;  %v1957_v33 = vld [vmem:[%s2284_s0 + $0xe0] sm:$0xff]   ;;  %v1958_v34 = vld [vmem:[%s2284_s0 + $0x68] sm:$0xff]  }
  0x1e   :  { %v1959_v35 = vld [vmem:[%s2284_s0 + $0xe8] sm:$0xff]   ;;  %v1960_v36 = vld [vmem:[%s2284_s0 + $0x70] sm:$0xff]   ;;  %v1962_v38 = vld [vmem:[%s2284_s0 + $0x78] sm:$0xff]  }
  0x1f   :  { %v1961_v37 = vld [vmem:[%s2284_s0 + $0xf0] sm:$0xff]   ;;  %v1963_v39 = vld [vmem:[%s2284_s0 + $0xf8] sm:$0xff]   ;;  %v2122_v40 = vld [vmem:[%s2286_s2] ss:$0 sm:$0xff] }
  0x20   :  { %1832 = vmatpush3.bf16.msra.mxu0 %v1927_v3  ;;  %1916 = vmatpush3.bf16.msra.mxu1 %v1927_v3 }
  0x21   :  { %1833 = vmatprep.subr.bf16.mxu0 %v1928_v6  ;;  %1909 = vmatprep.subr.bf16.mxu1 %v1928_v6 }
  0x24   :  { %1834 = vmatpush3.bf16.msra.mxu0 %v1928_v6  ;;  %1917 = vmatpush3.bf16.msra.mxu1 %v1928_v6 }
  0x25   :  { %1835 = vmatprep.subr.bf16.mxu0 %v1929_v7  ;;  %1910 = vmatprep.subr.bf16.mxu1 %v1929_v7 }
  0x28   :  { %1836 = vmatpush3.bf16.msra.mxu0 %v1929_v7  ;;  %1918 = vmatpush3.bf16.msra.mxu1 %v1929_v7 }
  0x29   :  { %1837 = vmatprep.subr.bf16.mxu0 %v1930_v8  ;;  %1911 = vmatprep.subr.bf16.mxu1 %v1930_v8 }
  0x2c   :  { %1838 = vmatpush3.bf16.msra.mxu0 %v1930_v8  ;;  %1919 = vmatpush3.bf16.msra.mxu1 %v1930_v8 }
  0x2d   :  { %1839 = vmatprep.subr.bf16.mxu0 %v1931_v9  ;;  %1912 = vmatprep.subr.bf16.mxu1 %v1931_v9 }
  0x30   :  { %1840 = vmatpush3.bf16.msra.mxu0 %v1931_v9  ;;  %1920 = vmatpush3.bf16.msra.mxu1 %v1931_v9 }
  0x33   :  { %1842 = vmatmul.mubr.bf16.vlgmr.msra.gmra.mrb[0].mxu0 %v1934_v10  ;;  %1874 = vmatmul.mubr.bf16.vlgmr.msra.gmra.mrb[0].mxu1 %v1935_v11 }
  0x34   :  { %1845 = vmatprep.mubr.bf16.mxu0 %v1936_v12  ;;  %1877 = vmatprep.mubr.bf16.mxu1 %v1937_v13 }
  0x3b   :  { %1846 = vmatmul.mubr.bf16.gmra.mrb[4].mxu0 %v1938_v14  ;;  %1878 = vmatmul.mubr.bf16.gmra.mrb[4].mxu1 %v1939_v15 }
  0x3c   :  { %1849 = vmatprep.mubr.bf16.mxu0 %v1940_v16  ;;  %1881 = vmatprep.mubr.bf16.mxu1 %v1941_v17 }
  0x43   :  { %1850 = vmatmul.mubr.bf16.gmra.mrb[8].mxu0 %v1942_v18  ;;  %1882 = vmatmul.mubr.bf16.gmra.mrb[8].mxu1 %v1943_v19 }
  0x44   :  { %1853 = vmatprep.mubr.bf16.mxu0 %v1944_v20  ;;  %1885 = vmatprep.mubr.bf16.mxu1 %v1945_v21 }
  0x4b   :  { %1854 = vmatmul.mubr.bf16.gmra.mrb[12].mxu0 %v1946_v22  ;;  %1886 = vmatmul.mubr.bf16.gmra.mrb[12].mxu1 %v1947_v23 }
  0x4c   :  { %1857 = vmatprep.mubr.bf16.mxu0 %v1948_v24  ;;  %1889 = vmatprep.mubr.bf16.mxu1 %v1949_v25 }
  0x53   :  { %1858 = vmatmul.mubr.bf16.gmra.mrb[16].mxu0 %v1950_v26  ;;  %1890 = vmatmul.mubr.bf16.gmra.mrb[16].mxu1 %v1951_v27 }
  0x54   :  { %1861 = vmatprep.mubr.bf16.mxu0 %v1952_v28  ;;  %1893 = vmatprep.mubr.bf16.mxu1 %v1953_v29 }
  0x5b   :  { %1862 = vmatmul.mubr.bf16.gmra.mrb[20].mxu0 %v1954_v30  ;;  %1894 = vmatmul.mubr.bf16.gmra.mrb[20].mxu1 %v1955_v31 }
  0x5c   :  { %1865 = vmatprep.mubr.bf16.mxu0 %v1956_v32  ;;  %1897 = vmatprep.mubr.bf16.mxu1 %v1957_v33 }
  0x63   :  { %1866 = vmatmul.mubr.bf16.gmra.mrb[24].mxu0 %v1958_v34  ;;  %1898 = vmatmul.mubr.bf16.gmra.mrb[24].mxu1 %v1959_v35 }
  0x64   :  { %1869 = vmatprep.mubr.bf16.mxu0 %v1960_v36  ;;  %1901 = vmatprep.mubr.bf16.mxu1 %v1961_v37 }
  0x6b   :  { %1870 = vmatmul.mubr.bf16.gmra.mrb[28].mxu0 %v1962_v38  ;;  %1902 = vmatmul.mubr.bf16.gmra.mrb[28].mxu1 %v1963_v39 }
 0x106   :  { %v1843_v41 = vpop.f32.mrb[0].mxu0  ;;  %v1875_v42 = vpop.f32.mrb[0].mxu1 }
 0x107   :  { %v974_v43 = vadd.f32 %v1843_v41, %v2122_v40  ;;  %v1006_v44 = vadd.f32 %v1875_v42, %v2122_v40  ;;  %v515_v45 = vpop.f32.mrb[1].mxu0  ;;  %v643_v46 = vpop.f32.mrb[1].mxu1 }
 0x108   :  { %v972_v47 = vadd.f32 %v2122_v40, %v515_v45  ;;  %v1004_v48 = vadd.f32 %v2122_v40, %v643_v46  ;;  %v1844_v49 = vpop.f32.mrb[2].mxu0  ;;  %v1876_v50 = vpop.f32.mrb[2].mxu1 }
 0x109   :  { %v975_v51 = vadd.f32 %v1844_v49, %v2122_v40  ;;  %v1007_v52 = vadd.f32 %v1876_v50, %v2122_v40  ;;  %v518_v53 = vpop.f32.mrb[3].mxu0  ;;  %v646_v54 = vpop.f32.mrb[3].mxu1  ;;  %v1038_v57 = vmax.f32 %v974_v43, 0.0  ;;  %v1070_v58 = vmax.f32 %v1006_v44, 0.0 }
 0x10a   :  { %v973_v55 = vadd.f32 %v2122_v40, %v518_v53  ;;  %v1005_v56 = vadd.f32 %v2122_v40, %v646_v54  ;;  %v1036_v61 = vmax.f32 %v972_v47, 0.0  ;;  %v1068_v62 = vmax.f32 %v1004_v48, 0.0 }
 0x10b   :  { %v1039_v59 = vmax.f32 %v975_v51, 0.0  ;;  %v1071_v60 = vmax.f32 %v1007_v52, 0.0 }
 0x10c   :  { %v1037_v63 = vmax.f32 %v973_v55, 0.0  ;;  %v1069_v0 = vmax.f32 %v1005_v56, 0.0 }
 0x10d   :  { %v1602_v1 = vpack.c.bf16 %v1039_v59, %v1038_v57  ;;  %v1682_v2 = vpack.c.bf16 %v1071_v60, %v1070_v58 }
 0x10e   :  { %v1597_v3 = vpack.c.bf16 %v1037_v63, %v1036_v61  ;;  %v1677_v4 = vpack.c.bf16 %v1069_v0, %v1068_v62  ;;  %v1847_v5 = vpop.f32.mrb[4].mxu0  ;;  %v1879_v6 = vpop.f32.mrb[4].mxu1 }
 0x10f   :  { %1754 = vst [vmem:[%s2287_s3 + $0x8] sm:$0xff] %v1602_v1   ;;  %1770 = vst [vmem:[%s2287_s3 + $0x88] sm:$0xff] %v1682_v2   ;;  %v978_v7 = vadd.f32 %v1847_v5, %v2122_v40  ;;  %v1010_v8 = vadd.f32 %v1879_v6, %v2122_v40  ;;  %v531_v9 = vpop.f32.mrb[5].mxu0  ;;  %v659_v10 = vpop.f32.mrb[5].mxu1 }
 0x110   :  { %1598 = vst [vmem:[%s2287_s3] sm:$0xff] %v1597_v3   ;;  %1769 = vst [vmem:[%s2287_s3 + $0x80] sm:$0xff] %v1677_v4   ;;  %v976_v11 = vadd.f32 %v2122_v40, %v531_v9  ;;  %v1008_v12 = vadd.f32 %v2122_v40, %v659_v10  ;;  %v1848_v13 = vpop.f32.mrb[6].mxu0  ;;  %v1880_v14 = vpop.f32.mrb[6].mxu1 }
 0x111   :  { %v979_v15 = vadd.f32 %v1848_v13, %v2122_v40  ;;  %v1011_v16 = vadd.f32 %v1880_v14, %v2122_v40  ;;  %v534_v17 = vpop.f32.mrb[7].mxu0  ;;  %v662_v18 = vpop.f32.mrb[7].mxu1  ;;  %v1042_v21 = vmax.f32 %v978_v7, 0.0  ;;  %v1074_v22 = vmax.f32 %v1010_v8, 0.0 }
 0x112   :  { %v977_v19 = vadd.f32 %v2122_v40, %v534_v17  ;;  %v1009_v20 = vadd.f32 %v2122_v40, %v662_v18  ;;  %v1040_v25 = vmax.f32 %v976_v11, 0.0  ;;  %v1072_v26 = vmax.f32 %v1008_v12, 0.0 }
 0x113   :  { %v1043_v23 = vmax.f32 %v979_v15, 0.0  ;;  %v1075_v24 = vmax.f32 %v1011_v16, 0.0 }
 0x114   :  { %v1041_v27 = vmax.f32 %v977_v19, 0.0  ;;  %v1073_v28 = vmax.f32 %v1009_v20, 0.0 }
 0x115   :  { %v1612_v29 = vpack.c.bf16 %v1043_v23, %v1042_v21  ;;  %v1692_v30 = vpack.c.bf16 %v1075_v24, %v1074_v22 }
 0x116   :  { %v1607_v31 = vpack.c.bf16 %v1041_v27, %v1040_v25  ;;  %v1687_v32 = vpack.c.bf16 %v1073_v28, %v1072_v26  ;;  %v1851_v33 = vpop.f32.mrb[8].mxu0  ;;  %v1883_v34 = vpop.f32.mrb[8].mxu1 }
 0x117   :  { %1756 = vst [vmem:[%s2287_s3 + $0x18] sm:$0xff] %v1612_v29   ;;  %1772 = vst [vmem:[%s2287_s3 + $0x98] sm:$0xff] %v1692_v30   ;;  %v982_v35 = vadd.f32 %v1851_v33, %v2122_v40  ;;  %v1014_v36 = vadd.f32 %v1883_v34, %v2122_v40  ;;  %v547_v37 = vpop.f32.mrb[9].mxu0  ;;  %v675_v38 = vpop.f32.mrb[9].mxu1 }
 0x118   :  { %1755 = vst [vmem:[%s2287_s3 + $0x10] sm:$0xff] %v1607_v31   ;;  %1771 = vst [vmem:[%s2287_s3 + $0x90] sm:$0xff] %v1687_v32   ;;  %v980_v39 = vadd.f32 %v2122_v40, %v547_v37  ;;  %v1012_v41 = vadd.f32 %v2122_v40, %v675_v38  ;;  %v1852_v42 = vpop.f32.mrb[10].mxu0  ;;  %v1884_v43 = vpop.f32.mrb[10].mxu1 }
 0x119   :  { %v983_v44 = vadd.f32 %v1852_v42, %v2122_v40  ;;  %v1015_v45 = vadd.f32 %v1884_v43, %v2122_v40  ;;  %v550_v46 = vpop.f32.mrb[11].mxu0  ;;  %v678_v47 = vpop.f32.mrb[11].mxu1  ;;  %v1046_v50 = vmax.f32 %v982_v35, 0.0  ;;  %v1078_v51 = vmax.f32 %v1014_v36, 0.0 }
 0x11a   :  { %v981_v48 = vadd.f32 %v2122_v40, %v550_v46  ;;  %v1013_v49 = vadd.f32 %v2122_v40, %v678_v47  ;;  %v1044_v54 = vmax.f32 %v980_v39, 0.0  ;;  %v1076_v55 = vmax.f32 %v1012_v41, 0.0 }
 0x11b   :  { %v1047_v52 = vmax.f32 %v983_v44, 0.0  ;;  %v1079_v53 = vmax.f32 %v1015_v45, 0.0 }
 0x11c   :  { %v1045_v56 = vmax.f32 %v981_v48, 0.0  ;;  %v1077_v57 = vmax.f32 %v1013_v49, 0.0 }
 0x11d   :  { %v1622_v58 = vpack.c.bf16 %v1047_v52, %v1046_v50  ;;  %v1702_v59 = vpack.c.bf16 %v1079_v53, %v1078_v51 }
 0x11e   :  { %v1617_v60 = vpack.c.bf16 %v1045_v56, %v1044_v54  ;;  %v1697_v61 = vpack.c.bf16 %v1077_v57, %v1076_v55  ;;  %v1855_v62 = vpop.f32.mrb[12].mxu0  ;;  %v1887_v63 = vpop.f32.mrb[12].mxu1 }
 0x11f   :  { %1758 = vst [vmem:[%s2287_s3 + $0x28] sm:$0xff] %v1622_v58   ;;  %1774 = vst [vmem:[%s2287_s3 + $0xa8] sm:$0xff] %v1702_v59   ;;  %v986_v0 = vadd.f32 %v1855_v62, %v2122_v40  ;;  %v1018_v1 = vadd.f32 %v1887_v63, %v2122_v40  ;;  %v563_v2 = vpop.f32.mrb[13].mxu0  ;;  %v691_v3 = vpop.f32.mrb[13].mxu1 }
 0x120   :  { %1757 = vst [vmem:[%s2287_s3 + $0x20] sm:$0xff] %v1617_v60   ;;  %1773 = vst [vmem:[%s2287_s3 + $0xa0] sm:$0xff] %v1697_v61   ;;  %v984_v4 = vadd.f32 %v2122_v40, %v563_v2  ;;  %v1016_v5 = vadd.f32 %v2122_v40, %v691_v3  ;;  %v1856_v6 = vpop.f32.mrb[14].mxu0  ;;  %v1888_v7 = vpop.f32.mrb[14].mxu1 }
 0x121   :  { %v987_v8 = vadd.f32 %v1856_v6, %v2122_v40  ;;  %v1019_v9 = vadd.f32 %v1888_v7, %v2122_v40  ;;  %v566_v10 = vpop.f32.mrb[15].mxu0  ;;  %v694_v11 = vpop.f32.mrb[15].mxu1  ;;  %v1050_v14 = vmax.f32 %v986_v0, 0.0  ;;  %v1082_v15 = vmax.f32 %v1018_v1, 0.0 }
 0x122   :  { %v985_v12 = vadd.f32 %v2122_v40, %v566_v10  ;;  %v1017_v13 = vadd.f32 %v2122_v40, %v694_v11  ;;  %v1048_v18 = vmax.f32 %v984_v4, 0.0  ;;  %v1080_v19 = vmax.f32 %v1016_v5, 0.0 }
 0x123   :  { %v1051_v16 = vmax.f32 %v987_v8, 0.0  ;;  %v1083_v17 = vmax.f32 %v1019_v9, 0.0 }
 0x124   :  { %v1049_v20 = vmax.f32 %v985_v12, 0.0  ;;  %v1081_v21 = vmax.f32 %v1017_v13, 0.0 }
 0x125   :  { %v1632_v22 = vpack.c.bf16 %v1051_v16, %v1050_v14  ;;  %v1712_v23 = vpack.c.bf16 %v1083_v17, %v1082_v15 }
 0x126   :  { %v1627_v24 = vpack.c.bf16 %v1049_v20, %v1048_v18  ;;  %v1707_v25 = vpack.c.bf16 %v1081_v21, %v1080_v19  ;;  %v1859_v26 = vpop.f32.mrb[16].mxu0  ;;  %v1891_v27 = vpop.f32.mrb[16].mxu1 }
 0x127   :  { %1760 = vst [vmem:[%s2287_s3 + $0x38] sm:$0xff] %v1632_v22   ;;  %1776 = vst [vmem:[%s2287_s3 + $0xb8] sm:$0xff] %v1712_v23   ;;  %v990_v28 = vadd.f32 %v1859_v26, %v2122_v40  ;;  %v1022_v29 = vadd.f32 %v1891_v27, %v2122_v40  ;;  %v579_v30 = vpop.f32.mrb[17].mxu0  ;;  %v707_v31 = vpop.f32.mrb[17].mxu1 }
 0x128   :  { %1759 = vst [vmem:[%s2287_s3 + $0x30] sm:$0xff] %v1627_v24   ;;  %1775 = vst [vmem:[%s2287_s3 + $0xb0] sm:$0xff] %v1707_v25   ;;  %v988_v32 = vadd.f32 %v2122_v40, %v579_v30  ;;  %v1020_v33 = vadd.f32 %v2122_v40, %v707_v31  ;;  %v1860_v34 = vpop.f32.mrb[18].mxu0  ;;  %v1892_v35 = vpop.f32.mrb[18].mxu1 }
 0x129   :  { %v991_v36 = vadd.f32 %v1860_v34, %v2122_v40  ;;  %v1023_v37 = vadd.f32 %v1892_v35, %v2122_v40  ;;  %v582_v38 = vpop.f32.mrb[19].mxu0  ;;  %v710_v39 = vpop.f32.mrb[19].mxu1  ;;  %v1054_v43 = vmax.f32 %v990_v28, 0.0  ;;  %v1086_v44 = vmax.f32 %v1022_v29, 0.0 }
 0x12a   :  { %v989_v41 = vadd.f32 %v2122_v40, %v582_v38  ;;  %v1021_v42 = vadd.f32 %v2122_v40, %v710_v39  ;;  %v1052_v47 = vmax.f32 %v988_v32, 0.0  ;;  %v1084_v48 = vmax.f32 %v1020_v33, 0.0 }
 0x12b   :  { %v1055_v45 = vmax.f32 %v991_v36, 0.0  ;;  %v1087_v46 = vmax.f32 %v1023_v37, 0.0 }
 0x12c   :  { %v1053_v49 = vmax.f32 %v989_v41, 0.0  ;;  %v1085_v50 = vmax.f32 %v1021_v42, 0.0 }
 0x12d   :  { %v1642_v51 = vpack.c.bf16 %v1055_v45, %v1054_v43  ;;  %v1722_v52 = vpack.c.bf16 %v1087_v46, %v1086_v44 }
 0x12e   :  { %v1637_v53 = vpack.c.bf16 %v1053_v49, %v1052_v47  ;;  %v1717_v54 = vpack.c.bf16 %v1085_v50, %v1084_v48  ;;  %v1863_v55 = vpop.f32.mrb[20].mxu0  ;;  %v1895_v56 = vpop.f32.mrb[20].mxu1 }
 0x12f   :  { %1762 = vst [vmem:[%s2287_s3 + $0x48] sm:$0xff] %v1642_v51   ;;  %1778 = vst [vmem:[%s2287_s3 + $0xc8] sm:$0xff] %v1722_v52   ;;  %v994_v57 = vadd.f32 %v1863_v55, %v2122_v40  ;;  %v1026_v58 = vadd.f32 %v1895_v56, %v2122_v40  ;;  %v595_v59 = vpop.f32.mrb[21].mxu0  ;;  %v723_v60 = vpop.f32.mrb[21].mxu1 }
 0x130   :  { %1761 = vst [vmem:[%s2287_s3 + $0x40] sm:$0xff] %v1637_v53   ;;  %1777 = vst [vmem:[%s2287_s3 + $0xc0] sm:$0xff] %v1717_v54   ;;  %v992_v61 = vadd.f32 %v2122_v40, %v595_v59  ;;  %v1024_v62 = vadd.f32 %v2122_v40, %v723_v60  ;;  %v1864_v63 = vpop.f32.mrb[22].mxu0  ;;  %v1896_v0 = vpop.f32.mrb[22].mxu1 }
 0x131   :  { %v995_v1 = vadd.f32 %v1864_v63, %v2122_v40  ;;  %v1027_v2 = vadd.f32 %v1896_v0, %v2122_v40  ;;  %v598_v3 = vpop.f32.mrb[23].mxu0  ;;  %v726_v4 = vpop.f32.mrb[23].mxu1  ;;  %v1058_v7 = vmax.f32 %v994_v57, 0.0  ;;  %v1090_v8 = vmax.f32 %v1026_v58, 0.0 }
 0x132   :  { %v993_v5 = vadd.f32 %v2122_v40, %v598_v3  ;;  %v1025_v6 = vadd.f32 %v2122_v40, %v726_v4  ;;  %v1056_v11 = vmax.f32 %v992_v61, 0.0  ;;  %v1088_v12 = vmax.f32 %v1024_v62, 0.0 }
 0x133   :  { %v1059_v9 = vmax.f32 %v995_v1, 0.0  ;;  %v1091_v10 = vmax.f32 %v1027_v2, 0.0 }
 0x134   :  { %v1057_v13 = vmax.f32 %v993_v5, 0.0  ;;  %v1089_v14 = vmax.f32 %v1025_v6, 0.0 }
 0x135   :  { %v1652_v15 = vpack.c.bf16 %v1059_v9, %v1058_v7  ;;  %v1732_v16 = vpack.c.bf16 %v1091_v10, %v1090_v8 }
 0x136   :  { %v1647_v17 = vpack.c.bf16 %v1057_v13, %v1056_v11  ;;  %v1727_v18 = vpack.c.bf16 %v1089_v14, %v1088_v12  ;;  %v1867_v19 = vpop.f32.mrb[24].mxu0  ;;  %v1899_v20 = vpop.f32.mrb[24].mxu1 }
 0x137   :  { %1764 = vst [vmem:[%s2287_s3 + $0x58] sm:$0xff] %v1652_v15   ;;  %1780 = vst [vmem:[%s2287_s3 + $0xd8] sm:$0xff] %v1732_v16   ;;  %v998_v21 = vadd.f32 %v1867_v19, %v2122_v40  ;;  %v1030_v22 = vadd.f32 %v1899_v20, %v2122_v40  ;;  %v611_v23 = vpop.f32.mrb[25].mxu0  ;;  %v739_v24 = vpop.f32.mrb[25].mxu1 }
 0x138   :  { %1763 = vst [vmem:[%s2287_s3 + $0x50] sm:$0xff] %v1647_v17   ;;  %1779 = vst [vmem:[%s2287_s3 + $0xd0] sm:$0xff] %v1727_v18   ;;  %v996_v25 = vadd.f32 %v2122_v40, %v611_v23  ;;  %v1028_v26 = vadd.f32 %v2122_v40, %v739_v24  ;;  %v1868_v27 = vpop.f32.mrb[26].mxu0  ;;  %v1900_v28 = vpop.f32.mrb[26].mxu1 }
 0x139   :  { %v999_v29 = vadd.f32 %v1868_v27, %v2122_v40  ;;  %v1031_v30 = vadd.f32 %v1900_v28, %v2122_v40  ;;  %v614_v31 = vpop.f32.mrb[27].mxu0  ;;  %v742_v32 = vpop.f32.mrb[27].mxu1  ;;  %v1062_v35 = vmax.f32 %v998_v21, 0.0  ;;  %v1094_v36 = vmax.f32 %v1030_v22, 0.0 }
 0x13a   :  { %v997_v33 = vadd.f32 %v2122_v40, %v614_v31  ;;  %v1029_v34 = vadd.f32 %v2122_v40, %v742_v32  ;;  %v1060_v39 = vmax.f32 %v996_v25, 0.0  ;;  %v1092_v41 = vmax.f32 %v1028_v26, 0.0 }
 0x13b   :  { %v1063_v37 = vmax.f32 %v999_v29, 0.0  ;;  %v1095_v38 = vmax.f32 %v1031_v30, 0.0 }
 0x13c   :  { %v1061_v42 = vmax.f32 %v997_v33, 0.0  ;;  %v1093_v43 = vmax.f32 %v1029_v34, 0.0 }
 0x13d   :  { %v1662_v44 = vpack.c.bf16 %v1063_v37, %v1062_v35  ;;  %v1742_v45 = vpack.c.bf16 %v1095_v38, %v1094_v36 }
 0x13e   :  { %v1657_v46 = vpack.c.bf16 %v1061_v42, %v1060_v39  ;;  %v1737_v47 = vpack.c.bf16 %v1093_v43, %v1092_v41  ;;  %v1871_v48 = vpop.f32.mrb[28].mxu0  ;;  %v1903_v49 = vpop.f32.mrb[28].mxu1 }
 0x13f   :  { %1766 = vst [vmem:[%s2287_s3 + $0x68] sm:$0xff] %v1662_v44   ;;  %1782 = vst [vmem:[%s2287_s3 + $0xe8] sm:$0xff] %v1742_v45   ;;  %v1002_v50 = vadd.f32 %v1871_v48, %v2122_v40  ;;  %v1034_v51 = vadd.f32 %v1903_v49, %v2122_v40  ;;  %v627_v52 = vpop.f32.mrb[29].mxu0  ;;  %v755_v53 = vpop.f32.mrb[29].mxu1 }
 0x140   :  { %1765 = vst [vmem:[%s2287_s3 + $0x60] sm:$0xff] %v1657_v46   ;;  %1781 = vst [vmem:[%s2287_s3 + $0xe0] sm:$0xff] %v1737_v47   ;;  %v1000_v54 = vadd.f32 %v2122_v40, %v627_v52  ;;  %v1032_v55 = vadd.f32 %v2122_v40, %v755_v53  ;;  %v1872_v56 = vpop.f32.mrb[30].mxu0  ;;  %v1904_v57 = vpop.f32.mrb[30].mxu1 }
 0x141   :  { %v1003_v58 = vadd.f32 %v1872_v56, %v2122_v40  ;;  %v1035_v59 = vadd.f32 %v1904_v57, %v2122_v40  ;;  %v630_v60 = vpop.f32.mrb[31].mxu0  ;;  %v758_v61 = vpop.f32.mrb[31].mxu1  ;;  %v1066_v0 = vmax.f32 %v1002_v50, 0.0  ;;  %v1098_v1 = vmax.f32 %v1034_v51, 0.0 }
 0x142   :  { %v1001_v62 = vadd.f32 %v2122_v40, %v630_v60  ;;  %v1033_v63 = vadd.f32 %v2122_v40, %v758_v61  ;;  %v1064_v4 = vmax.f32 %v1000_v54, 0.0  ;;  %v1096_v5 = vmax.f32 %v1032_v55, 0.0 }
 0x143   :  { %v1067_v2 = vmax.f32 %v1003_v58, 0.0  ;;  %v1099_v3 = vmax.f32 %v1035_v59, 0.0 }
 0x144   :  { %v1065_v6 = vmax.f32 %v1001_v62, 0.0  ;;  %v1097_v7 = vmax.f32 %v1033_v63, 0.0 }
 0x145   :  { %v1672_v8 = vpack.c.bf16 %v1067_v2, %v1066_v0  ;;  %v1752_v9 = vpack.c.bf16 %v1099_v3, %v1098_v1 }
 0x146   :  { %v1667_v10 = vpack.c.bf16 %v1065_v6, %v1064_v4  ;;  %v1747_v11 = vpack.c.bf16 %v1097_v7, %v1096_v5 }
 0x147   :  { %1768 = vst [vmem:[%s2287_s3 + $0x78] sm:$0xff] %v1672_v8   ;;  %1784 = vst [vmem:[%s2287_s3 + $0xf8] sm:$0xff] %v1752_v9  }
 0x148   :  { %1767 = vst [vmem:[%s2287_s3 + $0x70] sm:$0xff] %v1667_v10   ;;  %1783 = vst [vmem:[%s2287_s3 + $0xf0] sm:$0xff] %v1747_v11  }
 0x149   :  { %1424 = vsyncpa [#allocation4], 1 }

// kernel: hand_gesture_forward.16
= control target key start
LH: loop header
LB: loop body
LE: loop exit
PB: predicated region body
PF: predicated region fallthrough
CT: control target
= control target key end

     0   :  { %v4029_v0 = vmov 0   ;;  %s5169_s1 = inlined_call_operand.vmem [shape: bf16[640,128], index: 1, kind: input, shape index: {}]   ;;  %s5170_s0 = inlined_call_operand.vmem [shape: bf16[512,640], index: 0, kind: input, shape index: {}]   ;;  %s5171_s2 = inlined_call_operand.vmem [shape: f32[1,128], index: 2, kind: input, shape index: {}]   ;;  %s5172_s3 = inlined_call_operand.vmem [shape: bf16[512,128], index: 3, kind: output, shape index: {}]  }
   0x1   :  { %1491 = vmatprep.subr.bf16.mxu0 %v4029_v0  ;;  %3652 = vmatprep.subr.bf16.mxu1 %v4029_v0  ;;  %v3765_v1 = vld [vmem:[%s5169_s1] sm:$0xff]   ;;  %v3766_v2 = vld [vmem:[%s5169_s1 + $0x8] sm:$0xff]   ;;  %v3767_v3 = vld [vmem:[%s5169_s1 + $0x10] sm:$0xff]  }
   0x2   :  { %1492 = vmatpush1.bf16.msra.mxu0 %v3765_v1  ;;  %3668 = vmatpush1.bf16.msra.mxu1 %v3765_v1  ;;  %v3768_v4 = vld [vmem:[%s5169_s1 + $0x18] sm:$0xff]   ;;  %v3769_v5 = vld [vmem:[%s5169_s1 + $0x20] sm:$0xff]   ;;  %v3770_v7 = vld [vmem:[%s5169_s1 + $0x28] sm:$0xff]  }
   0x3   :  { %1493 = vmatprep.subr.bf16.mxu0 %v4029_v0  ;;  %3653 = vmatprep.subr.bf16.mxu1 %v4029_v0  ;;  %v3783_v6 = vld [vmem:[%s5170_s0 + $0x4] ss:$20 sps:$4 sm:$0xff]   ;;  %v3771_v9 = vld [vmem:[%s5169_s1 + $0x30] sm:$0xff]   ;;  %v3774_v12 = vld [vmem:[%s5169_s1 + $0x48] sm:$0xff]  }
   0x4   :  { %v3786_v8 = vld [vmem:[%s5170_s0 + $0x144] ss:$20 sps:$4 sm:$0xff]   ;;  %1523 = vmatprep.mubr.bf16.mxu0 %v3783_v6  ;;  %v3775_v13 = vld [vmem:[%s5169_s1 + $0x50] sm:$0xff]   ;;  %v3778_v16 = vld [vmem:[%s5169_s1 + $0x68] sm:$0xff]  }
   0x5   :  { %1587 = vmatprep.mubr.bf16.mxu1 %v3786_v8  ;;  %v3772_v10 = vld [vmem:[%s5169_s1 + $0x38] sm:$0xff]   ;;  %v3773_v11 = vld [vmem:[%s5169_s1 + $0x40] sm:$0xff]   ;;  %v3779_v17 = vld [vmem:[%s5169_s1 + $0x70] sm:$0xff]  }
   0x6   :  { %1494 = vmatpush1.bf16.msra.mxu0 %v3766_v2  ;;  %3669 = vmatpush1.bf16.msra.mxu1 %v3766_v2  ;;  %v3776_v14 = vld [vmem:[%s5169_s1 + $0x58] sm:$0xff]   ;;  %v3777_v15 = vld [vmem:[%s5169_s1 + $0x60] sm:$0xff]   ;;  %v3813_v25 = vld [vmem:[%s5169_s1 + $0x108] sm:$0xff]  }
   0x7   :  { %1495 = vmatprep.subr.bf16.mxu0 %v4029_v0  ;;  %3654 = vmatprep.subr.bf16.mxu1 %v4029_v0  ;;  %v3780_v18 = vld [vmem:[%s5169_s1 + $0x78] sm:$0xff]   ;;  %v3788_v19 = vld [vmem:[%s5169_s1 + $0x100] sm:$0xff]   ;;  %v3789_v26 = vld [vmem:[%s5169_s1 + $0x88] sm:$0xff]  }
   0x8   :  { %v3781_v20 = vld [vmem:[%s5170_s0] ss:$20 sps:$4 sm:$0xff]   ;;  %v3794_v28 = vld [vmem:[%s5170_s0 + $0x28] ss:$20 sps:$4 sm:$0xff]   ;;  %v3802_v35 = vld [vmem:[%s5170_s0 + $0x50] ss:$20 sps:$4 sm:$0xff]  }
   0x9   :  { %v3784_v21 = vld [vmem:[%s5170_s0 + $0x140] ss:$20 sps:$4 sm:$0xff]   ;;  %v3795_v29 = vld [vmem:[%s5170_s0 + $0x168] ss:$20 sps:$4 sm:$0xff]   ;;  %v3803_v36 = vld [vmem:[%s5170_s0 + $0x190] ss:$20 sps:$4 sm:$0xff]  }
   0xa   :  { %1496 = vmatpush1.bf16.msra.mxu0 %v3767_v3  ;;  %3670 = vmatpush1.bf16.msra.mxu1 %v3767_v3  ;;  %v3787_v22 = vld [vmem:[%s5169_s1 + $0x80] sm:$0xff]   ;;  %v3838_v27 = vld [vmem:[%s5169_s1 + $0x110] sm:$0xff]   ;;  %v3860_v33 = vld [vmem:[%s5169_s1 + $0x118] sm:$0xff]  }
   0xb   :  { %1497 = vmatprep.subr.bf16.mxu0 %v4029_v0  ;;  %3655 = vmatprep.subr.bf16.mxu1 %v4029_v0  ;;  %v3790_v23 = vld [vmem:[%s5170_s0 + $0x2c] ss:$20 sps:$4 sm:$0xff]   ;;  %v3796_v30 = vld [vmem:[%s5169_s1 + $0x90] sm:$0xff]   ;;  %v3797_v34 = vld [vmem:[%s5169_s1 + $0x98] sm:$0xff]  }
   0xc   :  { %v3792_v24 = vld [vmem:[%s5170_s0 + $0x16c] ss:$20 sps:$4 sm:$0xff]   ;;  %v3798_v31 = vld [vmem:[%s5170_s0 + $0x54] ss:$20 sps:$4 sm:$0xff]   ;;  %v3806_v38 = vld [vmem:[%s5170_s0 + $0x7c] ss:$20 sps:$4 sm:$0xff]  }
   0xd   :  { %v3800_v32 = vld [vmem:[%s5170_s0 + $0x194] ss:$20 sps:$4 sm:$0xff]   ;;  %v3804_v37 = vld [vmem:[%s5169_s1 + $0xa0] sm:$0xff]   ;;  %v3808_v39 = vld [vmem:[%s5170_s0 + $0x1bc] ss:$20 sps:$4 sm:$0xff]  }
   0xe   :  { %1498 = vmatpush1.bf16.msra.mxu0 %v3768_v4  ;;  %3671 = vmatpush1.bf16.msra.mxu1 %v3768_v4  ;;  %v3879_v40 = vld [vmem:[%s5169_s1 + $0x120] sm:$0xff]   ;;  %v3805_v41 = vld [vmem:[%s5169_s1 + $0xa8] sm:$0xff]   ;;  %v3812_v45 = vld [vmem:[%s5169_s1 + $0xb0] sm:$0xff]  }
   0xf   :  { %1499 = vmatprep.subr.bf16.mxu0 %v4029_v0  ;;  %3656 = vmatprep.subr.bf16.mxu1 %v4029_v0  ;;  %v3898_v42 = vld [vmem:[%s5169_s1 + $0x128] sm:$0xff]   ;;  %v3815_v46 = vld [vmem:[%s5170_s0 + $0xa4] ss:$20 sps:$4 sm:$0xff]   ;;  %v3917_v48 = vld [vmem:[%s5169_s1 + $0x130] sm:$0xff]  }
  0x10   :  { %v3810_v43 = vld [vmem:[%s5170_s0 + $0x78] ss:$20 sps:$4 sm:$0xff]   ;;  %v3819_v50 = vld [vmem:[%s5170_s0 + $0xa0] ss:$20 sps:$4 sm:$0xff]   ;;  %v3827_v56 = vld [vmem:[%s5170_s0 + $0xc8] ss:$20 sps:$4 sm:$0xff]  }
  0x11   :  { %v3811_v44 = vld [vmem:[%s5170_s0 + $0x1b8] ss:$20 sps:$4 sm:$0xff]   ;;  %v3820_v51 = vld [vmem:[%s5170_s0 + $0x1e0] ss:$20 sps:$4 sm:$0xff]   ;;  %v3828_v57 = vld [vmem:[%s5170_s0 + $0x208] ss:$20 sps:$4 sm:$0xff]  }
  0x12   :  { %1500 = vmatpush1.bf16.msra.mxu0 %v3769_v5  ;;  %3672 = vmatpush1.bf16.msra.mxu1 %v3769_v5  ;;  %v3817_v47 = vld [vmem:[%s5170_s0 + $0x1e4] ss:$20 sps:$4 sm:$0xff]   ;;  %v3823_v53 = vld [vmem:[%s5170_s0 + $0xcc] ss:$20 sps:$4 sm:$0xff]   ;;  %v3829_v58 = vld [vmem:[%s5169_s1 + $0xd0] sm:$0xff]  }
  0x13   :  { %1501 = vmatprep.subr.bf16.mxu0 %v4029_v0  ;;  %3657 = vmatprep.subr.bf16.mxu1 %v4029_v0  ;;  %v3814_v49 = vld [vmem:[%s5169_s1 + $0xb8] sm:$0xff]   ;;  %v3821_v52 = vld [vmem:[%s5169_s1 + $0xc0] sm:$0xff]   ;;  %v3822_v55 = vld [vmem:[%s5169_s1 + $0xc8] sm:$0xff]  }
  0x14   :  { %v3825_v54 = vld [vmem:[%s5170_s0 + $0x20c] ss:$20 sps:$4 sm:$0xff]   ;;  %v3831_v59 = vld [vmem:[%s5170_s0 + $0xf4] ss:$20 sps:$4 sm:$0xff]   ;;  %v3936_v61 = vld [vmem:[%s5169_s1 + $0x138] sm:$0xff]  }
  0x15   :  { %v3833_v60 = vld [vmem:[%s5170_s0 + $0x234] ss:$20 sps:$4 sm:$0xff]   ;;  %v3830_v62 = vld [vmem:[%s5169_s1 + $0xd8] sm:$0xff]   ;;  %v3835_v63 = vld [vmem:[%s5170_s0 + $0xf0] ss:$20 sps:$4 sm:$0xff]  }
  0x16   :  { %1502 = vmatpush1.bf16.msra.mxu0 %v3770_v7  ;;  %3673 = vmatpush1.bf16.msra.mxu1 %v3770_v7  ;;  %v3836_v1 = vld [vmem:[%s5170_s0 + $0x230] ss:$20 sps:$4 sm:$0xff]   ;;  %v3839_v5 = vld [vmem:[%s5169_s1 + $0xe8] sm:$0xff]  }
  0x17   :  { %1503 = vmatprep.subr.bf16.mxu0 %v4029_v0  ;;  %3658 = vmatprep.subr.bf16.mxu1 %v4029_v0  ;;  %v3837_v2 = vld [vmem:[%s5169_s1 + $0xe0] sm:$0xff]   ;;  %v3840_v3 = vld [vmem:[%s5170_s0 + $0x11c] ss:$20 sps:$4 sm:$0xff]   ;;  %v3844_v6 = vld [vmem:[%s5170_s0 + $0x118] ss:$20 sps:$4 sm:$0xff]  }
  0x18   :  { %v3842_v4 = vld [vmem:[%s5170_s0 + $0x25c] ss:$20 sps:$4 sm:$0xff]   ;;  %v3845_v7 = vld [vmem:[%s5170_s0 + $0x258] ss:$20 sps:$4 sm:$0xff]  }
  0x19   :  { %v3846_v8 = vld [vmem:[%s5169_s1 + $0xf0] sm:$0xff]  }
  0x1a   :  { %1504 = vmatpush1.bf16.msra.mxu0 %v3771_v9  ;;  %3674 = vmatpush1.bf16.msra.mxu1 %v3771_v9  ;;  %v3848_v9 = vld [vmem:[%s5170_s0 + $0x284] ss:$20 sps:$4 sm:$0xff]  }
  0x1b   :  { %1505 = vmatprep.subr.bf16.mxu0 %v4029_v0  ;;  %3659 = vmatprep.subr.bf16.mxu1 %v4029_v0 }
  0x1e   :  { %1506 = vmatpush1.bf16.msra.mxu0 %v3772_v10  ;;  %3675 = vmatpush1.bf16.msra.mxu1 %v3772_v10  ;;  %v3852_v10 = vld [vmem:[%s5170_s0 + $0xc] ss:$20 sps:$4 sm:$0xff]  }
  0x1f   :  { %1507 = vmatprep.subr.bf16.mxu0 %v4029_v0  ;;  %3660 = vmatprep.subr.bf16.mxu1 %v4029_v0 }
  0x22   :  { %1508 = vmatpush1.bf16.msra.mxu0 %v3773_v11  ;;  %3676 = vmatpush1.bf16.msra.mxu1 %v3773_v11  ;;  %v3847_v11 = vld [vmem:[%s5169_s1 + $0xf8] sm:$0xff]  }
  0x23   :  { %1509 = vmatprep.subr.bf16.mxu0 %v4029_v0  ;;  %3661 = vmatprep.subr.bf16.mxu1 %v4029_v0 }
  0x26   :  { %1510 = vmatpush1.bf16.msra.mxu0 %v3774_v12  ;;  %3677 = vmatpush1.bf16.msra.mxu1 %v3774_v12  ;;  %v3850_v12 = vld [vmem:[%s5170_s0 + $0x8] ss:$20 sps:$4 sm:$0xff]  }
  0x27   :  { %1511 = vmatprep.subr.bf16.mxu0 %v4029_v0  ;;  %3662 = vmatprep.subr.bf16.mxu1 %v4029_v0 }
  0x2a   :  { %1512 = vmatpush1.bf16.msra.mxu0 %v3775_v13  ;;  %3678 = vmatpush1.bf16.msra.mxu1 %v3775_v13  ;;  %v3853_v13 = vld [vmem:[%s5170_s0 + $0x280] ss:$20 sps:$4 sm:$0xff]  }
  0x2b   :  { %1513 = vmatprep.subr.bf16.mxu0 %v4029_v0  ;;  %3663 = vmatprep.subr.bf16.mxu1 %v4029_v0 }
  0x2e   :  { %1514 = vmatpush1.bf16.msra.mxu0 %v3776_v14  ;;  %3679 = vmatpush1.bf16.msra.mxu1 %v3776_v14  ;;  %v3854_v14 = vld [vmem:[%s5170_s0 + $0x2ac] ss:$20 sps:$4 sm:$0xff]  }
  0x2f   :  { %1515 = vmatprep.subr.bf16.mxu0 %v4029_v0  ;;  %3664 = vmatprep.subr.bf16.mxu1 %v4029_v0 }
  0x32   :  { %1516 = vmatpush1.bf16.msra.mxu0 %v3777_v15  ;;  %3680 = vmatpush1.bf16.msra.mxu1 %v3777_v15  ;;  %v3856_v15 = vld [vmem:[%s5170_s0 + $0x34] ss:$20 sps:$4 sm:$0xff]  }
  0x33   :  { %1517 = vmatprep.subr.bf16.mxu0 %v4029_v0  ;;  %3665 = vmatprep.subr.bf16.mxu1 %v4029_v0 }
  0x36   :  { %1518 = vmatpush1.bf16.msra.mxu0 %v3778_v16  ;;  %3681 = vmatpush1.bf16.msra.mxu1 %v3778_v16  ;;  %v3859_v16 = vld [vmem:[%s5170_s0 + $0x30] ss:$20 sps:$4 sm:$0xff]  }
  0x37   :  { %1519 = vmatprep.subr.bf16.mxu0 %v4029_v0  ;;  %3666 = vmatprep.subr.bf16.mxu1 %v4029_v0 }
  0x3a   :  { %1520 = vmatpush1.bf16.msra.mxu0 %v3779_v17  ;;  %3682 = vmatpush1.bf16.msra.mxu1 %v3779_v17  ;;  %v3861_v17 = vld [vmem:[%s5170_s0 + $0x2d4] ss:$20 sps:$4 sm:$0xff]  }
  0x3b   :  { %1521 = vmatprep.subr.bf16.mxu0 %v4029_v0  ;;  %3667 = vmatprep.subr.bf16.mxu1 %v4029_v0 }
  0x3e   :  { %1522 = vmatpush1.bf16.msra.mxu0 %v3780_v18  ;;  %3683 = vmatpush1.bf16.msra.mxu1 %v3780_v18  ;;  %v3863_v18 = vld [vmem:[%s5170_s0 + $0x5c] ss:$20 sps:$4 sm:$0xff]  }
  0x3f   :  { %1780 = vmatprep.subr.bf16.mxu0 %v4029_v0  ;;  %3572 = vmatprep.subr.bf16.mxu1 %v3788_v19 }
  0x41   :  { %1524 = vmatmul.mubr.bf16.vlgmr.msra.gmra.mrb[0].mxu0 %v3781_v20  ;;  %1588 = vmatmul.mubr.bf16.vlgmr.msra.gmra.mrb[0].mxu1 %v3784_v21  ;;  %v3866_v20 = vld [vmem:[%s5170_s0 + $0x58] ss:$20 sps:$4 sm:$0xff]   ;;  %v3867_v21 = vld [vmem:[%s5170_s0 + $0x2fc] ss:$20 sps:$4 sm:$0xff]  }
  0x42   :  { %1781 = vmatpush1.bf16.msra.mxu0 %v3787_v22  ;;  %3573 = vmatpush3.bf16.msra.mxu1 %v3788_v19  ;;  %v3865_v19 = vld [vmem:[%s5170_s0 + $0x2d0] ss:$20 sps:$4 sm:$0xff]  }
  0x43   :  { %1782 = vmatprep.subr.bf16.mxu0 %v4029_v0  ;;  %1531 = vmatprep.mubr.bf16.mxu0 %v3790_v23  ;;  %v3869_v22 = vld [vmem:[%s5170_s0 + $0x84] ss:$20 sps:$4 sm:$0xff]  }
  0x44   :  { %1595 = vmatprep.mubr.bf16.mxu1 %v3792_v24  ;;  %3574 = vmatprep.subr.bf16.mxu1 %v3813_v25  ;;  %v3871_v23 = vld [vmem:[%s5170_s0 + $0x2f8] ss:$20 sps:$4 sm:$0xff]   ;;  %v3872_v24 = vld [vmem:[%s5170_s0 + $0x80] ss:$20 sps:$4 sm:$0xff]  }
  0x46   :  { %1783 = vmatpush1.bf16.msra.mxu0 %v3789_v26  ;;  %3575 = vmatpush3.bf16.msra.mxu1 %v3813_v25  ;;  %v3873_v25 = vld [vmem:[%s5170_s0 + $0x324] ss:$20 sps:$4 sm:$0xff]   ;;  %v3875_v26 = vld [vmem:[%s5170_s0 + $0xac] ss:$20 sps:$4 sm:$0xff]  }
  0x47   :  { %1784 = vmatprep.subr.bf16.mxu0 %v4029_v0  ;;  %3576 = vmatprep.subr.bf16.mxu1 %v3838_v27 }
  0x49   :  { %1532 = vmatmul.mubr.bf16.gmra.mrb[4].mxu0 %v3794_v28  ;;  %1596 = vmatmul.mubr.bf16.gmra.mrb[4].mxu1 %v3795_v29  ;;  %v3878_v28 = vld [vmem:[%s5170_s0 + $0xa8] ss:$20 sps:$4 sm:$0xff]   ;;  %v3880_v29 = vld [vmem:[%s5170_s0 + $0x34c] ss:$20 sps:$4 sm:$0xff]  }
  0x4a   :  { %1785 = vmatpush1.bf16.msra.mxu0 %v3796_v30  ;;  %1539 = vmatprep.mubr.bf16.mxu0 %v3798_v31  ;;  %v3882_v30 = vld [vmem:[%s5170_s0 + $0xd4] ss:$20 sps:$4 sm:$0xff]  }
  0x4b   :  { %1786 = vmatprep.subr.bf16.mxu0 %v4029_v0  ;;  %1603 = vmatprep.mubr.bf16.mxu1 %v3800_v32  ;;  %v3884_v31 = vld [vmem:[%s5170_s0 + $0x348] ss:$20 sps:$4 sm:$0xff]   ;;  %v3885_v32 = vld [vmem:[%s5170_s0 + $0xd0] ss:$20 sps:$4 sm:$0xff]  }
  0x4c   :  { %3577 = vmatpush3.bf16.msra.mxu1 %v3838_v27  ;;  %v3877_v27 = vld [vmem:[%s5170_s0 + $0x320] ss:$20 sps:$4 sm:$0xff]  }
  0x4d   :  { %3578 = vmatprep.subr.bf16.mxu1 %v3860_v33 }
  0x4e   :  { %1787 = vmatpush1.bf16.msra.mxu0 %v3797_v34  ;;  %v3888_v34 = vld [vmem:[%s5170_s0 + $0xfc] ss:$20 sps:$4 sm:$0xff]  }
  0x4f   :  { %1788 = vmatprep.subr.bf16.mxu0 %v4029_v0 }
  0x50   :  { %3579 = vmatpush3.bf16.msra.mxu1 %v3860_v33  ;;  %v3886_v33 = vld [vmem:[%s5170_s0 + $0x374] ss:$20 sps:$4 sm:$0xff]  }
  0x51   :  { %1540 = vmatmul.mubr.bf16.gmra.mrb[8].mxu0 %v3802_v35  ;;  %1604 = vmatmul.mubr.bf16.gmra.mrb[8].mxu1 %v3803_v36  ;;  %v3890_v35 = vld [vmem:[%s5170_s0 + $0x370] ss:$20 sps:$4 sm:$0xff]   ;;  %v3891_v36 = vld [vmem:[%s5170_s0 + $0xf8] ss:$20 sps:$4 sm:$0xff]  }
  0x52   :  { %1789 = vmatpush1.bf16.msra.mxu0 %v3804_v37  ;;  %1547 = vmatprep.mubr.bf16.mxu0 %v3806_v38  ;;  %v3892_v37 = vld [vmem:[%s5170_s0 + $0x39c] ss:$20 sps:$4 sm:$0xff]   ;;  %v3894_v38 = vld [vmem:[%s5170_s0 + $0x124] ss:$20 sps:$4 sm:$0xff]  }
  0x53   :  { %1790 = vmatprep.subr.bf16.mxu0 %v4029_v0  ;;  %1611 = vmatprep.mubr.bf16.mxu1 %v3808_v39  ;;  %v3896_v39 = vld [vmem:[%s5170_s0 + $0x398] ss:$20 sps:$4 sm:$0xff]  }
  0x54   :  { %3580 = vmatprep.subr.bf16.mxu1 %v3879_v40 }
  0x55   :  { %3581 = vmatpush3.bf16.msra.mxu1 %v3879_v40  ;;  %v3897_v40 = vld [vmem:[%s5170_s0 + $0x120] ss:$20 sps:$4 sm:$0xff]  }
  0x56   :  { %1791 = vmatpush1.bf16.msra.mxu0 %v3805_v41  ;;  %3582 = vmatprep.subr.bf16.mxu1 %v3898_v42  ;;  %v3899_v41 = vld [vmem:[%s5170_s0 + $0x3c4] ss:$20 sps:$4 sm:$0xff]  }
  0x57   :  { %1792 = vmatprep.subr.bf16.mxu0 %v4029_v0 }
  0x59   :  { %1548 = vmatmul.mubr.bf16.gmra.mrb[12].mxu0 %v3810_v43  ;;  %1612 = vmatmul.mubr.bf16.gmra.mrb[12].mxu1 %v3811_v44  ;;  %v3903_v43 = vld [vmem:[%s5170_s0 + $0x3c0] ss:$20 sps:$4 sm:$0xff]   ;;  %v3904_v44 = vld [vmem:[%s5170_s0 + $0x148] ss:$20 sps:$4 sm:$0xff]  }
  0x5a   :  { %1793 = vmatpush1.bf16.msra.mxu0 %v3812_v45  ;;  %1555 = vmatprep.mubr.bf16.mxu0 %v3815_v46  ;;  %v3905_v45 = vld [vmem:[%s5170_s0 + $0x3ec] ss:$20 sps:$4 sm:$0xff]   ;;  %v3907_v46 = vld [vmem:[%s5170_s0 + $0x174] ss:$20 sps:$4 sm:$0xff]  }
  0x5b   :  { %1794 = vmatprep.subr.bf16.mxu0 %v4029_v0  ;;  %1619 = vmatprep.mubr.bf16.mxu1 %v3817_v47  ;;  %v3909_v47 = vld [vmem:[%s5170_s0 + $0x3e8] ss:$20 sps:$4 sm:$0xff]  }
  0x5c   :  { %3583 = vmatpush3.bf16.msra.mxu1 %v3898_v42  ;;  %v3901_v42 = vld [vmem:[%s5170_s0 + $0x14c] ss:$20 sps:$4 sm:$0xff]  }
  0x5d   :  { %3584 = vmatprep.subr.bf16.mxu1 %v3917_v48 }
  0x5e   :  { %1795 = vmatpush1.bf16.msra.mxu0 %v3814_v49  ;;  %v3911_v49 = vld [vmem:[%s5170_s0 + $0x414] ss:$20 sps:$4 sm:$0xff]  }
  0x5f   :  { %1796 = vmatprep.subr.bf16.mxu0 %v4029_v0 }
  0x60   :  { %3585 = vmatpush3.bf16.msra.mxu1 %v3917_v48  ;;  %v3910_v48 = vld [vmem:[%s5170_s0 + $0x170] ss:$20 sps:$4 sm:$0xff]  }
  0x61   :  { %1556 = vmatmul.mubr.bf16.gmra.mrb[16].mxu0 %v3819_v50  ;;  %1620 = vmatmul.mubr.bf16.gmra.mrb[16].mxu1 %v3820_v51  ;;  %v3913_v50 = vld [vmem:[%s5170_s0 + $0x19c] ss:$20 sps:$4 sm:$0xff]  }
  0x62   :  { %1797 = vmatpush1.bf16.msra.mxu0 %v3821_v52  ;;  %1563 = vmatprep.mubr.bf16.mxu0 %v3823_v53  ;;  %v3915_v51 = vld [vmem:[%s5170_s0 + $0x410] ss:$20 sps:$4 sm:$0xff]   ;;  %v3916_v52 = vld [vmem:[%s5170_s0 + $0x198] ss:$20 sps:$4 sm:$0xff]  }
  0x63   :  { %1798 = vmatprep.subr.bf16.mxu0 %v4029_v0  ;;  %1627 = vmatprep.mubr.bf16.mxu1 %v3825_v54  ;;  %v3918_v53 = vld [vmem:[%s5170_s0 + $0x43c] ss:$20 sps:$4 sm:$0xff]   ;;  %v3920_v54 = vld [vmem:[%s5170_s0 + $0x1c4] ss:$20 sps:$4 sm:$0xff]  }
  0x64   :  { %3586 = vmatprep.subr.bf16.mxu1 %v3936_v61 }
  0x65   :  { %3587 = vmatpush3.bf16.msra.mxu1 %v3936_v61  ;;  %v3930_v61 = vld [vmem:[%s5170_s0 + $0x48c] ss:$20 sps:$4 sm:$0xff]  }
  0x66   :  { %1799 = vmatpush1.bf16.msra.mxu0 %v3822_v55  ;;  %v3922_v55 = vld [vmem:[%s5170_s0 + $0x438] ss:$20 sps:$4 sm:$0xff]  }
  0x67   :  { %1800 = vmatprep.subr.bf16.mxu0 %v4029_v0 }
  0x69   :  { %1564 = vmatmul.mubr.bf16.gmra.mrb[20].mxu0 %v3827_v56  ;;  %1628 = vmatmul.mubr.bf16.gmra.mrb[20].mxu1 %v3828_v57  ;;  %v3923_v56 = vld [vmem:[%s5170_s0 + $0x1c0] ss:$20 sps:$4 sm:$0xff]   ;;  %v3924_v57 = vld [vmem:[%s5170_s0 + $0x464] ss:$20 sps:$4 sm:$0xff]  }
  0x6a   :  { %1801 = vmatpush1.bf16.msra.mxu0 %v3829_v58  ;;  %1571 = vmatprep.mubr.bf16.mxu0 %v3831_v59  ;;  %v3926_v58 = vld [vmem:[%s5170_s0 + $0x1ec] ss:$20 sps:$4 sm:$0xff]  }
  0x6b   :  { %1802 = vmatprep.subr.bf16.mxu0 %v4029_v0  ;;  %1635 = vmatprep.mubr.bf16.mxu1 %v3833_v60  ;;  %v3928_v59 = vld [vmem:[%s5170_s0 + $0x460] ss:$20 sps:$4 sm:$0xff]   ;;  %v3929_v60 = vld [vmem:[%s5170_s0 + $0x1e8] ss:$20 sps:$4 sm:$0xff]  }
  0x6e   :  { %1803 = vmatpush1.bf16.msra.mxu0 %v3830_v62  ;;  %v3932_v62 = vld [vmem:[%s5170_s0 + $0x214] ss:$20 sps:$4 sm:$0xff]  }
  0x6f   :  { %1804 = vmatprep.subr.bf16.mxu0 %v4029_v0 }
  0x71   :  { %1572 = vmatmul.mubr.bf16.gmra.mrb[24].mxu0 %v3835_v63  ;;  %1636 = vmatmul.mubr.bf16.gmra.mrb[24].mxu1 %v3836_v1  ;;  %v3934_v63 = vld [vmem:[%s5170_s0 + $0x488] ss:$20 sps:$4 sm:$0xff]   ;;  %v3935_v1 = vld [vmem:[%s5170_s0 + $0x210] ss:$20 sps:$4 sm:$0xff]  }
  0x72   :  { %1805 = vmatpush1.bf16.msra.mxu0 %v3837_v2  ;;  %1579 = vmatprep.mubr.bf16.mxu0 %v3840_v3  ;;  %v3937_v2 = vld [vmem:[%s5170_s0 + $0x4b4] ss:$20 sps:$4 sm:$0xff]   ;;  %v3939_v3 = vld [vmem:[%s5170_s0 + $0x23c] ss:$20 sps:$4 sm:$0xff]  }
  0x73   :  { %1806 = vmatprep.subr.bf16.mxu0 %v4029_v0  ;;  %1643 = vmatprep.mubr.bf16.mxu1 %v3842_v4  ;;  %v3941_v4 = vld [vmem:[%s5170_s0 + $0x4b0] ss:$20 sps:$4 sm:$0xff]  }
  0x76   :  { %1807 = vmatpush1.bf16.msra.mxu0 %v3839_v5  ;;  %v3942_v5 = vld [vmem:[%s5170_s0 + $0x238] ss:$20 sps:$4 sm:$0xff]  }
  0x77   :  { %1808 = vmatprep.subr.bf16.mxu0 %v4029_v0 }
  0x79   :  { %1580 = vmatmul.mubr.bf16.gmra.mrb[28].mxu0 %v3844_v6  ;;  %1644 = vmatmul.mubr.bf16.gmra.mrb[28].mxu1 %v3845_v7  ;;  %v3943_v6 = vld [vmem:[%s5170_s0 + $0x4dc] ss:$20 sps:$4 sm:$0xff]   ;;  %v3945_v7 = vld [vmem:[%s5170_s0 + $0x264] ss:$20 sps:$4 sm:$0xff]  }
  0x7a   :  { %1809 = vmatpush1.bf16.msra.mxu0 %v3846_v8  ;;  %1651 = vmatprep.mubr.bf16.mxu1 %v3848_v9  ;;  %v3947_v8 = vld [vmem:[%s5170_s0 + $0x4d8] ss:$20 sps:$4 sm:$0xff]   ;;  %v3948_v9 = vld [vmem:[%s5170_s0 + $0x260] ss:$20 sps:$4 sm:$0xff]  }
  0x7b   :  { %1810 = vmatprep.subr.bf16.mxu0 %v4029_v0  ;;  %1812 = vmatprep.mubr.bf16.mxu0 %v3852_v10  ;;  %v3858_v0 = vld [vmem:[%s5170_s0 + $0x2a8] ss:$20 sps:$4 sm:$0xff]   ;;  %v3949_v10 = vld [vmem:[%s5170_s0 + $0x28c] ss:$20 sps:$4 sm:$0xff]  }
  0x7e   :  { %1811 = vmatpush1.bf16.msra.mxu0 %v3847_v11  ;;  %v3951_v11 = vld [vmem:[%s5170_s0 + $0x10] ss:$20 sps:$4 sm:$0xff]  }
  0x81   :  { %1652 = vmatmul.mubr.bf16.gmra.mrb[32].mxu1 %v3853_v13  ;;  %1813 = vmatmul.mubr.bf16.vlgmr.msra.gmra.mrb[0].mxu0 %v3850_v12  ;;  %v3952_v12 = vld [vmem:[%s5170_s0 + $0x288] ss:$20 sps:$4 sm:$0xff]   ;;  %v3953_v13 = vld [vmem:[%s5170_s0 + $0x38] ss:$20 sps:$4 sm:$0xff]  }
  0x82   :  { %1659 = vmatprep.mubr.bf16.mxu1 %v3854_v14  ;;  %1820 = vmatprep.mubr.bf16.mxu0 %v3856_v15  ;;  %v3954_v14 = vld [vmem:[%s5170_s0 + $0x2b4] ss:$20 sps:$4 sm:$0xff]  }
  0x83   :  { %v3956_v15 = vld [vmem:[%s5170_s0 + $0x60] ss:$20 sps:$4 sm:$0xff]  }
  0x89   :  { %1660 = vmatmul.mubr.bf16.gmra.mrb[36].mxu1 %v3858_v0  ;;  %1821 = vmatmul.mubr.bf16.gmra.mrb[4].mxu0 %v3859_v16  ;;  %v3957_v0 = vld [vmem:[%s5170_s0 + $0x2b0] ss:$20 sps:$4 sm:$0xff]   ;;  %v3958_v16 = vld [vmem:[%s5170_s0 + $0x88] ss:$20 sps:$4 sm:$0xff]  }
  0x8a   :  { %1667 = vmatprep.mubr.bf16.mxu1 %v3861_v17  ;;  %1828 = vmatprep.mubr.bf16.mxu0 %v3863_v18  ;;  %v3959_v17 = vld [vmem:[%s5170_s0 + $0x2dc] ss:$20 sps:$4 sm:$0xff]  }
  0x8b   :  { %v3961_v18 = vld [vmem:[%s5170_s0 + $0xb0] ss:$20 sps:$4 sm:$0xff]  }
  0x91   :  { %1668 = vmatmul.mubr.bf16.gmra.mrb[40].mxu1 %v3865_v19  ;;  %1829 = vmatmul.mubr.bf16.gmra.mrb[8].mxu0 %v3866_v20  ;;  %v3962_v19 = vld [vmem:[%s5170_s0 + $0x2d8] ss:$20 sps:$4 sm:$0xff]  }
  0x92   :  { %1675 = vmatprep.mubr.bf16.mxu1 %v3867_v21  ;;  %1836 = vmatprep.mubr.bf16.mxu0 %v3869_v22  ;;  %v3963_v20 = vld [vmem:[%s5170_s0 + $0xd8] ss:$20 sps:$4 sm:$0xff]   ;;  %v3966_v22 = vld [vmem:[%s5170_s0 + $0x100] ss:$20 sps:$4 sm:$0xff]  }
  0x93   :  { %v3964_v21 = vld [vmem:[%s5170_s0 + $0x304] ss:$20 sps:$4 sm:$0xff]  }
  0x99   :  { %1676 = vmatmul.mubr.bf16.gmra.mrb[44].mxu1 %v3871_v23  ;;  %1837 = vmatmul.mubr.bf16.gmra.mrb[12].mxu0 %v3872_v24 }
  0x9a   :  { %1683 = vmatprep.mubr.bf16.mxu1 %v3873_v25  ;;  %1844 = vmatprep.mubr.bf16.mxu0 %v3875_v26  ;;  %v3967_v25 = vld [vmem:[%s5170_s0 + $0x300] ss:$20 sps:$4 sm:$0xff]   ;;  %v3968_v26 = vld [vmem:[%s5170_s0 + $0x128] ss:$20 sps:$4 sm:$0xff]  }
  0xa1   :  { %1684 = vmatmul.mubr.bf16.gmra.mrb[48].mxu1 %v3877_v27  ;;  %1845 = vmatmul.mubr.bf16.gmra.mrb[16].mxu0 %v3878_v28  ;;  %v3969_v28 = vld [vmem:[%s5170_s0 + $0x32c] ss:$20 sps:$4 sm:$0xff]  }
  0xa2   :  { %1691 = vmatprep.mubr.bf16.mxu1 %v3880_v29  ;;  %1852 = vmatprep.mubr.bf16.mxu0 %v3882_v30  ;;  %v3971_v29 = vld [vmem:[%s5170_s0 + $0x150] ss:$20 sps:$4 sm:$0xff]  }
  0xa9   :  { %1692 = vmatmul.mubr.bf16.gmra.mrb[52].mxu1 %v3884_v31  ;;  %1853 = vmatmul.mubr.bf16.gmra.mrb[20].mxu0 %v3885_v32 }
  0xaa   :  { %1699 = vmatprep.mubr.bf16.mxu1 %v3886_v33  ;;  %1860 = vmatprep.mubr.bf16.mxu0 %v3888_v34  ;;  %v3972_v33 = vld [vmem:[%s5170_s0 + $0x328] ss:$20 sps:$4 sm:$0xff]   ;;  %v3973_v34 = vld [vmem:[%s5170_s0 + $0x178] ss:$20 sps:$4 sm:$0xff]  }
  0xb1   :  { %1700 = vmatmul.mubr.bf16.gmra.mrb[56].mxu1 %v3890_v35  ;;  %1861 = vmatmul.mubr.bf16.gmra.mrb[24].mxu0 %v3891_v36  ;;  %v3974_v36 = vld [vmem:[%s5170_s0 + $0x354] ss:$20 sps:$4 sm:$0xff]  }
  0xb2   :  { %1707 = vmatprep.mubr.bf16.mxu1 %v3892_v37  ;;  %1868 = vmatprep.mubr.bf16.mxu0 %v3894_v38  ;;  %v3976_v37 = vld [vmem:[%s5170_s0 + $0x1a0] ss:$20 sps:$4 sm:$0xff]  }
  0xb9   :  { %1708 = vmatmul.mubr.bf16.gmra.mrb[60].mxu1 %v3896_v39  ;;  %1869 = vmatmul.mubr.bf16.gmra.mrb[28].mxu0 %v3897_v40 }
  0xba   :  { %1715 = vmatprep.mubr.bf16.mxu1 %v3899_v41  ;;  %1876 = vmatprep.mubr.bf16.mxu0 %v3901_v42  ;;  %v3977_v41 = vld [vmem:[%s5170_s0 + $0x350] ss:$20 sps:$4 sm:$0xff]   ;;  %v3978_v42 = vld [vmem:[%s5170_s0 + $0x1c8] ss:$20 sps:$4 sm:$0xff]  }
  0xc1   :  { %1716 = vmatmul.mubr.bf16.gmra.mrb[64].mxu1 %v3903_v43  ;;  %1877 = vmatmul.mubr.bf16.gmra.mrb[32].mxu0 %v3904_v44  ;;  %v3979_v44 = vld [vmem:[%s5170_s0 + $0x37c] ss:$20 sps:$4 sm:$0xff]  }
  0xc2   :  { %1723 = vmatprep.mubr.bf16.mxu1 %v3905_v45  ;;  %1884 = vmatprep.mubr.bf16.mxu0 %v3907_v46  ;;  %v3981_v45 = vld [vmem:[%s5170_s0 + $0x1f0] ss:$20 sps:$4 sm:$0xff]  }
  0xc9   :  { %1724 = vmatmul.mubr.bf16.gmra.mrb[68].mxu1 %v3909_v47  ;;  %1885 = vmatmul.mubr.bf16.gmra.mrb[36].mxu0 %v3910_v48 }
  0xca   :  { %1731 = vmatprep.mubr.bf16.mxu1 %v3911_v49  ;;  %1892 = vmatprep.mubr.bf16.mxu0 %v3913_v50  ;;  %v3982_v49 = vld [vmem:[%s5170_s0 + $0x378] ss:$20 sps:$4 sm:$0xff]  }
  0xcb   :  { %v3983_v50 = vld [vmem:[%s5170_s0 + $0x218] ss:$20 sps:$4 sm:$0xff]  }
  0xd1   :  { %1732 = vmatmul.mubr.bf16.gmra.mrb[72].mxu1 %v3915_v51  ;;  %1893 = vmatmul.mubr.bf16.gmra.mrb[40].mxu0 %v3916_v52  ;;  %v3984_v52 = vld [vmem:[%s5170_s0 + $0x3a4] ss:$20 sps:$4 sm:$0xff]  }
  0xd2   :  { %1739 = vmatprep.mubr.bf16.mxu1 %v3918_v53  ;;  %1900 = vmatprep.mubr.bf16.mxu0 %v3920_v54  ;;  %v3986_v53 = vld [vmem:[%s5170_s0 + $0x240] ss:$20 sps:$4 sm:$0xff]  }
  0xd9   :  { %1740 = vmatmul.mubr.bf16.gmra.mrb[76].mxu1 %v3922_v55  ;;  %1901 = vmatmul.mubr.bf16.gmra.mrb[44].mxu0 %v3923_v56 }
  0xda   :  { %1747 = vmatprep.mubr.bf16.mxu1 %v3924_v57  ;;  %1908 = vmatprep.mubr.bf16.mxu0 %v3926_v58  ;;  %v3987_v57 = vld [vmem:[%s5170_s0 + $0x3a0] ss:$20 sps:$4 sm:$0xff]   ;;  %v3988_v58 = vld [vmem:[%s5170_s0 + $0x268] ss:$20 sps:$4 sm:$0xff]  }
  0xe1   :  { %1748 = vmatmul.mubr.bf16.gmra.mrb[80].mxu1 %v3928_v59  ;;  %1909 = vmatmul.mubr.bf16.gmra.mrb[48].mxu0 %v3929_v60  ;;  %v3989_v60 = vld [vmem:[%s5170_s0 + $0x3cc] ss:$20 sps:$4 sm:$0xff]  }
  0xe2   :  { %1755 = vmatprep.mubr.bf16.mxu1 %v3930_v61  ;;  %1916 = vmatprep.mubr.bf16.mxu0 %v3932_v62  ;;  %v3991_v61 = vld [vmem:[%s5170_s0 + $0x290] ss:$20 sps:$4 sm:$0xff]  }
  0xe9   :  { %1756 = vmatmul.mubr.bf16.gmra.mrb[84].mxu1 %v3934_v63  ;;  %1917 = vmatmul.mubr.bf16.gmra.mrb[52].mxu0 %v3935_v1 }
  0xea   :  { %1763 = vmatprep.mubr.bf16.mxu1 %v3937_v2  ;;  %1924 = vmatprep.mubr.bf16.mxu0 %v3939_v3  ;;  %v3992_v2 = vld [vmem:[%s5170_s0 + $0x3c8] ss:$20 sps:$4 sm:$0xff]   ;;  %v3993_v3 = vld [vmem:[%s5170_s0 + $0x2b8] ss:$20 sps:$4 sm:$0xff]  }
  0xf1   :  { %1764 = vmatmul.mubr.bf16.gmra.mrb[88].mxu1 %v3941_v4  ;;  %1925 = vmatmul.mubr.bf16.gmra.mrb[56].mxu0 %v3942_v5  ;;  %v3994_v5 = vld [vmem:[%s5170_s0 + $0x3f4] ss:$20 sps:$4 sm:$0xff]  }
  0xf2   :  { %1771 = vmatprep.mubr.bf16.mxu1 %v3943_v6  ;;  %1932 = vmatprep.mubr.bf16.mxu0 %v3945_v7  ;;  %v3996_v6 = vld [vmem:[%s5170_s0 + $0x2e0] ss:$20 sps:$4 sm:$0xff]  }
  0xf9   :  { %1772 = vmatmul.mubr.bf16.gmra.mrb[92].mxu1 %v3947_v8  ;;  %1933 = vmatmul.mubr.bf16.gmra.mrb[60].mxu0 %v3948_v9 }
  0xfa   :  { %1940 = vmatprep.mubr.bf16.mxu0 %v3949_v10  ;;  %3588 = vmatprep.mubr.bf16.mxu1 %v3951_v11  ;;  %v3997_v10 = vld [vmem:[%s5170_s0 + $0x3f0] ss:$20 sps:$4 sm:$0xff]   ;;  %v3998_v11 = vld [vmem:[%s5170_s0 + $0x308] ss:$20 sps:$4 sm:$0xff]  }
 0x101   :  { %1941 = vmatmul.mubr.bf16.gmra.mrb[64].mxu0 %v3952_v12  ;;  %3589 = vmatmul.mubr.bf16.vlgmr.msra.gmra.mrb[96].mxu1 %v3953_v13  ;;  %v3999_v13 = vld [vmem:[%s5170_s0 + $0x41c] ss:$20 sps:$4 sm:$0xff]  }
 0x102   :  { %1948 = vmatprep.mubr.bf16.mxu0 %v3954_v14  ;;  %3592 = vmatprep.mubr.bf16.mxu1 %v3956_v15  ;;  %v4001_v14 = vld [vmem:[%s5170_s0 + $0x330] ss:$20 sps:$4 sm:$0xff]  }
 0x109   :  { %1949 = vmatmul.mubr.bf16.gmra.mrb[68].mxu0 %v3957_v0  ;;  %3593 = vmatmul.mubr.bf16.gmra.mrb[100].mxu1 %v3958_v16 }
 0x10a   :  { %1956 = vmatprep.mubr.bf16.mxu0 %v3959_v17  ;;  %3596 = vmatprep.mubr.bf16.mxu1 %v3961_v18  ;;  %v4002_v17 = vld [vmem:[%s5170_s0 + $0x418] ss:$20 sps:$4 sm:$0xff]  }
 0x10b   :  { %v4003_v18 = vld [vmem:[%s5170_s0 + $0x358] ss:$20 sps:$4 sm:$0xff]  }
 0x111   :  { %1957 = vmatmul.mubr.bf16.gmra.mrb[72].mxu0 %v3962_v19  ;;  %3597 = vmatmul.mubr.bf16.gmra.mrb[104].mxu1 %v3963_v20  ;;  %v4004_v20 = vld [vmem:[%s5170_s0 + $0x444] ss:$20 sps:$4 sm:$0xff]  }
 0x112   :  { %1964 = vmatprep.mubr.bf16.mxu0 %v3964_v21  ;;  %3600 = vmatprep.mubr.bf16.mxu1 %v3966_v22  ;;  %v4006_v21 = vld [vmem:[%s5170_s0 + $0x380] ss:$20 sps:$4 sm:$0xff]  }
 0x114   :  { %v4548_v23 = vpop.f32.mrb[0].mxu1 }
 0x115   :  { %v1591_v24 = vpop.f32.mrb[1].mxu1 }
 0x116   :  { %v4556_v27 = vpop.f32.mrb[2].mxu1 }
 0x117   :  { %v1594_v30 = vpop.f32.mrb[3].mxu1 }
 0x118   :  { %v4008_v30 = vld [vmem:[%s5170_s0 + $0x3a8] ss:$20 sps:$4 sm:$0xff]  }
 0x119   :  { %1965 = vmatmul.mubr.bf16.gmra.mrb[76].mxu0 %v3967_v25  ;;  %3601 = vmatmul.mubr.bf16.gmra.mrb[108].mxu1 %v3968_v26 }
 0x11a   :  { %1972 = vmatprep.mubr.bf16.mxu0 %v3969_v28  ;;  %3604 = vmatprep.mubr.bf16.mxu1 %v3971_v29  ;;  %v4007_v29 = vld [vmem:[%s5170_s0 + $0x440] ss:$20 sps:$4 sm:$0xff]  }
 0x11c   :  { %v4564_v31 = vpop.f32.mrb[4].mxu1 }
 0x11d   :  { %v1599_v32 = vpop.f32.mrb[5].mxu1 }
 0x11e   :  { %v4572_v35 = vpop.f32.mrb[6].mxu1 }
 0x11f   :  { %v1602_v38 = vpop.f32.mrb[7].mxu1 }
 0x121   :  { %1973 = vmatmul.mubr.bf16.gmra.mrb[80].mxu0 %v3972_v33  ;;  %3605 = vmatmul.mubr.bf16.gmra.mrb[112].mxu1 %v3973_v34  ;;  %v4009_v34 = vld [vmem:[%s5170_s0 + $0x46c] ss:$20 sps:$4 sm:$0xff]  }
 0x122   :  { %1980 = vmatprep.mubr.bf16.mxu0 %v3974_v36  ;;  %3608 = vmatprep.mubr.bf16.mxu1 %v3976_v37  ;;  %v4011_v36 = vld [vmem:[%s5170_s0 + $0x3d0] ss:$20 sps:$4 sm:$0xff]  }
 0x124   :  { %v4580_v39 = vpop.f32.mrb[8].mxu1 }
 0x125   :  { %v1607_v40 = vpop.f32.mrb[9].mxu1 }
 0x126   :  { %v4588_v43 = vpop.f32.mrb[10].mxu1 }
 0x127   :  { %v1610_v46 = vpop.f32.mrb[11].mxu1 }
 0x128   :  { %v4013_v46 = vld [vmem:[%s5170_s0 + $0x3f8] ss:$20 sps:$4 sm:$0xff]  }
 0x129   :  { %1981 = vmatmul.mubr.bf16.gmra.mrb[84].mxu0 %v3977_v41  ;;  %3609 = vmatmul.mubr.bf16.gmra.mrb[116].mxu1 %v3978_v42 }
 0x12a   :  { %1988 = vmatprep.mubr.bf16.mxu0 %v3979_v44  ;;  %3612 = vmatprep.mubr.bf16.mxu1 %v3981_v45  ;;  %v4012_v45 = vld [vmem:[%s5170_s0 + $0x468] ss:$20 sps:$4 sm:$0xff]  }
 0x12c   :  { %v4596_v47 = vpop.f32.mrb[12].mxu1 }
 0x12d   :  { %v1615_v48 = vpop.f32.mrb[13].mxu1 }
 0x12e   :  { %v4604_v51 = vpop.f32.mrb[14].mxu1 }
 0x12f   :  { %v1618_v54 = vpop.f32.mrb[15].mxu1 }
 0x131   :  { %1989 = vmatmul.mubr.bf16.gmra.mrb[88].mxu0 %v3982_v49  ;;  %3613 = vmatmul.mubr.bf16.gmra.mrb[120].mxu1 %v3983_v50  ;;  %v4014_v50 = vld [vmem:[%s5170_s0 + $0x494] ss:$20 sps:$4 sm:$0xff]  }
 0x132   :  { %1996 = vmatprep.mubr.bf16.mxu0 %v3984_v52  ;;  %3616 = vmatprep.mubr.bf16.mxu1 %v3986_v53  ;;  %v4016_v52 = vld [vmem:[%s5170_s0 + $0x420] ss:$20 sps:$4 sm:$0xff]  }
 0x134   :  { %v4612_v55 = vpop.f32.mrb[16].mxu1 }
 0x135   :  { %v1623_v56 = vpop.f32.mrb[17].mxu1 }
 0x136   :  { %v4620_v59 = vpop.f32.mrb[18].mxu1 }
 0x137   :  { %v1626_v62 = vpop.f32.mrb[19].mxu1 }
 0x138   :  { %v4018_v62 = vld [vmem:[%s5170_s0 + $0x448] ss:$20 sps:$4 sm:$0xff]  }
 0x139   :  { %1997 = vmatmul.mubr.bf16.gmra.mrb[92].mxu0 %v3987_v57  ;;  %3617 = vmatmul.mubr.bf16.gmra.mrb[124].mxu1 %v3988_v58 }
 0x13a   :  { %2004 = vmatprep.mubr.bf16.mxu0 %v3989_v60  ;;  %3620 = vmatprep.mubr.bf16.mxu1 %v3991_v61  ;;  %v4017_v61 = vld [vmem:[%s5170_s0 + $0x490] ss:$20 sps:$4 sm:$0xff]  }
 0x13c   :  { %v4628_v63 = vpop.f32.mrb[20].mxu1 }
 0x13d   :  { %v1631_v1 = vpop.f32.mrb[21].mxu1 }
 0x13e   :  { %v4636_v4 = vpop.f32.mrb[22].mxu1 }
 0x13f   :  { %v1634_v7 = vpop.f32.mrb[23].mxu1 }
 0x141   :  { %2005 = vmatmul.mubr.bf16.gmra.mrb[96].mxu0 %v3992_v2  ;;  %3621 = vmatmul.mubr.bf16.gmra.mrb[128].mxu1 %v3993_v3  ;;  %v4019_v3 = vld [vmem:[%s5170_s0 + $0x4bc] ss:$20 sps:$4 sm:$0xff]  }
 0x142   :  { %2012 = vmatprep.mubr.bf16.mxu0 %v3994_v5  ;;  %3624 = vmatprep.mubr.bf16.mxu1 %v3996_v6  ;;  %v4021_v5 = vld [vmem:[%s5170_s0 + $0x470] ss:$20 sps:$4 sm:$0xff]  }
 0x144   :  { %v4644_v8 = vpop.f32.mrb[24].mxu1 }
 0x145   :  { %v1639_v9 = vpop.f32.mrb[25].mxu1 }
 0x146   :  { %v4652_v12 = vpop.f32.mrb[26].mxu1 }
 0x147   :  { %v1642_v15 = vpop.f32.mrb[27].mxu1 }
 0x148   :  { %v4023_v15 = vld [vmem:[%s5170_s0 + $0x498] ss:$20 sps:$4 sm:$0xff]  }
 0x149   :  { %2013 = vmatmul.mubr.bf16.gmra.mrb[100].mxu0 %v3997_v10  ;;  %3625 = vmatmul.mubr.bf16.gmra.mrb[132].mxu1 %v3998_v11 }
 0x14a   :  { %2020 = vmatprep.mubr.bf16.mxu0 %v3999_v13  ;;  %3628 = vmatprep.mubr.bf16.mxu1 %v4001_v14  ;;  %v4022_v14 = vld [vmem:[%s5170_s0 + $0x4b8] ss:$20 sps:$4 sm:$0xff]  }
 0x14c   :  { %v4660_v0 = vpop.f32.mrb[28].mxu1 }
 0x14d   :  { %v1647_v16 = vpop.f32.mrb[29].mxu1 }
 0x14e   :  { %v4668_v19 = vpop.f32.mrb[30].mxu1 }
 0x14f   :  { %v1650_v22 = vpop.f32.mrb[31].mxu1 }
 0x151   :  { %2021 = vmatmul.mubr.bf16.gmra.mrb[104].mxu0 %v4002_v17  ;;  %3629 = vmatmul.mubr.bf16.gmra.mrb[136].mxu1 %v4003_v18  ;;  %v4024_v18 = vld [vmem:[%s5170_s0 + $0x4e4] ss:$20 sps:$4 sm:$0xff]  }
 0x152   :  { %2028 = vmatprep.mubr.bf16.mxu0 %v4004_v20  ;;  %3632 = vmatprep.mubr.bf16.mxu1 %v4006_v21  ;;  %v4026_v20 = vld [vmem:[%s5170_s0 + $0x4c0] ss:$20 sps:$4 sm:$0xff]  }
 0x154   :  { %v4676_v24 = vpop.f32.mrb[32].mxu1  ;;  %v4678_v25 = vpop.f32.mrb[0].mxu0 }
 0x155   :  { %v1655_v26 = vpop.f32.mrb[33].mxu1  ;;  %v1816_v28 = vpop.f32.mrb[1].mxu0 }
 0x156   :  { %v4686_v32 = vpop.f32.mrb[34].mxu1  ;;  %v4688_v33 = vpop.f32.mrb[2].mxu0 }
 0x157   :  { %v1658_v37 = vpop.f32.mrb[35].mxu1  ;;  %v1819_v38 = vpop.f32.mrb[3].mxu0 }
 0x159   :  { %2029 = vmatmul.mubr.bf16.gmra.mrb[108].mxu0 %v4007_v29  ;;  %3633 = vmatmul.mubr.bf16.gmra.mrb[140].mxu1 %v4008_v30 }
 0x15a   :  { %2036 = vmatprep.mubr.bf16.mxu0 %v4009_v34  ;;  %3636 = vmatprep.mubr.bf16.mxu1 %v4011_v36  ;;  %v4027_v34 = vld [vmem:[%s5170_s0 + $0x4e0] ss:$20 sps:$4 sm:$0xff]   ;;  %v4028_v36 = vld [vmem:[%s5170_s0 + $0x4e8] ss:$20 sps:$4 sm:$0xff]  }
 0x15c   :  { %v4696_v40 = vpop.f32.mrb[36].mxu1  ;;  %v4698_v41 = vpop.f32.mrb[4].mxu0 }
 0x15d   :  { %v1663_v42 = vpop.f32.mrb[37].mxu1  ;;  %v1824_v44 = vpop.f32.mrb[5].mxu0 }
 0x15e   :  { %v4706_v48 = vpop.f32.mrb[38].mxu1  ;;  %v4708_v49 = vpop.f32.mrb[6].mxu0 }
 0x15f   :  { %v1666_v53 = vpop.f32.mrb[39].mxu1  ;;  %v1827_v54 = vpop.f32.mrb[7].mxu0 }
 0x161   :  { %2037 = vmatmul.mubr.bf16.gmra.mrb[112].mxu0 %v4012_v45  ;;  %3637 = vmatmul.mubr.bf16.gmra.mrb[144].mxu1 %v4013_v46 }
 0x162   :  { %2044 = vmatprep.mubr.bf16.mxu0 %v4014_v50  ;;  %3640 = vmatprep.mubr.bf16.mxu1 %v4016_v52 }
 0x164   :  { %v4716_v56 = vpop.f32.mrb[40].mxu1  ;;  %v4718_v57 = vpop.f32.mrb[8].mxu0 }
 0x165   :  { %v1671_v58 = vpop.f32.mrb[41].mxu1  ;;  %v1832_v60 = vpop.f32.mrb[9].mxu0 }
 0x166   :  { %v4726_v1 = vpop.f32.mrb[42].mxu1  ;;  %v4728_v2 = vpop.f32.mrb[10].mxu0 }
 0x167   :  { %v1674_v6 = vpop.f32.mrb[43].mxu1  ;;  %v1835_v7 = vpop.f32.mrb[11].mxu0 }
 0x169   :  { %2045 = vmatmul.mubr.bf16.gmra.mrb[116].mxu0 %v4017_v61  ;;  %3641 = vmatmul.mubr.bf16.gmra.mrb[148].mxu1 %v4018_v62 }
 0x16a   :  { %2052 = vmatprep.mubr.bf16.mxu0 %v4019_v3  ;;  %3644 = vmatprep.mubr.bf16.mxu1 %v4021_v5 }
 0x16c   :  { %v4736_v9 = vpop.f32.mrb[44].mxu1  ;;  %v4738_v10 = vpop.f32.mrb[12].mxu0 }
 0x16d   :  { %v1679_v11 = vpop.f32.mrb[45].mxu1  ;;  %v1840_v13 = vpop.f32.mrb[13].mxu0 }
 0x16e   :  { %v4746_v16 = vpop.f32.mrb[46].mxu1  ;;  %v4748_v17 = vpop.f32.mrb[14].mxu0 }
 0x16f   :  { %v1682_v21 = vpop.f32.mrb[47].mxu1  ;;  %v1843_v22 = vpop.f32.mrb[15].mxu0 }
 0x171   :  { %2053 = vmatmul.mubr.bf16.gmra.mrb[120].mxu0 %v4022_v14  ;;  %3645 = vmatmul.mubr.bf16.gmra.mrb[152].mxu1 %v4023_v15 }
 0x172   :  { %2060 = vmatprep.mubr.bf16.mxu0 %v4024_v18  ;;  %3648 = vmatprep.mubr.bf16.mxu1 %v4026_v20 }
 0x174   :  { %v4756_v26 = vpop.f32.mrb[48].mxu1  ;;  %v4758_v28 = vpop.f32.mrb[16].mxu0 }
 0x175   :  { %v1687_v29 = vpop.f32.mrb[49].mxu1  ;;  %v1848_v30 = vpop.f32.mrb[17].mxu0 }
 0x176   :  { %v4766_v37 = vpop.f32.mrb[50].mxu1  ;;  %v4768_v38 = vpop.f32.mrb[18].mxu0 }
 0x177   :  { %v1690_v42 = vpop.f32.mrb[51].mxu1  ;;  %v1851_v44 = vpop.f32.mrb[19].mxu0 }
 0x179   :  { %2061 = vmatmul.mubr.bf16.gmra.mrb[124].mxu0 %v4027_v34  ;;  %3649 = vmatmul.mubr.bf16.gmra.mrb[156].mxu1 %v4028_v36 }
 0x17c   :  { %v4770_v45 = vpop.f32.mrb[52].mxu1  ;;  %v4772_v46 = vpop.f32.mrb[20].mxu0 }
 0x17d   :  { %v1695_v50 = vpop.f32.mrb[53].mxu1  ;;  %v1856_v52 = vpop.f32.mrb[21].mxu0 }
 0x17e   :  { %v4774_v53 = vpop.f32.mrb[54].mxu1  ;;  %v4776_v54 = vpop.f32.mrb[22].mxu0 }
 0x17f   :  { %v1698_v58 = vpop.f32.mrb[55].mxu1  ;;  %v1859_v60 = vpop.f32.mrb[23].mxu0 }
 0x184   :  { %v4778_v61 = vpop.f32.mrb[56].mxu1  ;;  %v4780_v62 = vpop.f32.mrb[24].mxu0 }
 0x185   :  { %v1703_v3 = vpop.f32.mrb[57].mxu1  ;;  %v1864_v5 = vpop.f32.mrb[25].mxu0 }
 0x186   :  { %v4782_v6 = vpop.f32.mrb[58].mxu1  ;;  %v4784_v7 = vpop.f32.mrb[26].mxu0 }
 0x187   :  { %v1706_v11 = vpop.f32.mrb[59].mxu1  ;;  %v1867_v13 = vpop.f32.mrb[27].mxu0 }
 0x18c   :  { %v4786_v14 = vpop.f32.mrb[60].mxu1  ;;  %v4788_v15 = vpop.f32.mrb[28].mxu0 }
 0x18d   :  { %v1711_v18 = vpop.f32.mrb[61].mxu1  ;;  %v1872_v20 = vpop.f32.mrb[29].mxu0 }
 0x18e   :  { %v4790_v21 = vpop.f32.mrb[62].mxu1  ;;  %v4792_v22 = vpop.f32.mrb[30].mxu0 }
 0x18f   :  { %v1714_v29 = vpop.f32.mrb[63].mxu1  ;;  %v1875_v30 = vpop.f32.mrb[31].mxu0 }
 0x194   :  { %v4794_v34 = vpop.f32.mrb[64].mxu1  ;;  %v1878_v36 = vpop.f32.mrb[32].mxu0 }
 0x195   :  { %5173 = vst [vmem:[#allocation3_spill] sm:$0xff] %v4794_v34  ;;  %v4797_v42 = vadd.f32 %v1878_v36, %v4548_v23  ;;  %v1719_v44 = vpop.f32.mrb[65].mxu1  ;;  %v1880_v50 = vpop.f32.mrb[33].mxu0 }
 0x196   :  { %v4799_v52 = vpop.f32.mrb[66].mxu1  ;;  %v1881_v58 = vpop.f32.mrb[34].mxu0 }
 0x197   :  { %5174 = vst [vmem:[#allocation4_spill] sm:$0xff] %v4799_v52  ;;  %v4802_v60 = vadd.f32 %v1881_v58, %v4556_v27  ;;  %v1722_v3 = vpop.f32.mrb[67].mxu1  ;;  %v1883_v5 = vpop.f32.mrb[35].mxu0 }
 0x19c   :  { %v4804_v11 = vpop.f32.mrb[68].mxu1  ;;  %v1886_v13 = vpop.f32.mrb[36].mxu0 }
 0x19d   :  { %5175 = vst [vmem:[#allocation5_spill] sm:$0xff] %v4804_v11  ;;  %v4807_v18 = vadd.f32 %v1886_v13, %v4564_v31  ;;  %v1727_v20 = vpop.f32.mrb[69].mxu1  ;;  %v1888_v29 = vpop.f32.mrb[37].mxu0 }
 0x19e   :  { %v4809_v23 = vpop.f32.mrb[70].mxu1  ;;  %v1889_v30 = vpop.f32.mrb[38].mxu0 }
 0x19f   :  { %5176 = vst [vmem:[#allocation6_spill] sm:$0xff] %v4809_v23  ;;  %v4812_v36 = vadd.f32 %v1889_v30, %v4572_v35  ;;  %v1730_v44 = vpop.f32.mrb[71].mxu1  ;;  %v1891_v50 = vpop.f32.mrb[39].mxu0 }
 0x1a4   :  { %v4814_v27 = vpop.f32.mrb[72].mxu1  ;;  %v1894_v58 = vpop.f32.mrb[40].mxu0 }
 0x1a5   :  { %5177 = vst [vmem:[#allocation7_spill] sm:$0xff] %v4814_v27  ;;  %v4817_v3 = vadd.f32 %v1894_v58, %v4580_v39  ;;  %v1735_v5 = vpop.f32.mrb[73].mxu1  ;;  %v1896_v11 = vpop.f32.mrb[41].mxu0 }
 0x1a6   :  { %v4819_v31 = vpop.f32.mrb[74].mxu1  ;;  %v1897_v13 = vpop.f32.mrb[42].mxu0 }
 0x1a7   :  { %5178 = vst [vmem:[#allocation8_spill] sm:$0xff] %v4819_v31  ;;  %v4822_v20 = vadd.f32 %v1897_v13, %v4588_v43  ;;  %v1738_v29 = vpop.f32.mrb[75].mxu1  ;;  %v1899_v23 = vpop.f32.mrb[43].mxu0 }
 0x1ac   :  { %v4824_v35 = vpop.f32.mrb[76].mxu1  ;;  %v1902_v30 = vpop.f32.mrb[44].mxu0 }
 0x1ad   :  { %5179 = vst [vmem:[#allocation9_spill] sm:$0xff] %v4824_v35  ;;  %v4827_v44 = vadd.f32 %v1902_v30, %v4596_v47  ;;  %v1743_v50 = vpop.f32.mrb[77].mxu1  ;;  %v1904_v27 = vpop.f32.mrb[45].mxu0 }
 0x1ae   :  { %v4829_v39 = vpop.f32.mrb[78].mxu1  ;;  %v1905_v58 = vpop.f32.mrb[46].mxu0 }
 0x1af   :  { %5180 = vst [vmem:[#allocation10_spill] sm:$0xff] %v4829_v39  ;;  %v4832_v11 = vadd.f32 %v1905_v58, %v4604_v51  ;;  %v1746_v5 = vpop.f32.mrb[79].mxu1  ;;  %v1907_v31 = vpop.f32.mrb[47].mxu0 }
 0x1b4   :  { %v4834_v43 = vpop.f32.mrb[80].mxu1  ;;  %v1910_v13 = vpop.f32.mrb[48].mxu0 }
 0x1b5   :  { %5181 = vst [vmem:[#allocation11_spill] sm:$0xff] %v4834_v43  ;;  %v4837_v23 = vadd.f32 %v1910_v13, %v4612_v55  ;;  %v1751_v29 = vpop.f32.mrb[81].mxu1  ;;  %v1912_v35 = vpop.f32.mrb[49].mxu0 }
 0x1b6   :  { %v4839_v47 = vpop.f32.mrb[82].mxu1  ;;  %v1913_v30 = vpop.f32.mrb[50].mxu0 }
 0x1b7   :  { %5182 = vst [vmem:[#allocation12_spill] sm:$0xff] %v4839_v47  ;;  %v4842_v27 = vadd.f32 %v1913_v30, %v4620_v59  ;;  %v1754_v50 = vpop.f32.mrb[83].mxu1  ;;  %v1915_v39 = vpop.f32.mrb[51].mxu0 }
 0x1bc   :  { %v4844_v51 = vpop.f32.mrb[84].mxu1  ;;  %v1918_v58 = vpop.f32.mrb[52].mxu0 }
 0x1bd   :  { %5183 = vst [vmem:[#allocation13_spill] sm:$0xff] %v4844_v51  ;;  %v4847_v31 = vadd.f32 %v1918_v58, %v4628_v63  ;;  %v1759_v5 = vpop.f32.mrb[85].mxu1  ;;  %v1920_v43 = vpop.f32.mrb[53].mxu0 }
 0x1be   :  { %v4849_v55 = vpop.f32.mrb[86].mxu1  ;;  %v1921_v13 = vpop.f32.mrb[54].mxu0 }
 0x1bf   :  { %5184 = vst [vmem:[#allocation14_spill] sm:$0xff] %v4849_v55  ;;  %v4852_v35 = vadd.f32 %v1921_v13, %v4636_v4  ;;  %v1762_v29 = vpop.f32.mrb[87].mxu1  ;;  %v1923_v47 = vpop.f32.mrb[55].mxu0 }
 0x1c4   :  { %v4854_v59 = vpop.f32.mrb[88].mxu1  ;;  %v1926_v30 = vpop.f32.mrb[56].mxu0 }
 0x1c5   :  { %5185 = vst [vmem:[#allocation15_spill] sm:$0xff] %v4854_v59  ;;  %v4857_v39 = vadd.f32 %v1926_v30, %v4644_v8  ;;  %v1767_v50 = vpop.f32.mrb[89].mxu1  ;;  %v1928_v51 = vpop.f32.mrb[57].mxu0 }
 0x1c6   :  { %v4859_v63 = vpop.f32.mrb[90].mxu1  ;;  %v1929_v58 = vpop.f32.mrb[58].mxu0 }
 0x1c7   :  { %5186 = vst [vmem:[#allocation16_spill] sm:$0xff] %v4859_v63  ;;  %v4862_v43 = vadd.f32 %v1929_v58, %v4652_v12  ;;  %v1770_v5 = vpop.f32.mrb[91].mxu1  ;;  %v1931_v55 = vpop.f32.mrb[59].mxu0 }
 0x1c8   :  { %v4877_v55 = vld [vmem:[%s5171_s2] ss:$0 sm:$0xff] }
 0x1cc   :  { %v4864_v4 = vpop.f32.mrb[92].mxu1  ;;  %v1934_v13 = vpop.f32.mrb[60].mxu0 }
 0x1cd   :  { %5187 = vst [vmem:[#allocation17_spill] sm:$0xff] %v4864_v4  ;;  %v4867_v47 = vadd.f32 %v1934_v13, %v4660_v0  ;;  %v1775_v29 = vpop.f32.mrb[93].mxu1  ;;  %v1936_v59 = vpop.f32.mrb[61].mxu0 }
 0x1ce   :  { %v4869_v8 = vpop.f32.mrb[94].mxu1  ;;  %v1937_v30 = vpop.f32.mrb[62].mxu0 }
 0x1cf   :  { %5188 = vst [vmem:[#allocation18_spill] sm:$0xff] %v4869_v8  ;;  %v4872_v51 = vadd.f32 %v1937_v30, %v4668_v19  ;;  %v1778_v50 = vpop.f32.mrb[95].mxu1  ;;  %v1939_v63 = vpop.f32.mrb[63].mxu0 }
 0x1d4   :  { %v1942_v12 = vpop.f32.mrb[64].mxu0  ;;  %v3590_v58 = vpop.f32.mrb[96].mxu1 }
 0x1d5   :  { %v4880_v0 = vadd.f32 %v1942_v12, %v4676_v24  ;;  %v2112_v59 = vadd.f32 %v3590_v58, %v4698_v41  ;;  %v1944_v5 = vpop.f32.mrb[65].mxu0  ;;  %v2103_v13 = vpop.f32.mrb[97].mxu1 }
 0x1d6   :  { %v2104_v29 = vadd.f32 %v2103_v13, %v4678_v25  ;;  %v1945_v19 = vpop.f32.mrb[66].mxu0  ;;  %v3591_v30 = vpop.f32.mrb[98].mxu1 }
 0x1d7   :  { %5189 = vst [vmem:[#allocation19_spill] sm:$0xff] %v4880_v0  ;;  %v2562_v63 = vadd.f32 %v4877_v55, %v2112_v59  ;;  %v4886_v50 = vadd.f32 %v1945_v19, %v4686_v32  ;;  %v2115_v8 = vadd.f32 %v3591_v30, %v4708_v49  ;;  %v1947_v4 = vpop.f32.mrb[67].mxu0  ;;  %v2106_v52 = vpop.f32.mrb[99].mxu1 }
 0x1d8   :  { %v2560_v24 = vadd.f32 %v4877_v55, %v2104_v29  ;;  %v2107_v12 = vadd.f32 %v2106_v52, %v4688_v33 }
 0x1d9   :  { %v2563_v41 = vadd.f32 %v4877_v55, %v2115_v8  ;;  %v2626_v25 = vmax.f32 %v2562_v63, 0.0 }
 0x1da   :  { %v2561_v58 = vadd.f32 %v4877_v55, %v2107_v12  ;;  %v2624_v13 = vmax.f32 %v2560_v24, 0.0 }
 0x1db   :  { %v2627_v5 = vmax.f32 %v2563_v41, 0.0 }
 0x1dc   :  { %v2625_v0 = vmax.f32 %v2561_v58, 0.0  ;;  %v1950_v59 = vpop.f32.mrb[68].mxu0  ;;  %v3594_v34 = vpop.f32.mrb[100].mxu1 }
 0x1dd   :  { %v3349_v32 = vpack.c.bf16 %v2627_v5, %v2626_v25  ;;  %v4894_v19 = vadd.f32 %v1950_v59, %v4696_v40  ;;  %v2128_v49 = vadd.f32 %v3594_v34, %v4738_v10  ;;  %v1952_v4 = vpop.f32.mrb[69].mxu0  ;;  %v2119_v29 = vpop.f32.mrb[101].mxu1 }
 0x1de   :  { %v3344_v30 = vpack.c.bf16 %v2625_v0, %v2624_v13  ;;  %v2120_v33 = vadd.f32 %v2119_v29, %v4718_v57  ;;  %v1953_v52 = vpop.f32.mrb[70].mxu0  ;;  %v3595_v8 = vpop.f32.mrb[102].mxu1 }
 0x1df   :  { %3501 = vst [vmem:[%s5172_s3 + $0x8] sm:$0xff] %v3349_v32   ;;  %v2566_v63 = vadd.f32 %v4877_v55, %v2128_v49  ;;  %v4903_v24 = vadd.f32 %v1953_v52, %v4706_v48  ;;  %v2131_v40 = vadd.f32 %v3595_v8, %v4748_v17  ;;  %v1955_v12 = vpop.f32.mrb[71].mxu0  ;;  %v2122_v10 = vpop.f32.mrb[103].mxu1 }
 0x1e0   :  { %3345 = vst [vmem:[%s5172_s3] sm:$0xff] %v3344_v30   ;;  %v2564_v57 = vadd.f32 %v4877_v55, %v2120_v33  ;;  %v2123_v34 = vadd.f32 %v2122_v10, %v4728_v2 }
 0x1e1   :  { %v2567_v0 = vadd.f32 %v4877_v55, %v2131_v40  ;;  %v2630_v58 = vmax.f32 %v2566_v63, 0.0 }
 0x1e2   :  { %v2565_v41 = vadd.f32 %v4877_v55, %v2123_v34  ;;  %v2628_v48 = vmax.f32 %v2564_v57, 0.0 }
 0x1e3   :  { %v2631_v25 = vmax.f32 %v2567_v0, 0.0 }
 0x1e4   :  { %v2629_v5 = vmax.f32 %v2565_v41, 0.0  ;;  %v1958_v13 = vpop.f32.mrb[72].mxu0  ;;  %v3598_v17 = vpop.f32.mrb[104].mxu1 }
 0x1e5   :  { %v3359_v59 = vpack.c.bf16 %v2631_v25, %v2630_v58  ;;  %v4914_v32 = vadd.f32 %v1958_v13, %v4716_v56  ;;  %v2144_v49 = vadd.f32 %v3598_v17, %v4772_v46  ;;  %v1960_v4 = vpop.f32.mrb[73].mxu0  ;;  %v2135_v29 = vpop.f32.mrb[105].mxu1 }
 0x1e6   :  { %v3354_v30 = vpack.c.bf16 %v2629_v5, %v2628_v48  ;;  %v2136_v2 = vadd.f32 %v2135_v29, %v4758_v28  ;;  %v1961_v33 = vpop.f32.mrb[74].mxu0  ;;  %v3599_v52 = vpop.f32.mrb[106].mxu1 }
 0x1e7   :  { %3503 = vst [vmem:[%s5172_s3 + $0x18] sm:$0xff] %v3359_v59   ;;  %v2570_v8 = vadd.f32 %v4877_v55, %v2144_v49  ;;  %v4923_v63 = vadd.f32 %v1961_v33, %v4726_v1  ;;  %v2147_v56 = vadd.f32 %v3599_v52, %v4776_v54  ;;  %v1963_v40 = vpop.f32.mrb[75].mxu0  ;;  %v2138_v46 = vpop.f32.mrb[107].mxu1 }
 0x1e8   :  { %3502 = vst [vmem:[%s5172_s3 + $0x10] sm:$0xff] %v3354_v30   ;;  %v2568_v28 = vadd.f32 %v4877_v55, %v2136_v2  ;;  %v2139_v12 = vadd.f32 %v2138_v46, %v4768_v38 }
 0x1e9   :  { %v2571_v10 = vadd.f32 %v4877_v55, %v2147_v56  ;;  %v2634_v34 = vmax.f32 %v2570_v8, 0.0 }
 0x1ea   :  { %v2569_v57 = vadd.f32 %v4877_v55, %v2139_v12  ;;  %v2632_v1 = vmax.f32 %v2568_v28, 0.0 }
 0x1eb   :  { %v2635_v0 = vmax.f32 %v2571_v10, 0.0 }
 0x1ec   :  { %v2633_v41 = vmax.f32 %v2569_v57, 0.0  ;;  %v1966_v58 = vpop.f32.mrb[76].mxu0  ;;  %v3602_v54 = vpop.f32.mrb[108].mxu1 }
 0x1ed   :  { %v3369_v25 = vpack.c.bf16 %v2635_v0, %v2634_v34  ;;  %v4934_v48 = vadd.f32 %v1966_v58, %v4736_v9  ;;  %v2160_v5 = vadd.f32 %v3602_v54, %v4788_v15  ;;  %v1968_v13 = vpop.f32.mrb[77].mxu0  ;;  %v2151_v17 = vpop.f32.mrb[109].mxu1 }
 0x1ee   :  { %v3364_v59 = vpack.c.bf16 %v2633_v41, %v2632_v1  ;;  %v2152_v38 = vadd.f32 %v2151_v17, %v4780_v62  ;;  %v1969_v49 = vpop.f32.mrb[78].mxu0  ;;  %v3603_v4 = vpop.f32.mrb[110].mxu1 }
 0x1ef   :  { %3505 = vst [vmem:[%s5172_s3 + $0x28] sm:$0xff] %v3369_v25   ;;  %v2574_v29 = vadd.f32 %v4877_v55, %v2160_v5  ;;  %v4943_v30 = vadd.f32 %v1969_v49, %v4746_v16  ;;  %v2163_v9 = vadd.f32 %v3603_v4, %v4792_v22  ;;  %v1971_v2 = vpop.f32.mrb[79].mxu0  ;;  %v2154_v15 = vpop.f32.mrb[111].mxu1 }
 0x1f0   :  { %3504 = vst [vmem:[%s5172_s3 + $0x20] sm:$0xff] %v3364_v59   ;;  %v2572_v62 = vadd.f32 %v4877_v55, %v2152_v38  ;;  %v2155_v33 = vadd.f32 %v2154_v15, %v4784_v7 }
 0x1f1   :  { %v2575_v52 = vadd.f32 %v4877_v55, %v2163_v9  ;;  %v2638_v56 = vmax.f32 %v2574_v29, 0.0 }
 0x1f2   :  { %v2573_v8 = vadd.f32 %v4877_v55, %v2155_v33  ;;  %v2636_v16 = vmax.f32 %v2572_v62, 0.0 }
 0x1f3   :  { %v2639_v40 = vmax.f32 %v2575_v52, 0.0 }
 0x1f4   :  { %v2637_v46 = vmax.f32 %v2573_v8, 0.0  ;;  %v1974_v28 = vpop.f32.mrb[80].mxu0  ;;  %v3606_v22 = vpop.f32.mrb[112].mxu1 }
 0x1f5   :  { %v3379_v12 = vpack.c.bf16 %v2639_v40, %v2638_v56  ;;  %v4954_v10 = vadd.f32 %v1974_v28, %v4756_v26  ;;  %v2176_v57 = vadd.f32 %v3606_v22, %v4807_v18  ;;  %v1976_v34 = vpop.f32.mrb[81].mxu0  ;;  %v2167_v0 = vpop.f32.mrb[113].mxu1 }
 0x1f6   :  { %v3374_v1 = vpack.c.bf16 %v2637_v46, %v2636_v16  ;;  %v2168_v7 = vadd.f32 %v2167_v0, %v4797_v42  ;;  %v1977_v41 = vpop.f32.mrb[82].mxu0  ;;  %v3607_v58 = vpop.f32.mrb[114].mxu1 }
 0x1f7   :  { %3507 = vst [vmem:[%s5172_s3 + $0x38] sm:$0xff] %v3379_v12   ;;  %v2578_v54 = vadd.f32 %v4877_v55, %v2176_v57  ;;  %v4963_v25 = vadd.f32 %v1977_v41, %v4766_v37  ;;  %v2179_v26 = vadd.f32 %v3607_v58, %v4812_v36  ;;  %v1979_v5 = vpop.f32.mrb[83].mxu0  ;;  %v2170_v18 = vpop.f32.mrb[115].mxu1 }
 0x1f8   :  { %3506 = vst [vmem:[%s5172_s3 + $0x30] sm:$0xff] %v3374_v1   ;;  %v2576_v42 = vadd.f32 %v4877_v55, %v2168_v7  ;;  %v2171_v13 = vadd.f32 %v2170_v18, %v4802_v60 }
 0x1f9   :  { %v2579_v17 = vadd.f32 %v4877_v55, %v2179_v26  ;;  %v2642_v38 = vmax.f32 %v2578_v54, 0.0 }
 0x1fa   :  { %v2577_v59 = vadd.f32 %v4877_v55, %v2171_v13  ;;  %v2640_v37 = vmax.f32 %v2576_v42, 0.0 }
 0x1fb   :  { %v2643_v49 = vmax.f32 %v2579_v17, 0.0 }
 0x1fc   :  { %v2641_v4 = vmax.f32 %v2577_v59, 0.0  ;;  %v1982_v29 = vpop.f32.mrb[84].mxu0  ;;  %v3610_v36 = vpop.f32.mrb[116].mxu1 }
 0x1fd   :  { %v3389_v9 = vpack.c.bf16 %v2643_v49, %v2642_v38  ;;  %v4974_v2 = vadd.f32 %v1982_v29, %v4770_v45  ;;  %v2192_v15 = vadd.f32 %v3610_v36, %v4827_v44  ;;  %v1984_v62 = vpop.f32.mrb[85].mxu0  ;;  %v2183_v33 = vpop.f32.mrb[117].mxu1 }
 0x1fe   :  { %v3384_v52 = vpack.c.bf16 %v2641_v4, %v2640_v37  ;;  %v2184_v60 = vadd.f32 %v2183_v33, %v4817_v3  ;;  %v1985_v8 = vpop.f32.mrb[86].mxu0  ;;  %v3611_v56 = vpop.f32.mrb[118].mxu1 }
 0x1ff   :  { %3509 = vst [vmem:[%s5172_s3 + $0x48] sm:$0xff] %v3389_v9   ;;  %v2582_v40 = vadd.f32 %v4877_v55, %v2192_v15  ;;  %v4983_v16 = vadd.f32 %v1985_v8, %v4774_v53  ;;  %v2195_v45 = vadd.f32 %v3611_v56, %v4832_v11  ;;  %v1987_v46 = vpop.f32.mrb[87].mxu0  ;;  %v2186_v44 = vpop.f32.mrb[119].mxu1 }
 0x200   :  { %3508 = vst [vmem:[%s5172_s3 + $0x40] sm:$0xff] %v3384_v52   ;;  %v2580_v3 = vadd.f32 %v4877_v55, %v2184_v60  ;;  %v2187_v28 = vadd.f32 %v2186_v44, %v4822_v20 }
 0x201   :  { %v2583_v22 = vadd.f32 %v4877_v55, %v2195_v45  ;;  %v2646_v57 = vmax.f32 %v2582_v40, 0.0 }
 0x202   :  { %v2581_v12 = vadd.f32 %v4877_v55, %v2187_v28  ;;  %v2644_v53 = vmax.f32 %v2580_v3, 0.0 }
 0x203   :  { %v2647_v34 = vmax.f32 %v2583_v22, 0.0 }
 0x204   :  { %v2645_v0 = vmax.f32 %v2581_v12, 0.0  ;;  %v1990_v1 = vpop.f32.mrb[88].mxu0  ;;  %v3614_v11 = vpop.f32.mrb[120].mxu1 }
 0x205   :  { %v3399_v7 = vpack.c.bf16 %v2647_v34, %v2646_v57  ;;  %v4994_v41 = vadd.f32 %v1990_v1, %v4778_v61  ;;  %v2208_v58 = vadd.f32 %v3614_v11, %v4847_v31  ;;  %v1992_v54 = vpop.f32.mrb[89].mxu0  ;;  %v2199_v26 = vpop.f32.mrb[121].mxu1  ;;  %v5190_v1 = vld [vmem:[#allocation3_spill] sm:$0xff] }
 0x206   :  { %v3394_v5 = vpack.c.bf16 %v2645_v0, %v2644_v53  ;;  %v2200_v20 = vadd.f32 %v2199_v26, %v4837_v23  ;;  %v1993_v18 = vpop.f32.mrb[90].mxu0  ;;  %v3615_v42 = vpop.f32.mrb[122].mxu1 }
 0x207   :  { %3511 = vst [vmem:[%s5172_s3 + $0x58] sm:$0xff] %v3399_v7   ;;  %v2586_v13 = vadd.f32 %v4877_v55, %v2208_v58  ;;  %v5003_v17 = vadd.f32 %v1993_v18, %v4782_v6  ;;  %v2211_v61 = vadd.f32 %v3615_v42, %v4852_v35  ;;  %v1995_v59 = vpop.f32.mrb[91].mxu0  ;;  %v2202_v31 = vpop.f32.mrb[123].mxu1 }
 0x208   :  { %3510 = vst [vmem:[%s5172_s3 + $0x50] sm:$0xff] %v3394_v5   ;;  %v2584_v23 = vadd.f32 %v4877_v55, %v2200_v20  ;;  %v2203_v38 = vadd.f32 %v2202_v31, %v4842_v27 }
 0x209   :  { %v2587_v49 = vadd.f32 %v4877_v55, %v2211_v61  ;;  %v2650_v4 = vmax.f32 %v2586_v13, 0.0  ;;  %v5192_v13 = vld [vmem:[#allocation4_spill] sm:$0xff] }
 0x20a   :  { %v2585_v37 = vadd.f32 %v4877_v55, %v2203_v38  ;;  %v2648_v6 = vmax.f32 %v2584_v23, 0.0 }
 0x20b   :  { %v2651_v29 = vmax.f32 %v2587_v49, 0.0 }
 0x20c   :  { %v2649_v36 = vmax.f32 %v2585_v37, 0.0  ;;  %v1998_v9 = vpop.f32.mrb[92].mxu0  ;;  %v3618_v35 = vpop.f32.mrb[124].mxu1 }
 0x20d   :  { %v3409_v15 = vpack.c.bf16 %v2651_v29, %v2650_v4  ;;  %v5014_v62 = vadd.f32 %v1998_v9, %v4786_v14  ;;  %v2224_v33 = vadd.f32 %v3618_v35, %v4867_v47  ;;  %v2000_v52 = vpop.f32.mrb[93].mxu0  ;;  %v2215_v60 = vpop.f32.mrb[125].mxu1 }
 0x20e   :  { %v3404_v8 = vpack.c.bf16 %v2649_v36, %v2648_v6  ;;  %v2216_v27 = vadd.f32 %v2215_v60, %v4857_v39  ;;  %v2001_v56 = vpop.f32.mrb[94].mxu0  ;;  %v3619_v40 = vpop.f32.mrb[126].mxu1 }
 0x20f   :  { %3513 = vst [vmem:[%s5172_s3 + $0x68] sm:$0xff] %v3409_v15   ;;  %v2590_v45 = vadd.f32 %v4877_v55, %v2224_v33  ;;  %v5023_v46 = vadd.f32 %v2001_v56, %v4790_v21  ;;  %v2227_v14 = vadd.f32 %v3619_v40, %v4872_v51  ;;  %v2003_v44 = vpop.f32.mrb[95].mxu0  ;;  %v2218_v47 = vpop.f32.mrb[127].mxu1  ;;  %v5193_v15 = vld [vmem:[#allocation5_spill] sm:$0xff] }
 0x210   :  { %3512 = vst [vmem:[%s5172_s3 + $0x60] sm:$0xff] %v3404_v8   ;;  %v2588_v39 = vadd.f32 %v4877_v55, %v2216_v27  ;;  %v2219_v3 = vadd.f32 %v2218_v47, %v4862_v43  ;;  %v5191_v43 = vld [vmem:[#allocation19_spill] sm:$0xff] }
 0x211   :  { %v2591_v28 = vadd.f32 %v4877_v55, %v2227_v14  ;;  %v2654_v12 = vmax.f32 %v2590_v45, 0.0  ;;  %v5194_v14 = vld [vmem:[#allocation6_spill] sm:$0xff] }
 0x212   :  { %v2589_v22 = vadd.f32 %v4877_v55, %v2219_v3  ;;  %v2652_v21 = vmax.f32 %v2588_v39, 0.0 }
 0x213   :  { %v2655_v57 = vmax.f32 %v2591_v28, 0.0 }
 0x214   :  { %v2653_v34 = vmax.f32 %v2589_v22, 0.0  ;;  %v2006_v53 = vpop.f32.mrb[96].mxu0  ;;  %v3622_v51 = vpop.f32.mrb[128].mxu1 }
 0x215   :  { %v3419_v0 = vpack.c.bf16 %v2655_v57, %v2654_v12  ;;  %v5034_v11 = vadd.f32 %v2006_v53, %v5190_v1  ;;  %v2240_v7 = vadd.f32 %v3622_v51, %v4894_v19  ;;  %v2008_v58 = vpop.f32.mrb[97].mxu0  ;;  %v2231_v54 = vpop.f32.mrb[129].mxu1 }
 0x216   :  { %v3414_v26 = vpack.c.bf16 %v2653_v34, %v2652_v21  ;;  %v2232_v5 = vadd.f32 %v2231_v54, %v5191_v43  ;;  %v2009_v20 = vpop.f32.mrb[98].mxu0  ;;  %v3623_v18 = vpop.f32.mrb[130].mxu1 }
 0x217   :  { %3515 = vst [vmem:[%s5172_s3 + $0x78] sm:$0xff] %v3419_v0   ;;  %v2594_v42 = vadd.f32 %v4877_v55, %v2240_v7  ;;  %v5043_v61 = vadd.f32 %v2009_v20, %v5192_v13  ;;  %v2243_v59 = vadd.f32 %v3623_v18, %v4903_v24  ;;  %v2011_v31 = vpop.f32.mrb[99].mxu0  ;;  %v2234_v19 = vpop.f32.mrb[131].mxu1  ;;  %v5195_v0 = vld [vmem:[#allocation7_spill] sm:$0xff]  ;;  %v5196_v18 = vld [vmem:[#allocation8_spill] sm:$0xff] }
 0x218   :  { %3514 = vst [vmem:[%s5172_s3 + $0x70] sm:$0xff] %v3414_v26   ;;  %v2592_v23 = vadd.f32 %v4877_v55, %v2232_v5  ;;  %v2235_v38 = vadd.f32 %v2234_v19, %v4886_v50 }
 0x219   :  { %v2595_v49 = vadd.f32 %v4877_v55, %v2243_v59  ;;  %v2658_v4 = vmax.f32 %v2594_v42, 0.0 }
 0x21a   :  { %v2593_v37 = vadd.f32 %v4877_v55, %v2235_v38  ;;  %v2656_v6 = vmax.f32 %v2592_v23, 0.0 }
 0x21b   :  { %v2659_v29 = vmax.f32 %v2595_v49, 0.0 }
 0x21c   :  { %v2657_v36 = vmax.f32 %v2593_v37, 0.0  ;;  %v2014_v9 = vpop.f32.mrb[100].mxu0  ;;  %v3626_v24 = vpop.f32.mrb[132].mxu1 }
 0x21d   :  { %v3429_v35 = vpack.c.bf16 %v2659_v29, %v2658_v4  ;;  %v5054_v33 = vadd.f32 %v2014_v9, %v5193_v15  ;;  %v2256_v52 = vadd.f32 %v3626_v24, %v4934_v48  ;;  %v2016_v60 = vpop.f32.mrb[101].mxu0  ;;  %v2247_v8 = vpop.f32.mrb[133].mxu1 }
 0x21e   :  { %v3424_v27 = vpack.c.bf16 %v2657_v36, %v2656_v6  ;;  %v2248_v50 = vadd.f32 %v2247_v8, %v4914_v32  ;;  %v2017_v56 = vpop.f32.mrb[102].mxu0  ;;  %v3627_v40 = vpop.f32.mrb[134].mxu1  ;;  %v5197_v36 = vld [vmem:[#allocation9_spill] sm:$0xff] }
 0x21f   :  { %3517 = vst [vmem:[%s5172_s3 + $0x88] sm:$0xff] %v3429_v35   ;;  %v2598_v45 = vadd.f32 %v4877_v55, %v2256_v52  ;;  %v5063_v44 = vadd.f32 %v2017_v56, %v5194_v14  ;;  %v2259_v47 = vadd.f32 %v3627_v40, %v4943_v30  ;;  %v2019_v39 = vpop.f32.mrb[103].mxu0  ;;  %v2250_v48 = vpop.f32.mrb[135].mxu1 }
 0x220   :  { %3516 = vst [vmem:[%s5172_s3 + $0x80] sm:$0xff] %v3424_v27   ;;  %v2596_v32 = vadd.f32 %v4877_v55, %v2248_v50  ;;  %v2251_v3 = vadd.f32 %v2250_v48, %v4923_v63  ;;  %v5198_v50 = vld [vmem:[#allocation10_spill] sm:$0xff] }
 0x221   :  { %v2599_v28 = vadd.f32 %v4877_v55, %v2259_v47  ;;  %v2662_v12 = vmax.f32 %v2598_v45, 0.0 }
 0x222   :  { %v2597_v22 = vadd.f32 %v4877_v55, %v2251_v3  ;;  %v2660_v21 = vmax.f32 %v2596_v32, 0.0 }
 0x223   :  { %v2663_v57 = vmax.f32 %v2599_v28, 0.0 }
 0x224   :  { %v2661_v34 = vmax.f32 %v2597_v22, 0.0  ;;  %v2022_v53 = vpop.f32.mrb[104].mxu0  ;;  %v3630_v30 = vpop.f32.mrb[136].mxu1 }
 0x225   :  { %v3439_v51 = vpack.c.bf16 %v2663_v57, %v2662_v12  ;;  %v5074_v1 = vadd.f32 %v2022_v53, %v5195_v0  ;;  %v2272_v7 = vadd.f32 %v3630_v30, %v4974_v2  ;;  %v2024_v58 = vpop.f32.mrb[105].mxu0  ;;  %v2263_v54 = vpop.f32.mrb[137].mxu1  ;;  %v5199_v57 = vld [vmem:[#allocation11_spill] sm:$0xff] }
 0x226   :  { %v3434_v26 = vpack.c.bf16 %v2661_v34, %v2660_v21  ;;  %v2264_v63 = vadd.f32 %v2263_v54, %v4954_v10  ;;  %v2025_v43 = vpop.f32.mrb[106].mxu0  ;;  %v3631_v5 = vpop.f32.mrb[138].mxu1  ;;  %v5200_v54 = vld [vmem:[#allocation12_spill] sm:$0xff] }
 0x227   :  { %3519 = vst [vmem:[%s5172_s3 + $0x98] sm:$0xff] %v3439_v51   ;;  %v2602_v20 = vadd.f32 %v4877_v55, %v2272_v7  ;;  %v5083_v42 = vadd.f32 %v2025_v43, %v5196_v18  ;;  %v2275_v13 = vadd.f32 %v3631_v5, %v4983_v16  ;;  %v2027_v59 = vpop.f32.mrb[107].mxu0  ;;  %v2266_v2 = vpop.f32.mrb[139].mxu1 }
 0x228   :  { %3518 = vst [vmem:[%s5172_s3 + $0x90] sm:$0xff] %v3434_v26   ;;  %v2600_v10 = vadd.f32 %v4877_v55, %v2264_v63  ;;  %v2267_v31 = vadd.f32 %v2266_v2, %v4963_v25 }
 0x229   :  { %v2603_v19 = vadd.f32 %v4877_v55, %v2275_v13  ;;  %v2666_v38 = vmax.f32 %v2602_v20, 0.0 }
 0x22a   :  { %v2601_v23 = vadd.f32 %v4877_v55, %v2267_v31  ;;  %v2664_v37 = vmax.f32 %v2600_v10, 0.0 }
 0x22b   :  { %v2667_v49 = vmax.f32 %v2603_v19, 0.0 }
 0x22c   :  { %v2665_v4 = vmax.f32 %v2601_v23, 0.0  ;;  %v2030_v29 = vpop.f32.mrb[108].mxu0  ;;  %v3634_v16 = vpop.f32.mrb[140].mxu1  ;;  %v5201_v23 = vld [vmem:[#allocation13_spill] sm:$0xff] }
 0x22d   :  { %v3449_v6 = vpack.c.bf16 %v2667_v49, %v2666_v38  ;;  %v2031_v9 = vadd.f32 %v2030_v29, %v5197_v36  ;;  %v2288_v24 = vadd.f32 %v3634_v16, %v5014_v62  ;;  %v2032_v35 = vpop.f32.mrb[109].mxu0  ;;  %v2279_v15 = vpop.f32.mrb[141].mxu1 }
 0x22e   :  { %v3444_v52 = vpack.c.bf16 %v2665_v4, %v2664_v37  ;;  %v2280_v25 = vadd.f32 %v2279_v15, %v4994_v41  ;;  %v2033_v60 = vpop.f32.mrb[110].mxu0  ;;  %v3635_v8 = vpop.f32.mrb[142].mxu1 }
 0x22f   :  { %3521 = vst [vmem:[%s5172_s3 + $0xa8] sm:$0xff] %v3449_v6   ;;  %v2606_v27 = vadd.f32 %v4877_v55, %v2288_v24  ;;  %v2034_v56 = vadd.f32 %v2033_v60, %v5198_v50  ;;  %v2291_v40 = vadd.f32 %v3635_v8, %v5023_v46  ;;  %v2035_v45 = vpop.f32.mrb[111].mxu0  ;;  %v2282_v14 = vpop.f32.mrb[143].mxu1  ;;  %v5202_v24 = vld [vmem:[#allocation14_spill] sm:$0xff] }
 0x230   :  { %3520 = vst [vmem:[%s5172_s3 + $0xa0] sm:$0xff] %v3444_v52   ;;  %v2604_v41 = vadd.f32 %v4877_v55, %v2280_v25  ;;  %v2283_v62 = vadd.f32 %v2282_v14, %v5003_v17 }
 0x231   :  { %v2607_v47 = vadd.f32 %v4877_v55, %v2291_v40  ;;  %v2670_v48 = vmax.f32 %v2606_v27, 0.0 }
 0x232   :  { %v2605_v39 = vadd.f32 %v4877_v55, %v2283_v62  ;;  %v2668_v3 = vmax.f32 %v2604_v41, 0.0  ;;  %v5203_v62 = vld [vmem:[#allocation15_spill] sm:$0xff] }
 0x233   :  { %v2671_v32 = vmax.f32 %v2607_v47, 0.0 }
 0x234   :  { %v2669_v28 = vmax.f32 %v2605_v39, 0.0  ;;  %v2038_v22 = vpop.f32.mrb[112].mxu0  ;;  %v3638_v46 = vpop.f32.mrb[144].mxu1 }
 0x235   :  { %v3459_v12 = vpack.c.bf16 %v2671_v32, %v2670_v48  ;;  %v2039_v21 = vadd.f32 %v2038_v22, %v5199_v57  ;;  %v2304_v34 = vadd.f32 %v3638_v46, %v5054_v33  ;;  %v2040_v53 = vpop.f32.mrb[113].mxu0  ;;  %v2295_v30 = vpop.f32.mrb[145].mxu1 }
 0x236   :  { %v3454_v51 = vpack.c.bf16 %v2669_v28, %v2668_v3  ;;  %v2296_v17 = vadd.f32 %v2295_v30, %v5034_v11  ;;  %v2041_v0 = vpop.f32.mrb[114].mxu0  ;;  %v3639_v7 = vpop.f32.mrb[146].mxu1 }
 0x237   :  { %3523 = vst [vmem:[%s5172_s3 + $0xb8] sm:$0xff] %v3459_v12   ;;  %v2610_v58 = vadd.f32 %v4877_v55, %v2304_v34  ;;  %v2042_v26 = vadd.f32 %v2041_v0, %v5200_v54  ;;  %v2307_v63 = vadd.f32 %v3639_v7, %v5063_v44  ;;  %v2043_v43 = vpop.f32.mrb[115].mxu0  ;;  %v2298_v5 = vpop.f32.mrb[147].mxu1  ;;  %v5204_v12 = vld [vmem:[#allocation16_spill] sm:$0xff] }
 0x238   :  { %3522 = vst [vmem:[%s5172_s3 + $0xb0] sm:$0xff] %v3454_v51   ;;  %v2608_v11 = vadd.f32 %v4877_v55, %v2296_v17  ;;  %v2299_v33 = vadd.f32 %v2298_v5, %v5043_v61 }
 0x239   :  { %v2611_v20 = vadd.f32 %v4877_v55, %v2307_v63  ;;  %v2674_v13 = vmax.f32 %v2610_v58, 0.0 }
 0x23a   :  { %v2609_v18 = vadd.f32 %v4877_v55, %v2299_v33  ;;  %v2672_v2 = vmax.f32 %v2608_v11, 0.0  ;;  %v5205_v33 = vld [vmem:[#allocation17_spill] sm:$0xff] }
 0x23b   :  { %v2675_v59 = vmax.f32 %v2611_v20, 0.0 }
 0x23c   :  { %v2673_v10 = vmax.f32 %v2609_v18, 0.0  ;;  %v2046_v31 = vpop.f32.mrb[116].mxu0  ;;  %v3642_v44 = vpop.f32.mrb[148].mxu1 }
 0x23d   :  { %v3469_v19 = vpack.c.bf16 %v2675_v59, %v2674_v13  ;;  %v2047_v38 = vadd.f32 %v2046_v31, %v5201_v23  ;;  %v2320_v49 = vadd.f32 %v3642_v44, %v2031_v9  ;;  %v2048_v37 = vpop.f32.mrb[117].mxu0  ;;  %v2311_v4 = vpop.f32.mrb[149].mxu1  ;;  %v5206_v44 = vld [vmem:[#allocation18_spill] sm:$0xff] }
 0x23e   :  { %v3464_v29 = vpack.c.bf16 %v2673_v10, %v2672_v2  ;;  %v2312_v16 = vadd.f32 %v2311_v4, %v5074_v1  ;;  %v2049_v61 = vpop.f32.mrb[118].mxu0  ;;  %v3643_v6 = vpop.f32.mrb[150].mxu1 }
 0x23f   :  { %3525 = vst [vmem:[%s5172_s3 + $0xc8] sm:$0xff] %v3469_v19   ;;  %v2614_v36 = vadd.f32 %v4877_v55, %v2320_v49  ;;  %v2050_v35 = vadd.f32 %v2049_v61, %v5202_v24  ;;  %v2323_v15 = vadd.f32 %v3643_v6, %v2034_v56  ;;  %v2051_v52 = vpop.f32.mrb[119].mxu0  ;;  %v2314_v25 = vpop.f32.mrb[151].mxu1 }
 0x240   :  { %3524 = vst [vmem:[%s5172_s3 + $0xc0] sm:$0xff] %v3464_v29   ;;  %v2612_v9 = vadd.f32 %v4877_v55, %v2312_v16  ;;  %v2315_v1 = vadd.f32 %v2314_v25, %v5083_v42 }
 0x241   :  { %v2615_v60 = vadd.f32 %v4877_v55, %v2323_v15  ;;  %v2678_v27 = vmax.f32 %v2614_v36, 0.0 }
 0x242   :  { %v2613_v8 = vadd.f32 %v4877_v55, %v2315_v1  ;;  %v2676_v40 = vmax.f32 %v2612_v9, 0.0 }
 0x243   :  { %v2679_v50 = vmax.f32 %v2615_v60, 0.0 }
 0x244   :  { %v2677_v45 = vmax.f32 %v2613_v8, 0.0  ;;  %v2054_v14 = vpop.f32.mrb[120].mxu0  ;;  %v3646_v56 = vpop.f32.mrb[152].mxu1 }
 0x245   :  { %v3479_v41 = vpack.c.bf16 %v2679_v50, %v2678_v27  ;;  %v2055_v47 = vadd.f32 %v2054_v14, %v5203_v62  ;;  %v2336_v39 = vadd.f32 %v3646_v56, %v2047_v38  ;;  %v2056_v48 = vpop.f32.mrb[121].mxu0  ;;  %v2327_v32 = vpop.f32.mrb[153].mxu1 }
 0x246   :  { %v3474_v3 = vpack.c.bf16 %v2677_v45, %v2676_v40  ;;  %v2328_v28 = vadd.f32 %v2327_v32, %v2039_v21  ;;  %v2057_v22 = vpop.f32.mrb[122].mxu0  ;;  %v3647_v42 = vpop.f32.mrb[154].mxu1 }
 0x247   :  { %3527 = vst [vmem:[%s5172_s3 + $0xd8] sm:$0xff] %v3479_v41   ;;  %v2618_v46 = vadd.f32 %v4877_v55, %v2336_v39  ;;  %v2058_v57 = vadd.f32 %v2057_v22, %v5204_v12  ;;  %v2339_v34 = vadd.f32 %v3647_v42, %v2050_v35  ;;  %v2059_v53 = vpop.f32.mrb[123].mxu0  ;;  %v2330_v30 = vpop.f32.mrb[155].mxu1 }
 0x248   :  { %3526 = vst [vmem:[%s5172_s3 + $0xd0] sm:$0xff] %v3474_v3   ;;  %v2616_v51 = vadd.f32 %v4877_v55, %v2328_v28  ;;  %v2331_v21 = vadd.f32 %v2330_v30, %v2042_v26 }
 0x249   :  { %v2619_v17 = vadd.f32 %v4877_v55, %v2339_v34  ;;  %v2682_v7 = vmax.f32 %v2618_v46, 0.0 }
 0x24a   :  { %v2617_v0 = vadd.f32 %v4877_v55, %v2331_v21  ;;  %v2680_v54 = vmax.f32 %v2616_v51, 0.0 }
 0x24b   :  { %v2683_v58 = vmax.f32 %v2619_v17, 0.0 }
 0x24c   :  { %v2681_v63 = vmax.f32 %v2617_v0, 0.0  ;;  %v2062_v43 = vpop.f32.mrb[124].mxu0  ;;  %v3650_v5 = vpop.f32.mrb[156].mxu1 }
 0x24d   :  { %v3489_v11 = vpack.c.bf16 %v2683_v58, %v2682_v7  ;;  %v2063_v20 = vadd.f32 %v2062_v43, %v5205_v33  ;;  %v2064_v18 = vpop.f32.mrb[125].mxu0  ;;  %v2343_v13 = vpop.f32.mrb[157].mxu1 }
 0x24e   :  { %v3484_v59 = vpack.c.bf16 %v2681_v63, %v2680_v54  ;;  %v2344_v2 = vadd.f32 %v2343_v13, %v2055_v47  ;;  %v2065_v10 = vpop.f32.mrb[126].mxu0  ;;  %v3651_v31 = vpop.f32.mrb[158].mxu1 }
 0x24f   :  { %3529 = vst [vmem:[%s5172_s3 + $0xe8] sm:$0xff] %v3489_v11   ;;  %v2352_v26 = vadd.f32 %v3650_v5, %v2063_v20  ;;  %v2066_v19 = vadd.f32 %v2065_v10, %v5206_v44  ;;  %v2067_v23 = vpop.f32.mrb[127].mxu0  ;;  %v2346_v38 = vpop.f32.mrb[159].mxu1 }
 0x250   :  { %3528 = vst [vmem:[%s5172_s3 + $0xe0] sm:$0xff] %v3484_v59   ;;  %v2620_v49 = vadd.f32 %v4877_v55, %v2344_v2  ;;  %v2347_v37 = vadd.f32 %v2346_v38, %v2058_v57 }
 0x251   :  { %v2622_v4 = vadd.f32 %v4877_v55, %v2352_v26  ;;  %v2355_v29 = vadd.f32 %v3651_v31, %v2066_v19 }
 0x252   :  { %v2621_v16 = vadd.f32 %v4877_v55, %v2347_v37  ;;  %v2684_v6 = vmax.f32 %v2620_v49, 0.0 }
 0x253   :  { %v2623_v61 = vadd.f32 %v4877_v55, %v2355_v29  ;;  %v2686_v24 = vmax.f32 %v2622_v4, 0.0 }
 0x254   :  { %v2685_v36 = vmax.f32 %v2621_v16, 0.0 }
 0x255   :  { %v2687_v35 = vmax.f32 %v2623_v61, 0.0 }
 0x256   :  { %v3494_v15 = vpack.c.bf16 %v2685_v36, %v2684_v6 }
 0x257   :  { %v3499_v52 = vpack.c.bf16 %v2687_v35, %v2686_v24 }
 0x258   :  { %3530 = vst [vmem:[%s5172_s3 + $0xf0] sm:$0xff] %v3494_v15  }
 0x259   :  { %3531 = vst [vmem:[%s5172_s3 + $0xf8] sm:$0xff] %v3499_v52  }

// kernel: hand_gesture_forward.18
= control target key start
LH: loop header
LB: loop body
LE: loop exit
PB: predicated region body
PF: predicated region fallthrough
CT: control target
= control target key end

     0   :  { %s1878_s1 = inlined_call_operand.vmem [shape: bf16[640,128], index: 1, kind: input, shape index: {}]   ;;  %s1879_s0 = inlined_call_operand.vmem [shape: bf16[128,640], index: 0, kind: input, shape index: {}]   ;;  %s1880_s2 = inlined_call_operand.vmem [shape: f32[1,128], index: 2, kind: input, shape index: {}]   ;;  %s1881_s3 = inlined_call_operand.vmem [shape: bf16[128,128], index: 3, kind: output, shape index: {}]  }
   0x1   :  { %v1444_v0 = vld [vmem:[%s1878_s1 + $0x40] sm:$0xff]   ;;  %v1448_v4 = vld [vmem:[%s1878_s1 + $0x48] sm:$0xff]   ;;  %v1452_v8 = vld [vmem:[%s1878_s1 + $0x50] sm:$0xff]  }
   0x2   :  { %v1445_v1 = vld [vmem:[%s1878_s1 + $0xc0] sm:$0xff]   ;;  %1252 = vmatprep.subr.bf16.mxu0 %v1444_v0  ;;  %v1449_v5 = vld [vmem:[%s1878_s1 + $0xc8] sm:$0xff]   ;;  %v1453_v9 = vld [vmem:[%s1878_s1 + $0xd0] sm:$0xff]  }
   0x3   :  { %v1446_v2 = vld [vmem:[%s1878_s1] sm:$0xff]   ;;  %1316 = vmatprep.subr.bf16.mxu1 %v1445_v1  ;;  %v1450_v6 = vld [vmem:[%s1878_s1 + $0x8] sm:$0xff]   ;;  %v1454_v10 = vld [vmem:[%s1878_s1 + $0x10] sm:$0xff]  }
   0x4   :  { %v1447_v3 = vld [vmem:[%s1878_s1 + $0x80] sm:$0xff]   ;;  %1253 = vmatpush3.bf16.msra.mxu0 %v1446_v2  ;;  %v1451_v7 = vld [vmem:[%s1878_s1 + $0x88] sm:$0xff]   ;;  %v1455_v11 = vld [vmem:[%s1878_s1 + $0x90] sm:$0xff]  }
   0x5   :  { %1317 = vmatpush3.bf16.msra.mxu1 %v1447_v3  ;;  %1254 = vmatprep.subr.bf16.mxu0 %v1448_v4  ;;  %v1456_v12 = vld [vmem:[%s1878_s1 + $0x58] sm:$0xff]   ;;  %v1460_v16 = vld [vmem:[%s1878_s1 + $0x60] sm:$0xff]   ;;  %v1464_v20 = vld [vmem:[%s1878_s1 + $0x68] sm:$0xff]  }
   0x6   :  { %1318 = vmatprep.subr.bf16.mxu1 %v1449_v5  ;;  %v1457_v13 = vld [vmem:[%s1878_s1 + $0xd8] sm:$0xff]   ;;  %v1461_v17 = vld [vmem:[%s1878_s1 + $0xe0] sm:$0xff]   ;;  %v1465_v21 = vld [vmem:[%s1878_s1 + $0xe8] sm:$0xff]  }
   0x7   :  { %v1458_v14 = vld [vmem:[%s1878_s1 + $0x18] sm:$0xff]   ;;  %v1462_v18 = vld [vmem:[%s1878_s1 + $0x20] sm:$0xff]   ;;  %v1466_v22 = vld [vmem:[%s1878_s1 + $0x28] sm:$0xff]  }
   0x8   :  { %1255 = vmatpush3.bf16.msra.mxu0 %v1450_v6  ;;  %v1459_v15 = vld [vmem:[%s1878_s1 + $0x98] sm:$0xff]   ;;  %v1463_v19 = vld [vmem:[%s1878_s1 + $0xa0] sm:$0xff]   ;;  %v1467_v23 = vld [vmem:[%s1878_s1 + $0xa8] sm:$0xff]  }
   0x9   :  { %1319 = vmatpush3.bf16.msra.mxu1 %v1451_v7  ;;  %1256 = vmatprep.subr.bf16.mxu0 %v1452_v8  ;;  %v1468_v24 = vld [vmem:[%s1878_s1 + $0x70] sm:$0xff]   ;;  %v1472_v28 = vld [vmem:[%s1878_s1 + $0x78] sm:$0xff]   ;;  %v1481_v35 = vld [vmem:[%s1879_s0 + $0xc] ss:$20 sps:$4 sm:$0xff]  }
   0xa   :  { %1320 = vmatprep.subr.bf16.mxu1 %v1453_v9  ;;  %v1469_v25 = vld [vmem:[%s1878_s1 + $0xf0] sm:$0xff]   ;;  %v1473_v29 = vld [vmem:[%s1878_s1 + $0xf8] sm:$0xff]   ;;  %v1482_v36 = vld [vmem:[%s1878_s1 + $0x100] sm:$0xff]   ;;  %756 = vmatprep.mubr.bf16.mxu1 %v1481_v35 }
   0xb   :  { %v1470_v26 = vld [vmem:[%s1878_s1 + $0x30] sm:$0xff]   ;;  %v1474_v30 = vld [vmem:[%s1878_s1 + $0x38] sm:$0xff]   ;;  %v1483_v37 = vld [vmem:[%s1879_s0 + $0x2c] ss:$20 sps:$4 sm:$0xff]  }
   0xc   :  { %1257 = vmatpush3.bf16.msra.mxu0 %v1454_v10  ;;  %v1471_v27 = vld [vmem:[%s1878_s1 + $0xb0] sm:$0xff]   ;;  %v1475_v31 = vld [vmem:[%s1878_s1 + $0xb8] sm:$0xff]   ;;  %v1489_v39 = vld [vmem:[%s1878_s1 + $0x108] sm:$0xff]  }
   0xd   :  { %1321 = vmatpush3.bf16.msra.mxu1 %v1455_v11  ;;  %1258 = vmatprep.subr.bf16.mxu0 %v1456_v12  ;;  %v1476_v32 = vld [vmem:[%s1879_s0] ss:$20 sps:$4 sm:$0xff]   ;;  %v1478_v33 = vld [vmem:[%s1879_s0 + $0x4] ss:$20 sps:$4 sm:$0xff]   ;;  %v1479_v34 = vld [vmem:[%s1879_s0 + $0x8] ss:$20 sps:$4 sm:$0xff]  }
   0xe   :  { %1322 = vmatprep.subr.bf16.mxu1 %v1457_v13  ;;  %659 = vmatprep.mubr.bf16.mxu0 %v1478_v33  ;;  %v1485_v38 = vld [vmem:[%s1879_s0 + $0x34] ss:$20 sps:$4 sm:$0xff]   ;;  %v1488_v41 = vld [vmem:[%s1879_s0 + $0x30] ss:$20 sps:$4 sm:$0xff]   ;;  %v1503_v45 = vld [vmem:[%s1878_s1 + $0x118] sm:$0xff]  }
   0xf   :  { %v1487_v40 = vld [vmem:[%s1879_s0 + $0x28] ss:$20 sps:$4 sm:$0xff]   ;;  %v1496_v44 = vld [vmem:[%s1878_s1 + $0x110] sm:$0xff]   ;;  %v1495_v47 = vld [vmem:[%s1879_s0 + $0x58] ss:$20 sps:$4 sm:$0xff]  }
  0x10   :  { %1259 = vmatpush3.bf16.msra.mxu0 %v1458_v14  ;;  %v1490_v42 = vld [vmem:[%s1879_s0 + $0x54] ss:$20 sps:$4 sm:$0xff]   ;;  %v1492_v43 = vld [vmem:[%s1879_s0 + $0x5c] ss:$20 sps:$4 sm:$0xff]   ;;  %v1499_v49 = vld [vmem:[%s1879_s0 + $0x84] ss:$20 sps:$4 sm:$0xff]  }
  0x11   :  { %1323 = vmatpush3.bf16.msra.mxu1 %v1459_v15  ;;  %1260 = vmatprep.subr.bf16.mxu0 %v1460_v16  ;;  %v1494_v46 = vld [vmem:[%s1879_s0 + $0x50] ss:$20 sps:$4 sm:$0xff]   ;;  %v1517_v51 = vld [vmem:[%s1878_s1 + $0x128] sm:$0xff]   ;;  %v1502_v53 = vld [vmem:[%s1879_s0 + $0x80] ss:$20 sps:$4 sm:$0xff]  }
  0x12   :  { %1324 = vmatprep.subr.bf16.mxu1 %v1461_v17  ;;  %v1497_v48 = vld [vmem:[%s1879_s0 + $0x7c] ss:$20 sps:$4 sm:$0xff]   ;;  %v1510_v50 = vld [vmem:[%s1878_s1 + $0x120] sm:$0xff]   ;;  %v1501_v52 = vld [vmem:[%s1879_s0 + $0x78] ss:$20 sps:$4 sm:$0xff]  }
  0x13   :  { %v1504_v54 = vld [vmem:[%s1879_s0 + $0xa4] ss:$20 sps:$4 sm:$0xff]   ;;  %v1524_v55 = vld [vmem:[%s1878_s1 + $0x130] sm:$0xff]   ;;  %v1506_v56 = vld [vmem:[%s1879_s0 + $0xac] ss:$20 sps:$4 sm:$0xff]  }
  0x14   :  { %1261 = vmatpush3.bf16.msra.mxu0 %v1462_v18  ;;  %v1531_v57 = vld [vmem:[%s1878_s1 + $0x138] sm:$0xff]   ;;  %v1508_v58 = vld [vmem:[%s1879_s0 + $0xa0] ss:$20 sps:$4 sm:$0xff]   ;;  %v1516_v63 = vld [vmem:[%s1879_s0 + $0xd0] ss:$20 sps:$4 sm:$0xff]  }
  0x15   :  { %1325 = vmatpush3.bf16.msra.mxu1 %v1463_v19  ;;  %1262 = vmatprep.subr.bf16.mxu0 %v1464_v20  ;;  %v1509_v59 = vld [vmem:[%s1879_s0 + $0xa8] ss:$20 sps:$4 sm:$0xff]   ;;  %v1511_v60 = vld [vmem:[%s1879_s0 + $0xcc] ss:$20 sps:$4 sm:$0xff]   ;;  %v1522_v2 = vld [vmem:[%s1879_s0 + $0xf0] ss:$20 sps:$4 sm:$0xff]  }
  0x16   :  { %1326 = vmatprep.subr.bf16.mxu1 %v1465_v21  ;;  %v1513_v61 = vld [vmem:[%s1879_s0 + $0xd4] ss:$20 sps:$4 sm:$0xff]   ;;  %v1520_v1 = vld [vmem:[%s1879_s0 + $0xfc] ss:$20 sps:$4 sm:$0xff]   ;;  %v1523_v3 = vld [vmem:[%s1879_s0 + $0xf8] ss:$20 sps:$4 sm:$0xff]  }
  0x17   :  { %v1515_v62 = vld [vmem:[%s1879_s0 + $0xc8] ss:$20 sps:$4 sm:$0xff]   ;;  %v1527_v5 = vld [vmem:[%s1879_s0 + $0x124] ss:$20 sps:$4 sm:$0xff]   ;;  %v1530_v7 = vld [vmem:[%s1879_s0 + $0x120] ss:$20 sps:$4 sm:$0xff]  }
  0x18   :  { %1263 = vmatpush3.bf16.msra.mxu0 %v1466_v22  ;;  %v1518_v0 = vld [vmem:[%s1879_s0 + $0xf4] ss:$20 sps:$4 sm:$0xff]   ;;  %v1525_v4 = vld [vmem:[%s1879_s0 + $0x11c] ss:$20 sps:$4 sm:$0xff]   ;;  %v1529_v6 = vld [vmem:[%s1879_s0 + $0x118] ss:$20 sps:$4 sm:$0xff]  }
  0x19   :  { %1327 = vmatpush3.bf16.msra.mxu1 %v1467_v23  ;;  %1264 = vmatprep.subr.bf16.mxu0 %v1468_v24  ;;  %v1532_v8 = vld [vmem:[%s1879_s0 + $0x10] ss:$20 sps:$4 sm:$0xff]   ;;  %v1534_v10 = vld [vmem:[%s1879_s0 + $0x38] ss:$20 sps:$4 sm:$0xff]   ;;  %v1536_v12 = vld [vmem:[%s1879_s0 + $0x60] ss:$20 sps:$4 sm:$0xff]  }
  0x1a   :  { %1328 = vmatprep.subr.bf16.mxu1 %v1469_v25  ;;  %v1533_v9 = vld [vmem:[%s1879_s0 + $0xb0] ss:$20 sps:$4 sm:$0xff]   ;;  %v1535_v11 = vld [vmem:[%s1879_s0 + $0xd8] ss:$20 sps:$4 sm:$0xff]   ;;  %v1537_v13 = vld [vmem:[%s1879_s0 + $0x100] ss:$20 sps:$4 sm:$0xff]  }
  0x1b   :  { %v1538_v14 = vld [vmem:[%s1879_s0 + $0x88] ss:$20 sps:$4 sm:$0xff]  }
  0x1c   :  { %1265 = vmatpush3.bf16.msra.mxu0 %v1470_v26  ;;  %v1539_v15 = vld [vmem:[%s1879_s0 + $0x128] ss:$20 sps:$4 sm:$0xff]  }
  0x1d   :  { %1329 = vmatpush3.bf16.msra.mxu1 %v1471_v27  ;;  %1266 = vmatprep.subr.bf16.mxu0 %v1472_v28 }
  0x1e   :  { %1330 = vmatprep.subr.bf16.mxu1 %v1473_v29 }
  0x20   :  { %1267 = vmatpush3.bf16.msra.mxu0 %v1474_v30 }
  0x21   :  { %1331 = vmatpush3.bf16.msra.mxu1 %v1475_v31  ;;  %1396 = vmatprep.subr.bf16.mxu0 %v1482_v36 }
  0x22   :  { %1428 = vmatprep.subr.bf16.mxu1 %v1482_v36 }
  0x23   :  { %660 = vmatmul.mubr.bf16.vlgmr.msra.gmra.mrb[0].mxu0 %v1476_v32 }
  0x24   :  { %757 = vmatmul.mubr.bf16.vlgmr.msra.gmra.mrb[0].mxu1 %v1479_v34  ;;  %1397 = vmatpush3.bf16.msra.mxu0 %v1482_v36 }
  0x25   :  { %1436 = vmatpush3.bf16.msra.mxu1 %v1482_v36  ;;  %667 = vmatprep.mubr.bf16.mxu0 %v1483_v37 }
  0x26   :  { %764 = vmatprep.mubr.bf16.mxu1 %v1485_v38  ;;  %1398 = vmatprep.subr.bf16.mxu0 %v1489_v39 }
  0x27   :  { %1429 = vmatprep.subr.bf16.mxu1 %v1489_v39 }
  0x28   :  { %1399 = vmatpush3.bf16.msra.mxu0 %v1489_v39 }
  0x29   :  { %1437 = vmatpush3.bf16.msra.mxu1 %v1489_v39  ;;  %1400 = vmatprep.subr.bf16.mxu0 %v1496_v44 }
  0x2a   :  { %1430 = vmatprep.subr.bf16.mxu1 %v1496_v44 }
  0x2b   :  { %668 = vmatmul.mubr.bf16.gmra.mrb[4].mxu0 %v1487_v40 }
  0x2c   :  { %765 = vmatmul.mubr.bf16.gmra.mrb[4].mxu1 %v1488_v41  ;;  %675 = vmatprep.mubr.bf16.mxu0 %v1490_v42 }
  0x2d   :  { %772 = vmatprep.mubr.bf16.mxu1 %v1492_v43  ;;  %1401 = vmatpush3.bf16.msra.mxu0 %v1496_v44 }
  0x2e   :  { %1438 = vmatpush3.bf16.msra.mxu1 %v1496_v44  ;;  %1402 = vmatprep.subr.bf16.mxu0 %v1503_v45 }
  0x2f   :  { %1431 = vmatprep.subr.bf16.mxu1 %v1503_v45 }
  0x31   :  { %1403 = vmatpush3.bf16.msra.mxu0 %v1503_v45 }
  0x32   :  { %1439 = vmatpush3.bf16.msra.mxu1 %v1503_v45  ;;  %1404 = vmatprep.subr.bf16.mxu0 %v1510_v50 }
  0x33   :  { %676 = vmatmul.mubr.bf16.gmra.mrb[8].mxu0 %v1494_v46  ;;  %1432 = vmatprep.subr.bf16.mxu1 %v1510_v50 }
  0x34   :  { %773 = vmatmul.mubr.bf16.gmra.mrb[8].mxu1 %v1495_v47  ;;  %683 = vmatprep.mubr.bf16.mxu0 %v1497_v48 }
  0x35   :  { %780 = vmatprep.mubr.bf16.mxu1 %v1499_v49  ;;  %1405 = vmatpush3.bf16.msra.mxu0 %v1510_v50 }
  0x36   :  { %1440 = vmatpush3.bf16.msra.mxu1 %v1510_v50  ;;  %1406 = vmatprep.subr.bf16.mxu0 %v1517_v51 }
  0x37   :  { %1433 = vmatprep.subr.bf16.mxu1 %v1517_v51 }
  0x39   :  { %1407 = vmatpush3.bf16.msra.mxu0 %v1517_v51 }
  0x3a   :  { %1441 = vmatpush3.bf16.msra.mxu1 %v1517_v51  ;;  %1408 = vmatprep.subr.bf16.mxu0 %v1524_v55 }
  0x3b   :  { %684 = vmatmul.mubr.bf16.gmra.mrb[12].mxu0 %v1501_v52  ;;  %1434 = vmatprep.subr.bf16.mxu1 %v1524_v55 }
  0x3c   :  { %781 = vmatmul.mubr.bf16.gmra.mrb[12].mxu1 %v1502_v53  ;;  %691 = vmatprep.mubr.bf16.mxu0 %v1504_v54 }
  0x3d   :  { %788 = vmatprep.mubr.bf16.mxu1 %v1506_v56  ;;  %1409 = vmatpush3.bf16.msra.mxu0 %v1524_v55 }
  0x3e   :  { %1442 = vmatpush3.bf16.msra.mxu1 %v1524_v55  ;;  %1410 = vmatprep.subr.bf16.mxu0 %v1531_v57 }
  0x3f   :  { %1435 = vmatprep.subr.bf16.mxu1 %v1531_v57 }
  0x41   :  { %1411 = vmatpush3.bf16.msra.mxu0 %v1531_v57 }
  0x42   :  { %1443 = vmatpush3.bf16.msra.mxu1 %v1531_v57 }
  0x43   :  { %692 = vmatmul.mubr.bf16.gmra.mrb[16].mxu0 %v1508_v58 }
  0x44   :  { %789 = vmatmul.mubr.bf16.gmra.mrb[16].mxu1 %v1509_v59  ;;  %699 = vmatprep.mubr.bf16.mxu0 %v1511_v60 }
  0x45   :  { %796 = vmatprep.mubr.bf16.mxu1 %v1513_v61 }
  0x4b   :  { %700 = vmatmul.mubr.bf16.gmra.mrb[20].mxu0 %v1515_v62 }
  0x4c   :  { %797 = vmatmul.mubr.bf16.gmra.mrb[20].mxu1 %v1516_v63  ;;  %707 = vmatprep.mubr.bf16.mxu0 %v1518_v0 }
  0x4d   :  { %804 = vmatprep.mubr.bf16.mxu1 %v1520_v1 }
  0x53   :  { %708 = vmatmul.mubr.bf16.gmra.mrb[24].mxu0 %v1522_v2 }
  0x54   :  { %805 = vmatmul.mubr.bf16.gmra.mrb[24].mxu1 %v1523_v3  ;;  %715 = vmatprep.mubr.bf16.mxu0 %v1525_v4 }
  0x55   :  { %812 = vmatprep.mubr.bf16.mxu1 %v1527_v5 }
  0x5b   :  { %716 = vmatmul.mubr.bf16.gmra.mrb[28].mxu0 %v1529_v6 }
  0x5c   :  { %813 = vmatmul.mubr.bf16.gmra.mrb[28].mxu1 %v1530_v7  ;;  %1412 = vmatprep.mubr.bf16.mxu0 %v1532_v8 }
  0x5d   :  { %1420 = vmatprep.mubr.bf16.mxu1 %v1533_v9 }
  0x63   :  { %1413 = vmatmul.mubr.bf16.vlgmr.msra.gmra.mrb[32].mxu0 %v1534_v10 }
  0x64   :  { %1421 = vmatmul.mubr.bf16.vlgmr.msra.gmra.mrb[32].mxu1 %v1535_v11  ;;  %1416 = vmatprep.mubr.bf16.mxu0 %v1536_v12 }
  0x65   :  { %1424 = vmatprep.mubr.bf16.mxu1 %v1537_v13 }
  0x6b   :  { %1417 = vmatmul.mubr.bf16.gmra.mrb[36].mxu0 %v1538_v14 }
  0x6c   :  { %1425 = vmatmul.mubr.bf16.gmra.mrb[36].mxu1 %v1539_v15 }
  0xf6   :  { %v1268_v16 = vpop.f32.mrb[0].mxu0 }
  0xf7   :  { %v1332_v17 = vpop.f32.mrb[0].mxu1  ;;  %v1269_v18 = vpop.f32.mrb[1].mxu0 }
  0xf8   :  { %v1270_v19 = vadd.f32 %v1269_v18, %v1268_v16  ;;  %v1333_v20 = vpop.f32.mrb[1].mxu1  ;;  %v1271_v21 = vpop.f32.mrb[2].mxu0 }
  0xf9   :  { %v1334_v22 = vadd.f32 %v1333_v20, %v1332_v17  ;;  %v1335_v23 = vpop.f32.mrb[2].mxu1  ;;  %v1272_v24 = vpop.f32.mrb[3].mxu0 }
  0xfa   :  { %v1273_v25 = vadd.f32 %v1272_v24, %v1271_v21  ;;  %v1336_v26 = vpop.f32.mrb[3].mxu1 }
  0xfb   :  { %v1337_v27 = vadd.f32 %v1336_v26, %v1335_v23  ;;  %v1800_v28 = vadd.f32 %v1334_v22, %v1270_v19 }
  0xfd   :  { %v1802_v29 = vadd.f32 %v1337_v27, %v1273_v25 }
  0xfe   :  { %v1274_v30 = vpop.f32.mrb[4].mxu0 }
  0xff   :  { %v1338_v31 = vpop.f32.mrb[4].mxu1  ;;  %v1275_v32 = vpop.f32.mrb[5].mxu0 }
 0x100   :  { %v1276_v33 = vadd.f32 %v1275_v32, %v1274_v30  ;;  %v1339_v34 = vpop.f32.mrb[5].mxu1  ;;  %v1277_v35 = vpop.f32.mrb[6].mxu0 }
 0x101   :  { %v1340_v36 = vadd.f32 %v1339_v34, %v1338_v31  ;;  %v1341_v37 = vpop.f32.mrb[6].mxu1  ;;  %v1278_v38 = vpop.f32.mrb[7].mxu0 }
 0x102   :  { %v1279_v39 = vadd.f32 %v1278_v38, %v1277_v35  ;;  %v1342_v40 = vpop.f32.mrb[7].mxu1 }
 0x103   :  { %v1343_v41 = vadd.f32 %v1342_v40, %v1341_v37  ;;  %v1804_v42 = vadd.f32 %v1340_v36, %v1276_v33 }
 0x105   :  { %v1806_v43 = vadd.f32 %v1343_v41, %v1279_v39 }
 0x106   :  { %v1280_v44 = vpop.f32.mrb[8].mxu0 }
 0x107   :  { %v1344_v45 = vpop.f32.mrb[8].mxu1  ;;  %v1281_v46 = vpop.f32.mrb[9].mxu0 }
 0x108   :  { %v1282_v47 = vadd.f32 %v1281_v46, %v1280_v44  ;;  %v1345_v48 = vpop.f32.mrb[9].mxu1  ;;  %v1283_v49 = vpop.f32.mrb[10].mxu0 }
 0x109   :  { %v1346_v50 = vadd.f32 %v1345_v48, %v1344_v45  ;;  %v1347_v51 = vpop.f32.mrb[10].mxu1  ;;  %v1284_v52 = vpop.f32.mrb[11].mxu0 }
 0x10a   :  { %v1285_v53 = vadd.f32 %v1284_v52, %v1283_v49  ;;  %v1348_v54 = vpop.f32.mrb[11].mxu1 }
 0x10b   :  { %v1349_v55 = vadd.f32 %v1348_v54, %v1347_v51  ;;  %v1808_v56 = vadd.f32 %v1346_v50, %v1282_v47 }
 0x10d   :  { %v1810_v57 = vadd.f32 %v1349_v55, %v1285_v53 }
 0x10e   :  { %v1286_v58 = vpop.f32.mrb[12].mxu0 }
 0x10f   :  { %v1350_v59 = vpop.f32.mrb[12].mxu1  ;;  %v1287_v60 = vpop.f32.mrb[13].mxu0 }
 0x110   :  { %v1288_v61 = vadd.f32 %v1287_v60, %v1286_v58  ;;  %v1351_v62 = vpop.f32.mrb[13].mxu1  ;;  %v1289_v63 = vpop.f32.mrb[14].mxu0 }
 0x111   :  { %v1352_v0 = vadd.f32 %v1351_v62, %v1350_v59  ;;  %v1353_v1 = vpop.f32.mrb[14].mxu1  ;;  %v1290_v2 = vpop.f32.mrb[15].mxu0 }
 0x112   :  { %v1291_v3 = vadd.f32 %v1290_v2, %v1289_v63  ;;  %v1354_v4 = vpop.f32.mrb[15].mxu1 }
 0x113   :  { %v1355_v5 = vadd.f32 %v1354_v4, %v1353_v1  ;;  %v1812_v6 = vadd.f32 %v1352_v0, %v1288_v61 }
 0x115   :  { %v1814_v7 = vadd.f32 %v1355_v5, %v1291_v3 }
 0x116   :  { %v1292_v8 = vpop.f32.mrb[16].mxu0 }
 0x117   :  { %v1356_v9 = vpop.f32.mrb[16].mxu1  ;;  %v1293_v10 = vpop.f32.mrb[17].mxu0 }
 0x118   :  { %v1294_v11 = vadd.f32 %v1293_v10, %v1292_v8  ;;  %v1357_v12 = vpop.f32.mrb[17].mxu1  ;;  %v1295_v13 = vpop.f32.mrb[18].mxu0 }
 0x119   :  { %v1358_v14 = vadd.f32 %v1357_v12, %v1356_v9  ;;  %v1359_v15 = vpop.f32.mrb[18].mxu1  ;;  %v1296_v16 = vpop.f32.mrb[19].mxu0  ;;  %v1825_v9 = vld [vmem:[%s1880_s2] ss:$0 sm:$0xff] }
 0x11a   :  { %v1297_v17 = vadd.f32 %v1296_v16, %v1295_v13  ;;  %v1360_v18 = vpop.f32.mrb[19].mxu1 }
 0x11b   :  { %v1361_v19 = vadd.f32 %v1360_v18, %v1359_v15  ;;  %v791_v20 = vadd.f32 %v1358_v14, %v1294_v11 }
 0x11d   :  { %v1816_v21 = vadd.f32 %v1361_v19, %v1297_v17 }
 0x11e   :  { %v1298_v22 = vpop.f32.mrb[20].mxu0 }
 0x11f   :  { %v1362_v23 = vpop.f32.mrb[20].mxu1  ;;  %v1299_v24 = vpop.f32.mrb[21].mxu0 }
 0x120   :  { %v1300_v25 = vadd.f32 %v1299_v24, %v1298_v22  ;;  %v1363_v26 = vpop.f32.mrb[21].mxu1  ;;  %v1301_v27 = vpop.f32.mrb[22].mxu0 }
 0x121   :  { %v1364_v30 = vadd.f32 %v1363_v26, %v1362_v23  ;;  %v1365_v31 = vpop.f32.mrb[22].mxu1  ;;  %v1302_v32 = vpop.f32.mrb[23].mxu0 }
 0x122   :  { %v1303_v33 = vadd.f32 %v1302_v32, %v1301_v27  ;;  %v1366_v34 = vpop.f32.mrb[23].mxu1 }
 0x123   :  { %v1367_v35 = vadd.f32 %v1366_v34, %v1365_v31  ;;  %v799_v36 = vadd.f32 %v1364_v30, %v1300_v25 }
 0x125   :  { %v802_v37 = vadd.f32 %v1367_v35, %v1303_v33 }
 0x126   :  { %v1304_v38 = vpop.f32.mrb[24].mxu0 }
 0x127   :  { %v1368_v39 = vpop.f32.mrb[24].mxu1  ;;  %v1305_v40 = vpop.f32.mrb[25].mxu0 }
 0x128   :  { %v1306_v41 = vadd.f32 %v1305_v40, %v1304_v38  ;;  %v1369_v44 = vpop.f32.mrb[25].mxu1  ;;  %v1307_v45 = vpop.f32.mrb[26].mxu0 }
 0x129   :  { %v1370_v46 = vadd.f32 %v1369_v44, %v1368_v39  ;;  %v1371_v47 = vpop.f32.mrb[26].mxu1  ;;  %v1308_v48 = vpop.f32.mrb[27].mxu0 }
 0x12a   :  { %v1309_v49 = vadd.f32 %v1308_v48, %v1307_v45  ;;  %v1372_v50 = vpop.f32.mrb[27].mxu1 }
 0x12b   :  { %v1373_v51 = vadd.f32 %v1372_v50, %v1371_v47  ;;  %v1818_v52 = vadd.f32 %v1370_v46, %v1306_v41 }
 0x12d   :  { %v1820_v53 = vadd.f32 %v1373_v51, %v1309_v49 }
 0x12e   :  { %v1310_v54 = vpop.f32.mrb[28].mxu0 }
 0x12f   :  { %v1374_v55 = vpop.f32.mrb[28].mxu1  ;;  %v1311_v58 = vpop.f32.mrb[29].mxu0 }
 0x130   :  { %v1312_v59 = vadd.f32 %v1311_v58, %v1310_v54  ;;  %v1375_v60 = vpop.f32.mrb[29].mxu1  ;;  %v1313_v61 = vpop.f32.mrb[30].mxu0 }
 0x131   :  { %v1376_v62 = vadd.f32 %v1375_v60, %v1374_v55  ;;  %v1377_v63 = vpop.f32.mrb[30].mxu1  ;;  %v1314_v0 = vpop.f32.mrb[31].mxu0 }
 0x132   :  { %v1315_v1 = vadd.f32 %v1314_v0, %v1313_v61  ;;  %v1378_v2 = vpop.f32.mrb[31].mxu1 }
 0x133   :  { %v1379_v3 = vadd.f32 %v1378_v2, %v1377_v63  ;;  %v815_v4 = vadd.f32 %v1376_v62, %v1312_v59 }
 0x135   :  { %v818_v5 = vadd.f32 %v1379_v3, %v1315_v1 }
 0x136   :  { %v1414_v8 = vpop.f32.mrb[32].mxu0 }
 0x137   :  { %v864_v10 = vadd.f32 %v1414_v8, %v1804_v42  ;;  %v1422_v11 = vpop.f32.mrb[32].mxu1  ;;  %v855_v12 = vpop.f32.mrb[33].mxu0 }
 0x138   :  { %v896_v13 = vadd.f32 %v1422_v11, %v799_v36  ;;  %v856_v14 = vadd.f32 %v855_v12, %v1800_v28  ;;  %v887_v15 = vpop.f32.mrb[33].mxu1  ;;  %v1415_v16 = vpop.f32.mrb[34].mxu0 }
 0x139   :  { %v978_v17 = vadd.f32 %v1825_v9, %v864_v10  ;;  %v888_v18 = vadd.f32 %v887_v15, %v791_v20  ;;  %v867_v19 = vadd.f32 %v1415_v16, %v1806_v43  ;;  %v1423_v22 = vpop.f32.mrb[34].mxu1  ;;  %v858_v23 = vpop.f32.mrb[35].mxu0 }
 0x13a   :  { %v986_v24 = vadd.f32 %v1825_v9, %v896_v13  ;;  %v976_v25 = vadd.f32 %v1825_v9, %v856_v14  ;;  %v899_v26 = vadd.f32 %v1423_v22, %v802_v37  ;;  %v859_v42 = vadd.f32 %v858_v23, %v1802_v29  ;;  %v890_v27 = vpop.f32.mrb[35].mxu1 }
 0x13b   :  { %v984_v30 = vadd.f32 %v1825_v9, %v888_v18  ;;  %v979_v28 = vadd.f32 %v1825_v9, %v867_v19  ;;  %v891_v31 = vadd.f32 %v890_v27, %v1816_v21  ;;  %v994_v32 = vmax.f32 %v978_v17, 0.0 }
 0x13c   :  { %v987_v20 = vadd.f32 %v1825_v9, %v899_v26  ;;  %v977_v43 = vadd.f32 %v1825_v9, %v859_v42  ;;  %v1002_v35 = vmax.f32 %v986_v24, 0.0  ;;  %v992_v36 = vmax.f32 %v976_v25, 0.0 }
 0x13d   :  { %v995_v33 = vmax.f32 %v979_v28, 0.0  ;;  %v985_v34 = vadd.f32 %v1825_v9, %v891_v31  ;;  %v1000_v39 = vmax.f32 %v984_v30, 0.0 }
 0x13e   :  { %v1003_v37 = vmax.f32 %v987_v20, 0.0  ;;  %v993_v38 = vmax.f32 %v977_v43, 0.0  ;;  %v1418_v29 = vpop.f32.mrb[36].mxu0 }
 0x13f   :  { %v1213_v40 = vpack.c.bf16 %v995_v33, %v994_v32  ;;  %v1001_v41 = vmax.f32 %v985_v34, 0.0  ;;  %v880_v44 = vadd.f32 %v1418_v29, %v1812_v6  ;;  %v1426_v45 = vpop.f32.mrb[36].mxu1  ;;  %v871_v21 = vpop.f32.mrb[37].mxu0 }
 0x140   :  { %v1233_v46 = vpack.c.bf16 %v1003_v37, %v1002_v35  ;;  %v1208_v47 = vpack.c.bf16 %v993_v38, %v992_v36  ;;  %v912_v48 = vadd.f32 %v1426_v45, %v815_v4  ;;  %v872_v49 = vadd.f32 %v871_v21, %v1808_v56  ;;  %v903_v50 = vpop.f32.mrb[37].mxu1  ;;  %v1419_v51 = vpop.f32.mrb[38].mxu0 }
 0x141   :  { %1245 = vst [vmem:[%s1881_s3 + $0x8] sm:$0xff] %v1213_v40   ;;  %v1228_v54 = vpack.c.bf16 %v1001_v41, %v1000_v39  ;;  %v982_v55 = vadd.f32 %v1825_v9, %v880_v44  ;;  %v904_v58 = vadd.f32 %v903_v50, %v1818_v52  ;;  %v883_v6 = vadd.f32 %v1419_v51, %v1814_v7  ;;  %v1427_v59 = vpop.f32.mrb[38].mxu1  ;;  %v874_v60 = vpop.f32.mrb[39].mxu0 }
 0x142   :  { %1249 = vst [vmem:[%s1881_s3 + $0x28] sm:$0xff] %v1233_v46   ;;  %1209 = vst [vmem:[%s1881_s3] sm:$0xff] %v1208_v47   ;;  %v990_v56 = vadd.f32 %v1825_v9, %v912_v48  ;;  %v980_v61 = vadd.f32 %v1825_v9, %v872_v49  ;;  %v915_v62 = vadd.f32 %v1427_v59, %v818_v5  ;;  %v906_v52 = vpop.f32.mrb[39].mxu1 }
 0x143   :  { %v875_v63 = vadd.f32 %v874_v60, %v1810_v57  ;;  %1248 = vst [vmem:[%s1881_s3 + $0x20] sm:$0xff] %v1228_v54   ;;  %v988_v7 = vadd.f32 %v1825_v9, %v904_v58  ;;  %v983_v0 = vadd.f32 %v1825_v9, %v883_v6  ;;  %v907_v1 = vadd.f32 %v906_v52, %v1820_v53 }
 0x144   :  { %v991_v2 = vadd.f32 %v1825_v9, %v915_v62  ;;  %v998_v4 = vmax.f32 %v982_v55, 0.0  ;;  %v1006_v57 = vmax.f32 %v990_v56, 0.0  ;;  %v996_v10 = vmax.f32 %v980_v61, 0.0 }
 0x145   :  { %v981_v3 = vadd.f32 %v1825_v9, %v875_v63  ;;  %v999_v8 = vmax.f32 %v983_v0, 0.0  ;;  %v989_v5 = vadd.f32 %v1825_v9, %v907_v1  ;;  %v1004_v13 = vmax.f32 %v988_v7, 0.0 }
 0x146   :  { %v1007_v11 = vmax.f32 %v991_v2, 0.0 }
 0x147   :  { %v997_v12 = vmax.f32 %v981_v3, 0.0  ;;  %v1223_v14 = vpack.c.bf16 %v999_v8, %v998_v4  ;;  %v1005_v15 = vmax.f32 %v989_v5, 0.0 }
 0x148   :  { %v1243_v16 = vpack.c.bf16 %v1007_v11, %v1006_v57 }
 0x149   :  { %v1218_v17 = vpack.c.bf16 %v997_v12, %v996_v10  ;;  %1247 = vst [vmem:[%s1881_s3 + $0x18] sm:$0xff] %v1223_v14   ;;  %v1238_v53 = vpack.c.bf16 %v1005_v15, %v1004_v13 }
 0x14a   :  { %1251 = vst [vmem:[%s1881_s3 + $0x38] sm:$0xff] %v1243_v16  }
 0x14b   :  { %1246 = vst [vmem:[%s1881_s3 + $0x10] sm:$0xff] %v1218_v17   ;;  %1250 = vst [vmem:[%s1881_s3 + $0x30] sm:$0xff] %v1238_v53  }

// kernel: hand_gesture_forward.17
= control target key start
LH: loop header
LB: loop body
LE: loop exit
PB: predicated region body
PF: predicated region fallthrough
CT: control target
= control target key end

     0   :  { %v4384_v0 = vmov 0   ;;  %s5632_s1 = inlined_call_operand.vmem [shape: bf16[640,128], index: 1, kind: input, shape index: {}]   ;;  %s5633_s0 = inlined_call_operand.vmem [shape: bf16[512,640], index: 0, kind: input, shape index: {}]   ;;  %s5634_s3 = inlined_call_operand.vmem [shape: bf16[512,128], index: 3, kind: input, shape index: {}]   ;;  %s5635_s2 = inlined_call_operand.vmem [shape: f32[1,128], index: 2, kind: input, shape index: {}]   ;;  %s5636_s4 = inlined_call_operand.vmem [shape: bf16[512,128], index: 4, kind: output, shape index: {}]  }
   0x1   :  { %1494 = vmatprep.subr.bf16.mxu0 %v4384_v0  ;;  %4006 = vmatprep.subr.bf16.mxu1 %v4384_v0  ;;  %v4119_v1 = vld [vmem:[%s5632_s1] sm:$0xff]   ;;  %v4120_v2 = vld [vmem:[%s5632_s1 + $0x8] sm:$0xff]   ;;  %v4121_v3 = vld [vmem:[%s5632_s1 + $0x10] sm:$0xff]  }
   0x2   :  { %1495 = vmatpush1.bf16.msra.mxu0 %v4119_v1  ;;  %4022 = vmatpush1.bf16.msra.mxu1 %v4119_v1  ;;  %v4122_v4 = vld [vmem:[%s5632_s1 + $0x18] sm:$0xff]   ;;  %v4123_v5 = vld [vmem:[%s5632_s1 + $0x20] sm:$0xff]   ;;  %v4124_v7 = vld [vmem:[%s5632_s1 + $0x28] sm:$0xff]  }
   0x3   :  { %1496 = vmatprep.subr.bf16.mxu0 %v4384_v0  ;;  %4007 = vmatprep.subr.bf16.mxu1 %v4384_v0  ;;  %v4137_v6 = vld [vmem:[%s5633_s0 + $0x4] ss:$20 sps:$4 sm:$0xff]   ;;  %v4125_v9 = vld [vmem:[%s5632_s1 + $0x30] sm:$0xff]   ;;  %v4128_v12 = vld [vmem:[%s5632_s1 + $0x48] sm:$0xff]  }
   0x4   :  { %v4140_v8 = vld [vmem:[%s5633_s0 + $0x144] ss:$20 sps:$4 sm:$0xff]   ;;  %1526 = vmatprep.mubr.bf16.mxu0 %v4137_v6  ;;  %v4129_v13 = vld [vmem:[%s5632_s1 + $0x50] sm:$0xff]   ;;  %v4132_v16 = vld [vmem:[%s5632_s1 + $0x68] sm:$0xff]  }
   0x5   :  { %1590 = vmatprep.mubr.bf16.mxu1 %v4140_v8  ;;  %v4126_v10 = vld [vmem:[%s5632_s1 + $0x38] sm:$0xff]   ;;  %v4127_v11 = vld [vmem:[%s5632_s1 + $0x40] sm:$0xff]   ;;  %v4133_v17 = vld [vmem:[%s5632_s1 + $0x70] sm:$0xff]  }
   0x6   :  { %1497 = vmatpush1.bf16.msra.mxu0 %v4120_v2  ;;  %4023 = vmatpush1.bf16.msra.mxu1 %v4120_v2  ;;  %v4130_v14 = vld [vmem:[%s5632_s1 + $0x58] sm:$0xff]   ;;  %v4131_v15 = vld [vmem:[%s5632_s1 + $0x60] sm:$0xff]   ;;  %v4167_v25 = vld [vmem:[%s5632_s1 + $0x108] sm:$0xff]  }
   0x7   :  { %1498 = vmatprep.subr.bf16.mxu0 %v4384_v0  ;;  %4008 = vmatprep.subr.bf16.mxu1 %v4384_v0  ;;  %v4134_v18 = vld [vmem:[%s5632_s1 + $0x78] sm:$0xff]   ;;  %v4142_v19 = vld [vmem:[%s5632_s1 + $0x100] sm:$0xff]   ;;  %v4143_v26 = vld [vmem:[%s5632_s1 + $0x88] sm:$0xff]  }
   0x8   :  { %v4135_v20 = vld [vmem:[%s5633_s0] ss:$20 sps:$4 sm:$0xff]   ;;  %v4148_v28 = vld [vmem:[%s5633_s0 + $0x28] ss:$20 sps:$4 sm:$0xff]   ;;  %v4156_v35 = vld [vmem:[%s5633_s0 + $0x50] ss:$20 sps:$4 sm:$0xff]  }
   0x9   :  { %v4138_v21 = vld [vmem:[%s5633_s0 + $0x140] ss:$20 sps:$4 sm:$0xff]   ;;  %v4149_v29 = vld [vmem:[%s5633_s0 + $0x168] ss:$20 sps:$4 sm:$0xff]   ;;  %v4157_v36 = vld [vmem:[%s5633_s0 + $0x190] ss:$20 sps:$4 sm:$0xff]  }
   0xa   :  { %1499 = vmatpush1.bf16.msra.mxu0 %v4121_v3  ;;  %4024 = vmatpush1.bf16.msra.mxu1 %v4121_v3  ;;  %v4141_v22 = vld [vmem:[%s5632_s1 + $0x80] sm:$0xff]   ;;  %v4192_v27 = vld [vmem:[%s5632_s1 + $0x110] sm:$0xff]   ;;  %v4214_v33 = vld [vmem:[%s5632_s1 + $0x118] sm:$0xff]  }
   0xb   :  { %1500 = vmatprep.subr.bf16.mxu0 %v4384_v0  ;;  %4009 = vmatprep.subr.bf16.mxu1 %v4384_v0  ;;  %v4144_v23 = vld [vmem:[%s5633_s0 + $0x2c] ss:$20 sps:$4 sm:$0xff]   ;;  %v4150_v30 = vld [vmem:[%s5632_s1 + $0x90] sm:$0xff]   ;;  %v4151_v34 = vld [vmem:[%s5632_s1 + $0x98] sm:$0xff]  }
   0xc   :  { %v4146_v24 = vld [vmem:[%s5633_s0 + $0x16c] ss:$20 sps:$4 sm:$0xff]   ;;  %v4152_v31 = vld [vmem:[%s5633_s0 + $0x54] ss:$20 sps:$4 sm:$0xff]   ;;  %v4160_v38 = vld [vmem:[%s5633_s0 + $0x7c] ss:$20 sps:$4 sm:$0xff]  }
   0xd   :  { %v4154_v32 = vld [vmem:[%s5633_s0 + $0x194] ss:$20 sps:$4 sm:$0xff]   ;;  %v4158_v37 = vld [vmem:[%s5632_s1 + $0xa0] sm:$0xff]   ;;  %v4162_v39 = vld [vmem:[%s5633_s0 + $0x1bc] ss:$20 sps:$4 sm:$0xff]  }
   0xe   :  { %1501 = vmatpush1.bf16.msra.mxu0 %v4122_v4  ;;  %4025 = vmatpush1.bf16.msra.mxu1 %v4122_v4  ;;  %v4233_v40 = vld [vmem:[%s5632_s1 + $0x120] sm:$0xff]   ;;  %v4159_v41 = vld [vmem:[%s5632_s1 + $0xa8] sm:$0xff]   ;;  %v4166_v45 = vld [vmem:[%s5632_s1 + $0xb0] sm:$0xff]  }
   0xf   :  { %1502 = vmatprep.subr.bf16.mxu0 %v4384_v0  ;;  %4010 = vmatprep.subr.bf16.mxu1 %v4384_v0  ;;  %v4252_v42 = vld [vmem:[%s5632_s1 + $0x128] sm:$0xff]   ;;  %v4169_v46 = vld [vmem:[%s5633_s0 + $0xa4] ss:$20 sps:$4 sm:$0xff]   ;;  %v4271_v48 = vld [vmem:[%s5632_s1 + $0x130] sm:$0xff]  }
  0x10   :  { %v4164_v43 = vld [vmem:[%s5633_s0 + $0x78] ss:$20 sps:$4 sm:$0xff]   ;;  %v4173_v50 = vld [vmem:[%s5633_s0 + $0xa0] ss:$20 sps:$4 sm:$0xff]   ;;  %v4181_v56 = vld [vmem:[%s5633_s0 + $0xc8] ss:$20 sps:$4 sm:$0xff]  }
  0x11   :  { %v4165_v44 = vld [vmem:[%s5633_s0 + $0x1b8] ss:$20 sps:$4 sm:$0xff]   ;;  %v4174_v51 = vld [vmem:[%s5633_s0 + $0x1e0] ss:$20 sps:$4 sm:$0xff]   ;;  %v4182_v57 = vld [vmem:[%s5633_s0 + $0x208] ss:$20 sps:$4 sm:$0xff]  }
  0x12   :  { %1503 = vmatpush1.bf16.msra.mxu0 %v4123_v5  ;;  %4026 = vmatpush1.bf16.msra.mxu1 %v4123_v5  ;;  %v4171_v47 = vld [vmem:[%s5633_s0 + $0x1e4] ss:$20 sps:$4 sm:$0xff]   ;;  %v4177_v53 = vld [vmem:[%s5633_s0 + $0xcc] ss:$20 sps:$4 sm:$0xff]   ;;  %v4183_v58 = vld [vmem:[%s5632_s1 + $0xd0] sm:$0xff]  }
  0x13   :  { %1504 = vmatprep.subr.bf16.mxu0 %v4384_v0  ;;  %4011 = vmatprep.subr.bf16.mxu1 %v4384_v0  ;;  %v4168_v49 = vld [vmem:[%s5632_s1 + $0xb8] sm:$0xff]   ;;  %v4175_v52 = vld [vmem:[%s5632_s1 + $0xc0] sm:$0xff]   ;;  %v4176_v55 = vld [vmem:[%s5632_s1 + $0xc8] sm:$0xff]  }
  0x14   :  { %v4179_v54 = vld [vmem:[%s5633_s0 + $0x20c] ss:$20 sps:$4 sm:$0xff]   ;;  %v4185_v59 = vld [vmem:[%s5633_s0 + $0xf4] ss:$20 sps:$4 sm:$0xff]   ;;  %v4290_v61 = vld [vmem:[%s5632_s1 + $0x138] sm:$0xff]  }
  0x15   :  { %v4187_v60 = vld [vmem:[%s5633_s0 + $0x234] ss:$20 sps:$4 sm:$0xff]   ;;  %v4184_v62 = vld [vmem:[%s5632_s1 + $0xd8] sm:$0xff]   ;;  %v4189_v63 = vld [vmem:[%s5633_s0 + $0xf0] ss:$20 sps:$4 sm:$0xff]  }
  0x16   :  { %1505 = vmatpush1.bf16.msra.mxu0 %v4124_v7  ;;  %4027 = vmatpush1.bf16.msra.mxu1 %v4124_v7  ;;  %v4190_v1 = vld [vmem:[%s5633_s0 + $0x230] ss:$20 sps:$4 sm:$0xff]   ;;  %v4193_v5 = vld [vmem:[%s5632_s1 + $0xe8] sm:$0xff]  }
  0x17   :  { %1506 = vmatprep.subr.bf16.mxu0 %v4384_v0  ;;  %4012 = vmatprep.subr.bf16.mxu1 %v4384_v0  ;;  %v4191_v2 = vld [vmem:[%s5632_s1 + $0xe0] sm:$0xff]   ;;  %v4194_v3 = vld [vmem:[%s5633_s0 + $0x11c] ss:$20 sps:$4 sm:$0xff]   ;;  %v4198_v6 = vld [vmem:[%s5633_s0 + $0x118] ss:$20 sps:$4 sm:$0xff]  }
  0x18   :  { %v4196_v4 = vld [vmem:[%s5633_s0 + $0x25c] ss:$20 sps:$4 sm:$0xff]   ;;  %v4199_v7 = vld [vmem:[%s5633_s0 + $0x258] ss:$20 sps:$4 sm:$0xff]  }
  0x19   :  { %v4200_v8 = vld [vmem:[%s5632_s1 + $0xf0] sm:$0xff]  }
  0x1a   :  { %1507 = vmatpush1.bf16.msra.mxu0 %v4125_v9  ;;  %4028 = vmatpush1.bf16.msra.mxu1 %v4125_v9  ;;  %v4202_v9 = vld [vmem:[%s5633_s0 + $0x284] ss:$20 sps:$4 sm:$0xff]  }
  0x1b   :  { %1508 = vmatprep.subr.bf16.mxu0 %v4384_v0  ;;  %4013 = vmatprep.subr.bf16.mxu1 %v4384_v0 }
  0x1e   :  { %1509 = vmatpush1.bf16.msra.mxu0 %v4126_v10  ;;  %4029 = vmatpush1.bf16.msra.mxu1 %v4126_v10  ;;  %v4206_v10 = vld [vmem:[%s5633_s0 + $0xc] ss:$20 sps:$4 sm:$0xff]  }
  0x1f   :  { %1510 = vmatprep.subr.bf16.mxu0 %v4384_v0  ;;  %4014 = vmatprep.subr.bf16.mxu1 %v4384_v0 }
  0x22   :  { %1511 = vmatpush1.bf16.msra.mxu0 %v4127_v11  ;;  %4030 = vmatpush1.bf16.msra.mxu1 %v4127_v11  ;;  %v4201_v11 = vld [vmem:[%s5632_s1 + $0xf8] sm:$0xff]  }
  0x23   :  { %1512 = vmatprep.subr.bf16.mxu0 %v4384_v0  ;;  %4015 = vmatprep.subr.bf16.mxu1 %v4384_v0 }
  0x26   :  { %1513 = vmatpush1.bf16.msra.mxu0 %v4128_v12  ;;  %4031 = vmatpush1.bf16.msra.mxu1 %v4128_v12  ;;  %v4204_v12 = vld [vmem:[%s5633_s0 + $0x8] ss:$20 sps:$4 sm:$0xff]  }
  0x27   :  { %1514 = vmatprep.subr.bf16.mxu0 %v4384_v0  ;;  %4016 = vmatprep.subr.bf16.mxu1 %v4384_v0 }
  0x2a   :  { %1515 = vmatpush1.bf16.msra.mxu0 %v4129_v13  ;;  %4032 = vmatpush1.bf16.msra.mxu1 %v4129_v13  ;;  %v4207_v13 = vld [vmem:[%s5633_s0 + $0x280] ss:$20 sps:$4 sm:$0xff]  }
  0x2b   :  { %1516 = vmatprep.subr.bf16.mxu0 %v4384_v0  ;;  %4017 = vmatprep.subr.bf16.mxu1 %v4384_v0 }
  0x2e   :  { %1517 = vmatpush1.bf16.msra.mxu0 %v4130_v14  ;;  %4033 = vmatpush1.bf16.msra.mxu1 %v4130_v14  ;;  %v4208_v14 = vld [vmem:[%s5633_s0 + $0x2ac] ss:$20 sps:$4 sm:$0xff]  }
  0x2f   :  { %1518 = vmatprep.subr.bf16.mxu0 %v4384_v0  ;;  %4018 = vmatprep.subr.bf16.mxu1 %v4384_v0 }
  0x32   :  { %1519 = vmatpush1.bf16.msra.mxu0 %v4131_v15  ;;  %4034 = vmatpush1.bf16.msra.mxu1 %v4131_v15  ;;  %v4210_v15 = vld [vmem:[%s5633_s0 + $0x34] ss:$20 sps:$4 sm:$0xff]  }
  0x33   :  { %1520 = vmatprep.subr.bf16.mxu0 %v4384_v0  ;;  %4019 = vmatprep.subr.bf16.mxu1 %v4384_v0 }
  0x36   :  { %1521 = vmatpush1.bf16.msra.mxu0 %v4132_v16  ;;  %4035 = vmatpush1.bf16.msra.mxu1 %v4132_v16  ;;  %v4213_v16 = vld [vmem:[%s5633_s0 + $0x30] ss:$20 sps:$4 sm:$0xff]  }
  0x37   :  { %1522 = vmatprep.subr.bf16.mxu0 %v4384_v0  ;;  %4020 = vmatprep.subr.bf16.mxu1 %v4384_v0 }
  0x3a   :  { %1523 = vmatpush1.bf16.msra.mxu0 %v4133_v17  ;;  %4036 = vmatpush1.bf16.msra.mxu1 %v4133_v17  ;;  %v4215_v17 = vld [vmem:[%s5633_s0 + $0x2d4] ss:$20 sps:$4 sm:$0xff]  }
  0x3b   :  { %1524 = vmatprep.subr.bf16.mxu0 %v4384_v0  ;;  %4021 = vmatprep.subr.bf16.mxu1 %v4384_v0 }
  0x3e   :  { %1525 = vmatpush1.bf16.msra.mxu0 %v4134_v18  ;;  %4037 = vmatpush1.bf16.msra.mxu1 %v4134_v18  ;;  %v4217_v18 = vld [vmem:[%s5633_s0 + $0x5c] ss:$20 sps:$4 sm:$0xff]  }
  0x3f   :  { %1783 = vmatprep.subr.bf16.mxu0 %v4384_v0  ;;  %3926 = vmatprep.subr.bf16.mxu1 %v4142_v19 }
  0x41   :  { %1527 = vmatmul.mubr.bf16.vlgmr.msra.gmra.mrb[0].mxu0 %v4135_v20  ;;  %1591 = vmatmul.mubr.bf16.vlgmr.msra.gmra.mrb[0].mxu1 %v4138_v21  ;;  %v4220_v20 = vld [vmem:[%s5633_s0 + $0x58] ss:$20 sps:$4 sm:$0xff]   ;;  %v4221_v21 = vld [vmem:[%s5633_s0 + $0x2fc] ss:$20 sps:$4 sm:$0xff]  }
  0x42   :  { %1784 = vmatpush1.bf16.msra.mxu0 %v4141_v22  ;;  %3927 = vmatpush3.bf16.msra.mxu1 %v4142_v19  ;;  %v4219_v19 = vld [vmem:[%s5633_s0 + $0x2d0] ss:$20 sps:$4 sm:$0xff]  }
  0x43   :  { %1785 = vmatprep.subr.bf16.mxu0 %v4384_v0  ;;  %1534 = vmatprep.mubr.bf16.mxu0 %v4144_v23  ;;  %v4223_v22 = vld [vmem:[%s5633_s0 + $0x84] ss:$20 sps:$4 sm:$0xff]  }
  0x44   :  { %1598 = vmatprep.mubr.bf16.mxu1 %v4146_v24  ;;  %3928 = vmatprep.subr.bf16.mxu1 %v4167_v25  ;;  %v4225_v23 = vld [vmem:[%s5633_s0 + $0x2f8] ss:$20 sps:$4 sm:$0xff]   ;;  %v4226_v24 = vld [vmem:[%s5633_s0 + $0x80] ss:$20 sps:$4 sm:$0xff]  }
  0x46   :  { %1786 = vmatpush1.bf16.msra.mxu0 %v4143_v26  ;;  %3929 = vmatpush3.bf16.msra.mxu1 %v4167_v25  ;;  %v4227_v25 = vld [vmem:[%s5633_s0 + $0x324] ss:$20 sps:$4 sm:$0xff]   ;;  %v4229_v26 = vld [vmem:[%s5633_s0 + $0xac] ss:$20 sps:$4 sm:$0xff]  }
  0x47   :  { %1787 = vmatprep.subr.bf16.mxu0 %v4384_v0  ;;  %3930 = vmatprep.subr.bf16.mxu1 %v4192_v27 }
  0x49   :  { %1535 = vmatmul.mubr.bf16.gmra.mrb[4].mxu0 %v4148_v28  ;;  %1599 = vmatmul.mubr.bf16.gmra.mrb[4].mxu1 %v4149_v29  ;;  %v4232_v28 = vld [vmem:[%s5633_s0 + $0xa8] ss:$20 sps:$4 sm:$0xff]   ;;  %v4234_v29 = vld [vmem:[%s5633_s0 + $0x34c] ss:$20 sps:$4 sm:$0xff]  }
  0x4a   :  { %1788 = vmatpush1.bf16.msra.mxu0 %v4150_v30  ;;  %1542 = vmatprep.mubr.bf16.mxu0 %v4152_v31  ;;  %v4236_v30 = vld [vmem:[%s5633_s0 + $0xd4] ss:$20 sps:$4 sm:$0xff]  }
  0x4b   :  { %1789 = vmatprep.subr.bf16.mxu0 %v4384_v0  ;;  %1606 = vmatprep.mubr.bf16.mxu1 %v4154_v32  ;;  %v4238_v31 = vld [vmem:[%s5633_s0 + $0x348] ss:$20 sps:$4 sm:$0xff]   ;;  %v4239_v32 = vld [vmem:[%s5633_s0 + $0xd0] ss:$20 sps:$4 sm:$0xff]  }
  0x4c   :  { %3931 = vmatpush3.bf16.msra.mxu1 %v4192_v27  ;;  %v4231_v27 = vld [vmem:[%s5633_s0 + $0x320] ss:$20 sps:$4 sm:$0xff]  }
  0x4d   :  { %3932 = vmatprep.subr.bf16.mxu1 %v4214_v33 }
  0x4e   :  { %1790 = vmatpush1.bf16.msra.mxu0 %v4151_v34  ;;  %v4242_v34 = vld [vmem:[%s5633_s0 + $0xfc] ss:$20 sps:$4 sm:$0xff]  }
  0x4f   :  { %1791 = vmatprep.subr.bf16.mxu0 %v4384_v0 }
  0x50   :  { %3933 = vmatpush3.bf16.msra.mxu1 %v4214_v33  ;;  %v4240_v33 = vld [vmem:[%s5633_s0 + $0x374] ss:$20 sps:$4 sm:$0xff]  }
  0x51   :  { %1543 = vmatmul.mubr.bf16.gmra.mrb[8].mxu0 %v4156_v35  ;;  %1607 = vmatmul.mubr.bf16.gmra.mrb[8].mxu1 %v4157_v36  ;;  %v4244_v35 = vld [vmem:[%s5633_s0 + $0x370] ss:$20 sps:$4 sm:$0xff]   ;;  %v4245_v36 = vld [vmem:[%s5633_s0 + $0xf8] ss:$20 sps:$4 sm:$0xff]  }
  0x52   :  { %1792 = vmatpush1.bf16.msra.mxu0 %v4158_v37  ;;  %1550 = vmatprep.mubr.bf16.mxu0 %v4160_v38  ;;  %v4246_v37 = vld [vmem:[%s5633_s0 + $0x39c] ss:$20 sps:$4 sm:$0xff]   ;;  %v4248_v38 = vld [vmem:[%s5633_s0 + $0x124] ss:$20 sps:$4 sm:$0xff]  }
  0x53   :  { %1793 = vmatprep.subr.bf16.mxu0 %v4384_v0  ;;  %1614 = vmatprep.mubr.bf16.mxu1 %v4162_v39  ;;  %v4250_v39 = vld [vmem:[%s5633_s0 + $0x398] ss:$20 sps:$4 sm:$0xff]  }
  0x54   :  { %3934 = vmatprep.subr.bf16.mxu1 %v4233_v40 }
  0x55   :  { %3935 = vmatpush3.bf16.msra.mxu1 %v4233_v40  ;;  %v4251_v40 = vld [vmem:[%s5633_s0 + $0x120] ss:$20 sps:$4 sm:$0xff]  }
  0x56   :  { %1794 = vmatpush1.bf16.msra.mxu0 %v4159_v41  ;;  %3936 = vmatprep.subr.bf16.mxu1 %v4252_v42  ;;  %v4253_v41 = vld [vmem:[%s5633_s0 + $0x3c4] ss:$20 sps:$4 sm:$0xff]  }
  0x57   :  { %1795 = vmatprep.subr.bf16.mxu0 %v4384_v0 }
  0x59   :  { %1551 = vmatmul.mubr.bf16.gmra.mrb[12].mxu0 %v4164_v43  ;;  %1615 = vmatmul.mubr.bf16.gmra.mrb[12].mxu1 %v4165_v44  ;;  %v4257_v43 = vld [vmem:[%s5633_s0 + $0x3c0] ss:$20 sps:$4 sm:$0xff]   ;;  %v4258_v44 = vld [vmem:[%s5633_s0 + $0x148] ss:$20 sps:$4 sm:$0xff]  }
  0x5a   :  { %1796 = vmatpush1.bf16.msra.mxu0 %v4166_v45  ;;  %1558 = vmatprep.mubr.bf16.mxu0 %v4169_v46  ;;  %v4259_v45 = vld [vmem:[%s5633_s0 + $0x3ec] ss:$20 sps:$4 sm:$0xff]   ;;  %v4261_v46 = vld [vmem:[%s5633_s0 + $0x174] ss:$20 sps:$4 sm:$0xff]  }
  0x5b   :  { %1797 = vmatprep.subr.bf16.mxu0 %v4384_v0  ;;  %1622 = vmatprep.mubr.bf16.mxu1 %v4171_v47  ;;  %v4263_v47 = vld [vmem:[%s5633_s0 + $0x3e8] ss:$20 sps:$4 sm:$0xff]  }
  0x5c   :  { %3937 = vmatpush3.bf16.msra.mxu1 %v4252_v42  ;;  %v4255_v42 = vld [vmem:[%s5633_s0 + $0x14c] ss:$20 sps:$4 sm:$0xff]  }
  0x5d   :  { %3938 = vmatprep.subr.bf16.mxu1 %v4271_v48 }
  0x5e   :  { %1798 = vmatpush1.bf16.msra.mxu0 %v4168_v49  ;;  %v4265_v49 = vld [vmem:[%s5633_s0 + $0x414] ss:$20 sps:$4 sm:$0xff]  }
  0x5f   :  { %1799 = vmatprep.subr.bf16.mxu0 %v4384_v0 }
  0x60   :  { %3939 = vmatpush3.bf16.msra.mxu1 %v4271_v48  ;;  %v4264_v48 = vld [vmem:[%s5633_s0 + $0x170] ss:$20 sps:$4 sm:$0xff]  }
  0x61   :  { %1559 = vmatmul.mubr.bf16.gmra.mrb[16].mxu0 %v4173_v50  ;;  %1623 = vmatmul.mubr.bf16.gmra.mrb[16].mxu1 %v4174_v51  ;;  %v4267_v50 = vld [vmem:[%s5633_s0 + $0x19c] ss:$20 sps:$4 sm:$0xff]  }
  0x62   :  { %1800 = vmatpush1.bf16.msra.mxu0 %v4175_v52  ;;  %1566 = vmatprep.mubr.bf16.mxu0 %v4177_v53  ;;  %v4269_v51 = vld [vmem:[%s5633_s0 + $0x410] ss:$20 sps:$4 sm:$0xff]   ;;  %v4270_v52 = vld [vmem:[%s5633_s0 + $0x198] ss:$20 sps:$4 sm:$0xff]  }
  0x63   :  { %1801 = vmatprep.subr.bf16.mxu0 %v4384_v0  ;;  %1630 = vmatprep.mubr.bf16.mxu1 %v4179_v54  ;;  %v4272_v53 = vld [vmem:[%s5633_s0 + $0x43c] ss:$20 sps:$4 sm:$0xff]   ;;  %v4274_v54 = vld [vmem:[%s5633_s0 + $0x1c4] ss:$20 sps:$4 sm:$0xff]  }
  0x64   :  { %3940 = vmatprep.subr.bf16.mxu1 %v4290_v61 }
  0x65   :  { %3941 = vmatpush3.bf16.msra.mxu1 %v4290_v61  ;;  %v4284_v61 = vld [vmem:[%s5633_s0 + $0x48c] ss:$20 sps:$4 sm:$0xff]  }
  0x66   :  { %1802 = vmatpush1.bf16.msra.mxu0 %v4176_v55  ;;  %v4276_v55 = vld [vmem:[%s5633_s0 + $0x438] ss:$20 sps:$4 sm:$0xff]  }
  0x67   :  { %1803 = vmatprep.subr.bf16.mxu0 %v4384_v0 }
  0x69   :  { %1567 = vmatmul.mubr.bf16.gmra.mrb[20].mxu0 %v4181_v56  ;;  %1631 = vmatmul.mubr.bf16.gmra.mrb[20].mxu1 %v4182_v57  ;;  %v4277_v56 = vld [vmem:[%s5633_s0 + $0x1c0] ss:$20 sps:$4 sm:$0xff]   ;;  %v4278_v57 = vld [vmem:[%s5633_s0 + $0x464] ss:$20 sps:$4 sm:$0xff]  }
  0x6a   :  { %1804 = vmatpush1.bf16.msra.mxu0 %v4183_v58  ;;  %1574 = vmatprep.mubr.bf16.mxu0 %v4185_v59  ;;  %v4280_v58 = vld [vmem:[%s5633_s0 + $0x1ec] ss:$20 sps:$4 sm:$0xff]  }
  0x6b   :  { %1805 = vmatprep.subr.bf16.mxu0 %v4384_v0  ;;  %1638 = vmatprep.mubr.bf16.mxu1 %v4187_v60  ;;  %v4282_v59 = vld [vmem:[%s5633_s0 + $0x460] ss:$20 sps:$4 sm:$0xff]   ;;  %v4283_v60 = vld [vmem:[%s5633_s0 + $0x1e8] ss:$20 sps:$4 sm:$0xff]  }
  0x6e   :  { %1806 = vmatpush1.bf16.msra.mxu0 %v4184_v62  ;;  %v4286_v62 = vld [vmem:[%s5633_s0 + $0x214] ss:$20 sps:$4 sm:$0xff]  }
  0x6f   :  { %1807 = vmatprep.subr.bf16.mxu0 %v4384_v0 }
  0x71   :  { %1575 = vmatmul.mubr.bf16.gmra.mrb[24].mxu0 %v4189_v63  ;;  %1639 = vmatmul.mubr.bf16.gmra.mrb[24].mxu1 %v4190_v1  ;;  %v4288_v63 = vld [vmem:[%s5633_s0 + $0x488] ss:$20 sps:$4 sm:$0xff]   ;;  %v4289_v1 = vld [vmem:[%s5633_s0 + $0x210] ss:$20 sps:$4 sm:$0xff]  }
  0x72   :  { %1808 = vmatpush1.bf16.msra.mxu0 %v4191_v2  ;;  %1582 = vmatprep.mubr.bf16.mxu0 %v4194_v3  ;;  %v4291_v2 = vld [vmem:[%s5633_s0 + $0x4b4] ss:$20 sps:$4 sm:$0xff]   ;;  %v4293_v3 = vld [vmem:[%s5633_s0 + $0x23c] ss:$20 sps:$4 sm:$0xff]  }
  0x73   :  { %1809 = vmatprep.subr.bf16.mxu0 %v4384_v0  ;;  %1646 = vmatprep.mubr.bf16.mxu1 %v4196_v4  ;;  %v4295_v4 = vld [vmem:[%s5633_s0 + $0x4b0] ss:$20 sps:$4 sm:$0xff]  }
  0x76   :  { %1810 = vmatpush1.bf16.msra.mxu0 %v4193_v5  ;;  %v4296_v5 = vld [vmem:[%s5633_s0 + $0x238] ss:$20 sps:$4 sm:$0xff]  }
  0x77   :  { %1811 = vmatprep.subr.bf16.mxu0 %v4384_v0 }
  0x79   :  { %1583 = vmatmul.mubr.bf16.gmra.mrb[28].mxu0 %v4198_v6  ;;  %1647 = vmatmul.mubr.bf16.gmra.mrb[28].mxu1 %v4199_v7  ;;  %v4297_v6 = vld [vmem:[%s5633_s0 + $0x4dc] ss:$20 sps:$4 sm:$0xff]   ;;  %v4299_v7 = vld [vmem:[%s5633_s0 + $0x264] ss:$20 sps:$4 sm:$0xff]  }
  0x7a   :  { %1812 = vmatpush1.bf16.msra.mxu0 %v4200_v8  ;;  %1654 = vmatprep.mubr.bf16.mxu1 %v4202_v9  ;;  %v4301_v8 = vld [vmem:[%s5633_s0 + $0x4d8] ss:$20 sps:$4 sm:$0xff]   ;;  %v4302_v9 = vld [vmem:[%s5633_s0 + $0x260] ss:$20 sps:$4 sm:$0xff]  }
  0x7b   :  { %1813 = vmatprep.subr.bf16.mxu0 %v4384_v0  ;;  %1815 = vmatprep.mubr.bf16.mxu0 %v4206_v10  ;;  %v4212_v0 = vld [vmem:[%s5633_s0 + $0x2a8] ss:$20 sps:$4 sm:$0xff]   ;;  %v4303_v10 = vld [vmem:[%s5633_s0 + $0x28c] ss:$20 sps:$4 sm:$0xff]  }
  0x7e   :  { %1814 = vmatpush1.bf16.msra.mxu0 %v4201_v11  ;;  %v4305_v11 = vld [vmem:[%s5633_s0 + $0x10] ss:$20 sps:$4 sm:$0xff]  }
  0x81   :  { %1655 = vmatmul.mubr.bf16.gmra.mrb[32].mxu1 %v4207_v13  ;;  %1816 = vmatmul.mubr.bf16.vlgmr.msra.gmra.mrb[0].mxu0 %v4204_v12  ;;  %v4306_v12 = vld [vmem:[%s5633_s0 + $0x288] ss:$20 sps:$4 sm:$0xff]   ;;  %v4307_v13 = vld [vmem:[%s5633_s0 + $0x38] ss:$20 sps:$4 sm:$0xff]  }
  0x82   :  { %1662 = vmatprep.mubr.bf16.mxu1 %v4208_v14  ;;  %1823 = vmatprep.mubr.bf16.mxu0 %v4210_v15  ;;  %v4308_v14 = vld [vmem:[%s5633_s0 + $0x2b4] ss:$20 sps:$4 sm:$0xff]  }
  0x83   :  { %v4310_v15 = vld [vmem:[%s5633_s0 + $0x60] ss:$20 sps:$4 sm:$0xff]  }
  0x89   :  { %1663 = vmatmul.mubr.bf16.gmra.mrb[36].mxu1 %v4212_v0  ;;  %1824 = vmatmul.mubr.bf16.gmra.mrb[4].mxu0 %v4213_v16  ;;  %v4311_v0 = vld [vmem:[%s5633_s0 + $0x2b0] ss:$20 sps:$4 sm:$0xff]   ;;  %v4312_v16 = vld [vmem:[%s5633_s0 + $0x88] ss:$20 sps:$4 sm:$0xff]  }
  0x8a   :  { %1670 = vmatprep.mubr.bf16.mxu1 %v4215_v17  ;;  %1831 = vmatprep.mubr.bf16.mxu0 %v4217_v18  ;;  %v4313_v17 = vld [vmem:[%s5633_s0 + $0x2dc] ss:$20 sps:$4 sm:$0xff]  }
  0x8b   :  { %v4315_v18 = vld [vmem:[%s5633_s0 + $0xb0] ss:$20 sps:$4 sm:$0xff]  }
  0x91   :  { %1671 = vmatmul.mubr.bf16.gmra.mrb[40].mxu1 %v4219_v19  ;;  %1832 = vmatmul.mubr.bf16.gmra.mrb[8].mxu0 %v4220_v20  ;;  %v4316_v19 = vld [vmem:[%s5633_s0 + $0x2d8] ss:$20 sps:$4 sm:$0xff]  }
  0x92   :  { %1678 = vmatprep.mubr.bf16.mxu1 %v4221_v21  ;;  %1839 = vmatprep.mubr.bf16.mxu0 %v4223_v22  ;;  %v4317_v20 = vld [vmem:[%s5633_s0 + $0xd8] ss:$20 sps:$4 sm:$0xff]   ;;  %v4320_v22 = vld [vmem:[%s5633_s0 + $0x100] ss:$20 sps:$4 sm:$0xff]  }
  0x93   :  { %v4318_v21 = vld [vmem:[%s5633_s0 + $0x304] ss:$20 sps:$4 sm:$0xff]  }
  0x99   :  { %1679 = vmatmul.mubr.bf16.gmra.mrb[44].mxu1 %v4225_v23  ;;  %1840 = vmatmul.mubr.bf16.gmra.mrb[12].mxu0 %v4226_v24 }
  0x9a   :  { %1686 = vmatprep.mubr.bf16.mxu1 %v4227_v25  ;;  %1847 = vmatprep.mubr.bf16.mxu0 %v4229_v26  ;;  %v4321_v25 = vld [vmem:[%s5633_s0 + $0x300] ss:$20 sps:$4 sm:$0xff]   ;;  %v4322_v26 = vld [vmem:[%s5633_s0 + $0x128] ss:$20 sps:$4 sm:$0xff]  }
  0xa1   :  { %1687 = vmatmul.mubr.bf16.gmra.mrb[48].mxu1 %v4231_v27  ;;  %1848 = vmatmul.mubr.bf16.gmra.mrb[16].mxu0 %v4232_v28  ;;  %v4323_v28 = vld [vmem:[%s5633_s0 + $0x32c] ss:$20 sps:$4 sm:$0xff]  }
  0xa2   :  { %1694 = vmatprep.mubr.bf16.mxu1 %v4234_v29  ;;  %1855 = vmatprep.mubr.bf16.mxu0 %v4236_v30  ;;  %v4325_v29 = vld [vmem:[%s5633_s0 + $0x150] ss:$20 sps:$4 sm:$0xff]  }
  0xa9   :  { %1695 = vmatmul.mubr.bf16.gmra.mrb[52].mxu1 %v4238_v31  ;;  %1856 = vmatmul.mubr.bf16.gmra.mrb[20].mxu0 %v4239_v32 }
  0xaa   :  { %1702 = vmatprep.mubr.bf16.mxu1 %v4240_v33  ;;  %1863 = vmatprep.mubr.bf16.mxu0 %v4242_v34  ;;  %v4326_v33 = vld [vmem:[%s5633_s0 + $0x328] ss:$20 sps:$4 sm:$0xff]   ;;  %v4327_v34 = vld [vmem:[%s5633_s0 + $0x178] ss:$20 sps:$4 sm:$0xff]  }
  0xb1   :  { %1703 = vmatmul.mubr.bf16.gmra.mrb[56].mxu1 %v4244_v35  ;;  %1864 = vmatmul.mubr.bf16.gmra.mrb[24].mxu0 %v4245_v36  ;;  %v4328_v36 = vld [vmem:[%s5633_s0 + $0x354] ss:$20 sps:$4 sm:$0xff]  }
  0xb2   :  { %1710 = vmatprep.mubr.bf16.mxu1 %v4246_v37  ;;  %1871 = vmatprep.mubr.bf16.mxu0 %v4248_v38  ;;  %v4330_v37 = vld [vmem:[%s5633_s0 + $0x1a0] ss:$20 sps:$4 sm:$0xff]  }
  0xb9   :  { %1711 = vmatmul.mubr.bf16.gmra.mrb[60].mxu1 %v4250_v39  ;;  %1872 = vmatmul.mubr.bf16.gmra.mrb[28].mxu0 %v4251_v40 }
  0xba   :  { %1718 = vmatprep.mubr.bf16.mxu1 %v4253_v41  ;;  %1879 = vmatprep.mubr.bf16.mxu0 %v4255_v42  ;;  %v4331_v41 = vld [vmem:[%s5633_s0 + $0x350] ss:$20 sps:$4 sm:$0xff]   ;;  %v4332_v42 = vld [vmem:[%s5633_s0 + $0x1c8] ss:$20 sps:$4 sm:$0xff]  }
  0xc1   :  { %1719 = vmatmul.mubr.bf16.gmra.mrb[64].mxu1 %v4257_v43  ;;  %1880 = vmatmul.mubr.bf16.gmra.mrb[32].mxu0 %v4258_v44  ;;  %v4333_v44 = vld [vmem:[%s5633_s0 + $0x37c] ss:$20 sps:$4 sm:$0xff]  }
  0xc2   :  { %1726 = vmatprep.mubr.bf16.mxu1 %v4259_v45  ;;  %1887 = vmatprep.mubr.bf16.mxu0 %v4261_v46  ;;  %v4335_v45 = vld [vmem:[%s5633_s0 + $0x1f0] ss:$20 sps:$4 sm:$0xff]  }
  0xc9   :  { %1727 = vmatmul.mubr.bf16.gmra.mrb[68].mxu1 %v4263_v47  ;;  %1888 = vmatmul.mubr.bf16.gmra.mrb[36].mxu0 %v4264_v48 }
  0xca   :  { %1734 = vmatprep.mubr.bf16.mxu1 %v4265_v49  ;;  %1895 = vmatprep.mubr.bf16.mxu0 %v4267_v50  ;;  %v4336_v49 = vld [vmem:[%s5633_s0 + $0x378] ss:$20 sps:$4 sm:$0xff]  }
  0xcb   :  { %v4337_v50 = vld [vmem:[%s5633_s0 + $0x218] ss:$20 sps:$4 sm:$0xff]  }
  0xd1   :  { %1735 = vmatmul.mubr.bf16.gmra.mrb[72].mxu1 %v4269_v51  ;;  %1896 = vmatmul.mubr.bf16.gmra.mrb[40].mxu0 %v4270_v52  ;;  %v4338_v52 = vld [vmem:[%s5633_s0 + $0x3a4] ss:$20 sps:$4 sm:$0xff]  }
  0xd2   :  { %1742 = vmatprep.mubr.bf16.mxu1 %v4272_v53  ;;  %1903 = vmatprep.mubr.bf16.mxu0 %v4274_v54  ;;  %v4340_v53 = vld [vmem:[%s5633_s0 + $0x240] ss:$20 sps:$4 sm:$0xff]  }
  0xd9   :  { %1743 = vmatmul.mubr.bf16.gmra.mrb[76].mxu1 %v4276_v55  ;;  %1904 = vmatmul.mubr.bf16.gmra.mrb[44].mxu0 %v4277_v56 }
  0xda   :  { %1750 = vmatprep.mubr.bf16.mxu1 %v4278_v57  ;;  %1911 = vmatprep.mubr.bf16.mxu0 %v4280_v58  ;;  %v4341_v57 = vld [vmem:[%s5633_s0 + $0x3a0] ss:$20 sps:$4 sm:$0xff]   ;;  %v4342_v58 = vld [vmem:[%s5633_s0 + $0x268] ss:$20 sps:$4 sm:$0xff]  }
  0xe1   :  { %1751 = vmatmul.mubr.bf16.gmra.mrb[80].mxu1 %v4282_v59  ;;  %1912 = vmatmul.mubr.bf16.gmra.mrb[48].mxu0 %v4283_v60  ;;  %v4343_v60 = vld [vmem:[%s5633_s0 + $0x3cc] ss:$20 sps:$4 sm:$0xff]  }
  0xe2   :  { %1758 = vmatprep.mubr.bf16.mxu1 %v4284_v61  ;;  %1919 = vmatprep.mubr.bf16.mxu0 %v4286_v62  ;;  %v4345_v61 = vld [vmem:[%s5633_s0 + $0x290] ss:$20 sps:$4 sm:$0xff]  }
  0xe9   :  { %1759 = vmatmul.mubr.bf16.gmra.mrb[84].mxu1 %v4288_v63  ;;  %1920 = vmatmul.mubr.bf16.gmra.mrb[52].mxu0 %v4289_v1 }
  0xea   :  { %1766 = vmatprep.mubr.bf16.mxu1 %v4291_v2  ;;  %1927 = vmatprep.mubr.bf16.mxu0 %v4293_v3  ;;  %v4346_v2 = vld [vmem:[%s5633_s0 + $0x3c8] ss:$20 sps:$4 sm:$0xff]   ;;  %v4347_v3 = vld [vmem:[%s5633_s0 + $0x2b8] ss:$20 sps:$4 sm:$0xff]  }
  0xf1   :  { %1767 = vmatmul.mubr.bf16.gmra.mrb[88].mxu1 %v4295_v4  ;;  %1928 = vmatmul.mubr.bf16.gmra.mrb[56].mxu0 %v4296_v5  ;;  %v4348_v5 = vld [vmem:[%s5633_s0 + $0x3f4] ss:$20 sps:$4 sm:$0xff]  }
  0xf2   :  { %1774 = vmatprep.mubr.bf16.mxu1 %v4297_v6  ;;  %1935 = vmatprep.mubr.bf16.mxu0 %v4299_v7  ;;  %v4350_v6 = vld [vmem:[%s5633_s0 + $0x2e0] ss:$20 sps:$4 sm:$0xff]  }
  0xf9   :  { %1775 = vmatmul.mubr.bf16.gmra.mrb[92].mxu1 %v4301_v8  ;;  %1936 = vmatmul.mubr.bf16.gmra.mrb[60].mxu0 %v4302_v9 }
  0xfa   :  { %1943 = vmatprep.mubr.bf16.mxu0 %v4303_v10  ;;  %3942 = vmatprep.mubr.bf16.mxu1 %v4305_v11  ;;  %v4351_v10 = vld [vmem:[%s5633_s0 + $0x3f0] ss:$20 sps:$4 sm:$0xff]   ;;  %v4352_v11 = vld [vmem:[%s5633_s0 + $0x308] ss:$20 sps:$4 sm:$0xff]  }
 0x101   :  { %1944 = vmatmul.mubr.bf16.gmra.mrb[64].mxu0 %v4306_v12  ;;  %3943 = vmatmul.mubr.bf16.vlgmr.msra.gmra.mrb[96].mxu1 %v4307_v13  ;;  %v4353_v13 = vld [vmem:[%s5633_s0 + $0x41c] ss:$20 sps:$4 sm:$0xff]  }
 0x102   :  { %1951 = vmatprep.mubr.bf16.mxu0 %v4308_v14  ;;  %3946 = vmatprep.mubr.bf16.mxu1 %v4310_v15  ;;  %v4355_v14 = vld [vmem:[%s5633_s0 + $0x330] ss:$20 sps:$4 sm:$0xff]  }
 0x109   :  { %1952 = vmatmul.mubr.bf16.gmra.mrb[68].mxu0 %v4311_v0  ;;  %3947 = vmatmul.mubr.bf16.gmra.mrb[100].mxu1 %v4312_v16 }
 0x10a   :  { %1959 = vmatprep.mubr.bf16.mxu0 %v4313_v17  ;;  %3950 = vmatprep.mubr.bf16.mxu1 %v4315_v18  ;;  %v4356_v17 = vld [vmem:[%s5633_s0 + $0x418] ss:$20 sps:$4 sm:$0xff]  }
 0x10b   :  { %v4357_v18 = vld [vmem:[%s5633_s0 + $0x358] ss:$20 sps:$4 sm:$0xff]  }
 0x111   :  { %1960 = vmatmul.mubr.bf16.gmra.mrb[72].mxu0 %v4316_v19  ;;  %3951 = vmatmul.mubr.bf16.gmra.mrb[104].mxu1 %v4317_v20  ;;  %v4358_v20 = vld [vmem:[%s5633_s0 + $0x444] ss:$20 sps:$4 sm:$0xff]  }
 0x112   :  { %1967 = vmatprep.mubr.bf16.mxu0 %v4318_v21  ;;  %3954 = vmatprep.mubr.bf16.mxu1 %v4320_v22  ;;  %v4360_v21 = vld [vmem:[%s5633_s0 + $0x380] ss:$20 sps:$4 sm:$0xff]  }
 0x114   :  { %v4908_v23 = vpop.f32.mrb[0].mxu1 }
 0x115   :  { %v1594_v24 = vpop.f32.mrb[1].mxu1 }
 0x116   :  { %v4916_v27 = vpop.f32.mrb[2].mxu1 }
 0x117   :  { %v1597_v30 = vpop.f32.mrb[3].mxu1 }
 0x118   :  { %v4362_v30 = vld [vmem:[%s5633_s0 + $0x3a8] ss:$20 sps:$4 sm:$0xff]  }
 0x119   :  { %1968 = vmatmul.mubr.bf16.gmra.mrb[76].mxu0 %v4321_v25  ;;  %3955 = vmatmul.mubr.bf16.gmra.mrb[108].mxu1 %v4322_v26 }
 0x11a   :  { %1975 = vmatprep.mubr.bf16.mxu0 %v4323_v28  ;;  %3958 = vmatprep.mubr.bf16.mxu1 %v4325_v29  ;;  %v4361_v29 = vld [vmem:[%s5633_s0 + $0x440] ss:$20 sps:$4 sm:$0xff]  }
 0x11c   :  { %v4924_v31 = vpop.f32.mrb[4].mxu1 }
 0x11d   :  { %v1602_v32 = vpop.f32.mrb[5].mxu1 }
 0x11e   :  { %v4932_v35 = vpop.f32.mrb[6].mxu1 }
 0x11f   :  { %v1605_v38 = vpop.f32.mrb[7].mxu1 }
 0x121   :  { %1976 = vmatmul.mubr.bf16.gmra.mrb[80].mxu0 %v4326_v33  ;;  %3959 = vmatmul.mubr.bf16.gmra.mrb[112].mxu1 %v4327_v34  ;;  %v4363_v34 = vld [vmem:[%s5633_s0 + $0x46c] ss:$20 sps:$4 sm:$0xff]  }
 0x122   :  { %1983 = vmatprep.mubr.bf16.mxu0 %v4328_v36  ;;  %3962 = vmatprep.mubr.bf16.mxu1 %v4330_v37  ;;  %v4365_v36 = vld [vmem:[%s5633_s0 + $0x3d0] ss:$20 sps:$4 sm:$0xff]  }
 0x124   :  { %v4940_v39 = vpop.f32.mrb[8].mxu1 }
 0x125   :  { %v1610_v40 = vpop.f32.mrb[9].mxu1 }
 0x126   :  { %v4948_v43 = vpop.f32.mrb[10].mxu1 }
 0x127   :  { %v1613_v46 = vpop.f32.mrb[11].mxu1 }
 0x128   :  { %v4367_v46 = vld [vmem:[%s5633_s0 + $0x3f8] ss:$20 sps:$4 sm:$0xff]  }
 0x129   :  { %1984 = vmatmul.mubr.bf16.gmra.mrb[84].mxu0 %v4331_v41  ;;  %3963 = vmatmul.mubr.bf16.gmra.mrb[116].mxu1 %v4332_v42 }
 0x12a   :  { %1991 = vmatprep.mubr.bf16.mxu0 %v4333_v44  ;;  %3966 = vmatprep.mubr.bf16.mxu1 %v4335_v45  ;;  %v4366_v45 = vld [vmem:[%s5633_s0 + $0x468] ss:$20 sps:$4 sm:$0xff]  }
 0x12c   :  { %v4956_v47 = vpop.f32.mrb[12].mxu1 }
 0x12d   :  { %v1618_v48 = vpop.f32.mrb[13].mxu1 }
 0x12e   :  { %v4964_v51 = vpop.f32.mrb[14].mxu1 }
 0x12f   :  { %v1621_v54 = vpop.f32.mrb[15].mxu1 }
 0x131   :  { %1992 = vmatmul.mubr.bf16.gmra.mrb[88].mxu0 %v4336_v49  ;;  %3967 = vmatmul.mubr.bf16.gmra.mrb[120].mxu1 %v4337_v50  ;;  %v4368_v50 = vld [vmem:[%s5633_s0 + $0x494] ss:$20 sps:$4 sm:$0xff]  }
 0x132   :  { %1999 = vmatprep.mubr.bf16.mxu0 %v4338_v52  ;;  %3970 = vmatprep.mubr.bf16.mxu1 %v4340_v53  ;;  %v4370_v52 = vld [vmem:[%s5633_s0 + $0x420] ss:$20 sps:$4 sm:$0xff]  }
 0x134   :  { %v4972_v55 = vpop.f32.mrb[16].mxu1 }
 0x135   :  { %v1626_v56 = vpop.f32.mrb[17].mxu1 }
 0x136   :  { %v4980_v59 = vpop.f32.mrb[18].mxu1 }
 0x137   :  { %v1629_v62 = vpop.f32.mrb[19].mxu1 }
 0x138   :  { %v4372_v62 = vld [vmem:[%s5633_s0 + $0x448] ss:$20 sps:$4 sm:$0xff]  }
 0x139   :  { %2000 = vmatmul.mubr.bf16.gmra.mrb[92].mxu0 %v4341_v57  ;;  %3971 = vmatmul.mubr.bf16.gmra.mrb[124].mxu1 %v4342_v58 }
 0x13a   :  { %2007 = vmatprep.mubr.bf16.mxu0 %v4343_v60  ;;  %3974 = vmatprep.mubr.bf16.mxu1 %v4345_v61  ;;  %v4371_v61 = vld [vmem:[%s5633_s0 + $0x490] ss:$20 sps:$4 sm:$0xff]  }
 0x13c   :  { %v4988_v63 = vpop.f32.mrb[20].mxu1 }
 0x13d   :  { %v1634_v1 = vpop.f32.mrb[21].mxu1 }
 0x13e   :  { %v4996_v4 = vpop.f32.mrb[22].mxu1 }
 0x13f   :  { %v1637_v7 = vpop.f32.mrb[23].mxu1 }
 0x141   :  { %2008 = vmatmul.mubr.bf16.gmra.mrb[96].mxu0 %v4346_v2  ;;  %3975 = vmatmul.mubr.bf16.gmra.mrb[128].mxu1 %v4347_v3  ;;  %v4373_v3 = vld [vmem:[%s5633_s0 + $0x4bc] ss:$20 sps:$4 sm:$0xff]  }
 0x142   :  { %2015 = vmatprep.mubr.bf16.mxu0 %v4348_v5  ;;  %3978 = vmatprep.mubr.bf16.mxu1 %v4350_v6  ;;  %v4375_v5 = vld [vmem:[%s5633_s0 + $0x470] ss:$20 sps:$4 sm:$0xff]  }
 0x144   :  { %v5004_v8 = vpop.f32.mrb[24].mxu1 }
 0x145   :  { %v1642_v9 = vpop.f32.mrb[25].mxu1 }
 0x146   :  { %v5012_v12 = vpop.f32.mrb[26].mxu1 }
 0x147   :  { %v1645_v15 = vpop.f32.mrb[27].mxu1 }
 0x148   :  { %v4377_v15 = vld [vmem:[%s5633_s0 + $0x498] ss:$20 sps:$4 sm:$0xff]  }
 0x149   :  { %2016 = vmatmul.mubr.bf16.gmra.mrb[100].mxu0 %v4351_v10  ;;  %3979 = vmatmul.mubr.bf16.gmra.mrb[132].mxu1 %v4352_v11 }
 0x14a   :  { %2023 = vmatprep.mubr.bf16.mxu0 %v4353_v13  ;;  %3982 = vmatprep.mubr.bf16.mxu1 %v4355_v14  ;;  %v4376_v14 = vld [vmem:[%s5633_s0 + $0x4b8] ss:$20 sps:$4 sm:$0xff]  }
 0x14c   :  { %v5020_v0 = vpop.f32.mrb[28].mxu1 }
 0x14d   :  { %v1650_v16 = vpop.f32.mrb[29].mxu1 }
 0x14e   :  { %v5028_v19 = vpop.f32.mrb[30].mxu1 }
 0x14f   :  { %v1653_v22 = vpop.f32.mrb[31].mxu1 }
 0x151   :  { %2024 = vmatmul.mubr.bf16.gmra.mrb[104].mxu0 %v4356_v17  ;;  %3983 = vmatmul.mubr.bf16.gmra.mrb[136].mxu1 %v4357_v18  ;;  %v4378_v18 = vld [vmem:[%s5633_s0 + $0x4e4] ss:$20 sps:$4 sm:$0xff]  }
 0x152   :  { %2031 = vmatprep.mubr.bf16.mxu0 %v4358_v20  ;;  %3986 = vmatprep.mubr.bf16.mxu1 %v4360_v21  ;;  %v4380_v20 = vld [vmem:[%s5633_s0 + $0x4c0] ss:$20 sps:$4 sm:$0xff]  }
 0x154   :  { %v5036_v24 = vpop.f32.mrb[32].mxu1  ;;  %v5038_v25 = vpop.f32.mrb[0].mxu0 }
 0x155   :  { %v1658_v26 = vpop.f32.mrb[33].mxu1  ;;  %v1819_v28 = vpop.f32.mrb[1].mxu0 }
 0x156   :  { %v5046_v32 = vpop.f32.mrb[34].mxu1  ;;  %v5048_v33 = vpop.f32.mrb[2].mxu0 }
 0x157   :  { %v1661_v37 = vpop.f32.mrb[35].mxu1  ;;  %v1822_v38 = vpop.f32.mrb[3].mxu0 }
 0x159   :  { %2032 = vmatmul.mubr.bf16.gmra.mrb[108].mxu0 %v4361_v29  ;;  %3987 = vmatmul.mubr.bf16.gmra.mrb[140].mxu1 %v4362_v30 }
 0x15a   :  { %2039 = vmatprep.mubr.bf16.mxu0 %v4363_v34  ;;  %3990 = vmatprep.mubr.bf16.mxu1 %v4365_v36  ;;  %v4381_v34 = vld [vmem:[%s5633_s0 + $0x4e0] ss:$20 sps:$4 sm:$0xff]   ;;  %v4382_v36 = vld [vmem:[%s5633_s0 + $0x4e8] ss:$20 sps:$4 sm:$0xff]  }
 0x15c   :  { %v5056_v40 = vpop.f32.mrb[36].mxu1  ;;  %v5058_v41 = vpop.f32.mrb[4].mxu0 }
 0x15d   :  { %v1666_v42 = vpop.f32.mrb[37].mxu1  ;;  %v1827_v44 = vpop.f32.mrb[5].mxu0 }
 0x15e   :  { %v5066_v48 = vpop.f32.mrb[38].mxu1  ;;  %v5068_v49 = vpop.f32.mrb[6].mxu0 }
 0x15f   :  { %v1669_v53 = vpop.f32.mrb[39].mxu1  ;;  %v1830_v54 = vpop.f32.mrb[7].mxu0 }
 0x161   :  { %2040 = vmatmul.mubr.bf16.gmra.mrb[112].mxu0 %v4366_v45  ;;  %3991 = vmatmul.mubr.bf16.gmra.mrb[144].mxu1 %v4367_v46 }
 0x162   :  { %2047 = vmatprep.mubr.bf16.mxu0 %v4368_v50  ;;  %3994 = vmatprep.mubr.bf16.mxu1 %v4370_v52 }
 0x164   :  { %v5076_v56 = vpop.f32.mrb[40].mxu1  ;;  %v5078_v57 = vpop.f32.mrb[8].mxu0 }
 0x165   :  { %v1674_v58 = vpop.f32.mrb[41].mxu1  ;;  %v1835_v60 = vpop.f32.mrb[9].mxu0 }
 0x166   :  { %v5086_v1 = vpop.f32.mrb[42].mxu1  ;;  %v5088_v2 = vpop.f32.mrb[10].mxu0 }
 0x167   :  { %v1677_v6 = vpop.f32.mrb[43].mxu1  ;;  %v1838_v7 = vpop.f32.mrb[11].mxu0 }
 0x169   :  { %2048 = vmatmul.mubr.bf16.gmra.mrb[116].mxu0 %v4371_v61  ;;  %3995 = vmatmul.mubr.bf16.gmra.mrb[148].mxu1 %v4372_v62 }
 0x16a   :  { %2055 = vmatprep.mubr.bf16.mxu0 %v4373_v3  ;;  %3998 = vmatprep.mubr.bf16.mxu1 %v4375_v5 }
 0x16c   :  { %v5096_v9 = vpop.f32.mrb[44].mxu1  ;;  %v5098_v10 = vpop.f32.mrb[12].mxu0 }
 0x16d   :  { %v1682_v11 = vpop.f32.mrb[45].mxu1  ;;  %v1843_v13 = vpop.f32.mrb[13].mxu0 }
 0x16e   :  { %v5106_v16 = vpop.f32.mrb[46].mxu1  ;;  %v5108_v17 = vpop.f32.mrb[14].mxu0 }
 0x16f   :  { %v1685_v21 = vpop.f32.mrb[47].mxu1  ;;  %v1846_v22 = vpop.f32.mrb[15].mxu0 }
 0x171   :  { %2056 = vmatmul.mubr.bf16.gmra.mrb[120].mxu0 %v4376_v14  ;;  %3999 = vmatmul.mubr.bf16.gmra.mrb[152].mxu1 %v4377_v15 }
 0x172   :  { %2063 = vmatprep.mubr.bf16.mxu0 %v4378_v18  ;;  %4002 = vmatprep.mubr.bf16.mxu1 %v4380_v20 }
 0x174   :  { %v5116_v26 = vpop.f32.mrb[48].mxu1  ;;  %v5118_v28 = vpop.f32.mrb[16].mxu0 }
 0x175   :  { %v1690_v29 = vpop.f32.mrb[49].mxu1  ;;  %v1851_v30 = vpop.f32.mrb[17].mxu0 }
 0x176   :  { %v5126_v37 = vpop.f32.mrb[50].mxu1  ;;  %v5128_v38 = vpop.f32.mrb[18].mxu0 }
 0x177   :  { %v1693_v42 = vpop.f32.mrb[51].mxu1  ;;  %v1854_v44 = vpop.f32.mrb[19].mxu0 }
 0x179   :  { %2064 = vmatmul.mubr.bf16.gmra.mrb[124].mxu0 %v4381_v34  ;;  %4003 = vmatmul.mubr.bf16.gmra.mrb[156].mxu1 %v4382_v36 }
 0x17c   :  { %v5130_v45 = vpop.f32.mrb[52].mxu1  ;;  %v5132_v46 = vpop.f32.mrb[20].mxu0 }
 0x17d   :  { %v1698_v50 = vpop.f32.mrb[53].mxu1  ;;  %v1859_v52 = vpop.f32.mrb[21].mxu0 }
 0x17e   :  { %v5134_v53 = vpop.f32.mrb[54].mxu1  ;;  %v5136_v54 = vpop.f32.mrb[22].mxu0 }
 0x17f   :  { %v1701_v58 = vpop.f32.mrb[55].mxu1  ;;  %v1862_v60 = vpop.f32.mrb[23].mxu0 }
 0x184   :  { %v5138_v61 = vpop.f32.mrb[56].mxu1  ;;  %v5140_v62 = vpop.f32.mrb[24].mxu0 }
 0x185   :  { %v1706_v3 = vpop.f32.mrb[57].mxu1  ;;  %v1867_v5 = vpop.f32.mrb[25].mxu0 }
 0x186   :  { %v5142_v6 = vpop.f32.mrb[58].mxu1  ;;  %v5144_v7 = vpop.f32.mrb[26].mxu0 }
 0x187   :  { %v1709_v11 = vpop.f32.mrb[59].mxu1  ;;  %v1870_v13 = vpop.f32.mrb[27].mxu0 }
 0x18c   :  { %v5146_v14 = vpop.f32.mrb[60].mxu1  ;;  %v5148_v15 = vpop.f32.mrb[28].mxu0 }
 0x18d   :  { %v1714_v18 = vpop.f32.mrb[61].mxu1  ;;  %v1875_v20 = vpop.f32.mrb[29].mxu0 }
 0x18e   :  { %v5150_v21 = vpop.f32.mrb[62].mxu1  ;;  %v5152_v22 = vpop.f32.mrb[30].mxu0 }
 0x18f   :  { %5637 = vst [vmem:[#allocation3_spill] sm:$0xff] %v5150_v21  ;;  %v1717_v29 = vpop.f32.mrb[63].mxu1  ;;  %v1878_v30 = vpop.f32.mrb[31].mxu0 }
 0x194   :  { %v5154_v34 = vpop.f32.mrb[64].mxu1  ;;  %v1881_v36 = vpop.f32.mrb[32].mxu0 }
 0x195   :  { %5638 = vst [vmem:[#allocation4_spill] sm:$0xff] %v5154_v34  ;;  %v5157_v42 = vadd.f32 %v1881_v36, %v4908_v23  ;;  %v1722_v44 = vpop.f32.mrb[65].mxu1  ;;  %v1883_v50 = vpop.f32.mrb[33].mxu0 }
 0x196   :  { %v5159_v52 = vpop.f32.mrb[66].mxu1  ;;  %v1884_v58 = vpop.f32.mrb[34].mxu0 }
 0x197   :  { %5639 = vst [vmem:[#allocation5_spill] sm:$0xff] %v5159_v52  ;;  %v5162_v60 = vadd.f32 %v1884_v58, %v4916_v27  ;;  %v1725_v3 = vpop.f32.mrb[67].mxu1  ;;  %v1886_v5 = vpop.f32.mrb[35].mxu0 }
 0x19c   :  { %v5164_v11 = vpop.f32.mrb[68].mxu1  ;;  %v1889_v13 = vpop.f32.mrb[36].mxu0 }
 0x19d   :  { %5640 = vst [vmem:[#allocation6_spill] sm:$0xff] %v5164_v11  ;;  %v5167_v18 = vadd.f32 %v1889_v13, %v4924_v31  ;;  %v1730_v20 = vpop.f32.mrb[69].mxu1  ;;  %v1891_v29 = vpop.f32.mrb[37].mxu0 }
 0x19e   :  { %v5169_v23 = vpop.f32.mrb[70].mxu1  ;;  %v1892_v30 = vpop.f32.mrb[38].mxu0 }
 0x19f   :  { %5641 = vst [vmem:[#allocation7_spill] sm:$0xff] %v5169_v23  ;;  %v5172_v36 = vadd.f32 %v1892_v30, %v4932_v35  ;;  %v1733_v44 = vpop.f32.mrb[71].mxu1  ;;  %v1894_v50 = vpop.f32.mrb[39].mxu0 }
 0x1a4   :  { %v5174_v27 = vpop.f32.mrb[72].mxu1  ;;  %v1897_v58 = vpop.f32.mrb[40].mxu0 }
 0x1a5   :  { %5642 = vst [vmem:[#allocation8_spill] sm:$0xff] %v5174_v27  ;;  %v5177_v3 = vadd.f32 %v1897_v58, %v4940_v39  ;;  %v1738_v5 = vpop.f32.mrb[73].mxu1  ;;  %v1899_v11 = vpop.f32.mrb[41].mxu0 }
 0x1a6   :  { %v5179_v31 = vpop.f32.mrb[74].mxu1  ;;  %v1900_v13 = vpop.f32.mrb[42].mxu0 }
 0x1a7   :  { %5643 = vst [vmem:[#allocation9_spill] sm:$0xff] %v5179_v31  ;;  %v5182_v20 = vadd.f32 %v1900_v13, %v4948_v43  ;;  %v1741_v29 = vpop.f32.mrb[75].mxu1  ;;  %v1902_v23 = vpop.f32.mrb[43].mxu0 }
 0x1ac   :  { %v5184_v35 = vpop.f32.mrb[76].mxu1  ;;  %v1905_v30 = vpop.f32.mrb[44].mxu0 }
 0x1ad   :  { %5644 = vst [vmem:[#allocation10_spill] sm:$0xff] %v5184_v35  ;;  %v5187_v44 = vadd.f32 %v1905_v30, %v4956_v47  ;;  %v1746_v50 = vpop.f32.mrb[77].mxu1  ;;  %v1907_v27 = vpop.f32.mrb[45].mxu0 }
 0x1ae   :  { %v5189_v39 = vpop.f32.mrb[78].mxu1  ;;  %v1908_v58 = vpop.f32.mrb[46].mxu0 }
 0x1af   :  { %5645 = vst [vmem:[#allocation11_spill] sm:$0xff] %v5189_v39  ;;  %v5192_v11 = vadd.f32 %v1908_v58, %v4964_v51  ;;  %v1749_v5 = vpop.f32.mrb[79].mxu1  ;;  %v1910_v31 = vpop.f32.mrb[47].mxu0 }
 0x1b4   :  { %v5194_v43 = vpop.f32.mrb[80].mxu1  ;;  %v1913_v13 = vpop.f32.mrb[48].mxu0 }
 0x1b5   :  { %5646 = vst [vmem:[#allocation12_spill] sm:$0xff] %v5194_v43  ;;  %v5197_v23 = vadd.f32 %v1913_v13, %v4972_v55  ;;  %v1754_v29 = vpop.f32.mrb[81].mxu1  ;;  %v1915_v35 = vpop.f32.mrb[49].mxu0 }
 0x1b6   :  { %v5199_v47 = vpop.f32.mrb[82].mxu1  ;;  %v1916_v30 = vpop.f32.mrb[50].mxu0 }
 0x1b7   :  { %5647 = vst [vmem:[#allocation13_spill] sm:$0xff] %v5199_v47  ;;  %v5202_v27 = vadd.f32 %v1916_v30, %v4980_v59  ;;  %v1757_v50 = vpop.f32.mrb[83].mxu1  ;;  %v1918_v39 = vpop.f32.mrb[51].mxu0 }
 0x1bc   :  { %v5204_v51 = vpop.f32.mrb[84].mxu1  ;;  %v1921_v58 = vpop.f32.mrb[52].mxu0 }
 0x1bd   :  { %5648 = vst [vmem:[#allocation14_spill] sm:$0xff] %v5204_v51  ;;  %v5207_v31 = vadd.f32 %v1921_v58, %v4988_v63  ;;  %v1762_v5 = vpop.f32.mrb[85].mxu1  ;;  %v1923_v43 = vpop.f32.mrb[53].mxu0 }
 0x1be   :  { %v5209_v55 = vpop.f32.mrb[86].mxu1  ;;  %v1924_v13 = vpop.f32.mrb[54].mxu0 }
 0x1bf   :  { %5649 = vst [vmem:[#allocation15_spill] sm:$0xff] %v5209_v55  ;;  %v5212_v35 = vadd.f32 %v1924_v13, %v4996_v4  ;;  %v1765_v29 = vpop.f32.mrb[87].mxu1  ;;  %v1926_v47 = vpop.f32.mrb[55].mxu0 }
 0x1c4   :  { %v5214_v59 = vpop.f32.mrb[88].mxu1  ;;  %v1929_v30 = vpop.f32.mrb[56].mxu0 }
 0x1c5   :  { %5650 = vst [vmem:[#allocation16_spill] sm:$0xff] %v5214_v59  ;;  %v5217_v39 = vadd.f32 %v1929_v30, %v5004_v8  ;;  %v1770_v50 = vpop.f32.mrb[89].mxu1  ;;  %v1931_v51 = vpop.f32.mrb[57].mxu0 }
 0x1c6   :  { %v5219_v63 = vpop.f32.mrb[90].mxu1  ;;  %v1932_v58 = vpop.f32.mrb[58].mxu0 }
 0x1c7   :  { %5651 = vst [vmem:[#allocation17_spill] sm:$0xff] %v5217_v39  ;;  %5652 = vst [vmem:[#allocation18_spill] sm:$0xff] %v5219_v63  ;;  %v5222_v43 = vadd.f32 %v1932_v58, %v5012_v12  ;;  %v1773_v5 = vpop.f32.mrb[91].mxu1  ;;  %v1934_v55 = vpop.f32.mrb[59].mxu0  ;;  %v3824_v12 = vld [vmem:[%s5634_s3 + $0x8] sm:$0xff]  }
 0x1c8   :  { %v3537_v55 = vld [vmem:[%s5634_s3] sm:$0xff]   ;;  %v3542_v5 = vunpack.c.l.bf16 %v3824_v12 }
 0x1c9   :  { %5653 = vst [vmem:[#allocation19_spill] sm:$0xff] %v5222_v43 }
 0x1cc   :  { %v5224_v4 = vpop.f32.mrb[92].mxu1  ;;  %v1937_v13 = vpop.f32.mrb[60].mxu0 }
 0x1cd   :  { %5654 = vst [vmem:[#allocation20_spill] sm:$0xff] %v5224_v4  ;;  %v5227_v47 = vadd.f32 %v1937_v13, %v5020_v0  ;;  %v1778_v29 = vpop.f32.mrb[93].mxu1  ;;  %v1939_v59 = vpop.f32.mrb[61].mxu0 }
 0x1ce   :  { %v5229_v8 = vpop.f32.mrb[94].mxu1  ;;  %v1940_v30 = vpop.f32.mrb[62].mxu0  ;;  %v5243_v59 = vld [vmem:[%s5635_s2] ss:$0 sm:$0xff] }
 0x1cf   :  { %5655 = vst [vmem:[#allocation21_spill] sm:$0xff] %v5229_v8  ;;  %v5232_v51 = vadd.f32 %v1940_v30, %v5028_v19  ;;  %v1781_v50 = vpop.f32.mrb[95].mxu1  ;;  %v1942_v63 = vpop.f32.mrb[63].mxu0 }
 0x1d0   :  { %v3538_v50 = vunpack.c.l.bf16 %v3537_v55 }
 0x1d1   :  { %5656 = vst [vmem:[#allocation22_spill] sm:$0xff] %v5232_v51  ;;  %v3543_v51 = vunpack.c.h.bf16 %v3824_v12 }
 0x1d4   :  { %v1945_v0 = vpop.f32.mrb[64].mxu0  ;;  %v3944_v58 = vpop.f32.mrb[96].mxu1 }
 0x1d5   :  { %v5246_v19 = vadd.f32 %v1945_v0, %v5036_v24  ;;  %v2115_v63 = vadd.f32 %v3944_v58, %v5058_v41  ;;  %v1947_v13 = vpop.f32.mrb[65].mxu0  ;;  %v2106_v29 = vpop.f32.mrb[97].mxu1 }
 0x1d6   :  { %v2107_v30 = vadd.f32 %v2106_v29, %v5038_v25  ;;  %v1948_v8 = vpop.f32.mrb[66].mxu0  ;;  %v3945_v4 = vpop.f32.mrb[98].mxu1  ;;  %v3539_v13 = vunpack.c.h.bf16 %v3537_v55 }
 0x1d7   :  { %5657 = vst [vmem:[#allocation23_spill] sm:$0xff] %v5246_v19  ;;  %v2565_v52 = vadd.f32 %v5243_v59, %v2115_v63  ;;  %v5252_v34 = vadd.f32 %v1948_v8, %v5046_v32  ;;  %v2118_v43 = vadd.f32 %v3945_v4, %v5068_v49  ;;  %v1950_v24 = vpop.f32.mrb[67].mxu0  ;;  %v2109_v0 = vpop.f32.mrb[99].mxu1  ;;  %v3826_v63 = vld [vmem:[%s5634_s3 + $0x18] sm:$0xff]   ;;  %v3825_v32 = vld [vmem:[%s5634_s3 + $0x10] sm:$0xff]  }
 0x1d8   :  { %v2563_v41 = vadd.f32 %v5243_v59, %v2107_v30  ;;  %v2110_v58 = vadd.f32 %v2109_v0, %v5048_v33  ;;  %v3550_v33 = vunpack.c.l.bf16 %v3826_v63  ;;  %v3546_v55 = vunpack.c.l.bf16 %v3825_v32 }
 0x1d9   :  { %5658 = vst [vmem:[#allocation24_spill] sm:$0xff] %v5252_v34  ;;  %v2757_v19 = vadd.f32 %v3542_v5, %v2565_v52  ;;  %v2566_v25 = vadd.f32 %v5243_v59, %v2118_v43 }
 0x1da   :  { %v2755_v49 = vadd.f32 %v3538_v50, %v2563_v41  ;;  %v2564_v4 = vadd.f32 %v5243_v59, %v2110_v58  ;;  %v3551_v58 = vunpack.c.h.bf16 %v3826_v63 }
 0x1db   :  { %v2758_v8 = vadd.f32 %v3543_v51, %v2566_v25  ;;  %v2821_v52 = vmax.f32 %v2757_v19, 0.0 }
 0x1dc   :  { %v2756_v12 = vadd.f32 %v3539_v13, %v2564_v4  ;;  %v1953_v29 = vpop.f32.mrb[68].mxu0  ;;  %v3948_v30 = vpop.f32.mrb[100].mxu1  ;;  %v2819_v21 = vmax.f32 %v2755_v49, 0.0 }
 0x1dd   :  { %v2822_v5 = vmax.f32 %v2758_v8, 0.0  ;;  %v5266_v43 = vadd.f32 %v1953_v29, %v5056_v40  ;;  %v2131_v24 = vadd.f32 %v3948_v30, %v5098_v10  ;;  %v1955_v0 = vpop.f32.mrb[69].mxu0  ;;  %v2122_v34 = vpop.f32.mrb[101].mxu1 }
 0x1de   :  { %v2820_v39 = vmax.f32 %v2756_v12, 0.0  ;;  %v2123_v50 = vadd.f32 %v2122_v34, %v5078_v57  ;;  %v1956_v41 = vpop.f32.mrb[70].mxu0  ;;  %v3949_v51 = vpop.f32.mrb[102].mxu1  ;;  %v3547_v12 = vunpack.c.h.bf16 %v3825_v32 }
 0x1df   :  { %v3672_v13 = vpack.c.bf16 %v2822_v5, %v2821_v52  ;;  %v2569_v25 = vadd.f32 %v5243_v59, %v2131_v24  ;;  %v5272_v19 = vadd.f32 %v1956_v41, %v5066_v48  ;;  %v2134_v40 = vadd.f32 %v3949_v51, %v5108_v17  ;;  %v1958_v4 = vpop.f32.mrb[71].mxu0  ;;  %v2125_v8 = vpop.f32.mrb[103].mxu1  ;;  %v3828_v48 = vld [vmem:[%s5634_s3 + $0x28] sm:$0xff]   ;;  %v3827_v17 = vld [vmem:[%s5634_s3 + $0x20] sm:$0xff]  }
 0x1e0   :  { %v3667_v10 = vpack.c.bf16 %v2820_v39, %v2819_v21  ;;  %v2567_v29 = vadd.f32 %v5243_v59, %v2123_v50  ;;  %v2126_v49 = vadd.f32 %v2125_v8, %v5088_v2  ;;  %v3554_v52 = vunpack.c.l.bf16 %v3827_v17 }
 0x1e1   :  { %3855 = vst [vmem:[%s5636_s4 + $0x8] sm:$0xff] %v3672_v13   ;;  %v2761_v57 = vadd.f32 %v3550_v33, %v2569_v25  ;;  %v2570_v34 = vadd.f32 %v5243_v59, %v2134_v40  ;;  %v3558_v33 = vunpack.c.l.bf16 %v3828_v48  ;;  %v3559_v4 = vunpack.c.h.bf16 %v3828_v48 }
 0x1e2   :  { %3668 = vst [vmem:[%s5636_s4] sm:$0xff] %v3667_v10   ;;  %v2759_v2 = vadd.f32 %v3546_v55, %v2567_v29  ;;  %v2568_v21 = vadd.f32 %v5243_v59, %v2126_v49 }
 0x1e3   :  { %v2762_v39 = vadd.f32 %v3551_v58, %v2570_v34  ;;  %v2825_v5 = vmax.f32 %v2761_v57, 0.0 }
 0x1e4   :  { %v2760_v63 = vadd.f32 %v3547_v12, %v2568_v21  ;;  %v1961_v32 = vpop.f32.mrb[72].mxu0  ;;  %v3952_v30 = vpop.f32.mrb[104].mxu1  ;;  %v2823_v13 = vmax.f32 %v2759_v2, 0.0  ;;  %v3555_v2 = vunpack.c.h.bf16 %v3827_v17 }
 0x1e5   :  { %v2826_v24 = vmax.f32 %v2762_v39, 0.0  ;;  %v5292_v0 = vadd.f32 %v1961_v32, %v5076_v56  ;;  %v2147_v50 = vadd.f32 %v3952_v30, %v5132_v46  ;;  %v1963_v41 = vpop.f32.mrb[73].mxu0  ;;  %v2138_v51 = vpop.f32.mrb[105].mxu1 }
 0x1e6   :  { %v2824_v25 = vmax.f32 %v2760_v63, 0.0  ;;  %v2139_v55 = vadd.f32 %v2138_v51, %v5118_v28  ;;  %v1964_v40 = vpop.f32.mrb[74].mxu0  ;;  %v3953_v58 = vpop.f32.mrb[106].mxu1 }
 0x1e7   :  { %v3682_v8 = vpack.c.bf16 %v2826_v24, %v2825_v5  ;;  %v2573_v10 = vadd.f32 %v5243_v59, %v2147_v50  ;;  %v5298_v29 = vadd.f32 %v1964_v40, %v5086_v1  ;;  %v2150_v56 = vadd.f32 %v3953_v58, %v5136_v54  ;;  %v1966_v49 = vpop.f32.mrb[75].mxu0  ;;  %v2141_v12 = vpop.f32.mrb[107].mxu1  ;;  %v3830_v1 = vld [vmem:[%s5634_s3 + $0x38] sm:$0xff]   ;;  %v3829_v54 = vld [vmem:[%s5634_s3 + $0x30] sm:$0xff]  }
 0x1e8   :  { %v3677_v46 = vpack.c.bf16 %v2824_v25, %v2823_v13  ;;  %v2571_v57 = vadd.f32 %v5243_v59, %v2139_v55  ;;  %v2142_v34 = vadd.f32 %v2141_v12, %v5128_v38  ;;  %v3566_v30 = vunpack.c.l.bf16 %v3830_v1 }
 0x1e9   :  { %3857 = vst [vmem:[%s5636_s4 + $0x18] sm:$0xff] %v3682_v8   ;;  %v2765_v28 = vadd.f32 %v3558_v33, %v2573_v10  ;;  %v2574_v48 = vadd.f32 %v5243_v59, %v2150_v56  ;;  %v3562_v33 = vunpack.c.l.bf16 %v3829_v54 }
 0x1ea   :  { %3856 = vst [vmem:[%s5636_s4 + $0x10] sm:$0xff] %v3677_v46   ;;  %v2763_v38 = vadd.f32 %v3554_v52, %v2571_v57  ;;  %v2572_v17 = vadd.f32 %v5243_v59, %v2142_v34  ;;  %v3563_v34 = vunpack.c.h.bf16 %v3829_v54 }
 0x1eb   :  { %v2766_v21 = vadd.f32 %v3559_v4, %v2574_v48  ;;  %v2829_v5 = vmax.f32 %v2765_v28, 0.0  ;;  %v3567_v4 = vunpack.c.h.bf16 %v3830_v1 }
 0x1ec   :  { %v2764_v39 = vadd.f32 %v3555_v2, %v2572_v17  ;;  %v1969_v63 = vpop.f32.mrb[76].mxu0  ;;  %v3956_v32 = vpop.f32.mrb[108].mxu1  ;;  %v2827_v25 = vmax.f32 %v2763_v38, 0.0 }
 0x1ed   :  { %v2830_v24 = vmax.f32 %v2766_v21, 0.0  ;;  %v5318_v50 = vadd.f32 %v1969_v63, %v5096_v9  ;;  %v2163_v41 = vadd.f32 %v3956_v32, %v5148_v15  ;;  %v1971_v51 = vpop.f32.mrb[77].mxu0  ;;  %v2154_v13 = vpop.f32.mrb[109].mxu1 }
 0x1ee   :  { %v2828_v55 = vmax.f32 %v2764_v39, 0.0  ;;  %v2155_v52 = vadd.f32 %v2154_v13, %v5140_v62  ;;  %v1972_v40 = vpop.f32.mrb[78].mxu0  ;;  %v3957_v58 = vpop.f32.mrb[110].mxu1 }
 0x1ef   :  { %v3692_v8 = vpack.c.bf16 %v2830_v24, %v2829_v5  ;;  %v2577_v10 = vadd.f32 %v5243_v59, %v2163_v41  ;;  %v5324_v56 = vadd.f32 %v1972_v40, %v5106_v16  ;;  %v2166_v9 = vadd.f32 %v3957_v58, %v5152_v22  ;;  %v1974_v49 = vpop.f32.mrb[79].mxu0  ;;  %v2157_v12 = vpop.f32.mrb[111].mxu1  ;;  %v3832_v16 = vld [vmem:[%s5634_s3 + $0x48] sm:$0xff]   ;;  %v3831_v22 = vld [vmem:[%s5634_s3 + $0x40] sm:$0xff]  }
 0x1f0   :  { %v3687_v15 = vpack.c.bf16 %v2828_v55, %v2827_v25  ;;  %v2575_v46 = vadd.f32 %v5243_v59, %v2155_v52  ;;  %v2158_v57 = vadd.f32 %v2157_v12, %v5144_v7  ;;  %v3574_v17 = vunpack.c.l.bf16 %v3832_v16 }
 0x1f1   :  { %3859 = vst [vmem:[%s5636_s4 + $0x28] sm:$0xff] %v3692_v8   ;;  %v2769_v62 = vadd.f32 %v3566_v30, %v2577_v10  ;;  %v2578_v2 = vadd.f32 %v5243_v59, %v2166_v9  ;;  %v3570_v21 = vunpack.c.l.bf16 %v3831_v22  ;;  %v3575_v55 = vunpack.c.h.bf16 %v3832_v16 }
 0x1f2   :  { %3858 = vst [vmem:[%s5636_s4 + $0x20] sm:$0xff] %v3687_v15   ;;  %v2767_v7 = vadd.f32 %v3562_v33, %v2575_v46  ;;  %v2576_v28 = vadd.f32 %v5243_v59, %v2158_v57  ;;  %v3571_v49 = vunpack.c.h.bf16 %v3831_v22 }
 0x1f3   :  { %v2770_v48 = vadd.f32 %v3567_v4, %v2578_v2  ;;  %v2833_v39 = vmax.f32 %v2769_v62, 0.0 }
 0x1f4   :  { %v2768_v1 = vadd.f32 %v3563_v34, %v2576_v28  ;;  %v1977_v54 = vpop.f32.mrb[80].mxu0  ;;  %v3960_v38 = vpop.f32.mrb[112].mxu1  ;;  %v2831_v41 = vmax.f32 %v2767_v7, 0.0 }
 0x1f5   :  { %v2834_v63 = vmax.f32 %v2770_v48, 0.0  ;;  %v5344_v32 = vadd.f32 %v1977_v54, %v5116_v26  ;;  %v2179_v30 = vadd.f32 %v3960_v38, %v5167_v18  ;;  %v1979_v5 = vpop.f32.mrb[81].mxu0  ;;  %v2170_v24 = vpop.f32.mrb[113].mxu1 }
 0x1f6   :  { %v2832_v51 = vmax.f32 %v2768_v1, 0.0  ;;  %v2171_v33 = vadd.f32 %v2170_v24, %v5157_v42  ;;  %v1980_v13 = vpop.f32.mrb[82].mxu0  ;;  %v3961_v25 = vpop.f32.mrb[114].mxu1 }
 0x1f7   :  { %v3702_v52 = vpack.c.bf16 %v2834_v63, %v2833_v39  ;;  %v2581_v40 = vadd.f32 %v5243_v59, %v2179_v30  ;;  %v5350_v58 = vadd.f32 %v1980_v13, %v5126_v37  ;;  %v2182_v26 = vadd.f32 %v3961_v25, %v5172_v36  ;;  %v1982_v4 = vpop.f32.mrb[83].mxu0  ;;  %v2173_v8 = vpop.f32.mrb[115].mxu1  ;;  %v3834_v37 = vld [vmem:[%s5634_s3 + $0x58] sm:$0xff]   ;;  %v3833_v36 = vld [vmem:[%s5634_s3 + $0x50] sm:$0xff]  }
 0x1f8   :  { %v3697_v18 = vpack.c.bf16 %v2832_v51, %v2831_v41  ;;  %v2579_v10 = vadd.f32 %v5243_v59, %v2171_v33  ;;  %v2174_v9 = vadd.f32 %v2173_v8, %v5162_v60  ;;  %v3582_v2 = vunpack.c.l.bf16 %v3834_v37 }
 0x1f9   :  { %3861 = vst [vmem:[%s5636_s4 + $0x38] sm:$0xff] %v3702_v52   ;;  %v2773_v42 = vadd.f32 %v3574_v17, %v2581_v40  ;;  %v2582_v12 = vadd.f32 %v5243_v59, %v2182_v26  ;;  %v3578_v16 = vunpack.c.l.bf16 %v3833_v36  ;;  %v3583_v30 = vunpack.c.h.bf16 %v3834_v37 }
 0x1fa   :  { %3860 = vst [vmem:[%s5636_s4 + $0x30] sm:$0xff] %v3697_v18   ;;  %v2771_v60 = vadd.f32 %v3570_v21, %v2579_v10  ;;  %v2580_v15 = vadd.f32 %v5243_v59, %v2174_v9 }
 0x1fb   :  { %v2774_v46 = vadd.f32 %v3575_v55, %v2582_v12  ;;  %v2837_v22 = vmax.f32 %v2773_v42, 0.0  ;;  %v3579_v55 = vunpack.c.h.bf16 %v3833_v36 }
 0x1fc   :  { %v2772_v57 = vadd.f32 %v3571_v49, %v2580_v15  ;;  %v1985_v34 = vpop.f32.mrb[84].mxu0  ;;  %v3964_v62 = vpop.f32.mrb[116].mxu1  ;;  %v2835_v38 = vmax.f32 %v2771_v60, 0.0 }
 0x1fd   :  { %v2838_v7 = vmax.f32 %v2774_v46, 0.0  ;;  %v5370_v28 = vadd.f32 %v1985_v34, %v5130_v45  ;;  %v2195_v48 = vadd.f32 %v3964_v62, %v5187_v44  ;;  %v1987_v1 = vpop.f32.mrb[85].mxu0  ;;  %v2186_v54 = vpop.f32.mrb[117].mxu1 }
 0x1fe   :  { %v2836_v17 = vmax.f32 %v2772_v57, 0.0  ;;  %v2187_v21 = vadd.f32 %v2186_v54, %v5177_v3  ;;  %v1988_v39 = vpop.f32.mrb[86].mxu0  ;;  %v3965_v63 = vpop.f32.mrb[118].mxu1 }
 0x1ff   :  { %v3712_v5 = vpack.c.bf16 %v2838_v7, %v2837_v22  ;;  %v2585_v24 = vadd.f32 %v5243_v59, %v2195_v48  ;;  %v5376_v41 = vadd.f32 %v1988_v39, %v5134_v53  ;;  %v2198_v45 = vadd.f32 %v3965_v63, %v5192_v11  ;;  %v1990_v51 = vpop.f32.mrb[87].mxu0  ;;  %v2189_v33 = vpop.f32.mrb[119].mxu1  ;;  %v3836_v53 = vld [vmem:[%s5634_s3 + $0x68] sm:$0xff]   ;;  %v3835_v11 = vld [vmem:[%s5634_s3 + $0x60] sm:$0xff]  }
 0x200   :  { %v3707_v44 = vpack.c.bf16 %v2836_v17, %v2835_v38  ;;  %v2583_v13 = vadd.f32 %v5243_v59, %v2187_v21  ;;  %v2190_v25 = vadd.f32 %v2189_v33, %v5182_v20  ;;  %v3590_v10 = vunpack.c.l.bf16 %v3836_v53 }
 0x201   :  { %3863 = vst [vmem:[%s5636_s4 + $0x48] sm:$0xff] %v3712_v5   ;;  %v2777_v3 = vadd.f32 %v3582_v2, %v2585_v24  ;;  %v2586_v52 = vadd.f32 %v5243_v59, %v2198_v45  ;;  %v3586_v9 = vunpack.c.l.bf16 %v3835_v11  ;;  %v3591_v2 = vunpack.c.h.bf16 %v3836_v53 }
 0x202   :  { %3862 = vst [vmem:[%s5636_s4 + $0x40] sm:$0xff] %v3707_v44   ;;  %v2775_v20 = vadd.f32 %v3578_v16, %v2583_v13  ;;  %v2584_v40 = vadd.f32 %v5243_v59, %v2190_v25  ;;  %v3587_v17 = vunpack.c.h.bf16 %v3835_v11  ;;  %v5659_v11 = vld [vmem:[#allocation17_spill] sm:$0xff] }
 0x203   :  { %v2778_v26 = vadd.f32 %v3583_v30, %v2586_v52  ;;  %v2841_v49 = vmax.f32 %v2777_v3, 0.0 }
 0x204   :  { %v2776_v4 = vadd.f32 %v3579_v55, %v2584_v40  ;;  %v1993_v8 = vpop.f32.mrb[88].mxu0  ;;  %v3968_v18 = vpop.f32.mrb[120].mxu1  ;;  %v2839_v15 = vmax.f32 %v2775_v20, 0.0 }
 0x205   :  { %v2842_v42 = vmax.f32 %v2778_v26, 0.0  ;;  %v5396_v12 = vadd.f32 %v1993_v8, %v5138_v61  ;;  %v2211_v37 = vadd.f32 %v3968_v18, %v5207_v31  ;;  %v1995_v36 = vpop.f32.mrb[89].mxu0  ;;  %v2202_v60 = vpop.f32.mrb[121].mxu1 }
 0x206   :  { %v2840_v46 = vmax.f32 %v2776_v4, 0.0  ;;  %v2203_v57 = vadd.f32 %v2202_v60, %v5197_v23  ;;  %v1996_v34 = vpop.f32.mrb[90].mxu0  ;;  %v3969_v62 = vpop.f32.mrb[122].mxu1  ;;  %v5662_v60 = vld [vmem:[#allocation19_spill] sm:$0xff] }
 0x207   :  { %v3722_v16 = vpack.c.bf16 %v2842_v42, %v2841_v49  ;;  %v2589_v22 = vadd.f32 %v5243_v59, %v2211_v37  ;;  %v5402_v7 = vadd.f32 %v1996_v34, %v5142_v6  ;;  %v2214_v61 = vadd.f32 %v3969_v62, %v5212_v35  ;;  %v1998_v48 = vpop.f32.mrb[91].mxu0  ;;  %v2205_v1 = vpop.f32.mrb[123].mxu1  ;;  %v3838_v6 = vld [vmem:[%s5634_s3 + $0x78] sm:$0xff]   ;;  %v3837_v35 = vld [vmem:[%s5634_s3 + $0x70] sm:$0xff]   ;;  %v3840_v62 = vld [vmem:[%s5634_s3 + $0x88] sm:$0xff]  }
 0x208   :  { %v3717_v31 = vpack.c.bf16 %v2840_v46, %v2839_v15  ;;  %v2587_v54 = vadd.f32 %v5243_v59, %v2203_v57  ;;  %v2206_v38 = vadd.f32 %v2205_v1, %v5202_v27  ;;  %v3598_v45 = vunpack.c.l.bf16 %v3838_v6  ;;  %v5661_v49 = vld [vmem:[#allocation22_spill] sm:$0xff] }
 0x209   :  { %3865 = vst [vmem:[%s5636_s4 + $0x58] sm:$0xff] %v3722_v16   ;;  %v2781_v23 = vadd.f32 %v3590_v10, %v2589_v22  ;;  %v2590_v21 = vadd.f32 %v5243_v59, %v2214_v61  ;;  %v3594_v51 = vunpack.c.l.bf16 %v3837_v35  ;;  %v3599_v4 = vunpack.c.h.bf16 %v3838_v6  ;;  %v5660_v10 = vld [vmem:[#allocation3_spill] sm:$0xff] }
 0x20a   :  { %3864 = vst [vmem:[%s5636_s4 + $0x50] sm:$0xff] %v3717_v31   ;;  %v2779_v27 = vadd.f32 %v3586_v9, %v2587_v54  ;;  %v2588_v39 = vadd.f32 %v5243_v59, %v2206_v38  ;;  %v3595_v46 = vunpack.c.h.bf16 %v3837_v35  ;;  %v3606_v54 = vunpack.c.l.bf16 %v3840_v62 }
 0x20b   :  { %v2782_v63 = vadd.f32 %v3591_v2, %v2590_v21  ;;  %v2845_v33 = vmax.f32 %v2781_v23, 0.0  ;;  %v3839_v2 = vld [vmem:[%s5634_s3 + $0x80] sm:$0xff]   ;;  %v5663_v21 = vld [vmem:[#allocation4_spill] sm:$0xff] }
 0x20c   :  { %v2780_v30 = vadd.f32 %v3587_v17, %v2588_v39  ;;  %v2001_v5 = vpop.f32.mrb[92].mxu0  ;;  %v3972_v24 = vpop.f32.mrb[124].mxu1  ;;  %v2843_v52 = vmax.f32 %v2779_v27, 0.0  ;;  %v3602_v38 = vunpack.c.l.bf16 %v3839_v2 }
 0x20d   :  { %v2846_v44 = vmax.f32 %v2782_v63, 0.0  ;;  %v5422_v13 = vadd.f32 %v2001_v5, %v5146_v14  ;;  %v2227_v25 = vadd.f32 %v3972_v24, %v5227_v47  ;;  %v2003_v55 = vpop.f32.mrb[93].mxu0  ;;  %v2218_v3 = vpop.f32.mrb[125].mxu1  ;;  %v5664_v5 = vld [vmem:[#allocation23_spill] sm:$0xff] }
 0x20e   :  { %v2844_v53 = vmax.f32 %v2780_v30, 0.0  ;;  %v2219_v20 = vadd.f32 %v2218_v3, %v5659_v11  ;;  %v2004_v40 = vpop.f32.mrb[94].mxu0  ;;  %v3973_v26 = vpop.f32.mrb[126].mxu1  ;;  %v5665_v55 = vld [vmem:[#allocation5_spill] sm:$0xff] }
 0x20f   :  { %v3732_v8 = vpack.c.bf16 %v2846_v44, %v2845_v33  ;;  %v2593_v18 = vadd.f32 %v5243_v59, %v2227_v25  ;;  %v5428_v9 = vadd.f32 %v2004_v40, %v5660_v10  ;;  %v2230_v14 = vadd.f32 %v3973_v26, %v5661_v49  ;;  %v2006_v42 = vpop.f32.mrb[95].mxu0  ;;  %v2221_v37 = vpop.f32.mrb[127].mxu1  ;;  %v5666_v40 = vld [vmem:[#allocation24_spill] sm:$0xff]  ;;  %v3842_v10 = vld [vmem:[%s5634_s3 + $0x98] sm:$0xff]  }
 0x210   :  { %v3727_v47 = vpack.c.bf16 %v2844_v53, %v2843_v52  ;;  %v2591_v36 = vadd.f32 %v5243_v59, %v2219_v20  ;;  %v2222_v15 = vadd.f32 %v2221_v37, %v5662_v60  ;;  %v3607_v33 = vunpack.c.h.bf16 %v3840_v62 }
 0x211   :  { %3867 = vst [vmem:[%s5636_s4 + $0x68] sm:$0xff] %v3732_v8   ;;  %v2785_v57 = vadd.f32 %v3598_v45, %v2593_v18  ;;  %v2594_v34 = vadd.f32 %v5243_v59, %v2230_v14  ;;  %v3614_v60 = vunpack.c.l.bf16 %v3842_v10 }
 0x212   :  { %3866 = vst [vmem:[%s5636_s4 + $0x60] sm:$0xff] %v3727_v47   ;;  %v2783_v16 = vadd.f32 %v3594_v51, %v2591_v36  ;;  %v2592_v22 = vadd.f32 %v5243_v59, %v2222_v15 }
 0x213   :  { %v2786_v61 = vadd.f32 %v3599_v4, %v2594_v34  ;;  %v2849_v17 = vmax.f32 %v2785_v57, 0.0  ;;  %v3603_v4 = vunpack.c.h.bf16 %v3839_v2  ;;  %v5667_v34 = vld [vmem:[#allocation6_spill] sm:$0xff] }
 0x214   :  { %v2784_v48 = vadd.f32 %v3595_v46, %v2592_v22  ;;  %v2009_v1 = vpop.f32.mrb[96].mxu0  ;;  %v3976_v31 = vpop.f32.mrb[128].mxu1  ;;  %v2847_v63 = vmax.f32 %v2783_v16, 0.0 }
 0x215   :  { %v2850_v23 = vmax.f32 %v2786_v61, 0.0  ;;  %v5448_v6 = vadd.f32 %v2009_v1, %v5663_v21  ;;  %v2243_v35 = vadd.f32 %v3976_v31, %v5266_v43  ;;  %v2011_v27 = vpop.f32.mrb[97].mxu0  ;;  %v2234_v39 = vpop.f32.mrb[129].mxu1  ;;  %v5668_v21 = vld [vmem:[#allocation7_spill] sm:$0xff] }
 0x216   :  { %v2848_v30 = vmax.f32 %v2784_v48, 0.0  ;;  %v2235_v24 = vadd.f32 %v2234_v39, %v5664_v5  ;;  %v2012_v45 = vpop.f32.mrb[98].mxu0  ;;  %v3977_v51 = vpop.f32.mrb[130].mxu1 }
 0x217   :  { %v3742_v44 = vpack.c.bf16 %v2850_v23, %v2849_v17  ;;  %v2597_v25 = vadd.f32 %v5243_v59, %v2243_v35  ;;  %v5454_v3 = vadd.f32 %v2012_v45, %v5665_v55  ;;  %v2246_v52 = vadd.f32 %v3977_v51, %v5272_v19  ;;  %v2014_v53 = vpop.f32.mrb[99].mxu0  ;;  %v2237_v11 = vpop.f32.mrb[131].mxu1  ;;  %v3841_v19 = vld [vmem:[%s5634_s3 + $0x90] sm:$0xff]   ;;  %v3844_v51 = vld [vmem:[%s5634_s3 + $0xa8] sm:$0xff]  }
 0x218   :  { %v3737_v43 = vpack.c.bf16 %v2848_v30, %v2847_v63  ;;  %v2595_v20 = vadd.f32 %v5243_v59, %v2235_v24  ;;  %v2238_v26 = vadd.f32 %v2237_v11, %v5666_v40  ;;  %v3610_v15 = vunpack.c.l.bf16 %v3841_v19  ;;  %v5669_v40 = vld [vmem:[#allocation8_spill] sm:$0xff] }
 0x219   :  { %3869 = vst [vmem:[%s5636_s4 + $0x78] sm:$0xff] %v3742_v44   ;;  %v2789_v8 = vadd.f32 %v3606_v54, %v2597_v25  ;;  %v2598_v18 = vadd.f32 %v5243_v59, %v2246_v52  ;;  %v3611_v24 = vunpack.c.h.bf16 %v3841_v19  ;;  %v3622_v53 = vunpack.c.l.bf16 %v3844_v51 }
 0x21a   :  { %3868 = vst [vmem:[%s5636_s4 + $0x70] sm:$0xff] %v3737_v43   ;;  %v2787_v49 = vadd.f32 %v3602_v38, %v2595_v20  ;;  %v2596_v14 = vadd.f32 %v5243_v59, %v2238_v26  ;;  %v3615_v38 = vunpack.c.h.bf16 %v3842_v10 }
 0x21b   :  { %v2790_v42 = vadd.f32 %v3607_v33, %v2598_v18  ;;  %v2853_v46 = vmax.f32 %v2789_v8, 0.0 }
 0x21c   :  { %v2788_v37 = vadd.f32 %v3603_v4, %v2596_v14  ;;  %v2017_v47 = vpop.f32.mrb[100].mxu0  ;;  %v3980_v36 = vpop.f32.mrb[132].mxu1  ;;  %v2851_v61 = vmax.f32 %v2787_v49, 0.0 }
 0x21d   :  { %v2854_v57 = vmax.f32 %v2790_v42, 0.0  ;;  %v5474_v62 = vadd.f32 %v2017_v47, %v5667_v34  ;;  %v2259_v2 = vadd.f32 %v3980_v36, %v5318_v50  ;;  %v2019_v16 = vpop.f32.mrb[101].mxu0  ;;  %v2250_v22 = vpop.f32.mrb[133].mxu1 }
 0x21e   :  { %v2852_v48 = vmax.f32 %v2788_v37, 0.0  ;;  %v2251_v1 = vadd.f32 %v2250_v22, %v5292_v0  ;;  %v2020_v31 = vpop.f32.mrb[102].mxu0  ;;  %v3981_v54 = vpop.f32.mrb[134].mxu1  ;;  %v3623_v37 = vunpack.c.h.bf16 %v3844_v51 }
 0x21f   :  { %v3752_v17 = vpack.c.bf16 %v2854_v57, %v2853_v46  ;;  %v2601_v23 = vadd.f32 %v5243_v59, %v2259_v2  ;;  %v5480_v35 = vadd.f32 %v2020_v31, %v5668_v21  ;;  %v2262_v27 = vadd.f32 %v3981_v54, %v5324_v56  ;;  %v2022_v39 = vpop.f32.mrb[103].mxu0  ;;  %v2253_v63 = vpop.f32.mrb[135].mxu1  ;;  %v3843_v56 = vld [vmem:[%s5634_s3 + $0xa0] sm:$0xff]  }
 0x220   :  { %v3747_v50 = vpack.c.bf16 %v2852_v48, %v2851_v61  ;;  %v2599_v30 = vadd.f32 %v5243_v59, %v2251_v1  ;;  %v2254_v5 = vadd.f32 %v2253_v63, %v5298_v29  ;;  %v3618_v11 = vunpack.c.l.bf16 %v3843_v56  ;;  %v3846_v48 = vld [vmem:[%s5634_s3 + $0xb8] sm:$0xff]  }
 0x221   :  { %3871 = vst [vmem:[%s5636_s4 + $0x88] sm:$0xff] %v3752_v17   ;;  %v2793_v0 = vadd.f32 %v3614_v60, %v2601_v23  ;;  %v2602_v45 = vadd.f32 %v5243_v59, %v2262_v27  ;;  %v5670_v60 = vld [vmem:[#allocation9_spill] sm:$0xff]  ;;  %v3619_v22 = vunpack.c.h.bf16 %v3843_v56  ;;  %v3630_v23 = vunpack.c.l.bf16 %v3846_v48  ;;  %v5671_v63 = vld [vmem:[#allocation10_spill] sm:$0xff] }
 0x222   :  { %3870 = vst [vmem:[%s5636_s4 + $0x80] sm:$0xff] %v3747_v50   ;;  %v2791_v29 = vadd.f32 %v3610_v15, %v2599_v30  ;;  %v2600_v33 = vadd.f32 %v5243_v59, %v2254_v5 }
 0x223   :  { %v2794_v44 = vadd.f32 %v3615_v38, %v2602_v45  ;;  %v2857_v43 = vmax.f32 %v2793_v0, 0.0 }
 0x224   :  { %v2792_v25 = vadd.f32 %v3611_v24, %v2600_v33  ;;  %v2025_v55 = vpop.f32.mrb[104].mxu0  ;;  %v3984_v52 = vpop.f32.mrb[136].mxu1  ;;  %v2855_v10 = vmax.f32 %v2791_v29, 0.0  ;;  %v3631_v33 = vunpack.c.h.bf16 %v3846_v48 }
 0x225   :  { %v2858_v20 = vmax.f32 %v2794_v44, 0.0  ;;  %v5500_v26 = vadd.f32 %v2025_v55, %v5669_v40  ;;  %v2275_v4 = vadd.f32 %v3984_v52, %v5370_v28  ;;  %v2027_v8 = vpop.f32.mrb[105].mxu0  ;;  %v2266_v18 = vpop.f32.mrb[137].mxu1  ;;  %v5672_v55 = vld [vmem:[#allocation11_spill] sm:$0xff] }
 0x226   :  { %v2856_v19 = vmax.f32 %v2792_v25, 0.0  ;;  %v2267_v49 = vadd.f32 %v2266_v18, %v5344_v32  ;;  %v2028_v14 = vpop.f32.mrb[106].mxu0  ;;  %v3985_v42 = vpop.f32.mrb[138].mxu1  ;;  %v3848_v18 = vld [vmem:[%s5634_s3 + $0xc8] sm:$0xff]  }
 0x227   :  { %v3762_v47 = vpack.c.bf16 %v2858_v20, %v2857_v43  ;;  %v2605_v36 = vadd.f32 %v5243_v59, %v2275_v4  ;;  %v5506_v15 = vadd.f32 %v2028_v14, %v5670_v60  ;;  %v2278_v46 = vadd.f32 %v3985_v42, %v5376_v41  ;;  %v2030_v57 = vpop.f32.mrb[107].mxu0  ;;  %v2269_v34 = vpop.f32.mrb[139].mxu1  ;;  %v3845_v41 = vld [vmem:[%s5634_s3 + $0xb0] sm:$0xff]  }
 0x228   :  { %v3757_v28 = vpack.c.bf16 %v2856_v19, %v2855_v10  ;;  %v2603_v2 = vadd.f32 %v5243_v59, %v2267_v49  ;;  %v2270_v16 = vadd.f32 %v2269_v34, %v5350_v58  ;;  %v3626_v21 = vunpack.c.l.bf16 %v3845_v41 }
 0x229   :  { %3873 = vst [vmem:[%s5636_s4 + $0x98] sm:$0xff] %v3762_v47   ;;  %v2797_v32 = vadd.f32 %v3622_v53, %v2605_v36  ;;  %v2606_v61 = vadd.f32 %v5243_v59, %v2278_v46  ;;  %v3627_v4 = vunpack.c.h.bf16 %v3845_v41  ;;  %v5673_v46 = vld [vmem:[#allocation12_spill] sm:$0xff]  ;;  %v3639_v41 = vunpack.c.h.bf16 %v3848_v18 }
 0x22a   :  { %3872 = vst [vmem:[%s5636_s4 + $0x90] sm:$0xff] %v3757_v28   ;;  %v2795_v58 = vadd.f32 %v3618_v11, %v2603_v2  ;;  %v2604_v1 = vadd.f32 %v5243_v59, %v2270_v16 }
 0x22b   :  { %v2798_v31 = vadd.f32 %v3623_v37, %v2606_v61  ;;  %v2861_v27 = vmax.f32 %v2797_v32, 0.0  ;;  %v3638_v37 = vunpack.c.l.bf16 %v3848_v18 }
 0x22c   :  { %v2796_v54 = vadd.f32 %v3619_v22, %v2604_v1  ;;  %v2033_v38 = vpop.f32.mrb[108].mxu0  ;;  %v3988_v17 = vpop.f32.mrb[140].mxu1  ;;  %v2859_v0 = vmax.f32 %v2795_v58, 0.0 }
 0x22d   :  { %v2862_v39 = vmax.f32 %v2798_v31, 0.0  ;;  %v5526_v50 = vadd.f32 %v2033_v38, %v5671_v63  ;;  %v2291_v30 = vadd.f32 %v3988_v17, %v5422_v13  ;;  %v2035_v5 = vpop.f32.mrb[109].mxu0  ;;  %v2282_v24 = vpop.f32.mrb[141].mxu1  ;;  %v5674_v31 = vld [vmem:[#allocation13_spill] sm:$0xff] }
 0x22e   :  { %v2860_v45 = vmax.f32 %v2796_v54, 0.0  ;;  %v2283_v51 = vadd.f32 %v2282_v24, %v5396_v12  ;;  %v2036_v56 = vpop.f32.mrb[110].mxu0  ;;  %v3989_v29 = vpop.f32.mrb[142].mxu1 }
 0x22f   :  { %v3772_v44 = vpack.c.bf16 %v2862_v39, %v2861_v27  ;;  %v2609_v25 = vadd.f32 %v5243_v59, %v2291_v30  ;;  %v5532_v52 = vadd.f32 %v2036_v56, %v5672_v55  ;;  %v2294_v53 = vadd.f32 %v3989_v29, %v5428_v9  ;;  %v2038_v11 = vpop.f32.mrb[111].mxu0  ;;  %v2285_v43 = vpop.f32.mrb[143].mxu1  ;;  %v3847_v9 = vld [vmem:[%s5634_s3 + $0xc0] sm:$0xff]   ;;  %v3850_v30 = vld [vmem:[%s5634_s3 + $0xd8] sm:$0xff]  }
 0x230   :  { %v3767_v13 = vpack.c.bf16 %v2860_v45, %v2859_v0  ;;  %v2607_v20 = vadd.f32 %v5243_v59, %v2283_v51  ;;  %v2286_v40 = vadd.f32 %v2285_v43, %v5402_v7  ;;  %v3634_v47 = vunpack.c.l.bf16 %v3847_v9 }
 0x231   :  { %3875 = vst [vmem:[%s5636_s4 + $0xa8] sm:$0xff] %v3772_v44   ;;  %v2801_v12 = vadd.f32 %v3630_v23, %v2609_v25  ;;  %v2610_v8 = vadd.f32 %v5243_v59, %v2294_v53  ;;  %v3635_v39 = vunpack.c.h.bf16 %v3847_v9  ;;  %v3646_v56 = vunpack.c.l.bf16 %v3850_v30  ;;  %v5675_v25 = vld [vmem:[#allocation14_spill] sm:$0xff] }
 0x232   :  { %3874 = vst [vmem:[%s5636_s4 + $0xa0] sm:$0xff] %v3767_v13   ;;  %v2799_v7 = vadd.f32 %v3626_v21, %v2607_v20  ;;  %v2608_v10 = vadd.f32 %v5243_v59, %v2286_v40 }
 0x233   :  { %v2802_v19 = vadd.f32 %v3631_v33, %v2610_v8  ;;  %v2865_v36 = vmax.f32 %v2801_v12, 0.0  ;;  %v3647_v8 = vunpack.c.h.bf16 %v3850_v30  ;;  %v5678_v30 = vld [vmem:[#allocation18_spill] sm:$0xff] }
 0x234   :  { %v2800_v49 = vadd.f32 %v3627_v4, %v2608_v10  ;;  %v2041_v14 = vpop.f32.mrb[112].mxu0  ;;  %v3992_v42 = vpop.f32.mrb[144].mxu1  ;;  %v2863_v16 = vmax.f32 %v2799_v7, 0.0  ;;  %v5676_v7 = vld [vmem:[#allocation15_spill] sm:$0xff] }
 0x235   :  { %v2866_v60 = vmax.f32 %v2802_v19, 0.0  ;;  %v5552_v57 = vadd.f32 %v2041_v14, %v5673_v46  ;;  %v2307_v34 = vadd.f32 %v3992_v42, %v5474_v62  ;;  %v2043_v28 = vpop.f32.mrb[113].mxu0  ;;  %v2298_v2 = vpop.f32.mrb[145].mxu1 }
 0x236   :  { %v2864_v22 = vmax.f32 %v2800_v49, 0.0  ;;  %v2299_v32 = vadd.f32 %v2298_v2, %v5448_v6  ;;  %v2044_v61 = vpop.f32.mrb[114].mxu0  ;;  %v3993_v48 = vpop.f32.mrb[146].mxu1 }
 0x237   :  { %v3782_v58 = vpack.c.bf16 %v2866_v60, %v2865_v36  ;;  %v2613_v1 = vadd.f32 %v5243_v59, %v2307_v34  ;;  %v5558_v54 = vadd.f32 %v2044_v61, %v5674_v31  ;;  %v2310_v38 = vadd.f32 %v3993_v48, %v5480_v35  ;;  %v2046_v17 = vpop.f32.mrb[115].mxu0  ;;  %v2301_v23 = vpop.f32.mrb[147].mxu1  ;;  %v3849_v35 = vld [vmem:[%s5634_s3 + $0xd0] sm:$0xff]   ;;  %v3852_v60 = vld [vmem:[%s5634_s3 + $0xe8] sm:$0xff]  }
 0x238   :  { %v3777_v62 = vpack.c.bf16 %v2864_v22, %v2863_v16  ;;  %v2611_v21 = vadd.f32 %v5243_v59, %v2299_v32  ;;  %v2302_v27 = vadd.f32 %v2301_v23, %v5454_v3  ;;  %v3642_v29 = vunpack.c.l.bf16 %v3849_v35 }
 0x239   :  { %3877 = vst [vmem:[%s5636_s4 + $0xb8] sm:$0xff] %v3782_v58   ;;  %v2805_v6 = vadd.f32 %v3638_v37, %v2613_v1  ;;  %v2614_v63 = vadd.f32 %v5243_v59, %v2310_v38  ;;  %v3654_v22 = vunpack.c.l.bf16 %v3852_v60 }
 0x23a   :  { %3876 = vst [vmem:[%s5636_s4 + $0xb0] sm:$0xff] %v3777_v62   ;;  %v2803_v3 = vadd.f32 %v3634_v47, %v2611_v21  ;;  %v2612_v5 = vadd.f32 %v5243_v59, %v2302_v27  ;;  %v3643_v47 = vunpack.c.h.bf16 %v3849_v35 }
 0x23b   :  { %v2806_v24 = vadd.f32 %v3639_v41, %v2614_v63  ;;  %v2869_v33 = vmax.f32 %v2805_v6, 0.0  ;;  %v5677_v41 = vld [vmem:[#allocation16_spill] sm:$0xff]  ;;  %v4383_v6 = vld [vmem:[%s5635_s2] ss:$0 sm:$0xff] }
 0x23c   :  { %v2804_v0 = vadd.f32 %v3635_v39, %v2612_v5  ;;  %v2049_v45 = vpop.f32.mrb[116].mxu0  ;;  %v3996_v51 = vpop.f32.mrb[148].mxu1  ;;  %v2867_v13 = vmax.f32 %v2803_v3, 0.0 }
 0x23d   :  { %v2870_v44 = vmax.f32 %v2806_v24, 0.0  ;;  %v2050_v55 = vadd.f32 %v2049_v45, %v5675_v25  ;;  %v2323_v53 = vadd.f32 %v3996_v51, %v5526_v50  ;;  %v2051_v11 = vpop.f32.mrb[117].mxu0  ;;  %v2314_v43 = vpop.f32.mrb[149].mxu1 }
 0x23e   :  { %v2868_v20 = vmax.f32 %v2804_v0, 0.0  ;;  %v2315_v40 = vadd.f32 %v2314_v43, %v5500_v26  ;;  %v2052_v4 = vpop.f32.mrb[118].mxu0  ;;  %v3997_v12 = vpop.f32.mrb[150].mxu1  ;;  %v3854_v43 = vld [vmem:[%s5634_s3 + $0xf8] sm:$0xff]  }
 0x23f   :  { %v3792_v18 = vpack.c.bf16 %v2870_v44, %v2869_v33  ;;  %v2617_v9 = vadd.f32 %v5243_v59, %v2323_v53  ;;  %v2053_v10 = vadd.f32 %v2052_v4, %v5676_v7  ;;  %v2326_v19 = vadd.f32 %v3997_v12, %v5532_v52  ;;  %v2054_v49 = vpop.f32.mrb[119].mxu0  ;;  %v2317_v14 = vpop.f32.mrb[151].mxu1  ;;  %v3851_v52 = vld [vmem:[%s5634_s3 + $0xe0] sm:$0xff]  }
 0x240   :  { %v3787_v42 = vpack.c.bf16 %v2868_v20, %v2867_v13  ;;  %v2615_v50 = vadd.f32 %v5243_v59, %v2315_v40  ;;  %v2318_v37 = vadd.f32 %v2317_v14, %v5506_v15  ;;  %v3650_v32 = vunpack.c.l.bf16 %v3851_v52  ;;  %v5679_v40 = vld [vmem:[#allocation20_spill] sm:$0xff] }
 0x241   :  { %3879 = vst [vmem:[%s5636_s4 + $0xc8] sm:$0xff] %v3792_v18   ;;  %v2809_v26 = vadd.f32 %v3646_v56, %v2617_v9  ;;  %v2618_v36 = vadd.f32 %v5243_v59, %v2326_v19  ;;  %v3651_v56 = vunpack.c.h.bf16 %v3851_v52 }
 0x242   :  { %3878 = vst [vmem:[%s5636_s4 + $0xc0] sm:$0xff] %v3787_v42   ;;  %v2807_v15 = vadd.f32 %v3642_v29, %v2615_v50  ;;  %v2616_v46 = vadd.f32 %v5243_v59, %v2318_v37  ;;  %v3655_v59 = vunpack.c.h.bf16 %v3852_v60  ;;  %v3662_v50 = vunpack.c.l.bf16 %v3854_v43  ;;  %v5680_v37 = vld [vmem:[#allocation21_spill] sm:$0xff] }
 0x243   :  { %v2810_v34 = vadd.f32 %v3647_v8, %v2618_v36  ;;  %v2873_v61 = vmax.f32 %v2809_v26, 0.0 }
 0x244   :  { %v2808_v28 = vadd.f32 %v3643_v47, %v2616_v46  ;;  %v2057_v2 = vpop.f32.mrb[120].mxu0  ;;  %v4000_v16 = vpop.f32.mrb[152].mxu1  ;;  %v2871_v17 = vmax.f32 %v2807_v15, 0.0 }
 0x245   :  { %v2874_v48 = vmax.f32 %v2810_v34, 0.0  ;;  %v2058_v58 = vadd.f32 %v2057_v2, %v5677_v41  ;;  %v2339_v1 = vadd.f32 %v4000_v16, %v2050_v55  ;;  %v2059_v31 = vpop.f32.mrb[121].mxu0  ;;  %v2330_v38 = vpop.f32.mrb[153].mxu1  ;;  %v3853_v55 = vld [vmem:[%s5634_s3 + $0xf0] sm:$0xff]   ;;  %v3663_v2 = vunpack.c.h.bf16 %v3854_v43 }
 0x246   :  { %v2872_v23 = vmax.f32 %v2808_v28, 0.0  ;;  %v2331_v62 = vadd.f32 %v2330_v38, %v5552_v57  ;;  %v2060_v21 = vpop.f32.mrb[122].mxu0  ;;  %v4001_v27 = vpop.f32.mrb[154].mxu1  ;;  %v3659_v46 = vunpack.c.h.bf16 %v3853_v55 }
 0x247   :  { %v3802_v39 = vpack.c.bf16 %v2874_v48, %v2873_v61  ;;  %v2621_v63 = vadd.f32 %v4383_v6, %v2339_v1  ;;  %v2061_v35 = vadd.f32 %v2060_v21, %v5678_v30  ;;  %v2342_v3 = vadd.f32 %v4001_v27, %v2053_v10  ;;  %v2062_v5 = vpop.f32.mrb[123].mxu0  ;;  %v2333_v24 = vpop.f32.mrb[155].mxu1 }
 0x248   :  { %v3797_v0 = vpack.c.bf16 %v2872_v23, %v2871_v17  ;;  %v2619_v45 = vadd.f32 %v4383_v6, %v2331_v62  ;;  %v2334_v51 = vadd.f32 %v2333_v24, %v5558_v54  ;;  %v3658_v10 = vunpack.c.l.bf16 %v3853_v55 }
 0x249   :  { %3881 = vst [vmem:[%s5636_s4 + $0xd8] sm:$0xff] %v3802_v39   ;;  %v2813_v57 = vadd.f32 %v3654_v22, %v2621_v63  ;;  %v2622_v29 = vadd.f32 %v4383_v6, %v2342_v3 }
 0x24a   :  { %3880 = vst [vmem:[%s5636_s4 + $0xd0] sm:$0xff] %v3797_v0   ;;  %v2811_v33 = vadd.f32 %v3650_v32, %v2619_v45  ;;  %v2620_v44 = vadd.f32 %v4383_v6, %v2334_v51 }
 0x24b   :  { %v2814_v25 = vadd.f32 %v3655_v59, %v2622_v29  ;;  %v2877_v13 = vmax.f32 %v2813_v57, 0.0 }
 0x24c   :  { %v2812_v53 = vadd.f32 %v3651_v56, %v2620_v44  ;;  %v2065_v54 = vpop.f32.mrb[124].mxu0  ;;  %v4004_v11 = vpop.f32.mrb[156].mxu1  ;;  %v2875_v18 = vmax.f32 %v2811_v33, 0.0 }
 0x24d   :  { %v2878_v20 = vmax.f32 %v2814_v25, 0.0  ;;  %v2066_v4 = vadd.f32 %v2065_v54, %v5679_v40  ;;  %v2067_v12 = vpop.f32.mrb[125].mxu0  ;;  %v2346_v8 = vpop.f32.mrb[157].mxu1 }
 0x24e   :  { %v2876_v9 = vmax.f32 %v2812_v53, 0.0  ;;  %v2347_v7 = vadd.f32 %v2346_v8, %v2058_v58  ;;  %v2068_v19 = vpop.f32.mrb[126].mxu0  ;;  %v4005_v49 = vpop.f32.mrb[158].mxu1 }
 0x24f   :  { %v3812_v14 = vpack.c.bf16 %v2878_v20, %v2877_v13  ;;  %v2355_v42 = vadd.f32 %v4004_v11, %v2066_v4  ;;  %v2069_v47 = vadd.f32 %v2068_v19, %v5680_v37  ;;  %v2070_v26 = vpop.f32.mrb[127].mxu0  ;;  %v2349_v36 = vpop.f32.mrb[159].mxu1 }
 0x250   :  { %v3807_v60 = vpack.c.bf16 %v2876_v9, %v2875_v18  ;;  %v2623_v52 = vadd.f32 %v4383_v6, %v2347_v7  ;;  %v2350_v15 = vadd.f32 %v2349_v36, %v2061_v35 }
 0x251   :  { %3883 = vst [vmem:[%s5636_s4 + $0xe8] sm:$0xff] %v3812_v14   ;;  %v2625_v34 = vadd.f32 %v4383_v6, %v2355_v42  ;;  %v2358_v28 = vadd.f32 %v4005_v49, %v2069_v47 }
 0x252   :  { %3882 = vst [vmem:[%s5636_s4 + $0xe0] sm:$0xff] %v3807_v60   ;;  %v2815_v16 = vadd.f32 %v3658_v10, %v2623_v52  ;;  %v2624_v22 = vadd.f32 %v4383_v6, %v2350_v15 }
 0x253   :  { %v2817_v32 = vadd.f32 %v3662_v50, %v2625_v34  ;;  %v2626_v61 = vadd.f32 %v4383_v6, %v2358_v28 }
 0x254   :  { %v2816_v48 = vadd.f32 %v3659_v46, %v2624_v22  ;;  %v2879_v58 = vmax.f32 %v2815_v16, 0.0 }
 0x255   :  { %v2818_v41 = vadd.f32 %v3663_v2, %v2626_v61  ;;  %v2881_v31 = vmax.f32 %v2817_v32, 0.0 }
 0x256   :  { %v2880_v1 = vmax.f32 %v2816_v48, 0.0 }
 0x257   :  { %v2882_v38 = vmax.f32 %v2818_v41, 0.0 }
 0x258   :  { %v3817_v17 = vpack.c.bf16 %v2880_v1, %v2879_v58 }
 0x259   :  { %v3822_v23 = vpack.c.bf16 %v2882_v38, %v2881_v31 }
 0x25a   :  { %3884 = vst [vmem:[%s5636_s4 + $0xf0] sm:$0xff] %v3817_v17  }
 0x25b   :  { %3885 = vst [vmem:[%s5636_s4 + $0xf8] sm:$0xff] %v3822_v23  }

// kernel: hand_gesture_forward.19
= control target key start
LH: loop header
LB: loop body
LE: loop exit
PB: predicated region body
PF: predicated region fallthrough
CT: control target
= control target key end

     0   :  { %s705_s1 = inlined_call_operand.vmem [shape: bf16[128,128], index: 1, kind: input, shape index: {}]   ;;  %s706_s0 = inlined_call_operand.vmem [shape: bf16[128,128], index: 0, kind: input, shape index: {}]   ;;  %s707_s2 = inlined_call_operand.vmem [shape: f32[1,128], index: 2, kind: input, shape index: {}]   ;;  %s708_s3 = inlined_call_operand.vmem [shape: bf16[128,128], index: 3, kind: output, shape index: {}]  }
   0x1   :  { %v594_v0 = vld [vmem:[%s705_s1] sm:$0xff]   ;;  %v595_v1 = vld [vmem:[%s705_s1 + $0x8] sm:$0xff]   ;;  %v596_v2 = vld [vmem:[%s705_s1 + $0x10] sm:$0xff]  }
   0x2   :  { %546 = vmatprep.subr.bf16.mxu0 %v594_v0  ;;  %578 = vmatprep.subr.bf16.mxu1 %v594_v0  ;;  %v597_v3 = vld [vmem:[%s705_s1 + $0x18] sm:$0xff]   ;;  %v602_v4 = vld [vmem:[%s706_s0] sm:$0xff]   ;;  %v599_v7 = vld [vmem:[%s705_s1 + $0x28] sm:$0xff]  }
   0x3   :  { %547 = vmatpush3.bf16.msra.mxu0 %v594_v0  ;;  %586 = vmatpush3.bf16.msra.mxu1 %v594_v0  ;;  %v603_v5 = vld [vmem:[%s706_s0 + $0x20] sm:$0xff]   ;;  %v600_v8 = vld [vmem:[%s705_s1 + $0x30] sm:$0xff]   ;;  %v601_v9 = vld [vmem:[%s705_s1 + $0x38] sm:$0xff]  }
   0x4   :  { %548 = vmatprep.subr.bf16.mxu0 %v595_v1  ;;  %579 = vmatprep.subr.bf16.mxu1 %v595_v1  ;;  %v598_v6 = vld [vmem:[%s705_s1 + $0x20] sm:$0xff]   ;;  %v604_v10 = vld [vmem:[%s706_s0 + $0x8] sm:$0xff]   ;;  %v606_v12 = vld [vmem:[%s706_s0 + $0x10] sm:$0xff]  }
   0x5   :  { %562 = vmatprep.mubr.bf16.mxu0 %v602_v4  ;;  %570 = vmatprep.mubr.bf16.mxu1 %v603_v5  ;;  %v605_v11 = vld [vmem:[%s706_s0 + $0x28] sm:$0xff]   ;;  %v607_v13 = vld [vmem:[%s706_s0 + $0x30] sm:$0xff]   ;;  %v608_v14 = vld [vmem:[%s706_s0 + $0x18] sm:$0xff]  }
   0x6   :  { %v609_v15 = vld [vmem:[%s706_s0 + $0x38] sm:$0xff]   ;;  %v450_v17 = vld [vmem:[%s707_s2] ss:$0 sm:$0xff] }
   0x7   :  { %549 = vmatpush3.bf16.msra.mxu0 %v595_v1  ;;  %587 = vmatpush3.bf16.msra.mxu1 %v595_v1 }
   0x8   :  { %550 = vmatprep.subr.bf16.mxu0 %v596_v2  ;;  %580 = vmatprep.subr.bf16.mxu1 %v596_v2 }
   0xb   :  { %551 = vmatpush3.bf16.msra.mxu0 %v596_v2  ;;  %588 = vmatpush3.bf16.msra.mxu1 %v596_v2 }
   0xc   :  { %552 = vmatprep.subr.bf16.mxu0 %v597_v3  ;;  %581 = vmatprep.subr.bf16.mxu1 %v597_v3 }
   0xf   :  { %553 = vmatpush3.bf16.msra.mxu0 %v597_v3  ;;  %589 = vmatpush3.bf16.msra.mxu1 %v597_v3 }
  0x10   :  { %554 = vmatprep.subr.bf16.mxu0 %v598_v6  ;;  %582 = vmatprep.subr.bf16.mxu1 %v598_v6 }
  0x13   :  { %555 = vmatpush3.bf16.msra.mxu0 %v598_v6  ;;  %590 = vmatpush3.bf16.msra.mxu1 %v598_v6 }
  0x14   :  { %556 = vmatprep.subr.bf16.mxu0 %v599_v7  ;;  %583 = vmatprep.subr.bf16.mxu1 %v599_v7 }
  0x17   :  { %557 = vmatpush3.bf16.msra.mxu0 %v599_v7  ;;  %591 = vmatpush3.bf16.msra.mxu1 %v599_v7 }
  0x18   :  { %558 = vmatprep.subr.bf16.mxu0 %v600_v8  ;;  %584 = vmatprep.subr.bf16.mxu1 %v600_v8 }
  0x1b   :  { %559 = vmatpush3.bf16.msra.mxu0 %v600_v8  ;;  %592 = vmatpush3.bf16.msra.mxu1 %v600_v8 }
  0x1c   :  { %560 = vmatprep.subr.bf16.mxu0 %v601_v9  ;;  %585 = vmatprep.subr.bf16.mxu1 %v601_v9 }
  0x1f   :  { %561 = vmatpush3.bf16.msra.mxu0 %v601_v9  ;;  %593 = vmatpush3.bf16.msra.mxu1 %v601_v9 }
  0x22   :  { %563 = vmatmul.mubr.bf16.vlgmr.msra.gmra.mrb[0].mxu0 %v604_v10  ;;  %571 = vmatmul.mubr.bf16.vlgmr.msra.gmra.mrb[0].mxu1 %v605_v11 }
  0x23   :  { %566 = vmatprep.mubr.bf16.mxu0 %v606_v12  ;;  %574 = vmatprep.mubr.bf16.mxu1 %v607_v13 }
  0x2a   :  { %567 = vmatmul.mubr.bf16.gmra.mrb[4].mxu0 %v608_v14  ;;  %575 = vmatmul.mubr.bf16.gmra.mrb[4].mxu1 %v609_v15 }
  0xf5   :  { %v564_v16 = vpop.f32.mrb[0].mxu0  ;;  %v572_v18 = vpop.f32.mrb[0].mxu1 }
  0xf6   :  { %v213_v19 = vpop.f32.mrb[1].mxu0  ;;  %v245_v20 = vpop.f32.mrb[1].mxu1  ;;  %v336_v23 = vadd.f32 %v564_v16, %v450_v17  ;;  %v344_v24 = vadd.f32 %v572_v18, %v450_v17 }
  0xf7   :  { %v565_v21 = vpop.f32.mrb[2].mxu0  ;;  %v573_v22 = vpop.f32.mrb[2].mxu1  ;;  %v334_v29 = vadd.f32 %v450_v17, %v213_v19  ;;  %v342_v30 = vadd.f32 %v450_v17, %v245_v20 }
  0xf8   :  { %v337_v25 = vadd.f32 %v565_v21, %v450_v17  ;;  %v345_v26 = vadd.f32 %v573_v22, %v450_v17  ;;  %v216_v27 = vpop.f32.mrb[3].mxu0  ;;  %v248_v28 = vpop.f32.mrb[3].mxu1 }
  0xf9   :  { %v335_v31 = vadd.f32 %v450_v17, %v216_v27  ;;  %v343_v32 = vadd.f32 %v450_v17, %v248_v28 }
  0xfa   :  { %v491_v33 = vpack.c.bf16 %v337_v25, %v336_v23  ;;  %v511_v34 = vpack.c.bf16 %v345_v26, %v344_v24 }
  0xfb   :  { %v486_v35 = vpack.c.bf16 %v335_v31, %v334_v29  ;;  %v506_v36 = vpack.c.bf16 %v343_v32, %v342_v30 }
  0xfc   :  { %523 = vst [vmem:[%s708_s3 + $0x8] sm:$0xff] %v491_v33   ;;  %527 = vst [vmem:[%s708_s3 + $0x28] sm:$0xff] %v511_v34  }
  0xfd   :  { %487 = vst [vmem:[%s708_s3] sm:$0xff] %v486_v35   ;;  %526 = vst [vmem:[%s708_s3 + $0x20] sm:$0xff] %v506_v36   ;;  %v568_v37 = vpop.f32.mrb[4].mxu0  ;;  %v576_v38 = vpop.f32.mrb[4].mxu1 }
  0xfe   :  { %v229_v39 = vpop.f32.mrb[5].mxu0  ;;  %v261_v40 = vpop.f32.mrb[5].mxu1  ;;  %v340_v43 = vadd.f32 %v568_v37, %v450_v17  ;;  %v348_v44 = vadd.f32 %v576_v38, %v450_v17 }
  0xff   :  { %v569_v41 = vpop.f32.mrb[6].mxu0  ;;  %v577_v42 = vpop.f32.mrb[6].mxu1  ;;  %v338_v49 = vadd.f32 %v450_v17, %v229_v39  ;;  %v346_v50 = vadd.f32 %v450_v17, %v261_v40 }
 0x100   :  { %v341_v45 = vadd.f32 %v569_v41, %v450_v17  ;;  %v349_v46 = vadd.f32 %v577_v42, %v450_v17  ;;  %v232_v47 = vpop.f32.mrb[7].mxu0  ;;  %v264_v48 = vpop.f32.mrb[7].mxu1 }
 0x101   :  { %v339_v51 = vadd.f32 %v450_v17, %v232_v47  ;;  %v347_v52 = vadd.f32 %v450_v17, %v264_v48 }
 0x102   :  { %v501_v53 = vpack.c.bf16 %v341_v45, %v340_v43  ;;  %v521_v54 = vpack.c.bf16 %v349_v46, %v348_v44 }
 0x103   :  { %v496_v55 = vpack.c.bf16 %v339_v51, %v338_v49  ;;  %v516_v56 = vpack.c.bf16 %v347_v52, %v346_v50 }
 0x104   :  { %525 = vst [vmem:[%s708_s3 + $0x18] sm:$0xff] %v501_v53   ;;  %529 = vst [vmem:[%s708_s3 + $0x38] sm:$0xff] %v521_v54  }
 0x105   :  { %524 = vst [vmem:[%s708_s3 + $0x10] sm:$0xff] %v496_v55   ;;  %528 = vst [vmem:[%s708_s3 + $0x30] sm:$0xff] %v516_v56  }

// kernel: hand_gesture_forward.20
= control target key start
LH: loop header
LB: loop body
LE: loop exit
PB: predicated region body
PF: predicated region fallthrough
CT: control target
= control target key end

     0   :  { %s1830_s15 = smov 0   ;;  %s1832_s16 = smov 0   ;;  %s2086_s0 = inlined_call_operand.vmem [shape: bf16[128,1152], index: 0, kind: input, shape index: {}]   ;;  %s2087_s1 = inlined_call_operand.vmem [shape: bf16[1152,128], index: 1, kind: input, shape index: {}]   ;;  %s2088_s2 = inlined_call_operand.vmem [shape: f32[1,128], index: 2, kind: input, shape index: {}]   ;;  %s2089_s3 = inlined_call_operand.vmem [shape: bf16[128,128], index: 3, kind: input, shape index: {}]   ;;  %s2090_s4 = inlined_call_operand.vmem [shape: bf16[128,128], index: 4, kind: output, shape index: {}]  }
   0x1   :  { %s1834_s17 = smov 0   ;;  %s1836_s18 = smov 0  }
   0x2   :  { %s1838_s19 = smov 0  }
   0x3 LB: > { %s26_s20 = sadd.s32 1, %s1798_s18  ;;  %p49_p1 = scmp.ne.s32.totalorder %s1790_s16, %s1786_s15  ;;  %s1802_s19 = sphi %s1838_s19, %s14_s19   ;;  %s1798_s18 = sphi %s1836_s18, %s2094_s18   ;;  %s1794_s17 = sphi %s1834_s17, %s2093_s17   ;;  %s1790_s16 = sphi %s1832_s16, %s2092_s16   ;;  %s1786_s15 = sphi %s1830_s15, %s2091_s15  }
   0x4   : > { %p27_p0 = scmp.ge.s32.totalorder %s26_s20, 3  ;;  %p50_p2 = scmp.eq.s32.totalorder %s1802_s19, 0 }
   0x5   : > { %s42_s22 = sadd.s32 1, %s1790_s16  ;;  %p1343_p5 = scmp.ge.s32.totalorder %s1802_s19, 3 }
   0x6   : > { %s2096_s20 = smov (%p27_p0, %s26_s20), 0  ;;  %p51_p3 = por %p50_p2, %p49_p1 }
   0x7   : > { %s38_s21 = ssub.s32 %s1798_s18, %s2096_s20  ;;  %203 = sbr.rel (%p1343_p5) target bundleno = 37 (0x25), region = 24 }
   0x8   : > { %p40_p4 = scmp.eq.s32.totalorder %s38_s21, 0 }
   0xa   : > { %s1865_s23 = scalar_select %p40_p4, %s1790_s16, %s42_s22  }
   0xe   : > { %206 = sbr.rel (!%p51_p3) target bundleno = 37 (0x25), region = 28  ;;  %s208_s24 = sand.u32 (%p51_p3), 1, %s1790_s16  }
   0xf   : > { %s1450_s25 = smul.u32 (%p51_p3), 12, %s1798_s18 }
  0x10   : > { %s1665_s26 = smul.u32 (%p51_p3), 192, %s208_s24 }
  0x11   : > { %s1873_s29 = scalar_lea.vmem (%p51_p3), %s2086_s0, %s1450_s25 }
  0x12   : > { %v231_v0 = vld [vmem:[%s1873_s29] sm:$0xff] (%p51_p3)  ;;  %v235_v2 = vld [vmem:[%s1873_s29 + $0x48] sm:$0xff] (%p51_p3)  ;;  %s1878_s30 = scalar_lea.vmem (%p51_p3), [#allocation3], %s1665_s26  ;;  %v239_v4 = vld [vmem:[%s1873_s29 + $0x90] sm:$0xff] (%p51_p3) }
  0x13   : > { %v233_v1 = vld [vmem:[%s1873_s29 + $0x24] sm:$0xff] (%p51_p3)  ;;  %232 = vst [vmem:[%s1878_s30] sm:$0xff] (%p51_p3), %v231_v0  ;;  %236 = vst [vmem:[%s1878_s30 + $0x18] sm:$0xff] (%p51_p3), %v235_v2  ;;  %v237_v3 = vld [vmem:[%s1873_s29 + $0x6c] sm:$0xff] (%p51_p3) }
  0x14   : > { %234 = vst [vmem:[%s1878_s30 + $0xc] sm:$0xff] (%p51_p3), %v233_v1  ;;  %v241_v5 = vld [vmem:[%s1873_s29 + $0xb4] sm:$0xff] (%p51_p3)  ;;  %238 = vst [vmem:[%s1878_s30 + $0x24] sm:$0xff] (%p51_p3), %v237_v3  ;;  %v245_v7 = vld [vmem:[%s1873_s29 + $0xfc] sm:$0xff] (%p51_p3) }
  0x15   : > { %240 = vst [vmem:[%s1878_s30 + $0x30] sm:$0xff] %v239_v4  ;;  %242 = vst [vmem:[%s1878_s30 + $0x3c] sm:$0xff] %v241_v5  ;;  %v243_v6 = vld [vmem:[%s1873_s29 + $0xd8] sm:$0xff]  ;;  %v247_v8 = vld [vmem:[%s1873_s29 + $0x120] sm:$0xff] }
  0x16   : > { %244 = vst [vmem:[%s1878_s30 + $0x48] sm:$0xff] %v243_v6  ;;  %246 = vst [vmem:[%s1878_s30 + $0x54] sm:$0xff] %v245_v7  ;;  %v249_v9 = vld [vmem:[%s1873_s29 + $0x144] sm:$0xff]  ;;  %v253_v11 = vld [vmem:[%s1873_s29 + $0x18c] sm:$0xff] }
  0x17   : > { %248 = vst [vmem:[%s1878_s30 + $0x60] sm:$0xff] %v247_v8  ;;  %v251_v10 = vld [vmem:[%s1873_s29 + $0x168] sm:$0xff]  ;;  %250 = vst [vmem:[%s1878_s30 + $0x6c] sm:$0xff] %v249_v9  ;;  %v255_v12 = vld [vmem:[%s1873_s29 + $0x1b0] sm:$0xff] }
  0x18   : > { %252 = vst [vmem:[%s1878_s30 + $0x78] sm:$0xff] %v251_v10  ;;  %254 = vst [vmem:[%s1878_s30 + $0x84] sm:$0xff] %v253_v11  ;;  %v257_v13 = vld [vmem:[%s1873_s29 + $0x1d4] sm:$0xff]  ;;  %v261_v15 = vld [vmem:[%s1873_s29 + $0x21c] sm:$0xff] }
  0x19   : > { %v259_v14 = vld [vmem:[%s1873_s29 + $0x1f8] sm:$0xff]  ;;  %256 = vst [vmem:[%s1878_s30 + $0x90] sm:$0xff] %v255_v12  ;;  %258 = vst [vmem:[%s1878_s30 + $0x9c] sm:$0xff] %v257_v13  ;;  %v1345_v16 = vld [vmem:[%s1873_s29 + $0x8] sm:$0xf] }
  0x1a   : > { %260 = vst [vmem:[%s1878_s30 + $0xa8] sm:$0xff] %v259_v14  ;;  %v1347_v17 = vld [vmem:[%s1873_s29 + $0x2c] sm:$0xf]  ;;  %262 = vst [vmem:[%s1878_s30 + $0xb4] sm:$0xff] %v261_v15  ;;  %v1349_v18 = vld [vmem:[%s1873_s29 + $0x50] sm:$0xf] }
  0x1b   : > { %1346 = vst [vmem:[%s1878_s30 + $0x8] sm:$0xf] %v1345_v16  ;;  %1348 = vst [vmem:[%s1878_s30 + $0x14] sm:$0xf] %v1347_v17  ;;  %v1351_v19 = vld [vmem:[%s1873_s29 + $0x74] sm:$0xf] }
  0x1c   : > { %v1353_v20 = vld [vmem:[%s1873_s29 + $0x98] sm:$0xf]  ;;  %1350 = vst [vmem:[%s1878_s30 + $0x20] sm:$0xf] %v1349_v18  ;;  %1352 = vst [vmem:[%s1878_s30 + $0x2c] sm:$0xf] %v1351_v19 }
  0x1d   : > { %1354 = vst [vmem:[%s1878_s30 + $0x38] sm:$0xf] %v1353_v20  ;;  %v1355_v21 = vld [vmem:[%s1873_s29 + $0xbc] sm:$0xf]  ;;  %v1357_v22 = vld [vmem:[%s1873_s29 + $0xe0] sm:$0xf] }
  0x1e   : > { %v1359_v23 = vld [vmem:[%s1873_s29 + $0x104] sm:$0xf]  ;;  %1356 = vst [vmem:[%s1878_s30 + $0x44] sm:$0xf] %v1355_v21  ;;  %1358 = vst [vmem:[%s1878_s30 + $0x50] sm:$0xf] %v1357_v22 }
  0x1f   : > { %1360 = vst [vmem:[%s1878_s30 + $0x5c] sm:$0xf] %v1359_v23  ;;  %v1361_v24 = vld [vmem:[%s1873_s29 + $0x128] sm:$0xf]  ;;  %v1363_v25 = vld [vmem:[%s1873_s29 + $0x14c] sm:$0xf] }
  0x20   : > { %v1365_v26 = vld [vmem:[%s1873_s29 + $0x170] sm:$0xf]  ;;  %1362 = vst [vmem:[%s1878_s30 + $0x68] sm:$0xf] %v1361_v24  ;;  %1364 = vst [vmem:[%s1878_s30 + $0x74] sm:$0xf] %v1363_v25 }
  0x21   : > { %1366 = vst [vmem:[%s1878_s30 + $0x80] sm:$0xf] %v1365_v26  ;;  %v1367_v27 = vld [vmem:[%s1873_s29 + $0x194] sm:$0xf]  ;;  %v1369_v28 = vld [vmem:[%s1873_s29 + $0x1b8] sm:$0xf] }
  0x22   : > { %v1371_v29 = vld [vmem:[%s1873_s29 + $0x1dc] sm:$0xf]  ;;  %1368 = vst [vmem:[%s1878_s30 + $0x8c] sm:$0xf] %v1367_v27  ;;  %1370 = vst [vmem:[%s1878_s30 + $0x98] sm:$0xf] %v1369_v28 }
  0x23   : > { %1372 = vst [vmem:[%s1878_s30 + $0xa4] sm:$0xf] %v1371_v29  ;;  %v1373_v30 = vld [vmem:[%s1873_s29 + $0x200] sm:$0xf]  ;;  %v1375_v31 = vld [vmem:[%s1873_s29 + $0x224] sm:$0xf] }
  0x24   : > { %1374 = vst [vmem:[%s1878_s30 + $0xb0] sm:$0xf] %v1373_v30  ;;  %1376 = vst [vmem:[%s1878_s30 + $0xbc] sm:$0xf] %v1375_v31 }
  0x25 PF: > { %p1377_p6 = scmp.ge.s32.totalorder %s1802_s19, 1  ;;  %p318_p7 = scmp.lt.s32.totalorder %s1802_s19, 4 }
  0x27   : > { %p319_p8 = pnand %p1377_p6, %p318_p7 }
  0x28   : > { %s325_s5 = sand.u32 (!%p319_p8), 1, %s1786_s15   ;;  %s374_s6 = smul.u32 (!%p319_p8), 48, %s1794_s17 }
  0x29   : > { %322 = sbr.rel (%p319_p8) target bundleno = 385 (0x181), region = 58  ;;  %p1379_p10 = scmp.ne.s32.totalorder (!%p319_p8), %s1794_s17, 0 }
  0x2a   : > { %s1666_s7 = smul.u32 (!%p319_p8), 192, %s325_s5  ;;  %p375_p9 = scmp.lt.s32.totalorder (!%p319_p8), %s374_s6, 143 }
  0x2c   : > { %s1950_s12 = scalar_lea.vmem (!%p319_p8), [#allocation3], %s1666_s7 }
  0x30   : > { %s2098_s6 = smov (!%p375_p9, %s374_s6), 143  ;;  %408 = sbr.rel (%p1379_p10) target bundleno = 58 (0x3a), region = 66 }
  0x31   : > { %s1378_s8 = sshll.u32 %s2098_s6, 2  ;;  %v1804_v32 = vmov (!%p1379_p10), 0.0  }
  0x32   : > { %s1948_s11 = scalar_lea.vmem %s2087_s1, %s1378_s8  ;;  %409 = vst [vmem:[#allocation2] sm:$0xff] (!%p1379_p10), %v1804_v32  ;;  %410 = vst [vmem:[#allocation2 + $0x8] sm:$0xff] (!%p1379_p10), %v1804_v32 }
  0x33   : > { %411 = vst [vmem:[#allocation2 + $0x10] sm:$0xff] (!%p1379_p10), %v1804_v32  ;;  %412 = vst [vmem:[#allocation2 + $0x18] sm:$0xff] (!%p1379_p10), %v1804_v32 }
  0x34   : > { %413 = vst [vmem:[#allocation2 + $0x20] sm:$0xff] (!%p1379_p10), %v1804_v32  ;;  %414 = vst [vmem:[#allocation2 + $0x28] sm:$0xff] (!%p1379_p10), %v1804_v32 }
  0x35   : > { %415 = vst [vmem:[#allocation2 + $0x30] sm:$0xff] (!%p1379_p10), %v1804_v32  ;;  %416 = vst [vmem:[#allocation2 + $0x38] sm:$0xff] (!%p1379_p10), %v1804_v32 }
  0x36   : > { %417 = vst [vmem:[#allocation2 + $0x40] sm:$0xff] (!%p1379_p10), %v1804_v32  ;;  %418 = vst [vmem:[#allocation2 + $0x48] sm:$0xff] (!%p1379_p10), %v1804_v32 }
  0x37   : > { %419 = vst [vmem:[#allocation2 + $0x50] sm:$0xff] %v1804_v32  ;;  %420 = vst [vmem:[#allocation2 + $0x58] sm:$0xff] %v1804_v32 }
  0x38   : > { %421 = vst [vmem:[#allocation2 + $0x60] sm:$0xff] %v1804_v32  ;;  %422 = vst [vmem:[#allocation2 + $0x68] sm:$0xff] %v1804_v32 }
  0x39   : > { %423 = vst [vmem:[#allocation2 + $0x70] sm:$0xff] %v1804_v32  ;;  %424 = vst [vmem:[#allocation2 + $0x78] sm:$0xff] %v1804_v32 }
  0x3a PF: > { %v1708_v33 = vld [vmem:[%s1948_s11 + $0x40] sm:$0xff]   ;;  %v1711_v36 = vld [vmem:[%s1948_s11 + $0x48] sm:$0xff]   ;;  %v1714_v39 = vld [vmem:[%s1948_s11 + $0x50] sm:$0xff]   ;;  %p1428_p11 = scmp.ne.s32.totalorder %s1794_s17, 2 }
  0x3b   : > { %v1709_v34 = vld [vmem:[%s1948_s11] sm:$0xff]   ;;  %1553 = vmatprep.subr.bf16.mxu0 %v1708_v33  ;;  %v1712_v37 = vld [vmem:[%s1948_s11 + $0x8] sm:$0xff]   ;;  %v1715_v40 = vld [vmem:[%s1948_s11 + $0x10] sm:$0xff]  }
  0x3c   : > { %v1710_v35 = vld [vmem:[%s1948_s11 + $0x80] sm:$0xff]   ;;  %1554 = vmatpush3.bf16.msra.mxu0 %v1709_v34  ;;  %v1713_v38 = vld [vmem:[%s1948_s11 + $0x88] sm:$0xff]   ;;  %v1716_v41 = vld [vmem:[%s1948_s11 + $0x90] sm:$0xff]  }
  0x3d   : > { %1633 = vmatprep.subr.bf16.mxu1 %v1710_v35  ;;  %1555 = vmatprep.subr.bf16.mxu0 %v1711_v36  ;;  %v1717_v42 = vld [vmem:[%s1948_s11 + $0x58] sm:$0xff]   ;;  %v1720_v45 = vld [vmem:[%s1948_s11 + $0x60] sm:$0xff]   ;;  %v1723_v48 = vld [vmem:[%s1948_s11 + $0x68] sm:$0xff]  }
  0x3e   : > { %1634 = vmatpush3.bf16.msra.mxu1 %v1710_v35  ;;  %v1718_v43 = vld [vmem:[%s1948_s11 + $0x18] sm:$0xff]   ;;  %v1722_v46 = vld [vmem:[%s1948_s11 + $0xa0] sm:$0xff]   ;;  %v1725_v49 = vld [vmem:[%s1948_s11 + $0xa8] sm:$0xff]  }
  0x3f   : > { %1635 = vmatprep.subr.bf16.mxu1 %v1713_v38  ;;  %v1719_v44 = vld [vmem:[%s1948_s11 + $0x98] sm:$0xff]   ;;  %v1721_v47 = vld [vmem:[%s1948_s11 + $0x20] sm:$0xff]   ;;  %v1724_v50 = vld [vmem:[%s1948_s11 + $0x28] sm:$0xff]  }
  0x40   : > { %1556 = vmatpush3.bf16.msra.mxu0 %v1712_v37  ;;  %v1726_v51 = vld [vmem:[%s1948_s11 + $0x70] sm:$0xff]   ;;  %v1729_v54 = vld [vmem:[%s1948_s11 + $0x78] sm:$0xff]   ;;  %v1732_v59 = vld [vmem:[%s1950_s12] ss:$12 sps:$4 sm:$0xff]  }
  0x41   : > { %1557 = vmatprep.subr.bf16.mxu0 %v1714_v39  ;;  %v1727_v52 = vld [vmem:[%s1948_s11 + $0x30] sm:$0xff]   ;;  %v1731_v55 = vld [vmem:[%s1948_s11 + $0xb8] sm:$0xff]   ;;  %v1736_v61 = vld [vmem:[%s1950_s12 + $0x20] ss:$12 sps:$4 sm:$0xff]  }
  0x42   : > { %1636 = vmatpush3.bf16.msra.mxu1 %v1713_v38  ;;  %v1728_v53 = vld [vmem:[%s1948_s11 + $0xb0] sm:$0xff]   ;;  %v1730_v58 = vld [vmem:[%s1948_s11 + $0x38] sm:$0xff]   ;;  %v1752_v5 = vld [vmem:[%s1950_s12 + $0x80] ss:$12 sps:$4 sm:$0xff]  }
  0x43   : > { %1637 = vmatprep.subr.bf16.mxu1 %v1716_v41  ;;  %v1734_v56 = vld [vmem:[%s1950_s12 + $0x4] ss:$12 sps:$4 sm:$0xff]   ;;  %v1735_v57 = vld [vmem:[%s1950_s12 + $0x8] ss:$12 sps:$4 sm:$0xff]   ;;  %v1745_v4 = vld [vmem:[%s1950_s12 + $0x4c] ss:$12 sps:$4 sm:$0xff]  }
  0x44   : > { %1558 = vmatpush3.bf16.msra.mxu0 %v1715_v40  ;;  %825 = vmatprep.mubr.bf16.mxu0 %v1734_v56  ;;  %v1737_v60 = vld [vmem:[%s1950_s12 + $0x1c] ss:$12 sps:$4 sm:$0xff]   ;;  %v1743_v62 = vld [vmem:[%s1950_s12 + $0x38] ss:$12 sps:$4 sm:$0xff]   ;;  %v1740_v0 = vld [vmem:[%s1950_s12 + $0x34] ss:$12 sps:$4 sm:$0xff]  }
  0x45   : > { %1559 = vmatprep.subr.bf16.mxu0 %v1717_v42  ;;  %1649 = vmatprep.mubr.bf16.mxu1 %v1735_v57  ;;  %v1739_v63 = vld [vmem:[%s1950_s12 + $0x18] ss:$12 sps:$4 sm:$0xff]   ;;  %v1744_v1 = vld [vmem:[%s1950_s12 + $0x50] ss:$12 sps:$4 sm:$0xff]   ;;  %v1751_v2 = vld [vmem:[%s1950_s12 + $0x68] ss:$12 sps:$4 sm:$0xff]  }
  0x46   : > { %1638 = vmatpush3.bf16.msra.mxu1 %v1716_v41  ;;  %v1742_v3 = vld [vmem:[%s1950_s12 + $0x30] ss:$12 sps:$4 sm:$0xff]   ;;  %v1759_v6 = vld [vmem:[%s1950_s12 + $0x98] ss:$12 sps:$4 sm:$0xff]   ;;  %v1747_v7 = vld [vmem:[%s1950_s12 + $0x48] ss:$12 sps:$4 sm:$0xff]  }
  0x47   : > { %1639 = vmatprep.subr.bf16.mxu1 %v1719_v44  ;;  %v1748_v8 = vld [vmem:[%s1950_s12 + $0x64] ss:$12 sps:$4 sm:$0xff]   ;;  %v1750_v10 = vld [vmem:[%s1950_s12 + $0x60] ss:$12 sps:$4 sm:$0xff]   ;;  %v1753_v11 = vld [vmem:[%s1950_s12 + $0x7c] ss:$12 sps:$4 sm:$0xff]  }
  0x48   : > { %1560 = vmatpush3.bf16.msra.mxu0 %v1718_v43  ;;  %v1760_v9 = vld [vmem:[%s1950_s12 + $0xb0] ss:$12 sps:$4 sm:$0xff]   ;;  %v1755_v12 = vld [vmem:[%s1950_s12 + $0x78] ss:$12 sps:$4 sm:$0xff]   ;;  %v1756_v13 = vld [vmem:[%s1950_s12 + $0x94] ss:$12 sps:$4 sm:$0xff]  }
  0x49   : > { %1561 = vmatprep.subr.bf16.mxu0 %v1720_v45  ;;  %v1758_v14 = vld [vmem:[%s1950_s12 + $0x90] ss:$12 sps:$4 sm:$0xff]   ;;  %v1761_v15 = vld [vmem:[%s1950_s12 + $0xac] ss:$12 sps:$4 sm:$0xff]   ;;  %v1763_v16 = vld [vmem:[%s1950_s12 + $0xa8] ss:$12 sps:$4 sm:$0xff]  }
  0x4a   : > { %1640 = vmatpush3.bf16.msra.mxu1 %v1719_v44  ;;  %v425_v23 = vld [vmem:[#allocation2] sm:$0xff]  ;;  %v426_v28 = vld [vmem:[#allocation2 + $0x8] sm:$0xff]  ;;  %v427_v38 = vld [vmem:[#allocation2 + $0x10] sm:$0xff] }
  0x4b   : > { %1641 = vmatprep.subr.bf16.mxu1 %v1722_v46  ;;  %v428_v44 = vld [vmem:[#allocation2 + $0x18] sm:$0xff] }
  0x4c   : > { %1562 = vmatpush3.bf16.msra.mxu0 %v1721_v47 }
  0x4d   : > { %1563 = vmatprep.subr.bf16.mxu0 %v1723_v48 }
  0x4e   : > { %1642 = vmatpush3.bf16.msra.mxu1 %v1722_v46 }
  0x4f   : > { %1643 = vmatprep.subr.bf16.mxu1 %v1725_v49 }
  0x50   : > { %1564 = vmatpush3.bf16.msra.mxu0 %v1724_v50 }
  0x51   : > { %1565 = vmatprep.subr.bf16.mxu0 %v1726_v51 }
  0x52   : > { %1644 = vmatpush3.bf16.msra.mxu1 %v1725_v49 }
  0x53   : > { %1645 = vmatprep.subr.bf16.mxu1 %v1728_v53 }
  0x54   : > { %1566 = vmatpush3.bf16.msra.mxu0 %v1727_v52 }
  0x55   : > { %1567 = vmatprep.subr.bf16.mxu0 %v1729_v54 }
  0x56   : > { %1646 = vmatpush3.bf16.msra.mxu1 %v1728_v53 }
  0x57   : > { %1647 = vmatprep.subr.bf16.mxu1 %v1731_v55 }
  0x58   : > { %1568 = vmatpush3.bf16.msra.mxu0 %v1730_v58 }
  0x5a   : > { %1648 = vmatpush3.bf16.msra.mxu1 %v1731_v55  ;;  %v429_v55 = vld [vmem:[#allocation2 + $0x20] sm:$0xff] }
  0x5b   : > { %826 = vmatmul.mubr.bf16.vlgmr.msra.gmra.mrb[0].mxu0 %v1732_v59 }
  0x5c   : > { %833 = vmatprep.mubr.bf16.mxu0 %v1737_v60  ;;  %v430_v60 = vld [vmem:[#allocation2 + $0x28] sm:$0xff] }
  0x5d   : > { %1650 = vmatmul.mubr.bf16.vlgmr.msra.gmra.mrb[0].mxu1 %v1736_v61 }
  0x5e   : > { %1653 = vmatprep.mubr.bf16.mxu1 %v1743_v62 }
  0x63   : > { %834 = vmatmul.mubr.bf16.gmra.mrb[4].mxu0 %v1739_v63 }
  0x64   : > { %841 = vmatprep.mubr.bf16.mxu0 %v1740_v0 }
  0x65   : > { %1654 = vmatmul.mubr.bf16.gmra.mrb[4].mxu1 %v1744_v1 }
  0x66   : > { %1657 = vmatprep.mubr.bf16.mxu1 %v1751_v2 }
  0x6b   : > { %842 = vmatmul.mubr.bf16.gmra.mrb[8].mxu0 %v1742_v3 }
  0x6c   : > { %849 = vmatprep.mubr.bf16.mxu0 %v1745_v4 }
  0x6d   : > { %1658 = vmatmul.mubr.bf16.gmra.mrb[8].mxu1 %v1752_v5 }
  0x6e   : > { %1661 = vmatprep.mubr.bf16.mxu1 %v1759_v6  ;;  %v431_v6 = vld [vmem:[#allocation2 + $0x30] sm:$0xff] }
  0x73   : > { %850 = vmatmul.mubr.bf16.gmra.mrb[12].mxu0 %v1747_v7 }
  0x74   : > { %857 = vmatprep.mubr.bf16.mxu0 %v1748_v8 }
  0x75   : > { %1662 = vmatmul.mubr.bf16.gmra.mrb[12].mxu1 %v1760_v9 }
  0x7b   : > { %858 = vmatmul.mubr.bf16.gmra.mrb[16].mxu0 %v1750_v10 }
  0x7c   : > { %865 = vmatprep.mubr.bf16.mxu0 %v1753_v11 }
  0x83   : > { %866 = vmatmul.mubr.bf16.gmra.mrb[20].mxu0 %v1755_v12  ;;  %v432_v12 = vld [vmem:[#allocation2 + $0x38] sm:$0xff] }
  0x84   : > { %873 = vmatprep.mubr.bf16.mxu0 %v1756_v13 }
  0x8b   : > { %874 = vmatmul.mubr.bf16.gmra.mrb[24].mxu0 %v1758_v14 }
  0x8c   : > { %881 = vmatprep.mubr.bf16.mxu0 %v1761_v15 }
  0x93   : > { %882 = vmatmul.mubr.bf16.gmra.mrb[28].mxu0 %v1763_v16 }
 0x12e   : > { %v1569_v17 = vpop.f32.mrb[0].mxu0 }
 0x12f   : > { %v1570_v18 = vpop.f32.mrb[1].mxu0 }
 0x130   : > { %v1571_v19 = vadd.f32 %v1570_v18, %v1569_v17  ;;  %v1572_v20 = vpop.f32.mrb[2].mxu0  ;;  %v1651_v21 = vpop.f32.mrb[0].mxu1 }
 0x131   : > { %v1573_v22 = vpop.f32.mrb[3].mxu0  ;;  %v924_v24 = vpop.f32.mrb[1].mxu1 }
 0x132   : > { %v1574_v25 = vadd.f32 %v1573_v22, %v1572_v20  ;;  %v925_v26 = vadd.f32 %v1571_v19, %v924_v24  ;;  %v1652_v27 = vpop.f32.mrb[2].mxu1  ;;  %v433_v22 = vld [vmem:[#allocation2 + $0x40] sm:$0xff] }
 0x133   : > { %v927_v29 = vpop.f32.mrb[3].mxu1 }
 0x134   : > { %v987_v30 = vadd.f32 %v925_v26, %v425_v23  ;;  %v928_v31 = vadd.f32 %v1574_v25, %v927_v29  ;;  %v434_v25 = vld [vmem:[#allocation2 + $0x48] sm:$0xff] }
 0x136   : > { %1003 = vst [vmem:[#allocation2] sm:$0xff] %v987_v30  ;;  %v988_v32 = vadd.f32 %v928_v31, %v426_v28  ;;  %v1575_v33 = vpop.f32.mrb[4].mxu0 }
 0x137   : > { %v1576_v34 = vpop.f32.mrb[5].mxu0 }
 0x138   : > { %1004 = vst [vmem:[#allocation2 + $0x8] sm:$0xff] %v988_v32  ;;  %v1577_v35 = vadd.f32 %v1576_v34, %v1575_v33  ;;  %v1578_v36 = vpop.f32.mrb[6].mxu0  ;;  %v1655_v37 = vpop.f32.mrb[4].mxu1  ;;  %v435_v33 = vld [vmem:[#allocation2 + $0x50] sm:$0xff] }
 0x139   : > { %v1579_v39 = vpop.f32.mrb[7].mxu0  ;;  %v940_v40 = vpop.f32.mrb[5].mxu1 }
 0x13a   : > { %v933_v41 = vadd.f32 %v1651_v21, %v1577_v35  ;;  %v1580_v42 = vadd.f32 %v1579_v39, %v1578_v36  ;;  %v1656_v43 = vpop.f32.mrb[6].mxu1 }
 0x13b   : > { %v943_v45 = vpop.f32.mrb[7].mxu1 }
 0x13c   : > { %v989_v46 = vadd.f32 %v933_v41, %v427_v38  ;;  %v936_v47 = vadd.f32 %v1652_v27, %v1580_v42 }
 0x13e   : > { %1005 = vst [vmem:[#allocation2 + $0x10] sm:$0xff] %v989_v46  ;;  %v990_v48 = vadd.f32 %v936_v47, %v428_v44  ;;  %v1581_v49 = vpop.f32.mrb[8].mxu0  ;;  %v437_v46 = vld [vmem:[#allocation2 + $0x60] sm:$0xff] }
 0x13f   : > { %v1582_v50 = vpop.f32.mrb[9].mxu0 }
 0x140   : > { %1006 = vst [vmem:[#allocation2 + $0x18] sm:$0xff] %v990_v48  ;;  %v1583_v51 = vadd.f32 %v1582_v50, %v1581_v49  ;;  %v1584_v52 = vpop.f32.mrb[10].mxu0  ;;  %v1659_v53 = vpop.f32.mrb[8].mxu1  ;;  %v438_v49 = vld [vmem:[#allocation2 + $0x68] sm:$0xff] }
 0x141   : > { %v1585_v54 = vpop.f32.mrb[11].mxu0  ;;  %v956_v56 = vpop.f32.mrb[9].mxu1 }
 0x142   : > { %v1586_v57 = vadd.f32 %v1585_v54, %v1584_v52  ;;  %v941_v58 = vadd.f32 %v1583_v51, %v940_v40  ;;  %v1660_v59 = vpop.f32.mrb[10].mxu1 }
 0x143   : > { %v959_v61 = vpop.f32.mrb[11].mxu1 }
 0x144   : > { %v991_v62 = vadd.f32 %v941_v58, %v429_v55  ;;  %v944_v63 = vadd.f32 %v1586_v57, %v943_v45  ;;  %v439_v57 = vld [vmem:[#allocation2 + $0x70] sm:$0xff] }
 0x146   : > { %1007 = vst [vmem:[#allocation2 + $0x20] sm:$0xff] %v991_v62  ;;  %v992_v0 = vadd.f32 %v944_v63, %v430_v60  ;;  %v1587_v1 = vpop.f32.mrb[12].mxu0 }
 0x147   : > { %v1588_v2 = vpop.f32.mrb[13].mxu0 }
 0x148   : > { %1008 = vst [vmem:[#allocation2 + $0x28] sm:$0xff] %v992_v0  ;;  %v1589_v3 = vadd.f32 %v1588_v2, %v1587_v1  ;;  %v1590_v4 = vpop.f32.mrb[14].mxu0  ;;  %v1663_v5 = vpop.f32.mrb[12].mxu1  ;;  %v1023_v1 = vld [vmem:[#allocation2] sm:$0xff] (!%p1428_p11)  ;;  %v1024_v2 = vld [vmem:[#allocation2 + $0x8] sm:$0xff] (!%p1428_p11) }
 0x149   : > { %v1591_v7 = vpop.f32.mrb[15].mxu0  ;;  %v972_v8 = vpop.f32.mrb[13].mxu1 }
 0x14a   : > { %v949_v9 = vadd.f32 %v1655_v37, %v1589_v3  ;;  %v1592_v10 = vadd.f32 %v1591_v7, %v1590_v4  ;;  %v1664_v11 = vpop.f32.mrb[14].mxu1  ;;  %v436_v37 = vld [vmem:[#allocation2 + $0x58] sm:$0xff]  ;;  %v2005_v3 = vld [vmem:[%s2088_s2] ss:$0 sm:$0xff] (!%p1428_p11)  ;;  %v1025_v7 = vld [vmem:[#allocation2 + $0x10] sm:$0xff] (!%p1428_p11) }
 0x14b   : > { %v975_v13 = vpop.f32.mrb[15].mxu1  ;;  %v1046_v4 = vadd.f32 (!%p1428_p11), %v2005_v3, %v1023_v1 }
 0x14c   : > { %v993_v14 = vadd.f32 %v949_v9, %v431_v6  ;;  %v952_v15 = vadd.f32 %v1656_v43, %v1592_v10  ;;  %v1468_v6 = vld [vmem:[%s2089_s3] sm:$0xff] (!%p1428_p11)  }
 0x14d   : > { %v1469_v9 = vunpack.c.l.bf16 (!%p1428_p11), %v1468_v6  ;;  %v1470_v10 = vunpack.c.h.bf16 (!%p1428_p11), %v1468_v6 }
 0x14e   : > { %1009 = vst [vmem:[#allocation2 + $0x30] sm:$0xff] %v993_v14  ;;  %v994_v16 = vadd.f32 %v952_v15, %v432_v12  ;;  %v1593_v17 = vpop.f32.mrb[16].mxu0  ;;  %v1027_v14 = vld [vmem:[#allocation2 + $0x20] sm:$0xff] (!%p1428_p11) }
 0x14f   : > { %v1594_v18 = vpop.f32.mrb[17].mxu0  ;;  %v1028_v15 = vld [vmem:[#allocation2 + $0x28] sm:$0xff] (!%p1428_p11) }
 0x150   : > { %1010 = vst [vmem:[#allocation2 + $0x38] sm:$0xff] %v994_v16  ;;  %v1595_v19 = vadd.f32 %v1594_v18, %v1593_v17  ;;  %v1596_v20 = vpop.f32.mrb[18].mxu0  ;;  %v1050_v18 = vadd.f32 (!%p1428_p11), %v2005_v3, %v1027_v14 }
 0x151   : > { %v1597_v21 = vpop.f32.mrb[19].mxu0 }
 0x152   : > { %v1598_v23 = vadd.f32 %v1597_v21, %v1596_v20  ;;  %v957_v24 = vadd.f32 %v1595_v19, %v956_v56  ;;  %v1051_v19 = vadd.f32 (!%p1428_p11), %v2005_v3, %v1028_v15  ;;  %v1540_v20 = vld [vmem:[%s2089_s3 + $0x10] sm:$0xff] (!%p1428_p11)  }
 0x154   : > { %v995_v26 = vadd.f32 %v957_v24, %v433_v22  ;;  %v960_v27 = vadd.f32 %v1598_v23, %v959_v61  ;;  %v440_v61 = vld [vmem:[#allocation2 + $0x78] sm:$0xff]  ;;  %v1094_v23 = vadd.f32 (!%p1428_p11), %v1469_v9, %v1046_v4 }
 0x155   : > { %v1029_v21 = vld [vmem:[#allocation2 + $0x30] sm:$0xff] (!%p1428_p11) }
 0x156   : > { %1011 = vst [vmem:[#allocation2 + $0x40] sm:$0xff] %v995_v26  ;;  %v996_v28 = vadd.f32 %v960_v27, %v434_v25  ;;  %v1599_v29 = vpop.f32.mrb[20].mxu0  ;;  %v1477_v25 = vunpack.c.l.bf16 (!%p1428_p11), %v1540_v20  ;;  %v1478_v26 = vunpack.c.h.bf16 (!%p1428_p11), %v1540_v20  ;;  %v1541_v27 = vld [vmem:[%s2089_s3 + $0x18] sm:$0xff] (!%p1428_p11)  }
 0x157   : > { %v1600_v30 = vpop.f32.mrb[21].mxu0  ;;  %v1030_v22 = vld [vmem:[#allocation2 + $0x38] sm:$0xff] (!%p1428_p11) }
 0x158   : > { %1012 = vst [vmem:[#allocation2 + $0x48] sm:$0xff] %v996_v28  ;;  %v1601_v31 = vadd.f32 %v1600_v30, %v1599_v29  ;;  %v1602_v32 = vpop.f32.mrb[22].mxu0  ;;  %v1052_v30 = vadd.f32 (!%p1428_p11), %v2005_v3, %v1029_v21 }
 0x159   : > { %v1603_v34 = vpop.f32.mrb[23].mxu0 }
 0x15a   : > { %v965_v35 = vadd.f32 %v1659_v53, %v1601_v31  ;;  %v1604_v36 = vadd.f32 %v1603_v34, %v1602_v32  ;;  %v1053_v31 = vadd.f32 (!%p1428_p11), %v2005_v3, %v1030_v22 }
 0x15c   : > { %v997_v38 = vadd.f32 %v965_v35, %v435_v33  ;;  %v968_v39 = vadd.f32 %v1660_v59, %v1604_v36  ;;  %v1110_v33 = vmax.f32 (!%p1428_p11), %v1094_v23, 0.0  ;;  %v1098_v35 = vadd.f32 (!%p1428_p11), %v1477_v25, %v1050_v18 }
 0x15d   : > { %v1031_v32 = vld [vmem:[#allocation2 + $0x40] sm:$0xff] (!%p1428_p11)  ;;  %v1099_v36 = vadd.f32 (!%p1428_p11), %v1478_v26, %v1051_v19 }
 0x15e   : > { %1013 = vst [vmem:[#allocation2 + $0x50] sm:$0xff] %v997_v38  ;;  %v998_v40 = vadd.f32 %v968_v39, %v436_v37  ;;  %v1605_v41 = vpop.f32.mrb[24].mxu0 }
 0x15f   : > { %v1606_v42 = vpop.f32.mrb[25].mxu0  ;;  %v1032_v37 = vld [vmem:[#allocation2 + $0x48] sm:$0xff] (!%p1428_p11) }
 0x160   : > { %1014 = vst [vmem:[#allocation2 + $0x58] sm:$0xff] %v998_v40  ;;  %v1607_v43 = vadd.f32 %v1606_v42, %v1605_v41  ;;  %v1608_v44 = vpop.f32.mrb[26].mxu0  ;;  %v1481_v40 = vunpack.c.l.bf16 (!%p1428_p11), %v1541_v27  ;;  %v1482_v41 = vunpack.c.h.bf16 (!%p1428_p11), %v1541_v27  ;;  %v1542_v42 = vld [vmem:[%s2089_s3 + $0x20] sm:$0xff] (!%p1428_p11)  }
 0x161   : > { %v1609_v45 = vpop.f32.mrb[27].mxu0 }
 0x162   : > { %v1610_v47 = vadd.f32 %v1609_v45, %v1608_v44  ;;  %v973_v48 = vadd.f32 %v1607_v43, %v972_v8  ;;  %v1026_v8 = vld [vmem:[#allocation2 + $0x18] sm:$0xff] (!%p1428_p11)  ;;  %v1114_v45 = vmax.f32 (!%p1428_p11), %v1098_v35, 0.0 }
 0x163   : > { %v1049_v12 = vadd.f32 (!%p1428_p11), %v2005_v3, %v1026_v8 }
 0x164   : > { %v999_v50 = vadd.f32 %v973_v48, %v437_v46  ;;  %v976_v51 = vadd.f32 %v1610_v47, %v975_v13  ;;  %v1539_v13 = vld [vmem:[%s2089_s3 + $0x8] sm:$0xff] (!%p1428_p11)   ;;  %v1115_v46 = vmax.f32 (!%p1428_p11), %v1099_v36, 0.0  ;;  %v1054_v47 = vadd.f32 (!%p1428_p11), %v2005_v3, %v1031_v32 }
 0x165   : > { %v1473_v16 = vunpack.c.l.bf16 (!%p1428_p11), %v1539_v13  ;;  %v1474_v17 = vunpack.c.h.bf16 (!%p1428_p11), %v1539_v13  ;;  %v1033_v43 = vld [vmem:[#allocation2 + $0x50] sm:$0xff] (!%p1428_p11) }
 0x166   : > { %1015 = vst [vmem:[#allocation2 + $0x60] sm:$0xff] %v999_v50  ;;  %v1000_v52 = vadd.f32 %v976_v51, %v438_v49  ;;  %v1611_v53 = vpop.f32.mrb[28].mxu0  ;;  %v1543_v49 = vld [vmem:[%s2089_s3 + $0x28] sm:$0xff] (!%p1428_p11)   ;;  %v1100_v51 = vadd.f32 (!%p1428_p11), %v1481_v40, %v1052_v30 }
 0x167   : > { %v1612_v54 = vpop.f32.mrb[29].mxu0  ;;  %v1097_v29 = vadd.f32 (!%p1428_p11), %v1474_v17, %v1049_v12  ;;  %v1034_v48 = vld [vmem:[#allocation2 + $0x58] sm:$0xff] (!%p1428_p11)  ;;  %v1490_v4 = vunpack.c.h.bf16 (!%p1428_p11), %v1543_v49 }
 0x168   : > { %1016 = vst [vmem:[#allocation2 + $0x68] sm:$0xff] %v1000_v52  ;;  %v1613_v55 = vadd.f32 %v1612_v54, %v1611_v53  ;;  %v1614_v56 = vpop.f32.mrb[30].mxu0  ;;  %v1101_v52 = vadd.f32 (!%p1428_p11), %v1482_v41, %v1053_v31  ;;  %v1055_v53 = vadd.f32 (!%p1428_p11), %v2005_v3, %v1032_v37  ;;  %v1545_v12 = vld [vmem:[%s2089_s3 + $0x38] sm:$0xff] (!%p1428_p11)  }
 0x169   : > { %v1615_v58 = vpop.f32.mrb[31].mxu0  ;;  %v1113_v39 = vmax.f32 (!%p1428_p11), %v1097_v29, 0.0  ;;  %v1498_v26 = vunpack.c.h.bf16 (!%p1428_p11), %v1545_v12 }
 0x16a   : > { %v981_v59 = vadd.f32 %v1663_v5, %v1613_v55  ;;  %v1616_v60 = vadd.f32 %v1615_v58, %v1614_v56  ;;  %1022 = sbr.rel (%p1428_p11) target bundleno = 385 (0x181), region = 70  ;;  %v1047_v5 = vadd.f32 (!%p1428_p11), %v2005_v3, %v1024_v2  ;;  %v1512_v55 = vpack.c.bf16 (!%p1428_p11), %v1115_v46, %v1114_v45 }
 0x16b   : > { %v1485_v56 = vunpack.c.l.bf16 (!%p1428_p11), %v1542_v42  ;;  %v1056_v58 = vadd.f32 (!%p1428_p11), %v2005_v3, %v1033_v43 }
 0x16c   : > { %v1001_v62 = vadd.f32 %v981_v59, %v439_v57  ;;  %v984_v63 = vadd.f32 %v1664_v11, %v1616_v60  ;;  %v1048_v11 = vadd.f32 (!%p1428_p11), %v2005_v3, %v1025_v7  ;;  %v1095_v24 = vadd.f32 (!%p1428_p11), %v1470_v10, %v1047_v5  ;;  %v1544_v60 = vld [vmem:[%s2089_s3 + $0x30] sm:$0xff] (!%p1428_p11)   ;;  %1547 = vst [vmem:[%s2090_s4 + $0x10] sm:$0xff] (!%p1428_p11), %v1512_v55  }
 0x16d   : > { %v1035_v54 = vld [vmem:[#allocation2 + $0x60] sm:$0xff] (!%p1428_p11)  ;;  %v1486_v57 = vunpack.c.h.bf16 (!%p1428_p11), %v1542_v42  ;;  %v1102_v1 = vadd.f32 (!%p1428_p11), %v1485_v56, %v1054_v47 }
 0x16e   : > { %1017 = vst [vmem:[#allocation2 + $0x70] sm:$0xff] %v1001_v62  ;;  %v1002_v0 = vadd.f32 %v984_v63, %v440_v61  ;;  %v1096_v28 = vadd.f32 (!%p1428_p11), %v1473_v16, %v1048_v11  ;;  %v1111_v34 = vmax.f32 (!%p1428_p11), %v1095_v24, 0.0  ;;  %v1116_v61 = vmax.f32 (!%p1428_p11), %v1100_v51, 0.0 }
 0x16f   : > { %v1036_v59 = vld [vmem:[#allocation2 + $0x68] sm:$0xff] (!%p1428_p11)  ;;  %v1117_v62 = vmax.f32 (!%p1428_p11), %v1101_v52, 0.0  ;;  %v1057_v63 = vadd.f32 (!%p1428_p11), %v2005_v3, %v1034_v48  ;;  %v1103_v2 = vadd.f32 (!%p1428_p11), %v1486_v57, %v1055_v53  ;;  %v1058_v5 = vadd.f32 (!%p1428_p11), %v2005_v3, %v1035_v54 }
 0x170   : > { %1018 = vst [vmem:[#allocation2 + $0x78] sm:$0xff] %v1002_v0  ;;  %v1112_v38 = vmax.f32 (!%p1428_p11), %v1096_v28, 0.0  ;;  %v1502_v44 = vpack.c.bf16 (!%p1428_p11), %v1111_v34, %v1110_v33  ;;  %v1489_v0 = vunpack.c.l.bf16 (!%p1428_p11), %v1543_v49  ;;  %v1059_v10 = vadd.f32 (!%p1428_p11), %v2005_v3, %v1036_v59 }
 0x171   : > { %v1517_v8 = vpack.c.bf16 %v1117_v62, %v1116_v61  ;;  %v1493_v11 = vunpack.c.l.bf16 %v1544_v60  ;;  %v1118_v13 = vmax.f32 %v1102_v1, 0.0  ;;  %v1119_v14 = vmax.f32 %v1103_v2, 0.0 }
 0x172   : > { %v1507_v50 = vpack.c.bf16 %v1113_v39, %v1112_v38  ;;  %1503 = vst [vmem:[%s2090_s4] sm:$0xff] %v1502_v44   ;;  %v1104_v9 = vadd.f32 %v1489_v0, %v1056_v58  ;;  %v1105_v15 = vadd.f32 %v1490_v4, %v1057_v63  ;;  %v1494_v16 = vunpack.c.h.bf16 %v1544_v60 }
 0x173   : > { %1548 = vst [vmem:[%s2090_s4 + $0x18] sm:$0xff] %v1517_v8   ;;  %v1106_v18 = vadd.f32 %v1493_v11, %v1058_v5  ;;  %v1522_v21 = vpack.c.bf16 %v1119_v14, %v1118_v13  ;;  %v1497_v24 = vunpack.c.l.bf16 %v1545_v12 }
 0x174   : > { %1546 = vst [vmem:[%s2090_s4 + $0x8] sm:$0xff] %v1507_v50   ;;  %v1120_v17 = vmax.f32 %v1104_v9, 0.0  ;;  %v1121_v22 = vmax.f32 %v1105_v15, 0.0  ;;  %v1107_v23 = vadd.f32 %v1494_v16, %v1059_v10 }
 0x175   : > { %v1037_v6 = vld [vmem:[#allocation2 + $0x70] sm:$0xff]  ;;  %v1122_v25 = vmax.f32 %v1106_v18, 0.0  ;;  %1549 = vst [vmem:[%s2090_s4 + $0x20] sm:$0xff] %v1522_v21  }
 0x176   : > { %v1060_v19 = vadd.f32 %v2005_v3, %v1037_v6  ;;  %v1527_v27 = vpack.c.bf16 %v1121_v22, %v1120_v17  ;;  %v1123_v28 = vmax.f32 %v1107_v23, 0.0 }
 0x177   : > { %v1038_v7 = vld [vmem:[#allocation2 + $0x78] sm:$0xff] }
 0x178   : > { %v1061_v20 = vadd.f32 %v2005_v3, %v1038_v7  ;;  %v1108_v29 = vadd.f32 %v1497_v24, %v1060_v19  ;;  %1550 = vst [vmem:[%s2090_s4 + $0x28] sm:$0xff] %v1527_v27   ;;  %v1532_v31 = vpack.c.bf16 %v1123_v28, %v1122_v25 }
 0x17a   : > { %v1109_v30 = vadd.f32 %v1498_v26, %v1061_v20  ;;  %v1124_v3 = vmax.f32 %v1108_v29, 0.0  ;;  %1551 = vst [vmem:[%s2090_s4 + $0x30] sm:$0xff] %v1532_v31  }
 0x17c   : > { %v1125_v32 = vmax.f32 %v1109_v30, 0.0 }
 0x17e   : > { %v1537_v33 = vpack.c.bf16 %v1125_v32, %v1124_v3 }
 0x180   : > { %1552 = vst [vmem:[%s2090_s4 + $0x38] sm:$0xff] %v1537_v33  }
 0x181 PF: > { %s14_s19 = sadd.s32 1, %s1802_s19   ;;  %s2091_s15 = smov %s1790_s16 }
 0x182   : > { %p11_p12 = scmp.ge.s32.totalorder %s14_s19, 5   ;;  %s2092_s16 = smov %s1865_s23 }
 0x183   : > { %s2093_s17 = smov %s1798_s18  ;;  %s2094_s18 = smov %s2096_s20 }
 0x184   :  { %13 = sbr.rel (!%p11_p12) target bundleno = 3 (0x3), region = 120 }

// kernel: hand_gesture_forward.21
= control target key start
LH: loop header
LB: loop body
LE: loop exit
PB: predicated region body
PF: predicated region fallthrough
CT: control target
= control target key end

     0   :  { %s1260_s12 = smov 0   ;;  %s1262_s13 = smov 0   ;;  %s1402_s0 = inlined_call_operand.vmem [shape: bf16[32,1152], index: 0, kind: input, shape index: {}]   ;;  %s1403_s1 = inlined_call_operand.vmem [shape: bf16[1152,256], index: 1, kind: input, shape index: {}]   ;;  %s1404_s2 = inlined_call_operand.vmem [shape: f32[1,256], index: 2, kind: input, shape index: {}]   ;;  %s1405_s3 = inlined_call_operand.vmem [shape: bf16[32,256], index: 3, kind: output, shape index: {}]  }
   0x1   :  { %s1264_s14 = smov 0   ;;  %s1266_s15 = smov 0  }
   0x2   :  { %s1268_s16 = smov 0  }
   0x3 LB: > { %s25_s17 = sadd.s32 1, %s1232_s15  ;;  %p48_p1 = scmp.ne.s32.totalorder %s1224_s13, %s1220_s12  ;;  %s1236_s16 = sphi %s1268_s16, %s13_s16   ;;  %s1232_s15 = sphi %s1266_s15, %s1409_s15   ;;  %s1228_s14 = sphi %s1264_s14, %s1408_s14   ;;  %s1224_s13 = sphi %s1262_s13, %s1407_s13   ;;  %s1220_s12 = sphi %s1260_s12, %s1406_s12  }
   0x4   : > { %p26_p0 = scmp.ge.s32.totalorder %s25_s17, 3  ;;  %p49_p2 = scmp.eq.s32.totalorder %s1236_s16, 0 }
   0x5   : > { %s41_s19 = sadd.s32 1, %s1224_s13  ;;  %p983_p5 = scmp.ge.s32.totalorder %s1236_s16, 3 }
   0x6   : > { %s1411_s17 = smov (%p26_p0, %s25_s17), 0  ;;  %p50_p3 = por %p49_p2, %p48_p1 }
   0x7   : > { %s37_s18 = ssub.s32 %s1232_s15, %s1411_s17  ;;  %164 = sbr.rel (%p983_p5) target bundleno = 23 (0x17), region = 20 }
   0x8   : > { %p39_p4 = scmp.eq.s32.totalorder %s37_s18, 0 }
   0xa   : > { %s1295_s20 = scalar_select %p39_p4, %s1224_s13, %s41_s19  }
   0xe   : > { %167 = sbr.rel (!%p50_p3) target bundleno = 23 (0x17), region = 24  ;;  %s169_s21 = sand.u32 (%p50_p3), 1, %s1224_s13  }
   0xf   : > { %s1060_s22 = smul.u32 (%p50_p3), 12, %s1232_s15 }
  0x10   : > { %s1074_s23 = smul.u32 (%p50_p3), 48, %s169_s21 }
  0x11   : > { %s177_s26 = scalar_lea.vmem (%p50_p3), %s1402_s0, %s1060_s22 }
  0x12   : > { %v192_v0 = vld [vmem:[%s177_s26] sm:$0xff] (%p50_p3)  ;;  %v196_v2 = vld [vmem:[%s177_s26 + $0x48] sm:$0xff] (%p50_p3)  ;;  %s171_s27 = scalar_lea.vmem (%p50_p3), [#allocation3], %s1074_s23  ;;  %v989_v6 = vld [vmem:[%s177_s26 + $0x50] sm:$0xf] (%p50_p3) }
  0x13   : > { %v194_v1 = vld [vmem:[%s177_s26 + $0x24] sm:$0xff] (%p50_p3)  ;;  %193 = vst [vmem:[%s171_s27] sm:$0xff] (%p50_p3), %v192_v0  ;;  %197 = vst [vmem:[%s171_s27 + $0x18] sm:$0xff] (%p50_p3), %v196_v2  ;;  %v198_v3 = vld [vmem:[%s177_s26 + $0x6c] sm:$0xff] (%p50_p3) }
  0x14   : > { %195 = vst [vmem:[%s171_s27 + $0xc] sm:$0xff] (%p50_p3), %v194_v1  ;;  %v985_v4 = vld [vmem:[%s177_s26 + $0x8] sm:$0xf] (%p50_p3)  ;;  %v987_v5 = vld [vmem:[%s177_s26 + $0x2c] sm:$0xf] (%p50_p3)  ;;  %199 = vst [vmem:[%s171_s27 + $0x24] sm:$0xff] (%p50_p3), %v198_v3 }
  0x15   : > { %986 = vst [vmem:[%s171_s27 + $0x8] sm:$0xf] %v985_v4  ;;  %988 = vst [vmem:[%s171_s27 + $0x14] sm:$0xf] %v987_v5  ;;  %v991_v7 = vld [vmem:[%s177_s26 + $0x74] sm:$0xf] }
  0x16   : > { %990 = vst [vmem:[%s171_s27 + $0x20] sm:$0xf] %v989_v6  ;;  %992 = vst [vmem:[%s171_s27 + $0x2c] sm:$0xf] %v991_v7 }
  0x17 PF: > { %p993_p6 = scmp.ge.s32.totalorder %s1236_s16, 1  ;;  %p234_p7 = scmp.lt.s32.totalorder %s1236_s16, 4 }
  0x19   : > { %p235_p8 = pnand %p993_p6, %p234_p7 }
  0x1a   : > { %s241_s28 = sand.u32 (!%p235_p8), 1, %s1220_s12   ;;  %s285_s29 = smul.u32 (!%p235_p8), 48, %s1228_s14 }
  0x1b   : > { %238 = sbr.rel (%p235_p8) target bundleno = 348 (0x15c), region = 54  ;;  %p996_p10 = scmp.ne.s32.totalorder (!%p235_p8), %s1228_s14, 0 }
  0x1c   : > { %s1075_s30 = smul.u32 (!%p235_p8), 48, %s241_s28  ;;  %p287_p9 = scmp.lt.s32.totalorder (!%p235_p8), %s285_s29, 143 }
  0x1e   : > { %s1312_s8 = scalar_lea.vmem (!%p235_p8), [#allocation3], %s1075_s30 }
  0x22   : > { %s1413_s29 = smov (!%p287_p9, %s285_s29), 143  ;;  %318 = sbr.rel (%p996_p10) target bundleno = 41 (0x29), region = 62 }
  0x23   : > { %s1061_s4 = sshll.u32 %s1413_s29, 3  ;;  %v1238_v8 = vmov (!%p996_p10), 0.0  }
  0x24   : > { %s1310_s7 = scalar_lea.vmem %s1403_s1, %s1061_s4  ;;  %319 = vst [vmem:[#allocation2] sm:$0xff] (!%p996_p10), %v1238_v8  ;;  %320 = vst [vmem:[#allocation2 + $0x8] sm:$0xff] (!%p996_p10), %v1238_v8 }
  0x25   : > { %321 = vst [vmem:[#allocation2 + $0x10] sm:$0xff] (!%p996_p10), %v1238_v8  ;;  %322 = vst [vmem:[#allocation2 + $0x18] sm:$0xff] (!%p996_p10), %v1238_v8 }
  0x26   : > { %323 = vst [vmem:[#allocation2 + $0x20] sm:$0xff] (!%p996_p10), %v1238_v8  ;;  %324 = vst [vmem:[#allocation2 + $0x28] sm:$0xff] (!%p996_p10), %v1238_v8 }
  0x27   : > { %325 = vst [vmem:[#allocation2 + $0x30] sm:$0xff] (!%p996_p10), %v1238_v8  ;;  %326 = vst [vmem:[#allocation2 + $0x38] sm:$0xff] (!%p996_p10), %v1238_v8 }
  0x29 PF: > { %v1118_v9 = vld [vmem:[%s1310_s7 + $0x4] ss:$8 sps:$4 sm:$0xff]   ;;  %v1120_v10 = vld [vmem:[%s1310_s7] ss:$8 sps:$4 sm:$0xff]   ;;  %v1239_v11 = vmov 0   ;;  %p1051_p11 = scmp.ne.s32.totalorder %s1228_s14, 2 }
  0x2a   : > { %748 = vmatprep.mubr.bf16.mxu0 %v1239_v11  ;;  %663 = vmatprep.subr.bf16.mxu1 %v1118_v9  ;;  %v1121_v12 = vld [vmem:[%s1310_s7 + $0x14] ss:$8 sps:$4 sm:$0xff]   ;;  %v1123_v13 = vld [vmem:[%s1310_s7 + $0x10] ss:$8 sps:$4 sm:$0xff]   ;;  %v1124_v14 = vld [vmem:[%s1310_s7 + $0x24] ss:$8 sps:$4 sm:$0xff]  }
  0x2b   : > { %664 = vmatpush1.bf16.msra.mxu1 %v1120_v10  ;;  %v1126_v15 = vld [vmem:[%s1310_s7 + $0x20] ss:$8 sps:$4 sm:$0xff]   ;;  %v1127_v16 = vld [vmem:[%s1310_s7 + $0x34] ss:$8 sps:$4 sm:$0xff]   ;;  %v1129_v17 = vld [vmem:[%s1310_s7 + $0x30] ss:$8 sps:$4 sm:$0xff]  }
  0x2c   : > { %665 = vmatprep.subr.bf16.mxu1 %v1121_v12  ;;  %v1142_v18 = vld [vmem:[%s1310_s7 + $0x104] ss:$8 sps:$4 sm:$0xff]   ;;  %v1144_v19 = vld [vmem:[%s1310_s7 + $0x100] ss:$8 sps:$4 sm:$0xff]   ;;  %v1148_v21 = vld [vmem:[%s1310_s7 + $0x114] ss:$8 sps:$4 sm:$0xff]  }
  0x2d   : > { %v1130_v20 = vld [vmem:[%s1310_s7 + $0x44] ss:$8 sps:$4 sm:$0xff]   ;;  %716 = vmatprep.subr.bf16.mxu0 %v1142_v18  ;;  %v1150_v22 = vld [vmem:[%s1310_s7 + $0x110] ss:$8 sps:$4 sm:$0xff]   ;;  %v1132_v23 = vld [vmem:[%s1310_s7 + $0x40] ss:$8 sps:$4 sm:$0xff]  }
  0x2e   : > { %717 = vmatpush1.bf16.msra.mxu0 %v1144_v19  ;;  %v1133_v24 = vld [vmem:[%s1310_s7 + $0x54] ss:$8 sps:$4 sm:$0xff]   ;;  %v1154_v25 = vld [vmem:[%s1310_s7 + $0x124] ss:$8 sps:$4 sm:$0xff]   ;;  %v1156_v26 = vld [vmem:[%s1310_s7 + $0x120] ss:$8 sps:$4 sm:$0xff]  }
  0x2f   : > { %666 = vmatpush1.bf16.msra.mxu1 %v1123_v13  ;;  %718 = vmatprep.subr.bf16.mxu0 %v1148_v21  ;;  %v1135_v27 = vld [vmem:[%s1310_s7 + $0x50] ss:$8 sps:$4 sm:$0xff]   ;;  %v1160_v28 = vld [vmem:[%s1310_s7 + $0x134] ss:$8 sps:$4 sm:$0xff]   ;;  %v1136_v29 = vld [vmem:[%s1310_s7 + $0x64] ss:$8 sps:$4 sm:$0xff]  }
  0x30   : > { %667 = vmatprep.subr.bf16.mxu1 %v1124_v14  ;;  %v1162_v30 = vld [vmem:[%s1310_s7 + $0x130] ss:$8 sps:$4 sm:$0xff]   ;;  %v1138_v31 = vld [vmem:[%s1310_s7 + $0x60] ss:$8 sps:$4 sm:$0xff]   ;;  %v1166_v32 = vld [vmem:[%s1310_s7 + $0x144] ss:$8 sps:$4 sm:$0xff]  }
  0x31   : > { %v1139_v33 = vld [vmem:[%s1310_s7 + $0x74] ss:$8 sps:$4 sm:$0xff]   ;;  %v1168_v34 = vld [vmem:[%s1310_s7 + $0x140] ss:$8 sps:$4 sm:$0xff]   ;;  %v1141_v35 = vld [vmem:[%s1310_s7 + $0x70] ss:$8 sps:$4 sm:$0xff]  }
  0x32   : > { %719 = vmatpush1.bf16.msra.mxu0 %v1150_v22  ;;  %v1172_v36 = vld [vmem:[%s1310_s7 + $0x154] ss:$8 sps:$4 sm:$0xff]   ;;  %v1145_v37 = vld [vmem:[%s1310_s7 + $0x84] ss:$8 sps:$4 sm:$0xff]   ;;  %v1174_v38 = vld [vmem:[%s1310_s7 + $0x150] ss:$8 sps:$4 sm:$0xff]  }
  0x33   : > { %668 = vmatpush1.bf16.msra.mxu1 %v1126_v15  ;;  %720 = vmatprep.subr.bf16.mxu0 %v1154_v25  ;;  %v1147_v39 = vld [vmem:[%s1310_s7 + $0x80] ss:$8 sps:$4 sm:$0xff]   ;;  %v1178_v40 = vld [vmem:[%s1310_s7 + $0x164] ss:$8 sps:$4 sm:$0xff]   ;;  %v1151_v41 = vld [vmem:[%s1310_s7 + $0x94] ss:$8 sps:$4 sm:$0xff]  }
  0x34   : > { %669 = vmatprep.subr.bf16.mxu1 %v1127_v16  ;;  %v1153_v42 = vld [vmem:[%s1310_s7 + $0x90] ss:$8 sps:$4 sm:$0xff]   ;;  %v1180_v43 = vld [vmem:[%s1310_s7 + $0x160] ss:$8 sps:$4 sm:$0xff]   ;;  %v1184_v45 = vld [vmem:[%s1310_s7 + $0x174] ss:$8 sps:$4 sm:$0xff]  }
  0x35   : > { %v1193_v44 = vld [vmem:[%s1312_s8 + $0x4] ss:$12 sps:$4 sm:$0xff]   ;;  %v1190_v50 = vld [vmem:[%s1312_s8 + $0x8] ss:$12 sps:$4 sm:$0xff]   ;;  %v1194_v55 = vld [vmem:[%s1312_s8 + $0x20] ss:$12 sps:$4 sm:$0xff]  }
  0x36   : > { %721 = vmatpush1.bf16.msra.mxu0 %v1156_v26  ;;  %v1157_v46 = vld [vmem:[%s1310_s7 + $0xa4] ss:$8 sps:$4 sm:$0xff]   ;;  %695 = vmatprep.mubr.bf16.mxu1 %v1193_v44  ;;  %v1186_v47 = vld [vmem:[%s1310_s7 + $0x170] ss:$8 sps:$4 sm:$0xff]   ;;  %v1159_v48 = vld [vmem:[%s1310_s7 + $0xa0] ss:$8 sps:$4 sm:$0xff]  }
  0x37   : > { %670 = vmatpush1.bf16.msra.mxu1 %v1129_v17  ;;  %722 = vmatprep.subr.bf16.mxu0 %v1160_v28  ;;  %v1163_v49 = vld [vmem:[%s1310_s7 + $0xb4] ss:$8 sps:$4 sm:$0xff]   ;;  %v1165_v51 = vld [vmem:[%s1310_s7 + $0xb0] ss:$8 sps:$4 sm:$0xff]   ;;  %v1169_v52 = vld [vmem:[%s1310_s7 + $0xc4] ss:$8 sps:$4 sm:$0xff]  }
  0x38   : > { %671 = vmatprep.subr.bf16.mxu1 %v1130_v20  ;;  %v1171_v53 = vld [vmem:[%s1310_s7 + $0xc0] ss:$8 sps:$4 sm:$0xff]   ;;  %v1175_v54 = vld [vmem:[%s1310_s7 + $0xd4] ss:$8 sps:$4 sm:$0xff]   ;;  %v1177_v56 = vld [vmem:[%s1310_s7 + $0xd0] ss:$8 sps:$4 sm:$0xff]  }
  0x39   : > { %v1181_v57 = vld [vmem:[%s1310_s7 + $0xe4] ss:$8 sps:$4 sm:$0xff]   ;;  %v1183_v58 = vld [vmem:[%s1310_s7 + $0xe0] ss:$8 sps:$4 sm:$0xff]   ;;  %v1187_v59 = vld [vmem:[%s1310_s7 + $0xf4] ss:$8 sps:$4 sm:$0xff]  }
  0x3a   : > { %723 = vmatpush1.bf16.msra.mxu0 %v1162_v30  ;;  %v1189_v60 = vld [vmem:[%s1310_s7 + $0xf0] ss:$8 sps:$4 sm:$0xff]   ;;  %v327_v8 = vld [vmem:[#allocation2] sm:$0xff] }
  0x3b   : > { %672 = vmatpush1.bf16.msra.mxu1 %v1132_v23  ;;  %724 = vmatprep.subr.bf16.mxu0 %v1166_v32  ;;  %v1191_v61 = vld [vmem:[%s1312_s8] ss:$12 sps:$4 sm:$0xff]   ;;  %v1195_v62 = vld [vmem:[%s1312_s8 + $0x1c] ss:$12 sps:$4 sm:$0xff]   ;;  %v1197_v63 = vld [vmem:[%s1312_s8 + $0x18] ss:$12 sps:$4 sm:$0xff]  }
  0x3c   : > { %673 = vmatprep.subr.bf16.mxu1 %v1133_v24  ;;  %v329_v14 = vld [vmem:[#allocation2 + $0x10] sm:$0xff]  ;;  %v330_v18 = vld [vmem:[#allocation2 + $0x18] sm:$0xff]  ;;  %v331_v24 = vld [vmem:[#allocation2 + $0x20] sm:$0xff] }
  0x3d   : > { %v333_v30 = vld [vmem:[#allocation2 + $0x30] sm:$0xff] }
  0x3e   : > { %725 = vmatpush1.bf16.msra.mxu0 %v1168_v34  ;;  %v334_v34 = vld [vmem:[#allocation2 + $0x38] sm:$0xff] }
  0x3f   : > { %674 = vmatpush1.bf16.msra.mxu1 %v1135_v27  ;;  %726 = vmatprep.subr.bf16.mxu0 %v1172_v36  ;;  %v332_v27 = vld [vmem:[#allocation2 + $0x28] sm:$0xff] }
  0x40   : > { %675 = vmatprep.subr.bf16.mxu1 %v1136_v29 }
  0x42   : > { %727 = vmatpush1.bf16.msra.mxu0 %v1174_v38 }
  0x43   : > { %676 = vmatpush1.bf16.msra.mxu1 %v1138_v31  ;;  %728 = vmatprep.subr.bf16.mxu0 %v1178_v40  ;;  %v799_v40 = vlaneseq (!%p1051_p11) }
  0x44   : > { %677 = vmatprep.subr.bf16.mxu1 %v1139_v33 }
  0x46   : > { %729 = vmatpush1.bf16.msra.mxu0 %v1180_v43 }
  0x47   : > { %678 = vmatpush1.bf16.msra.mxu1 %v1141_v35  ;;  %730 = vmatprep.subr.bf16.mxu0 %v1184_v45 }
  0x48   : > { %679 = vmatprep.subr.bf16.mxu1 %v1145_v37 }
  0x4a   : > { %731 = vmatpush1.bf16.msra.mxu0 %v1186_v47 }
  0x4b   : > { %680 = vmatpush1.bf16.msra.mxu1 %v1147_v39 }
  0x4c   : > { %681 = vmatprep.subr.bf16.mxu1 %v1151_v41  ;;  %v800_v41 = vshrl.u32 (!%p1051_p11), %v799_v40, 7 }
  0x4d   : > { %749 = vmatmul.mubr.bf16.vlgmr.msra.gmra.mrb[0].mxu0 %v1190_v50 }
  0x4e   : > { %758 = vmatprep.mubr.bf16.mxu0 %v1239_v11  ;;  %v328_v11 = vld [vmem:[#allocation2 + $0x8] sm:$0xff]  ;;  %v801_v45 = vsub.s32 (!%p1051_p11), 0, %v800_v41 }
  0x4f   : > { %682 = vmatpush1.bf16.msra.mxu1 %v1153_v42  ;;  %v797_v42 = vld [vmem:[%s1404_s2] sm:$0x3] (!%p1051_p11) }
  0x50   : > { %683 = vmatprep.subr.bf16.mxu1 %v1157_v46  ;;  %v805_v46 = vsub.s32 (!%p1051_p11), 1, %v800_v41  ;;  %v802_v50 = vrot.slane (!%p1051_p11), %v797_v42, %v801_v45 }
  0x53   : > { %684 = vmatpush1.bf16.msra.mxu1 %v1159_v48 }
  0x54   : > { %685 = vmatprep.subr.bf16.mxu1 %v1163_v49 }
  0x55   : > { %759 = vmatmul.mubr.bf16.gmra.mrb[4].mxu0 %v1194_v55 }
  0x57   : > { %686 = vmatpush1.bf16.msra.mxu1 %v1165_v51  ;;  %v806_v51 = vrot.slane (!%p1051_p11), %v797_v42, %v805_v46 }
  0x58   : > { %687 = vmatprep.subr.bf16.mxu1 %v1169_v52 }
  0x5b   : > { %688 = vmatpush1.bf16.msra.mxu1 %v1171_v53 }
  0x5c   : > { %689 = vmatprep.subr.bf16.mxu1 %v1175_v54 }
  0x5f   : > { %690 = vmatpush1.bf16.msra.mxu1 %v1177_v56 }
  0x60   : > { %691 = vmatprep.subr.bf16.mxu1 %v1181_v57 }
  0x63   : > { %692 = vmatpush1.bf16.msra.mxu1 %v1183_v58 }
  0x64   : > { %693 = vmatprep.subr.bf16.mxu1 %v1187_v59 }
  0x67   : > { %694 = vmatpush1.bf16.msra.mxu1 %v1189_v60 }
  0x6a   : > { %696 = vmatmul.mubr.bf16.vlgmr.msra.gmra.mrb[0].mxu1 %v1191_v61 }
  0x6b   : > { %705 = vmatprep.mubr.bf16.mxu1 %v1195_v62 }
  0x72   : > { %706 = vmatmul.mubr.bf16.gmra.mrb[4].mxu1 %v1197_v63 }
 0x120   : > { %v750_v0 = vpop.f32.mrb[0].mxu0 }
 0x121   : > { %v752_v1 = vpop.f32.mrb[1].mxu0 }
 0x122   : > { %v754_v2 = vpop.f32.mrb[2].mxu0 }
 0x123   : > { %v756_v3 = vpop.f32.mrb[3].mxu0 }
 0x128   : > { %v760_v4 = vpop.f32.mrb[4].mxu0 }
 0x129   : > { %v762_v5 = vpop.f32.mrb[5].mxu0 }
 0x12a   : > { %v764_v6 = vpop.f32.mrb[6].mxu0 }
 0x12b   : > { %v766_v7 = vpop.f32.mrb[7].mxu0 }
 0x13d   : > { %v697_v9 = vpop.f32.mrb[0].mxu1 }
 0x13e   : > { %v751_v10 = vadd.f32 %v750_v0, %v697_v9  ;;  %v699_v12 = vpop.f32.mrb[1].mxu1 }
 0x13f   : > { %v753_v13 = vadd.f32 %v752_v1, %v699_v12  ;;  %v701_v15 = vpop.f32.mrb[2].mxu1 }
 0x140   : > { %v769_v16 = vadd.f32 %v751_v10, %v327_v8  ;;  %v755_v17 = vadd.f32 %v754_v2, %v701_v15  ;;  %v703_v19 = vpop.f32.mrb[3].mxu1 }
 0x141   : > { %v770_v20 = vadd.f32 %v753_v13, %v328_v11  ;;  %v757_v21 = vadd.f32 %v756_v3, %v703_v19 }
 0x142   : > { %777 = vst [vmem:[#allocation2] sm:$0xff] %v769_v16  ;;  %v771_v22 = vadd.f32 %v755_v17, %v329_v14 }
 0x143   : > { %778 = vst [vmem:[#allocation2 + $0x8] sm:$0xff] %v770_v20  ;;  %v772_v23 = vadd.f32 %v757_v21, %v330_v18 }
 0x144   : > { %779 = vst [vmem:[#allocation2 + $0x10] sm:$0xff] %v771_v22 }
 0x145   : > { %780 = vst [vmem:[#allocation2 + $0x18] sm:$0xff] %v772_v23  ;;  %v707_v25 = vpop.f32.mrb[4].mxu1 }
 0x146   : > { %v761_v26 = vadd.f32 %v760_v4, %v707_v25  ;;  %v709_v28 = vpop.f32.mrb[5].mxu1 }
 0x147   : > { %v763_v29 = vadd.f32 %v762_v5, %v709_v28  ;;  %v711_v31 = vpop.f32.mrb[6].mxu1  ;;  %788 = sbr.rel (%p1051_p11) target bundleno = 348 (0x15c), region = 66 }
 0x148   : > { %v773_v32 = vadd.f32 %v761_v26, %v331_v24  ;;  %v765_v33 = vadd.f32 %v764_v6, %v711_v31  ;;  %v713_v35 = vpop.f32.mrb[7].mxu1 }
 0x149   : > { %v774_v36 = vadd.f32 %v763_v29, %v332_v27  ;;  %v767_v37 = vadd.f32 %v766_v7, %v713_v35  ;;  %v789_v43 = vld [vmem:[#allocation2] sm:$0xff] (!%p1051_p11) }
 0x14a   : > { %781 = vst [vmem:[#allocation2 + $0x20] sm:$0xff] %v773_v32  ;;  %v775_v38 = vadd.f32 %v765_v33, %v333_v30  ;;  %v790_v44 = vld [vmem:[#allocation2 + $0x8] sm:$0xff] (!%p1051_p11)  ;;  %v809_v55 = vadd.f32 (!%p1051_p11), %v802_v50, %v789_v43 }
 0x14b   : > { %782 = vst [vmem:[#allocation2 + $0x28] sm:$0xff] %v774_v36  ;;  %v776_v39 = vadd.f32 %v767_v37, %v334_v34  ;;  %v791_v47 = vld [vmem:[#allocation2 + $0x10] sm:$0xff] (!%p1051_p11)  ;;  %v810_v56 = vadd.f32 (!%p1051_p11), %v806_v51, %v790_v44 }
 0x14c   : > { %783 = vst [vmem:[#allocation2 + $0x30] sm:$0xff] %v775_v38  ;;  %v792_v48 = vld [vmem:[#allocation2 + $0x18] sm:$0xff] (!%p1051_p11)  ;;  %v811_v57 = vadd.f32 (!%p1051_p11), %v802_v50, %v791_v47  ;;  %v817_v63 = vmax.f32 (!%p1051_p11), %v809_v55, 0.0 }
 0x14d   : > { %784 = vst [vmem:[#allocation2 + $0x38] sm:$0xff] %v776_v39  ;;  %v812_v58 = vadd.f32 (!%p1051_p11), %v806_v51, %v792_v48  ;;  %v818_v0 = vmax.f32 (!%p1051_p11), %v810_v56, 0.0 }
 0x14e   : > { %v819_v1 = vmax.f32 %v811_v57, 0.0 }
 0x14f   : > { %v820_v2 = vmax.f32 %v812_v58, 0.0  ;;  %v1062_v7 = vpack.c.bf16 %v818_v0, %v817_v63 }
 0x151   : > { %v793_v49 = vld [vmem:[#allocation2 + $0x20] sm:$0xff]  ;;  %v1063_v8 = vpack.c.bf16 %v820_v2, %v819_v1  ;;  %849 = vst [vmem:[%s1405_s3] sm:$0xff] %v1062_v7 }
 0x152   : > { %v794_v52 = vld [vmem:[#allocation2 + $0x28] sm:$0xff]  ;;  %v813_v59 = vadd.f32 %v802_v50, %v793_v49 }
 0x153   : > { %v795_v53 = vld [vmem:[#allocation2 + $0x30] sm:$0xff]  ;;  %v814_v60 = vadd.f32 %v806_v51, %v794_v52  ;;  %850 = vst [vmem:[%s1405_s3 + $0x8] sm:$0xff] %v1063_v8 }
 0x154   : > { %v796_v54 = vld [vmem:[#allocation2 + $0x38] sm:$0xff]  ;;  %v815_v61 = vadd.f32 %v802_v50, %v795_v53  ;;  %v821_v3 = vmax.f32 %v813_v59, 0.0 }
 0x155   : > { %v816_v62 = vadd.f32 %v806_v51, %v796_v54  ;;  %v822_v4 = vmax.f32 %v814_v60, 0.0 }
 0x156   : > { %v823_v5 = vmax.f32 %v815_v61, 0.0 }
 0x157   : > { %v824_v6 = vmax.f32 %v816_v62, 0.0  ;;  %v1064_v9 = vpack.c.bf16 %v822_v4, %v821_v3 }
 0x159   : > { %v1065_v10 = vpack.c.bf16 %v824_v6, %v823_v5  ;;  %851 = vst [vmem:[%s1405_s3 + $0x10] sm:$0xff] %v1064_v9 }
 0x15b   : > { %852 = vst [vmem:[%s1405_s3 + $0x18] sm:$0xff] %v1065_v10 }
 0x15c PF: > { %s13_s16 = sadd.s32 1, %s1236_s16   ;;  %s1406_s12 = smov %s1224_s13 }
 0x15d   : > { %p10_p12 = scmp.ge.s32.totalorder %s13_s16, 5   ;;  %s1407_s13 = smov %s1295_s20 }
 0x15e   : > { %s1408_s14 = smov %s1232_s15  ;;  %s1409_s15 = smov %s1411_s17 }
 0x15f   :  { %12 = sbr.rel (!%p10_p12) target bundleno = 3 (0x3), region = 113 }

// kernel: hand_gesture_forward.22
= control target key start
LH: loop header
LB: loop body
LE: loop exit
PB: predicated region body
PF: predicated region fallthrough
CT: control target
= control target key end

     0   :  { %v348_v1 = vmov 0   ;;  %v229_v19 = vlaneseq  ;;  %s438_s1 = inlined_call_operand.vmem [shape: bf16[128,256], index: 1, kind: input, shape index: {}]   ;;  %s439_s0 = inlined_call_operand.vmem [shape: bf16[32,128], index: 0, kind: input, shape index: {}]   ;;  %s440_s2 = inlined_call_operand.vmem [shape: f32[1,256], index: 2, kind: input, shape index: {}]   ;;  %s441_s3 = inlined_call_operand.vmem [shape: bf16[32,256], index: 3, kind: output, shape index: {}]  }
   0x1   :  { %v322_v0 = vld [vmem:[%s438_s1 + $0x4] ss:$8 sps:$4 sm:$0xff]   ;;  %179 = vmatprep.mubr.bf16.mxu0 %v348_v1  ;;  %189 = vmatprep.mubr.bf16.mxu1 %v348_v1  ;;  %v324_v2 = vld [vmem:[%s438_s1] ss:$8 sps:$4 sm:$0xff]   ;;  %v325_v3 = vld [vmem:[%s438_s1 + $0x14] ss:$8 sps:$4 sm:$0xff]  }
   0x2   :  { %147 = vmatprep.subr.bf16.mxu0 %v322_v0  ;;  %305 = vmatprep.subr.bf16.mxu1 %v322_v0  ;;  %v327_v4 = vld [vmem:[%s438_s1 + $0x10] ss:$8 sps:$4 sm:$0xff]   ;;  %v328_v5 = vld [vmem:[%s438_s1 + $0x24] ss:$8 sps:$4 sm:$0xff]   ;;  %v330_v6 = vld [vmem:[%s438_s1 + $0x20] ss:$8 sps:$4 sm:$0xff]  }
   0x3   :  { %148 = vmatpush1.bf16.msra.mxu0 %v324_v2  ;;  %313 = vmatpush1.bf16.msra.mxu1 %v324_v2  ;;  %v331_v7 = vld [vmem:[%s438_s1 + $0x34] ss:$8 sps:$4 sm:$0xff]   ;;  %v333_v8 = vld [vmem:[%s438_s1 + $0x30] ss:$8 sps:$4 sm:$0xff]   ;;  %v334_v9 = vld [vmem:[%s438_s1 + $0x44] ss:$8 sps:$4 sm:$0xff]  }
   0x4   :  { %149 = vmatprep.subr.bf16.mxu0 %v325_v3  ;;  %306 = vmatprep.subr.bf16.mxu1 %v325_v3  ;;  %v336_v10 = vld [vmem:[%s438_s1 + $0x40] ss:$8 sps:$4 sm:$0xff]   ;;  %v337_v11 = vld [vmem:[%s438_s1 + $0x54] ss:$8 sps:$4 sm:$0xff]   ;;  %v339_v12 = vld [vmem:[%s438_s1 + $0x50] ss:$8 sps:$4 sm:$0xff]  }
   0x5   :  { %v340_v13 = vld [vmem:[%s438_s1 + $0x64] ss:$8 sps:$4 sm:$0xff]   ;;  %v342_v14 = vld [vmem:[%s438_s1 + $0x60] ss:$8 sps:$4 sm:$0xff]   ;;  %v343_v15 = vld [vmem:[%s438_s1 + $0x74] ss:$8 sps:$4 sm:$0xff]  }
   0x6   :  { %v345_v16 = vld [vmem:[%s438_s1 + $0x70] ss:$8 sps:$4 sm:$0xff]   ;;  %v346_v17 = vld [vmem:[%s439_s0] sm:$0xff]   ;;  %v347_v18 = vld [vmem:[%s439_s0 + $0x8] sm:$0xff]   ;;  %v230_v20 = vshrl.u32 %v229_v19, 7 }
   0x7   :  { %150 = vmatpush1.bf16.msra.mxu0 %v327_v4  ;;  %314 = vmatpush1.bf16.msra.mxu1 %v327_v4  ;;  %v227_v22 = vld [vmem:[%s440_s2] sm:$0x3] }
   0x8   :  { %151 = vmatprep.subr.bf16.mxu0 %v328_v5  ;;  %307 = vmatprep.subr.bf16.mxu1 %v328_v5  ;;  %v231_v21 = vsub.s32 0, %v230_v20  ;;  %v235_v23 = vsub.s32 1, %v230_v20 }
   0xa   :  { %v232_v24 = vrot.slane %v227_v22, %v231_v21  ;;  %v236_v25 = vrot.slane %v227_v22, %v235_v23 }
   0xb   :  { %152 = vmatpush1.bf16.msra.mxu0 %v330_v6  ;;  %315 = vmatpush1.bf16.msra.mxu1 %v330_v6 }
   0xc   :  { %153 = vmatprep.subr.bf16.mxu0 %v331_v7  ;;  %308 = vmatprep.subr.bf16.mxu1 %v331_v7 }
   0xf   :  { %154 = vmatpush1.bf16.msra.mxu0 %v333_v8  ;;  %316 = vmatpush1.bf16.msra.mxu1 %v333_v8 }
  0x10   :  { %155 = vmatprep.subr.bf16.mxu0 %v334_v9  ;;  %309 = vmatprep.subr.bf16.mxu1 %v334_v9 }
  0x13   :  { %156 = vmatpush1.bf16.msra.mxu0 %v336_v10  ;;  %317 = vmatpush1.bf16.msra.mxu1 %v336_v10 }
  0x14   :  { %157 = vmatprep.subr.bf16.mxu0 %v337_v11  ;;  %310 = vmatprep.subr.bf16.mxu1 %v337_v11 }
  0x17   :  { %158 = vmatpush1.bf16.msra.mxu0 %v339_v12  ;;  %318 = vmatpush1.bf16.msra.mxu1 %v339_v12 }
  0x18   :  { %159 = vmatprep.subr.bf16.mxu0 %v340_v13  ;;  %311 = vmatprep.subr.bf16.mxu1 %v340_v13 }
  0x1b   :  { %160 = vmatpush1.bf16.msra.mxu0 %v342_v14  ;;  %319 = vmatpush1.bf16.msra.mxu1 %v342_v14 }
  0x1c   :  { %161 = vmatprep.subr.bf16.mxu0 %v343_v15  ;;  %312 = vmatprep.subr.bf16.mxu1 %v343_v15 }
  0x1f   :  { %162 = vmatpush1.bf16.msra.mxu0 %v345_v16  ;;  %320 = vmatpush1.bf16.msra.mxu1 %v345_v16 }
  0x22   :  { %180 = vmatmul.mubr.bf16.vlgmr.msra.gmra.mrb[0].mxu0 %v346_v17  ;;  %190 = vmatmul.mubr.bf16.vlgmr.msra.gmra.mrb[0].mxu1 %v347_v18 }
  0xf5   :  { %v181_v26 = vpop.f32.mrb[0].mxu0  ;;  %v191_v27 = vpop.f32.mrb[0].mxu1 }
  0xf6   :  { %v239_v28 = vadd.f32 %v232_v24, %v181_v26  ;;  %v243_v29 = vadd.f32 %v232_v24, %v191_v27  ;;  %v183_v30 = vpop.f32.mrb[1].mxu0  ;;  %v193_v31 = vpop.f32.mrb[1].mxu1 }
  0xf7   :  { %v240_v32 = vadd.f32 %v236_v25, %v183_v30  ;;  %v244_v33 = vadd.f32 %v236_v25, %v193_v31  ;;  %v185_v34 = vpop.f32.mrb[2].mxu0  ;;  %v195_v35 = vpop.f32.mrb[2].mxu1 }
  0xf8   :  { %v241_v36 = vadd.f32 %v232_v24, %v185_v34  ;;  %v245_v37 = vadd.f32 %v232_v24, %v195_v35  ;;  %v187_v38 = vpop.f32.mrb[3].mxu0  ;;  %v197_v39 = vpop.f32.mrb[3].mxu1 }
  0xf9   :  { %v301_v40 = vpack.c.bf16 %v240_v32, %v239_v28  ;;  %v303_v41 = vpack.c.bf16 %v244_v33, %v243_v29  ;;  %v242_v42 = vadd.f32 %v236_v25, %v187_v38  ;;  %v246_v43 = vadd.f32 %v236_v25, %v197_v39 }
  0xfb   :  { %271 = vst [vmem:[%s441_s3] sm:$0xff] %v301_v40  ;;  %273 = vst [vmem:[%s441_s3 + $0x10] sm:$0xff] %v303_v41  ;;  %v302_v44 = vpack.c.bf16 %v242_v42, %v241_v36  ;;  %v304_v45 = vpack.c.bf16 %v246_v43, %v245_v37 }
  0xfd   :  { %272 = vst [vmem:[%s441_s3 + $0x8] sm:$0xff] %v302_v44  ;;  %274 = vst [vmem:[%s441_s3 + $0x18] sm:$0xff] %v304_v45 }

// kernel: hand_gesture_forward.23
= control target key start
LH: loop header
LB: loop body
LE: loop exit
PB: predicated region body
PF: predicated region fallthrough
CT: control target
= control target key end

     0   :  { %s1375_s15 = smov 0   ;;  %s1377_s16 = smov 0   ;;  %s1529_s0 = inlined_call_operand.vmem [shape: bf16[32,2304], index: 0, kind: input, shape index: {}]   ;;  %s1530_s1 = inlined_call_operand.vmem [shape: bf16[2304,256], index: 1, kind: input, shape index: {}]   ;;  %s1531_s2 = inlined_call_operand.vmem [shape: f32[1,256], index: 2, kind: input, shape index: {}]   ;;  %s1532_s3 = inlined_call_operand.vmem [shape: bf16[32,256], index: 3, kind: input, shape index: {}]   ;;  %s1533_s4 = inlined_call_operand.vmem [shape: bf16[32,256], index: 4, kind: output, shape index: {}]  }
   0x1   :  { %s1379_s17 = smov 0   ;;  %s1381_s18 = smov 0  }
   0x2   :  { %s1383_s19 = smov 0  }
   0x3 LB: > { %s26_s20 = sadd.s32 1, %s1342_s18  ;;  %p49_p1 = scmp.ne.s32.totalorder %s1334_s16, %s1330_s15  ;;  %s1346_s19 = sphi %s1383_s19, %s14_s19   ;;  %s1342_s18 = sphi %s1381_s18, %s1537_s18   ;;  %s1338_s17 = sphi %s1379_s17, %s1536_s17   ;;  %s1334_s16 = sphi %s1377_s16, %s1535_s16   ;;  %s1330_s15 = sphi %s1375_s15, %s1534_s15  }
   0x4   : > { %p27_p0 = scmp.ge.s32.totalorder %s26_s20, 6  ;;  %p50_p2 = scmp.eq.s32.totalorder %s1346_s19, 0 }
   0x5   : > { %s42_s22 = sadd.s32 1, %s1334_s16  ;;  %p1093_p5 = scmp.ge.s32.totalorder %s1346_s19, 6 }
   0x6   : > { %s1539_s20 = smov (%p27_p0, %s26_s20), 0  ;;  %p51_p3 = por %p50_p2, %p49_p1 }
   0x7   : > { %s38_s21 = ssub.s32 %s1342_s18, %s1539_s20  ;;  %208 = sbr.rel (%p1093_p5) target bundleno = 23 (0x17), region = 24 }
   0x8   : > { %p40_p4 = scmp.eq.s32.totalorder %s38_s21, 0 }
   0xa   : > { %s1410_s23 = scalar_select %p40_p4, %s1334_s16, %s42_s22  }
   0xe   : > { %211 = sbr.rel (!%p51_p3) target bundleno = 23 (0x17), region = 28  ;;  %s213_s24 = sand.u32 (%p51_p3), 1, %s1334_s16  }
   0xf   : > { %s1170_s25 = smul.u32 (%p51_p3), 12, %s1342_s18 }
  0x10   : > { %s1184_s26 = smul.u32 (%p51_p3), 48, %s213_s24 }
  0x11   : > { %s221_s29 = scalar_lea.vmem (%p51_p3), %s1529_s0, %s1170_s25 }
  0x12   : > { %v236_v0 = vld [vmem:[%s221_s29] sm:$0xff] (%p51_p3)  ;;  %v238_v1 = vld [vmem:[%s221_s29 + $0x48] sm:$0xff] (%p51_p3)  ;;  %v240_v2 = vld [vmem:[%s221_s29 + $0x90] sm:$0xff] (%p51_p3)  ;;  %s215_s30 = scalar_lea.vmem (%p51_p3), [#allocation3], %s1184_s26 }
  0x13   : > { %237 = vst [vmem:[%s215_s30] sm:$0xff] (%p51_p3), %v236_v0  ;;  %239 = vst [vmem:[%s215_s30 + $0xc] sm:$0xff] (%p51_p3), %v238_v1  ;;  %v242_v3 = vld [vmem:[%s221_s29 + $0xd8] sm:$0xff] (%p51_p3)  ;;  %v1095_v4 = vld [vmem:[%s221_s29 + $0x8] sm:$0xf] (%p51_p3) }
  0x14   : > { %241 = vst [vmem:[%s215_s30 + $0x18] sm:$0xff] (%p51_p3), %v240_v2  ;;  %v1097_v5 = vld [vmem:[%s221_s29 + $0x50] sm:$0xf] (%p51_p3)  ;;  %243 = vst [vmem:[%s215_s30 + $0x24] sm:$0xff] (%p51_p3), %v242_v3  ;;  %v1099_v6 = vld [vmem:[%s221_s29 + $0x98] sm:$0xf] (%p51_p3) }
  0x15   : > { %1096 = vst [vmem:[%s215_s30 + $0x8] sm:$0xf] %v1095_v4  ;;  %1098 = vst [vmem:[%s215_s30 + $0x14] sm:$0xf] %v1097_v5  ;;  %v1101_v7 = vld [vmem:[%s221_s29 + $0xe0] sm:$0xf] }
  0x16   : > { %1100 = vst [vmem:[%s215_s30 + $0x20] sm:$0xf] %v1099_v6  ;;  %1102 = vst [vmem:[%s215_s30 + $0x2c] sm:$0xf] %v1101_v7 }
  0x17 PF: > { %p1103_p6 = scmp.ge.s32.totalorder %s1346_s19, 1  ;;  %p278_p7 = scmp.lt.s32.totalorder %s1346_s19, 7 }
  0x19   : > { %p279_p8 = pnand %p1103_p6, %p278_p7 }
  0x1a   : > { %s285_s5 = sand.u32 (!%p279_p8), 1, %s1330_s15   ;;  %s341_s6 = smul.u32 (!%p279_p8), 48, %s1338_s17 }
  0x1b   : > { %282 = sbr.rel (%p279_p8) target bundleno = 350 (0x15e), region = 58  ;;  %p1106_p10 = scmp.ne.s32.totalorder (!%p279_p8), %s1338_s17, 0 }
  0x1c   : > { %s1185_s7 = smul.u32 (!%p279_p8), 48, %s285_s5  ;;  %p343_p9 = scmp.lt.s32.totalorder (!%p279_p8), %s341_s6, 287 }
  0x1e   : > { %s1427_s12 = scalar_lea.vmem (!%p279_p8), [#allocation3], %s1185_s7 }
  0x22   : > { %s1541_s6 = smov (!%p343_p9, %s341_s6), 287  ;;  %386 = sbr.rel (%p1106_p10) target bundleno = 41 (0x29), region = 66 }
  0x23   : > { %s1171_s8 = sshll.u32 %s1541_s6, 3  ;;  %v1348_v8 = vmov (!%p1106_p10), 0.0  }
  0x24   : > { %s1425_s11 = scalar_lea.vmem %s1530_s1, %s1171_s8  ;;  %387 = vst [vmem:[#allocation2] sm:$0xff] (!%p1106_p10), %v1348_v8  ;;  %388 = vst [vmem:[#allocation2 + $0x8] sm:$0xff] (!%p1106_p10), %v1348_v8 }
  0x25   : > { %389 = vst [vmem:[#allocation2 + $0x10] sm:$0xff] (!%p1106_p10), %v1348_v8  ;;  %390 = vst [vmem:[#allocation2 + $0x18] sm:$0xff] (!%p1106_p10), %v1348_v8 }
  0x26   : > { %391 = vst [vmem:[#allocation2 + $0x20] sm:$0xff] (!%p1106_p10), %v1348_v8  ;;  %392 = vst [vmem:[#allocation2 + $0x28] sm:$0xff] (!%p1106_p10), %v1348_v8 }
  0x27   : > { %393 = vst [vmem:[#allocation2 + $0x30] sm:$0xff] (!%p1106_p10), %v1348_v8  ;;  %394 = vst [vmem:[#allocation2 + $0x38] sm:$0xff] (!%p1106_p10), %v1348_v8 }
  0x29 PF: > { %v1228_v9 = vld [vmem:[%s1425_s11 + $0x4] ss:$8 sps:$4 sm:$0xff]   ;;  %v1230_v10 = vld [vmem:[%s1425_s11] ss:$8 sps:$4 sm:$0xff]   ;;  %v1349_v11 = vmov 0   ;;  %p1161_p11 = scmp.ne.s32.totalorder %s1338_s17, 5 }
  0x2a   : > { %816 = vmatprep.mubr.bf16.mxu0 %v1349_v11  ;;  %731 = vmatprep.subr.bf16.mxu1 %v1228_v9  ;;  %v1231_v12 = vld [vmem:[%s1425_s11 + $0x14] ss:$8 sps:$4 sm:$0xff]   ;;  %v1233_v13 = vld [vmem:[%s1425_s11 + $0x10] ss:$8 sps:$4 sm:$0xff]   ;;  %v1234_v14 = vld [vmem:[%s1425_s11 + $0x24] ss:$8 sps:$4 sm:$0xff]  }
  0x2b   : > { %732 = vmatpush1.bf16.msra.mxu1 %v1230_v10  ;;  %v1236_v15 = vld [vmem:[%s1425_s11 + $0x20] ss:$8 sps:$4 sm:$0xff]   ;;  %v1237_v16 = vld [vmem:[%s1425_s11 + $0x34] ss:$8 sps:$4 sm:$0xff]   ;;  %v1239_v17 = vld [vmem:[%s1425_s11 + $0x30] ss:$8 sps:$4 sm:$0xff]  }
  0x2c   : > { %733 = vmatprep.subr.bf16.mxu1 %v1231_v12  ;;  %v1252_v18 = vld [vmem:[%s1425_s11 + $0x104] ss:$8 sps:$4 sm:$0xff]   ;;  %v1254_v19 = vld [vmem:[%s1425_s11 + $0x100] ss:$8 sps:$4 sm:$0xff]   ;;  %v1258_v21 = vld [vmem:[%s1425_s11 + $0x114] ss:$8 sps:$4 sm:$0xff]  }
  0x2d   : > { %v1240_v20 = vld [vmem:[%s1425_s11 + $0x44] ss:$8 sps:$4 sm:$0xff]   ;;  %784 = vmatprep.subr.bf16.mxu0 %v1252_v18  ;;  %v1260_v22 = vld [vmem:[%s1425_s11 + $0x110] ss:$8 sps:$4 sm:$0xff]   ;;  %v1242_v23 = vld [vmem:[%s1425_s11 + $0x40] ss:$8 sps:$4 sm:$0xff]  }
  0x2e   : > { %785 = vmatpush1.bf16.msra.mxu0 %v1254_v19  ;;  %v1243_v24 = vld [vmem:[%s1425_s11 + $0x54] ss:$8 sps:$4 sm:$0xff]   ;;  %v1264_v25 = vld [vmem:[%s1425_s11 + $0x124] ss:$8 sps:$4 sm:$0xff]   ;;  %v1266_v26 = vld [vmem:[%s1425_s11 + $0x120] ss:$8 sps:$4 sm:$0xff]  }
  0x2f   : > { %734 = vmatpush1.bf16.msra.mxu1 %v1233_v13  ;;  %786 = vmatprep.subr.bf16.mxu0 %v1258_v21  ;;  %v1245_v27 = vld [vmem:[%s1425_s11 + $0x50] ss:$8 sps:$4 sm:$0xff]   ;;  %v1270_v28 = vld [vmem:[%s1425_s11 + $0x134] ss:$8 sps:$4 sm:$0xff]   ;;  %v1246_v29 = vld [vmem:[%s1425_s11 + $0x64] ss:$8 sps:$4 sm:$0xff]  }
  0x30   : > { %735 = vmatprep.subr.bf16.mxu1 %v1234_v14  ;;  %v1272_v30 = vld [vmem:[%s1425_s11 + $0x130] ss:$8 sps:$4 sm:$0xff]   ;;  %v1248_v31 = vld [vmem:[%s1425_s11 + $0x60] ss:$8 sps:$4 sm:$0xff]   ;;  %v1276_v32 = vld [vmem:[%s1425_s11 + $0x144] ss:$8 sps:$4 sm:$0xff]  }
  0x31   : > { %v1249_v33 = vld [vmem:[%s1425_s11 + $0x74] ss:$8 sps:$4 sm:$0xff]   ;;  %v1278_v34 = vld [vmem:[%s1425_s11 + $0x140] ss:$8 sps:$4 sm:$0xff]   ;;  %v1251_v35 = vld [vmem:[%s1425_s11 + $0x70] ss:$8 sps:$4 sm:$0xff]  }
  0x32   : > { %787 = vmatpush1.bf16.msra.mxu0 %v1260_v22  ;;  %v1282_v36 = vld [vmem:[%s1425_s11 + $0x154] ss:$8 sps:$4 sm:$0xff]   ;;  %v1255_v37 = vld [vmem:[%s1425_s11 + $0x84] ss:$8 sps:$4 sm:$0xff]   ;;  %v1284_v38 = vld [vmem:[%s1425_s11 + $0x150] ss:$8 sps:$4 sm:$0xff]  }
  0x33   : > { %736 = vmatpush1.bf16.msra.mxu1 %v1236_v15  ;;  %788 = vmatprep.subr.bf16.mxu0 %v1264_v25  ;;  %v1257_v39 = vld [vmem:[%s1425_s11 + $0x80] ss:$8 sps:$4 sm:$0xff]   ;;  %v1288_v40 = vld [vmem:[%s1425_s11 + $0x164] ss:$8 sps:$4 sm:$0xff]   ;;  %v1261_v41 = vld [vmem:[%s1425_s11 + $0x94] ss:$8 sps:$4 sm:$0xff]  }
  0x34   : > { %737 = vmatprep.subr.bf16.mxu1 %v1237_v16  ;;  %v1263_v42 = vld [vmem:[%s1425_s11 + $0x90] ss:$8 sps:$4 sm:$0xff]   ;;  %v1290_v43 = vld [vmem:[%s1425_s11 + $0x160] ss:$8 sps:$4 sm:$0xff]   ;;  %v1294_v45 = vld [vmem:[%s1425_s11 + $0x174] ss:$8 sps:$4 sm:$0xff]  }
  0x35   : > { %v1303_v44 = vld [vmem:[%s1427_s12 + $0x4] ss:$12 sps:$4 sm:$0xff]   ;;  %v1300_v50 = vld [vmem:[%s1427_s12 + $0x8] ss:$12 sps:$4 sm:$0xff]   ;;  %v1304_v55 = vld [vmem:[%s1427_s12 + $0x20] ss:$12 sps:$4 sm:$0xff]  }
  0x36   : > { %789 = vmatpush1.bf16.msra.mxu0 %v1266_v26  ;;  %v1267_v46 = vld [vmem:[%s1425_s11 + $0xa4] ss:$8 sps:$4 sm:$0xff]   ;;  %763 = vmatprep.mubr.bf16.mxu1 %v1303_v44  ;;  %v1296_v47 = vld [vmem:[%s1425_s11 + $0x170] ss:$8 sps:$4 sm:$0xff]   ;;  %v1269_v48 = vld [vmem:[%s1425_s11 + $0xa0] ss:$8 sps:$4 sm:$0xff]  }
  0x37   : > { %738 = vmatpush1.bf16.msra.mxu1 %v1239_v17  ;;  %790 = vmatprep.subr.bf16.mxu0 %v1270_v28  ;;  %v1273_v49 = vld [vmem:[%s1425_s11 + $0xb4] ss:$8 sps:$4 sm:$0xff]   ;;  %v1275_v51 = vld [vmem:[%s1425_s11 + $0xb0] ss:$8 sps:$4 sm:$0xff]   ;;  %v1279_v52 = vld [vmem:[%s1425_s11 + $0xc4] ss:$8 sps:$4 sm:$0xff]  }
  0x38   : > { %739 = vmatprep.subr.bf16.mxu1 %v1240_v20  ;;  %v1281_v53 = vld [vmem:[%s1425_s11 + $0xc0] ss:$8 sps:$4 sm:$0xff]   ;;  %v1285_v54 = vld [vmem:[%s1425_s11 + $0xd4] ss:$8 sps:$4 sm:$0xff]   ;;  %v1287_v56 = vld [vmem:[%s1425_s11 + $0xd0] ss:$8 sps:$4 sm:$0xff]  }
  0x39   : > { %v1291_v57 = vld [vmem:[%s1425_s11 + $0xe4] ss:$8 sps:$4 sm:$0xff]   ;;  %v1293_v58 = vld [vmem:[%s1425_s11 + $0xe0] ss:$8 sps:$4 sm:$0xff]   ;;  %v1297_v59 = vld [vmem:[%s1425_s11 + $0xf4] ss:$8 sps:$4 sm:$0xff]  }
  0x3a   : > { %791 = vmatpush1.bf16.msra.mxu0 %v1272_v30  ;;  %v1299_v60 = vld [vmem:[%s1425_s11 + $0xf0] ss:$8 sps:$4 sm:$0xff]   ;;  %v395_v8 = vld [vmem:[#allocation2] sm:$0xff] }
  0x3b   : > { %740 = vmatpush1.bf16.msra.mxu1 %v1242_v23  ;;  %792 = vmatprep.subr.bf16.mxu0 %v1276_v32  ;;  %v1301_v61 = vld [vmem:[%s1427_s12] ss:$12 sps:$4 sm:$0xff]   ;;  %v1305_v62 = vld [vmem:[%s1427_s12 + $0x1c] ss:$12 sps:$4 sm:$0xff]   ;;  %v1307_v63 = vld [vmem:[%s1427_s12 + $0x18] ss:$12 sps:$4 sm:$0xff]  }
  0x3c   : > { %741 = vmatprep.subr.bf16.mxu1 %v1243_v24  ;;  %v397_v14 = vld [vmem:[#allocation2 + $0x10] sm:$0xff]  ;;  %v398_v18 = vld [vmem:[#allocation2 + $0x18] sm:$0xff]  ;;  %v399_v24 = vld [vmem:[#allocation2 + $0x20] sm:$0xff] }
  0x3d   : > { %v401_v30 = vld [vmem:[#allocation2 + $0x30] sm:$0xff]  ;;  %v865_v44 = vld [vmem:[%s1531_s2] sm:$0x3] (!%p1161_p11) }
  0x3e   : > { %793 = vmatpush1.bf16.msra.mxu0 %v1278_v34  ;;  %v402_v34 = vld [vmem:[#allocation2 + $0x38] sm:$0xff] }
  0x3f   : > { %742 = vmatpush1.bf16.msra.mxu1 %v1245_v27  ;;  %794 = vmatprep.subr.bf16.mxu0 %v1282_v36  ;;  %v400_v27 = vld [vmem:[#allocation2 + $0x28] sm:$0xff] }
  0x40   : > { %743 = vmatprep.subr.bf16.mxu1 %v1246_v29 }
  0x42   : > { %795 = vmatpush1.bf16.msra.mxu0 %v1284_v38 }
  0x43   : > { %744 = vmatpush1.bf16.msra.mxu1 %v1248_v31  ;;  %796 = vmatprep.subr.bf16.mxu0 %v1288_v40  ;;  %v867_v40 = vlaneseq (!%p1161_p11) }
  0x44   : > { %745 = vmatprep.subr.bf16.mxu1 %v1249_v33 }
  0x46   : > { %797 = vmatpush1.bf16.msra.mxu0 %v1290_v43 }
  0x47   : > { %746 = vmatpush1.bf16.msra.mxu1 %v1251_v35  ;;  %798 = vmatprep.subr.bf16.mxu0 %v1294_v45  ;;  %v886_v45 = vld [vmem:[%s1532_s3 + $0x8] sm:$0xff] (!%p1161_p11) }
  0x48   : > { %747 = vmatprep.subr.bf16.mxu1 %v1255_v37 }
  0x4a   : > { %799 = vmatpush1.bf16.msra.mxu0 %v1296_v47 }
  0x4b   : > { %748 = vmatpush1.bf16.msra.mxu1 %v1257_v39 }
  0x4c   : > { %749 = vmatprep.subr.bf16.mxu1 %v1261_v41  ;;  %v868_v41 = vshrl.u32 (!%p1161_p11), %v867_v40, 7 }
  0x4d   : > { %817 = vmatmul.mubr.bf16.vlgmr.msra.gmra.mrb[0].mxu0 %v1300_v50  ;;  %v888_v50 = vld [vmem:[%s1532_s3 + $0x18] sm:$0xff] (!%p1161_p11) }
  0x4e   : > { %826 = vmatprep.mubr.bf16.mxu0 %v1349_v11  ;;  %v396_v11 = vld [vmem:[#allocation2 + $0x8] sm:$0xff]  ;;  %v869_v47 = vsub.s32 (!%p1161_p11), 0, %v868_v41 }
  0x4f   : > { %750 = vmatpush1.bf16.msra.mxu1 %v1263_v42  ;;  %v885_v42 = vld [vmem:[%s1532_s3] sm:$0xff] (!%p1161_p11) }
  0x50   : > { %751 = vmatprep.subr.bf16.mxu1 %v1267_v46 }
  0x53   : > { %752 = vmatpush1.bf16.msra.mxu1 %v1269_v48  ;;  %v873_v48 = vsub.s32 (!%p1161_p11), 1, %v868_v41 }
  0x54   : > { %753 = vmatprep.subr.bf16.mxu1 %v1273_v49  ;;  %v887_v49 = vld [vmem:[%s1532_s3 + $0x10] sm:$0xff] (!%p1161_p11) }
  0x55   : > { %827 = vmatmul.mubr.bf16.gmra.mrb[4].mxu0 %v1304_v55 }
  0x57   : > { %754 = vmatpush1.bf16.msra.mxu1 %v1275_v51  ;;  %v889_v51 = vunpack.c.l.bf16 (!%p1161_p11), %v885_v42 }
  0x58   : > { %755 = vmatprep.subr.bf16.mxu1 %v1279_v52  ;;  %v890_v52 = vunpack.c.h.bf16 (!%p1161_p11), %v885_v42 }
  0x5b   : > { %756 = vmatpush1.bf16.msra.mxu1 %v1281_v53 }
  0x5c   : > { %757 = vmatprep.subr.bf16.mxu1 %v1285_v54 }
  0x5f   : > { %758 = vmatpush1.bf16.msra.mxu1 %v1287_v56  ;;  %v870_v56 = vrot.slane (!%p1161_p11), %v865_v44, %v869_v47 }
  0x60   : > { %759 = vmatprep.subr.bf16.mxu1 %v1291_v57  ;;  %v874_v57 = vrot.slane (!%p1161_p11), %v865_v44, %v873_v48 }
  0x63   : > { %760 = vmatpush1.bf16.msra.mxu1 %v1293_v58  ;;  %v891_v58 = vunpack.c.l.bf16 (!%p1161_p11), %v886_v45 }
  0x64   : > { %761 = vmatprep.subr.bf16.mxu1 %v1297_v59  ;;  %v892_v59 = vunpack.c.h.bf16 (!%p1161_p11), %v886_v45 }
  0x67   : > { %762 = vmatpush1.bf16.msra.mxu1 %v1299_v60 }
  0x6a   : > { %764 = vmatmul.mubr.bf16.vlgmr.msra.gmra.mrb[0].mxu1 %v1301_v61 }
  0x6b   : > { %773 = vmatprep.mubr.bf16.mxu1 %v1305_v62 }
  0x72   : > { %774 = vmatmul.mubr.bf16.gmra.mrb[4].mxu1 %v1307_v63  ;;  %v893_v63 = vunpack.c.l.bf16 (!%p1161_p11), %v887_v49 }
 0x120   : > { %v818_v0 = vpop.f32.mrb[0].mxu0 }
 0x121   : > { %v820_v1 = vpop.f32.mrb[1].mxu0 }
 0x122   : > { %v822_v2 = vpop.f32.mrb[2].mxu0 }
 0x123   : > { %v824_v3 = vpop.f32.mrb[3].mxu0 }
 0x128   : > { %v828_v4 = vpop.f32.mrb[4].mxu0 }
 0x129   : > { %v830_v5 = vpop.f32.mrb[5].mxu0 }
 0x12a   : > { %v832_v6 = vpop.f32.mrb[6].mxu0 }
 0x12b   : > { %v834_v7 = vpop.f32.mrb[7].mxu0 }
 0x13d   : > { %v765_v9 = vpop.f32.mrb[0].mxu1 }
 0x13e   : > { %v819_v10 = vadd.f32 %v818_v0, %v765_v9  ;;  %v767_v12 = vpop.f32.mrb[1].mxu1  ;;  %v894_v0 = vunpack.c.h.bf16 (!%p1161_p11), %v887_v49 }
 0x13f   : > { %v821_v13 = vadd.f32 %v820_v1, %v767_v12  ;;  %v769_v15 = vpop.f32.mrb[2].mxu1  ;;  %v895_v1 = vunpack.c.l.bf16 (!%p1161_p11), %v888_v50 }
 0x140   : > { %v837_v16 = vadd.f32 %v819_v10, %v395_v8  ;;  %v823_v17 = vadd.f32 %v822_v2, %v769_v15  ;;  %v771_v19 = vpop.f32.mrb[3].mxu1  ;;  %v896_v2 = vunpack.c.h.bf16 (!%p1161_p11), %v888_v50 }
 0x141   : > { %v838_v20 = vadd.f32 %v821_v13, %v396_v11  ;;  %v825_v21 = vadd.f32 %v824_v3, %v771_v19 }
 0x142   : > { %845 = vst [vmem:[#allocation2] sm:$0xff] %v837_v16  ;;  %v839_v22 = vadd.f32 %v823_v17, %v397_v14 }
 0x143   : > { %846 = vst [vmem:[#allocation2 + $0x8] sm:$0xff] %v838_v20  ;;  %v840_v23 = vadd.f32 %v825_v21, %v398_v18 }
 0x144   : > { %847 = vst [vmem:[#allocation2 + $0x10] sm:$0xff] %v839_v22 }
 0x145   : > { %848 = vst [vmem:[#allocation2 + $0x18] sm:$0xff] %v840_v23  ;;  %v775_v25 = vpop.f32.mrb[4].mxu1 }
 0x146   : > { %v829_v26 = vadd.f32 %v828_v4, %v775_v25  ;;  %v777_v28 = vpop.f32.mrb[5].mxu1 }
 0x147   : > { %v831_v29 = vadd.f32 %v830_v5, %v777_v28  ;;  %v779_v31 = vpop.f32.mrb[6].mxu1  ;;  %856 = sbr.rel (%p1161_p11) target bundleno = 350 (0x15e), region = 70 }
 0x148   : > { %v841_v32 = vadd.f32 %v829_v26, %v399_v24  ;;  %v833_v33 = vadd.f32 %v832_v6, %v779_v31  ;;  %v781_v35 = vpop.f32.mrb[7].mxu1 }
 0x149   : > { %v842_v36 = vadd.f32 %v831_v29, %v400_v27  ;;  %v835_v37 = vadd.f32 %v834_v7, %v781_v35  ;;  %v857_v43 = vld [vmem:[#allocation2] sm:$0xff] (!%p1161_p11) }
 0x14a   : > { %849 = vst [vmem:[#allocation2 + $0x20] sm:$0xff] %v841_v32  ;;  %v843_v38 = vadd.f32 %v833_v33, %v401_v30  ;;  %v858_v46 = vld [vmem:[#allocation2 + $0x8] sm:$0xff] (!%p1161_p11)  ;;  %v877_v3 = vadd.f32 (!%p1161_p11), %v870_v56, %v857_v43 }
 0x14b   : > { %850 = vst [vmem:[#allocation2 + $0x28] sm:$0xff] %v842_v36  ;;  %v844_v39 = vadd.f32 %v835_v37, %v402_v34  ;;  %v859_v53 = vld [vmem:[#allocation2 + $0x10] sm:$0xff] (!%p1161_p11)  ;;  %v878_v4 = vadd.f32 (!%p1161_p11), %v874_v57, %v858_v46 }
 0x14c   : > { %851 = vst [vmem:[#allocation2 + $0x30] sm:$0xff] %v843_v38  ;;  %v860_v54 = vld [vmem:[#allocation2 + $0x18] sm:$0xff] (!%p1161_p11)  ;;  %v879_v5 = vadd.f32 (!%p1161_p11), %v870_v56, %v859_v53  ;;  %v897_v11 = vadd.f32 (!%p1161_p11), %v889_v51, %v877_v3 }
 0x14d   : > { %852 = vst [vmem:[#allocation2 + $0x38] sm:$0xff] %v844_v39  ;;  %v880_v6 = vadd.f32 (!%p1161_p11), %v874_v57, %v860_v54  ;;  %v898_v12 = vadd.f32 (!%p1161_p11), %v890_v52, %v878_v4 }
 0x14e   : > { %v899_v13 = vadd.f32 %v891_v58, %v879_v5  ;;  %v905_v19 = vmax.f32 %v897_v11, 0.0 }
 0x14f   : > { %v900_v14 = vadd.f32 %v892_v59, %v880_v6  ;;  %v906_v20 = vmax.f32 %v898_v12, 0.0 }
 0x150   : > { %v907_v21 = vmax.f32 %v899_v13, 0.0 }
 0x151   : > { %v861_v55 = vld [vmem:[#allocation2 + $0x20] sm:$0xff]  ;;  %v908_v22 = vmax.f32 %v900_v14, 0.0  ;;  %v1172_v27 = vpack.c.bf16 %v906_v20, %v905_v19 }
 0x152   : > { %v862_v60 = vld [vmem:[#allocation2 + $0x28] sm:$0xff]  ;;  %v881_v7 = vadd.f32 %v870_v56, %v861_v55 }
 0x153   : > { %v863_v61 = vld [vmem:[#allocation2 + $0x30] sm:$0xff]  ;;  %v882_v8 = vadd.f32 %v874_v57, %v862_v60  ;;  %v1173_v28 = vpack.c.bf16 %v908_v22, %v907_v21  ;;  %937 = vst [vmem:[%s1533_s4] sm:$0xff] %v1172_v27 }
 0x154   : > { %v864_v62 = vld [vmem:[#allocation2 + $0x38] sm:$0xff]  ;;  %v883_v9 = vadd.f32 %v870_v56, %v863_v61  ;;  %v901_v15 = vadd.f32 %v893_v63, %v881_v7 }
 0x155   : > { %v884_v10 = vadd.f32 %v874_v57, %v864_v62  ;;  %v902_v16 = vadd.f32 %v894_v0, %v882_v8  ;;  %938 = vst [vmem:[%s1533_s4 + $0x8] sm:$0xff] %v1173_v28 }
 0x156   : > { %v903_v17 = vadd.f32 %v895_v1, %v883_v9  ;;  %v909_v23 = vmax.f32 %v901_v15, 0.0 }
 0x157   : > { %v904_v18 = vadd.f32 %v896_v2, %v884_v10  ;;  %v910_v24 = vmax.f32 %v902_v16, 0.0 }
 0x158   : > { %v911_v25 = vmax.f32 %v903_v17, 0.0 }
 0x159   : > { %v912_v26 = vmax.f32 %v904_v18, 0.0  ;;  %v1174_v29 = vpack.c.bf16 %v910_v24, %v909_v23 }
 0x15b   : > { %v1175_v30 = vpack.c.bf16 %v912_v26, %v911_v25  ;;  %939 = vst [vmem:[%s1533_s4 + $0x10] sm:$0xff] %v1174_v29 }
 0x15d   : > { %940 = vst [vmem:[%s1533_s4 + $0x18] sm:$0xff] %v1175_v30 }
 0x15e PF: > { %s14_s19 = sadd.s32 1, %s1346_s19   ;;  %s1534_s15 = smov %s1334_s16 }
 0x15f   : > { %p11_p12 = scmp.ge.s32.totalorder %s14_s19, 8   ;;  %s1535_s16 = smov %s1410_s23 }
 0x160   : > { %s1536_s17 = smov %s1342_s18  ;;  %s1537_s18 = smov %s1539_s20 }
 0x161   :  { %13 = sbr.rel (!%p11_p12) target bundleno = 3 (0x3), region = 120 }

// kernel: hand_gesture_forward.24
= control target key start
LH: loop header
LB: loop body
LE: loop exit
PB: predicated region body
PF: predicated region fallthrough
CT: control target
= control target key end

     0   :  { %s1705_s12 = smov 0   ;;  %s1707_s13 = smov 0   ;;  %s1890_s0 = inlined_call_operand.vmem [shape: bf16[16,2304], index: 0, kind: input, shape index: {}]   ;;  %s1891_s1 = inlined_call_operand.vmem [shape: bf16[2304,512], index: 1, kind: input, shape index: {}]   ;;  %s1892_s2 = inlined_call_operand.vmem [shape: f32[1,512], index: 2, kind: input, shape index: {}]   ;;  %s1893_s3 = inlined_call_operand.vmem [shape: bf16[16,512], index: 3, kind: output, shape index: {}]  }
   0x1   :  { %s1709_s14 = smov 0   ;;  %s1711_s15 = smov 0  }
   0x2   :  { %s1713_s16 = smov 0  }
   0x3 LB: > { %s25_s17 = sadd.s32 1, %s1677_s15  ;;  %p48_p1 = scmp.ne.s32.totalorder %s1669_s13, %s1665_s12  ;;  %s1681_s16 = sphi %s1713_s16, %s13_s16   ;;  %s1677_s15 = sphi %s1711_s15, %s1897_s15   ;;  %s1673_s14 = sphi %s1709_s14, %s1896_s14   ;;  %s1669_s13 = sphi %s1707_s13, %s1895_s13   ;;  %s1665_s12 = sphi %s1705_s12, %s1894_s12  }
   0x4   : > { %p26_p0 = scmp.ge.s32.totalorder %s25_s17, 6  ;;  %p49_p2 = scmp.eq.s32.totalorder %s1681_s16, 0 }
   0x5   : > { %s41_s19 = sadd.s32 1, %s1669_s13  ;;  %p1319_p5 = scmp.ge.s32.totalorder %s1681_s16, 6 }
   0x6   : > { %s1899_s17 = smov (%p26_p0, %s25_s17), 0  ;;  %p50_p3 = por %p49_p2, %p48_p1 }
   0x7   : > { %s37_s18 = ssub.s32 %s1677_s15, %s1899_s17  ;;  %164 = sbr.rel (%p1319_p5) target bundleno = 21 (0x15), region = 20 }
   0x8   : > { %p39_p4 = scmp.eq.s32.totalorder %s37_s18, 0 }
   0xa   : > { %s1740_s20 = scalar_select %p39_p4, %s1669_s13, %s41_s19  }
   0xe   : > { %167 = sbr.rel (!%p50_p3) target bundleno = 21 (0x15), region = 24  ;;  %s169_s21 = sand.u32 (%p50_p3), 1, %s1669_s13  }
   0xf   : > { %s1437_s22 = smul.u32 (%p50_p3), 12, %s1677_s15 }
  0x10   : > { %s1451_s23 = smul.u32 (%p50_p3), 24, %s169_s21 }
  0x11   : > { %s177_s26 = scalar_lea.vmem (%p50_p3), %s1890_s0, %s1437_s22 }
  0x12   : > { %v192_v0 = vld [vmem:[%s177_s26] sm:$0xff] (%p50_p3)  ;;  %v194_v1 = vld [vmem:[%s177_s26 + $0x48] sm:$0xff] (%p50_p3)  ;;  %s171_s27 = scalar_lea.vmem (%p50_p3), [#allocation3], %s1451_s23  ;;  %v1323_v3 = vld [vmem:[%s177_s26 + $0x50] sm:$0xf] (%p50_p3) }
  0x13   : > { %v1321_v2 = vld [vmem:[%s177_s26 + $0x8] sm:$0xf] (%p50_p3)  ;;  %193 = vst [vmem:[%s171_s27] sm:$0xff] (%p50_p3), %v192_v0  ;;  %195 = vst [vmem:[%s171_s27 + $0xc] sm:$0xff] (%p50_p3), %v194_v1 }
  0x14   : > { %1322 = vst [vmem:[%s171_s27 + $0x8] sm:$0xf] (%p50_p3), %v1321_v2  ;;  %1324 = vst [vmem:[%s171_s27 + $0x14] sm:$0xf] (%p50_p3), %v1323_v3 }
  0x15 PF: > { %p1325_p6 = scmp.ge.s32.totalorder %s1681_s16, 1  ;;  %p226_p7 = scmp.lt.s32.totalorder %s1681_s16, 7 }
  0x17   : > { %p227_p8 = pnand %p1325_p6, %p226_p7 }
  0x18   : > { %s233_s28 = sand.u32 (!%p227_p8), 1, %s1665_s12   ;;  %s277_s29 = smul.u32 (!%p227_p8), 48, %s1673_s14 }
  0x19   : > { %230 = sbr.rel (%p227_p8) target bundleno = 368 (0x170), region = 54  ;;  %p1328_p10 = scmp.ne.s32.totalorder (!%p227_p8), %s1673_s14, 0 }
  0x1a   : > { %s1452_s30 = smul.u32 (!%p227_p8), 24, %s233_s28  ;;  %p279_p9 = scmp.lt.s32.totalorder (!%p227_p8), %s277_s29, 287 }
  0x1c   : > { %s1757_s8 = scalar_lea.vmem (!%p227_p8), [#allocation3], %s1452_s30 }
  0x20   : > { %s1901_s29 = smov (!%p279_p9, %s277_s29), 287  ;;  %310 = sbr.rel (%p1328_p10) target bundleno = 39 (0x27), region = 62 }
  0x21   : > { %s1438_s4 = sshll.u32 %s1901_s29, 4  ;;  %v1683_v4 = vmov (!%p1328_p10), 0.0  }
  0x22   : > { %s1755_s7 = scalar_lea.vmem %s1891_s1, %s1438_s4  ;;  %311 = vst [vmem:[#allocation2] sm:$0xff] (!%p1328_p10), %v1683_v4  ;;  %312 = vst [vmem:[#allocation2 + $0x8] sm:$0xff] (!%p1328_p10), %v1683_v4 }
  0x23   : > { %313 = vst [vmem:[#allocation2 + $0x10] sm:$0xff] (!%p1328_p10), %v1683_v4  ;;  %314 = vst [vmem:[#allocation2 + $0x18] sm:$0xff] (!%p1328_p10), %v1683_v4 }
  0x24   : > { %315 = vst [vmem:[#allocation2 + $0x20] sm:$0xff] (!%p1328_p10), %v1683_v4  ;;  %316 = vst [vmem:[#allocation2 + $0x28] sm:$0xff] (!%p1328_p10), %v1683_v4 }
  0x25   : > { %317 = vst [vmem:[#allocation2 + $0x30] sm:$0xff] (!%p1328_p10), %v1683_v4  ;;  %318 = vst [vmem:[#allocation2 + $0x38] sm:$0xff] (!%p1328_p10), %v1683_v4 }
  0x27 PF: > { %v1495_v5 = vld [vmem:[%s1755_s7 + $0x4] ss:$16 sps:$4 sm:$0xff]   ;;  %v1497_v6 = vld [vmem:[%s1755_s7 + $0xc] ss:$16 sps:$4 sm:$0xff]   ;;  %v1499_v7 = vld [vmem:[%s1755_s7] ss:$16 sps:$4 sm:$0xff]  }
  0x28   : > { %923 = vmatprep.subr.bf16.mxu0 %v1495_v5  ;;  %v1500_v8 = vld [vmem:[%s1755_s7 + $0x8] ss:$16 sps:$4 sm:$0xff]   ;;  %1009 = vmatprep.subr.bf16.mxu1 %v1497_v6  ;;  %v1501_v9 = vld [vmem:[%s1755_s7 + $0x24] ss:$16 sps:$4 sm:$0xff]   ;;  %v1503_v10 = vld [vmem:[%s1755_s7 + $0x2c] ss:$16 sps:$4 sm:$0xff]  }
  0x29   : > { %924 = vmatpush1.bf16.msra.mxu0 %v1499_v7  ;;  %1010 = vmatpush1.bf16.msra.mxu1 %v1500_v8  ;;  %v1505_v11 = vld [vmem:[%s1755_s7 + $0x20] ss:$16 sps:$4 sm:$0xff]   ;;  %v1506_v12 = vld [vmem:[%s1755_s7 + $0x28] ss:$16 sps:$4 sm:$0xff]   ;;  %v1507_v13 = vld [vmem:[%s1755_s7 + $0x44] ss:$16 sps:$4 sm:$0xff]  }
  0x2a   : > { %925 = vmatprep.subr.bf16.mxu0 %v1501_v9  ;;  %1011 = vmatprep.subr.bf16.mxu1 %v1503_v10  ;;  %v1509_v14 = vld [vmem:[%s1755_s7 + $0x4c] ss:$16 sps:$4 sm:$0xff]   ;;  %v1511_v15 = vld [vmem:[%s1755_s7 + $0x40] ss:$16 sps:$4 sm:$0xff]   ;;  %v1512_v16 = vld [vmem:[%s1755_s7 + $0x48] ss:$16 sps:$4 sm:$0xff]  }
  0x2b   : > { %v1513_v17 = vld [vmem:[%s1755_s7 + $0x64] ss:$16 sps:$4 sm:$0xff]   ;;  %v1515_v18 = vld [vmem:[%s1755_s7 + $0x6c] ss:$16 sps:$4 sm:$0xff]   ;;  %v1517_v19 = vld [vmem:[%s1755_s7 + $0x60] ss:$16 sps:$4 sm:$0xff]  }
  0x2c   : > { %v1518_v20 = vld [vmem:[%s1755_s7 + $0x68] ss:$16 sps:$4 sm:$0xff]   ;;  %v1519_v21 = vld [vmem:[%s1755_s7 + $0x84] ss:$16 sps:$4 sm:$0xff]   ;;  %v1521_v22 = vld [vmem:[%s1755_s7 + $0x8c] ss:$16 sps:$4 sm:$0xff]  }
  0x2d   : > { %926 = vmatpush1.bf16.msra.mxu0 %v1505_v11  ;;  %1012 = vmatpush1.bf16.msra.mxu1 %v1506_v12  ;;  %v1523_v23 = vld [vmem:[%s1755_s7 + $0x80] ss:$16 sps:$4 sm:$0xff]   ;;  %v1524_v24 = vld [vmem:[%s1755_s7 + $0x88] ss:$16 sps:$4 sm:$0xff]   ;;  %v1525_v25 = vld [vmem:[%s1755_s7 + $0xa4] ss:$16 sps:$4 sm:$0xff]  }
  0x2e   : > { %927 = vmatprep.subr.bf16.mxu0 %v1507_v13  ;;  %1013 = vmatprep.subr.bf16.mxu1 %v1509_v14  ;;  %v1527_v26 = vld [vmem:[%s1755_s7 + $0xac] ss:$16 sps:$4 sm:$0xff]   ;;  %v1529_v27 = vld [vmem:[%s1755_s7 + $0xa0] ss:$16 sps:$4 sm:$0xff]   ;;  %v1530_v28 = vld [vmem:[%s1755_s7 + $0xa8] ss:$16 sps:$4 sm:$0xff]  }
  0x2f   : > { %v1531_v29 = vld [vmem:[%s1755_s7 + $0xc4] ss:$16 sps:$4 sm:$0xff]   ;;  %v1533_v30 = vld [vmem:[%s1755_s7 + $0xcc] ss:$16 sps:$4 sm:$0xff]   ;;  %v1535_v31 = vld [vmem:[%s1755_s7 + $0xc0] ss:$16 sps:$4 sm:$0xff]  }
  0x30   : > { %v1536_v32 = vld [vmem:[%s1755_s7 + $0xc8] ss:$16 sps:$4 sm:$0xff]   ;;  %v1537_v33 = vld [vmem:[%s1755_s7 + $0xe4] ss:$16 sps:$4 sm:$0xff]   ;;  %v1539_v34 = vld [vmem:[%s1755_s7 + $0xec] ss:$16 sps:$4 sm:$0xff]  }
  0x31   : > { %928 = vmatpush1.bf16.msra.mxu0 %v1511_v15  ;;  %1014 = vmatpush1.bf16.msra.mxu1 %v1512_v16  ;;  %v1541_v35 = vld [vmem:[%s1755_s7 + $0xe0] ss:$16 sps:$4 sm:$0xff]   ;;  %v1542_v36 = vld [vmem:[%s1755_s7 + $0xe8] ss:$16 sps:$4 sm:$0xff]   ;;  %v1543_v37 = vld [vmem:[%s1755_s7 + $0x104] ss:$16 sps:$4 sm:$0xff]  }
  0x32   : > { %929 = vmatprep.subr.bf16.mxu0 %v1513_v17  ;;  %1015 = vmatprep.subr.bf16.mxu1 %v1515_v18  ;;  %v1545_v38 = vld [vmem:[%s1755_s7 + $0x10c] ss:$16 sps:$4 sm:$0xff]   ;;  %v1547_v39 = vld [vmem:[%s1755_s7 + $0x100] ss:$16 sps:$4 sm:$0xff]   ;;  %v1548_v40 = vld [vmem:[%s1755_s7 + $0x108] ss:$16 sps:$4 sm:$0xff]  }
  0x33   : > { %v1549_v41 = vld [vmem:[%s1755_s7 + $0x124] ss:$16 sps:$4 sm:$0xff]   ;;  %v1551_v42 = vld [vmem:[%s1755_s7 + $0x12c] ss:$16 sps:$4 sm:$0xff]   ;;  %v1553_v43 = vld [vmem:[%s1755_s7 + $0x120] ss:$16 sps:$4 sm:$0xff]  }
  0x34   : > { %v1554_v44 = vld [vmem:[%s1755_s7 + $0x128] ss:$16 sps:$4 sm:$0xff]   ;;  %v1555_v45 = vld [vmem:[%s1755_s7 + $0x144] ss:$16 sps:$4 sm:$0xff]   ;;  %v1557_v46 = vld [vmem:[%s1755_s7 + $0x14c] ss:$16 sps:$4 sm:$0xff]  }
  0x35   : > { %930 = vmatpush1.bf16.msra.mxu0 %v1517_v19  ;;  %1016 = vmatpush1.bf16.msra.mxu1 %v1518_v20  ;;  %v1559_v47 = vld [vmem:[%s1755_s7 + $0x140] ss:$16 sps:$4 sm:$0xff]   ;;  %v1560_v48 = vld [vmem:[%s1755_s7 + $0x148] ss:$16 sps:$4 sm:$0xff]   ;;  %v1561_v49 = vld [vmem:[%s1755_s7 + $0x164] ss:$16 sps:$4 sm:$0xff]  }
  0x36   : > { %931 = vmatprep.subr.bf16.mxu0 %v1519_v21  ;;  %1017 = vmatprep.subr.bf16.mxu1 %v1521_v22  ;;  %v1563_v50 = vld [vmem:[%s1755_s7 + $0x16c] ss:$16 sps:$4 sm:$0xff]   ;;  %v1565_v51 = vld [vmem:[%s1755_s7 + $0x160] ss:$16 sps:$4 sm:$0xff]   ;;  %v1566_v52 = vld [vmem:[%s1755_s7 + $0x168] ss:$16 sps:$4 sm:$0xff]  }
  0x37   : > { %v1593_v53 = vld [vmem:[%s1757_s8 + $0x4] ss:$12 sps:$4 sm:$0xff]   ;;  %v1591_v8 = vld [vmem:[%s1757_s8] ss:$12 sps:$4 sm:$0xff]   ;;  %v1684_v17 = vmov 0   ;;  %p1428_p11 = scmp.ne.s32.totalorder %s1673_s14, 5 }
  0x38   : > { %v1567_v54 = vld [vmem:[%s1755_s7 + $0x184] ss:$16 sps:$4 sm:$0xff]   ;;  %v1569_v55 = vld [vmem:[%s1755_s7 + $0x18c] ss:$16 sps:$4 sm:$0xff]   ;;  %955 = vmatprep.mubr.bf16.mxu0 %v1593_v53  ;;  %1041 = vmatprep.mubr.bf16.mxu1 %v1593_v53  ;;  %v1571_v56 = vld [vmem:[%s1755_s7 + $0x180] ss:$16 sps:$4 sm:$0xff]  }
  0x39   : > { %932 = vmatpush1.bf16.msra.mxu0 %v1523_v23  ;;  %1018 = vmatpush1.bf16.msra.mxu1 %v1524_v24  ;;  %v1572_v57 = vld [vmem:[%s1755_s7 + $0x188] ss:$16 sps:$4 sm:$0xff]   ;;  %v1573_v58 = vld [vmem:[%s1755_s7 + $0x1a4] ss:$16 sps:$4 sm:$0xff]   ;;  %v1575_v59 = vld [vmem:[%s1755_s7 + $0x1ac] ss:$16 sps:$4 sm:$0xff]  }
  0x3a   : > { %933 = vmatprep.subr.bf16.mxu0 %v1525_v25  ;;  %1019 = vmatprep.subr.bf16.mxu1 %v1527_v26  ;;  %v1577_v60 = vld [vmem:[%s1755_s7 + $0x1a0] ss:$16 sps:$4 sm:$0xff]   ;;  %v1578_v61 = vld [vmem:[%s1755_s7 + $0x1a8] ss:$16 sps:$4 sm:$0xff]   ;;  %v1579_v62 = vld [vmem:[%s1755_s7 + $0x1c4] ss:$16 sps:$4 sm:$0xff]  }
  0x3b   : > { %v1581_v63 = vld [vmem:[%s1755_s7 + $0x1cc] ss:$16 sps:$4 sm:$0xff]   ;;  %v1583_v0 = vld [vmem:[%s1755_s7 + $0x1c0] ss:$16 sps:$4 sm:$0xff]   ;;  %v1584_v1 = vld [vmem:[%s1755_s7 + $0x1c8] ss:$16 sps:$4 sm:$0xff]  }
  0x3c   : > { %v1585_v2 = vld [vmem:[%s1755_s7 + $0x1e4] ss:$16 sps:$4 sm:$0xff]   ;;  %v1587_v3 = vld [vmem:[%s1755_s7 + $0x1ec] ss:$16 sps:$4 sm:$0xff]   ;;  %v1589_v4 = vld [vmem:[%s1755_s7 + $0x1e0] ss:$16 sps:$4 sm:$0xff]  }
  0x3d   : > { %934 = vmatpush1.bf16.msra.mxu0 %v1529_v27  ;;  %1020 = vmatpush1.bf16.msra.mxu1 %v1530_v28  ;;  %v1590_v5 = vld [vmem:[%s1755_s7 + $0x1e8] ss:$16 sps:$4 sm:$0xff]   ;;  %v1596_v6 = vld [vmem:[%s1755_s7 + $0x204] ss:$16 sps:$4 sm:$0xff]   ;;  %v1599_v7 = vld [vmem:[%s1755_s7 + $0x20c] ss:$16 sps:$4 sm:$0xff]  }
  0x3e   : > { %935 = vmatprep.subr.bf16.mxu0 %v1531_v29  ;;  %1021 = vmatprep.subr.bf16.mxu1 %v1533_v30  ;;  %v1594_v9 = vld [vmem:[%s1755_s7 + $0x200] ss:$16 sps:$4 sm:$0xff]   ;;  %v1597_v10 = vld [vmem:[%s1755_s7 + $0x208] ss:$16 sps:$4 sm:$0xff]   ;;  %v1602_v11 = vld [vmem:[%s1755_s7 + $0x224] ss:$16 sps:$4 sm:$0xff]  }
  0x3f   : > { %v1605_v12 = vld [vmem:[%s1755_s7 + $0x22c] ss:$16 sps:$4 sm:$0xff]   ;;  %v1600_v13 = vld [vmem:[%s1755_s7 + $0x220] ss:$16 sps:$4 sm:$0xff]   ;;  %v1603_v14 = vld [vmem:[%s1755_s7 + $0x228] ss:$16 sps:$4 sm:$0xff]  }
  0x40   : > { %v1608_v15 = vld [vmem:[%s1755_s7 + $0x244] ss:$16 sps:$4 sm:$0xff]   ;;  %v1611_v16 = vld [vmem:[%s1755_s7 + $0x24c] ss:$16 sps:$4 sm:$0xff]   ;;  %v1606_v18 = vld [vmem:[%s1755_s7 + $0x240] ss:$16 sps:$4 sm:$0xff]  }
  0x41   : > { %936 = vmatpush1.bf16.msra.mxu0 %v1535_v31  ;;  %1022 = vmatpush1.bf16.msra.mxu1 %v1536_v32  ;;  %v1609_v19 = vld [vmem:[%s1755_s7 + $0x248] ss:$16 sps:$4 sm:$0xff]   ;;  %v1614_v20 = vld [vmem:[%s1755_s7 + $0x264] ss:$16 sps:$4 sm:$0xff]   ;;  %v1617_v21 = vld [vmem:[%s1755_s7 + $0x26c] ss:$16 sps:$4 sm:$0xff]  }
  0x42   : > { %937 = vmatprep.subr.bf16.mxu0 %v1537_v33  ;;  %1023 = vmatprep.subr.bf16.mxu1 %v1539_v34  ;;  %v1612_v22 = vld [vmem:[%s1755_s7 + $0x260] ss:$16 sps:$4 sm:$0xff]   ;;  %v1615_v23 = vld [vmem:[%s1755_s7 + $0x268] ss:$16 sps:$4 sm:$0xff]   ;;  %v1620_v24 = vld [vmem:[%s1755_s7 + $0x284] ss:$16 sps:$4 sm:$0xff]  }
  0x43   : > { %v1623_v25 = vld [vmem:[%s1755_s7 + $0x28c] ss:$16 sps:$4 sm:$0xff]   ;;  %v1618_v26 = vld [vmem:[%s1755_s7 + $0x280] ss:$16 sps:$4 sm:$0xff]   ;;  %v1621_v27 = vld [vmem:[%s1755_s7 + $0x288] ss:$16 sps:$4 sm:$0xff]  }
  0x44   : > { %v1626_v28 = vld [vmem:[%s1755_s7 + $0x2a4] ss:$16 sps:$4 sm:$0xff]   ;;  %v1629_v29 = vld [vmem:[%s1755_s7 + $0x2ac] ss:$16 sps:$4 sm:$0xff]   ;;  %v1624_v30 = vld [vmem:[%s1755_s7 + $0x2a0] ss:$16 sps:$4 sm:$0xff]  }
  0x45   : > { %938 = vmatpush1.bf16.msra.mxu0 %v1541_v35  ;;  %1024 = vmatpush1.bf16.msra.mxu1 %v1542_v36  ;;  %v1627_v31 = vld [vmem:[%s1755_s7 + $0x2a8] ss:$16 sps:$4 sm:$0xff]   ;;  %v1632_v32 = vld [vmem:[%s1755_s7 + $0x2c4] ss:$16 sps:$4 sm:$0xff]   ;;  %v1635_v33 = vld [vmem:[%s1755_s7 + $0x2cc] ss:$16 sps:$4 sm:$0xff]  }
  0x46   : > { %939 = vmatprep.subr.bf16.mxu0 %v1543_v37  ;;  %1025 = vmatprep.subr.bf16.mxu1 %v1545_v38  ;;  %v1630_v34 = vld [vmem:[%s1755_s7 + $0x2c0] ss:$16 sps:$4 sm:$0xff]   ;;  %v1633_v35 = vld [vmem:[%s1755_s7 + $0x2c8] ss:$16 sps:$4 sm:$0xff]   ;;  %v1638_v36 = vld [vmem:[%s1755_s7 + $0x2e4] ss:$16 sps:$4 sm:$0xff]  }
  0x47   : > { %v1641_v37 = vld [vmem:[%s1755_s7 + $0x2ec] ss:$16 sps:$4 sm:$0xff]   ;;  %v1636_v38 = vld [vmem:[%s1755_s7 + $0x2e0] ss:$16 sps:$4 sm:$0xff]  }
  0x48   : > { %v324_v53 = vld [vmem:[#allocation2 + $0x28] sm:$0xff] }
  0x49   : > { %940 = vmatpush1.bf16.msra.mxu0 %v1547_v39  ;;  %1026 = vmatpush1.bf16.msra.mxu1 %v1548_v40  ;;  %v1639_v39 = vld [vmem:[%s1755_s7 + $0x2e8] ss:$16 sps:$4 sm:$0xff]  }
  0x4a   : > { %941 = vmatprep.subr.bf16.mxu0 %v1549_v41  ;;  %1027 = vmatprep.subr.bf16.mxu1 %v1551_v42  ;;  %v1642_v40 = vld [vmem:[%s1757_s8 + $0x8] ss:$12 sps:$4 sm:$0xff]  }
  0x4b   : > { %v319_v41 = vld [vmem:[#allocation2] sm:$0xff]  ;;  %v321_v42 = vld [vmem:[#allocation2 + $0x10] sm:$0xff] }
  0x4d   : > { %942 = vmatpush1.bf16.msra.mxu0 %v1553_v43  ;;  %1028 = vmatpush1.bf16.msra.mxu1 %v1554_v44  ;;  %v320_v43 = vld [vmem:[#allocation2 + $0x8] sm:$0xff]  ;;  %v322_v44 = vld [vmem:[#allocation2 + $0x18] sm:$0xff] }
  0x4e   : > { %943 = vmatprep.subr.bf16.mxu0 %v1555_v45  ;;  %1029 = vmatprep.subr.bf16.mxu1 %v1557_v46 }
  0x51   : > { %944 = vmatpush1.bf16.msra.mxu0 %v1559_v47  ;;  %1030 = vmatpush1.bf16.msra.mxu1 %v1560_v48  ;;  %v323_v47 = vld [vmem:[#allocation2 + $0x20] sm:$0xff]  ;;  %v325_v48 = vld [vmem:[#allocation2 + $0x30] sm:$0xff] }
  0x52   : > { %945 = vmatprep.subr.bf16.mxu0 %v1561_v49  ;;  %1031 = vmatprep.subr.bf16.mxu1 %v1563_v50 }
  0x55   : > { %946 = vmatpush1.bf16.msra.mxu0 %v1565_v51  ;;  %1032 = vmatpush1.bf16.msra.mxu1 %v1566_v52 }
  0x56   : > { %947 = vmatprep.subr.bf16.mxu0 %v1567_v54  ;;  %1033 = vmatprep.subr.bf16.mxu1 %v1569_v55  ;;  %v326_v54 = vld [vmem:[#allocation2 + $0x38] sm:$0xff] }
  0x59   : > { %948 = vmatpush1.bf16.msra.mxu0 %v1571_v56  ;;  %1034 = vmatpush1.bf16.msra.mxu1 %v1572_v57 }
  0x5a   : > { %949 = vmatprep.subr.bf16.mxu0 %v1573_v58  ;;  %1035 = vmatprep.subr.bf16.mxu1 %v1575_v59 }
  0x5d   : > { %950 = vmatpush1.bf16.msra.mxu0 %v1577_v60  ;;  %1036 = vmatpush1.bf16.msra.mxu1 %v1578_v61 }
  0x5e   : > { %951 = vmatprep.subr.bf16.mxu0 %v1579_v62  ;;  %1037 = vmatprep.subr.bf16.mxu1 %v1581_v63 }
  0x61   : > { %952 = vmatpush1.bf16.msra.mxu0 %v1583_v0  ;;  %1038 = vmatpush1.bf16.msra.mxu1 %v1584_v1  ;;  %v1125_v1 = vlaneseq (!%p1428_p11) }
  0x62   : > { %953 = vmatprep.subr.bf16.mxu0 %v1585_v2  ;;  %1039 = vmatprep.subr.bf16.mxu1 %v1587_v3  ;;  %v1123_v3 = vld [vmem:[%s1892_s2] sm:$0xf] (!%p1428_p11) }
  0x63   : > { %v1126_v2 = vshrl.u32 (!%p1428_p11), %v1125_v1, 7 }
  0x65   : > { %954 = vmatpush1.bf16.msra.mxu0 %v1589_v4  ;;  %1040 = vmatpush1.bf16.msra.mxu1 %v1590_v5 }
  0x66   : > { %966 = vmatprep.subr.bf16.mxu0 %v1596_v6  ;;  %1052 = vmatprep.subr.bf16.mxu1 %v1599_v7  ;;  %v1127_v6 = vsub.s32 (!%p1428_p11), 0, %v1126_v2  ;;  %v1131_v7 = vsub.s32 (!%p1428_p11), 1, %v1126_v2 }
  0x68   : > { %956 = vmatmul.mubr.bf16.vlgmr.msra.gmra.mrb[0].mxu0 %v1591_v8  ;;  %1042 = vmatmul.mubr.bf16.vlgmr.msra.gmra.mrb[0].mxu1 %v1591_v8  ;;  %v1135_v8 = vsub.s32 (!%p1428_p11), 2, %v1126_v2 }
  0x69   : > { %967 = vmatpush1.bf16.msra.mxu0 %v1594_v9  ;;  %1053 = vmatpush1.bf16.msra.mxu1 %v1597_v10  ;;  %v1139_v9 = vsub.s32 (!%p1428_p11), 3, %v1126_v2 }
  0x6a   : > { %968 = vmatprep.subr.bf16.mxu0 %v1602_v11  ;;  %1054 = vmatprep.subr.bf16.mxu1 %v1605_v12 }
  0x6b   : > { %998 = vmatprep.mubr.bf16.mxu0 %v1684_v17  ;;  %1084 = vmatprep.mubr.bf16.mxu1 %v1684_v17 }
  0x6d   : > { %969 = vmatpush1.bf16.msra.mxu0 %v1600_v13  ;;  %1055 = vmatpush1.bf16.msra.mxu1 %v1603_v14  ;;  %v1128_v13 = vrot.slane (!%p1428_p11), %v1123_v3, %v1127_v6  ;;  %v1132_v14 = vrot.slane (!%p1428_p11), %v1123_v3, %v1131_v7 }
  0x6e   : > { %970 = vmatprep.subr.bf16.mxu0 %v1608_v15  ;;  %1056 = vmatprep.subr.bf16.mxu1 %v1611_v16  ;;  %v1136_v15 = vrot.slane (!%p1428_p11), %v1123_v3, %v1135_v8  ;;  %v1140_v16 = vrot.slane (!%p1428_p11), %v1123_v3, %v1139_v9 }
  0x71   : > { %971 = vmatpush1.bf16.msra.mxu0 %v1606_v18  ;;  %1057 = vmatpush1.bf16.msra.mxu1 %v1609_v19 }
  0x72   : > { %972 = vmatprep.subr.bf16.mxu0 %v1614_v20  ;;  %1058 = vmatprep.subr.bf16.mxu1 %v1617_v21 }
  0x75   : > { %973 = vmatpush1.bf16.msra.mxu0 %v1612_v22  ;;  %1059 = vmatpush1.bf16.msra.mxu1 %v1615_v23 }
  0x76   : > { %974 = vmatprep.subr.bf16.mxu0 %v1620_v24  ;;  %1060 = vmatprep.subr.bf16.mxu1 %v1623_v25 }
  0x79   : > { %975 = vmatpush1.bf16.msra.mxu0 %v1618_v26  ;;  %1061 = vmatpush1.bf16.msra.mxu1 %v1621_v27 }
  0x7a   : > { %976 = vmatprep.subr.bf16.mxu0 %v1626_v28  ;;  %1062 = vmatprep.subr.bf16.mxu1 %v1629_v29 }
  0x7d   : > { %977 = vmatpush1.bf16.msra.mxu0 %v1624_v30  ;;  %1063 = vmatpush1.bf16.msra.mxu1 %v1627_v31 }
  0x7e   : > { %978 = vmatprep.subr.bf16.mxu0 %v1632_v32  ;;  %1064 = vmatprep.subr.bf16.mxu1 %v1635_v33 }
  0x81   : > { %979 = vmatpush1.bf16.msra.mxu0 %v1630_v34  ;;  %1065 = vmatpush1.bf16.msra.mxu1 %v1633_v35 }
  0x82   : > { %980 = vmatprep.subr.bf16.mxu0 %v1638_v36  ;;  %1066 = vmatprep.subr.bf16.mxu1 %v1641_v37 }
  0x85   : > { %981 = vmatpush1.bf16.msra.mxu0 %v1636_v38  ;;  %1067 = vmatpush1.bf16.msra.mxu1 %v1639_v39 }
  0x88   : > { %999 = vmatmul.mubr.bf16.vlgmr.msra.gmra.mrb[0].mxu0 %v1642_v40  ;;  %1085 = vmatmul.mubr.bf16.vlgmr.msra.gmra.mrb[0].mxu1 %v1642_v40 }
 0x15b   : > { %v1000_v45 = vpop.f32.mrb[0].mxu0  ;;  %v1086_v46 = vpop.f32.mrb[0].mxu1  ;;  %1114 = sbr.rel (%p1428_p11) target bundleno = 368 (0x170), region = 66 }
 0x15c   : > { %v1095_v49 = vadd.f32 %v1000_v45, %v319_v41  ;;  %v1097_v50 = vadd.f32 %v1086_v46, %v321_v42  ;;  %v1002_v51 = vpop.f32.mrb[1].mxu0  ;;  %v1088_v52 = vpop.f32.mrb[1].mxu1 }
 0x15d   : > { %v1096_v55 = vadd.f32 %v1002_v51, %v320_v43  ;;  %v1098_v56 = vadd.f32 %v1088_v52, %v322_v44  ;;  %v1004_v57 = vpop.f32.mrb[2].mxu0  ;;  %v1090_v58 = vpop.f32.mrb[2].mxu1 }
 0x15e   : > { %1103 = vst [vmem:[#allocation2] sm:$0xff] %v1095_v49  ;;  %1105 = vst [vmem:[#allocation2 + $0x10] sm:$0xff] %v1097_v50  ;;  %v1099_v59 = vadd.f32 %v1004_v57, %v323_v47  ;;  %v1101_v60 = vadd.f32 %v1090_v58, %v325_v48  ;;  %v1006_v61 = vpop.f32.mrb[3].mxu0  ;;  %v1092_v62 = vpop.f32.mrb[3].mxu1 }
 0x15f   : > { %1104 = vst [vmem:[#allocation2 + $0x8] sm:$0xff] %v1096_v55  ;;  %1106 = vst [vmem:[#allocation2 + $0x18] sm:$0xff] %v1098_v56  ;;  %v1100_v63 = vadd.f32 %v1006_v61, %v324_v53  ;;  %v1102_v0 = vadd.f32 %v1092_v62, %v326_v54 }
 0x160   : > { %1107 = vst [vmem:[#allocation2 + $0x20] sm:$0xff] %v1099_v59  ;;  %1109 = vst [vmem:[#allocation2 + $0x30] sm:$0xff] %v1101_v60 }
 0x161   : > { %1108 = vst [vmem:[#allocation2 + $0x28] sm:$0xff] %v1100_v63  ;;  %1110 = vst [vmem:[#allocation2 + $0x38] sm:$0xff] %v1102_v0 }
 0x165   : > { %v1115_v4 = vld [vmem:[#allocation2] sm:$0xff]  ;;  %v1117_v10 = vld [vmem:[#allocation2 + $0x10] sm:$0xff] }
 0x166   : > { %v1116_v5 = vld [vmem:[#allocation2 + $0x8] sm:$0xff]  ;;  %v1118_v11 = vld [vmem:[#allocation2 + $0x18] sm:$0xff]  ;;  %v1145_v20 = vadd.f32 %v1128_v13, %v1115_v4  ;;  %v1147_v22 = vadd.f32 %v1136_v15, %v1117_v10 }
 0x167   : > { %v1119_v12 = vld [vmem:[#allocation2 + $0x20] sm:$0xff]  ;;  %v1121_v18 = vld [vmem:[#allocation2 + $0x30] sm:$0xff]  ;;  %v1146_v21 = vadd.f32 %v1132_v14, %v1116_v5  ;;  %v1148_v23 = vadd.f32 %v1140_v16, %v1118_v11 }
 0x168   : > { %v1120_v17 = vld [vmem:[#allocation2 + $0x28] sm:$0xff]  ;;  %v1122_v19 = vld [vmem:[#allocation2 + $0x38] sm:$0xff]  ;;  %v1149_v24 = vadd.f32 %v1128_v13, %v1119_v12  ;;  %v1151_v26 = vadd.f32 %v1136_v15, %v1121_v18  ;;  %v1153_v28 = vmax.f32 %v1145_v20, 0.0  ;;  %v1155_v30 = vmax.f32 %v1147_v22, 0.0 }
 0x169   : > { %v1150_v25 = vadd.f32 %v1132_v14, %v1120_v17  ;;  %v1152_v27 = vadd.f32 %v1140_v16, %v1122_v19  ;;  %v1154_v29 = vmax.f32 %v1146_v21, 0.0  ;;  %v1156_v31 = vmax.f32 %v1148_v23, 0.0 }
 0x16a   : > { %v1157_v32 = vmax.f32 %v1149_v24, 0.0  ;;  %v1159_v34 = vmax.f32 %v1151_v26, 0.0 }
 0x16b   : > { %v1158_v33 = vmax.f32 %v1150_v25, 0.0  ;;  %v1160_v35 = vmax.f32 %v1152_v27, 0.0  ;;  %v1439_v36 = vpack.c.bf16 %v1154_v29, %v1153_v28  ;;  %v1440_v37 = vpack.c.bf16 %v1156_v31, %v1155_v30 }
 0x16d   : > { %v1441_v38 = vpack.c.bf16 %v1158_v33, %v1157_v32  ;;  %v1442_v39 = vpack.c.bf16 %v1160_v35, %v1159_v34  ;;  %1185 = vst [vmem:[%s1893_s3] sm:$0xff] %v1439_v36  ;;  %1186 = vst [vmem:[%s1893_s3 + $0x8] sm:$0xff] %v1440_v37 }
 0x16f   : > { %1187 = vst [vmem:[%s1893_s3 + $0x10] sm:$0xff] %v1441_v38  ;;  %1188 = vst [vmem:[%s1893_s3 + $0x18] sm:$0xff] %v1442_v39 }
 0x170 PF: > { %s13_s16 = sadd.s32 1, %s1681_s16   ;;  %s1894_s12 = smov %s1669_s13 }
 0x171   : > { %p10_p12 = scmp.ge.s32.totalorder %s13_s16, 8   ;;  %s1895_s13 = smov %s1740_s20 }
 0x172   : > { %s1896_s14 = smov %s1677_s15  ;;  %s1897_s15 = smov %s1899_s17 }
 0x173   :  { %12 = sbr.rel (!%p10_p12) target bundleno = 3 (0x3), region = 113 }

// kernel: hand_gesture_forward.27
= control target key start
LH: loop header
LB: loop body
LE: loop exit
PB: predicated region body
PF: predicated region fallthrough
CT: control target
= control target key end

     0   :  { %v113_v0 = vlaneseq  ;;  %vm26_vm0 = vcmask 1043456   ;;  %v254_v3 = vmov 1966171168   ;;  %v255_v11 = vmov 1935823168   ;;  %s295_s0 = inlined_call_operand.vmem [shape: bf16[2,4,512], index: 0, kind: input, shape index: {}]   ;;  %s296_s1 = inlined_call_operand.vmem [shape: bf16[2,512], index: 1, kind: output, shape index: {}]  }
   0x1   :  { %v8_v1 = vld [vmem:[%s295_s0] sm:$0xff]  ;;  %v9_v2 = vld [vmem:[%s295_s0 + $0x8] sm:$0xff]  ;;  %v272_v4 = vunpack.c.l.s4 %v254_v3  ;;  %v277_v12 = vunpack.c.l.s4 %v255_v11  ;;  %vm209_vm1 = vcmask 1041409  }
   0x2   :  { %v10_v5 = vunpack.c.l.bf16 %v8_v1  ;;  %v11_v6 = vunpack.c.h.bf16 %v8_v1  ;;  %v12_v7 = vunpack.c.l.bf16 %v9_v2  ;;  %v13_v8 = vunpack.c.h.bf16 %v9_v2 }
   0x3   :  { %v112_v9 = vunpack.c.0.s8 %v272_v4  ;;  %v275_v10 = vshrl.u32 %v113_v0, 7 }
   0x4   :  { %v18_v13 = vcombine.high %v10_v5, %v10_v5  ;;  %v19_v14 = vcombine.high %v11_v6, %v11_v6  ;;  %v20_v15 = vcombine.high %v12_v7, %v12_v7  ;;  %v21_v16 = vcombine.high %v13_v8, %v13_v8 }
   0x5   :  { %v27_v17 = vsel %vm26_vm0, %v10_v5, 0.0  ;;  %v41_v18 = vsel %vm26_vm0, %v11_v6, 0.0  ;;  %v55_v19 = vsel %vm26_vm0, %v12_v7, 0.0  ;;  %v69_v20 = vsel %vm26_vm0, %v13_v8, 0.0 }
   0x6   :  { %v28_v21 = vrot.slane %v27_v17, 4  ;;  %v34_v22 = vsel %vm26_vm0, %v18_v13, 0.0  ;;  %v42_v23 = vrot.slane %v41_v18, 4  ;;  %v48_v24 = vsel %vm26_vm0, %v19_v14, 0.0 }
   0x7   :  { %v35_v25 = vrot.slane %v34_v22, 4  ;;  %v49_v26 = vrot.slane %v48_v24, 4  ;;  %v56_v27 = vrot.slane %v55_v19, 4  ;;  %v62_v28 = vsel %vm26_vm0, %v20_v15, 0.0 }
   0x8   :  { %v29_v29 = vadd.f32 %v28_v21, %v27_v17  ;;  %v43_v30 = vadd.f32 %v42_v23, %v41_v18  ;;  %v63_v31 = vrot.slane %v62_v28, 4  ;;  %v70_v32 = vrot.slane %v69_v20, 4 }
   0x9   :  { %v36_v33 = vadd.f32 %v35_v25, %v34_v22  ;;  %v50_v34 = vadd.f32 %v49_v26, %v48_v24  ;;  %v57_v35 = vadd.f32 %v56_v27, %v55_v19  ;;  %v76_v36 = vsel %vm26_vm0, %v21_v16, 0.0 }
   0xa   :  { %v30_v37 = vrot.slane %v29_v29, 2  ;;  %v44_v38 = vrot.slane %v43_v30, 2  ;;  %v64_v39 = vadd.f32 %v63_v31, %v62_v28  ;;  %v71_v40 = vadd.f32 %v70_v32, %v69_v20 }
   0xb   :  { %v37_v41 = vrot.slane %v36_v33, 2  ;;  %v51_v42 = vrot.slane %v50_v34, 2  ;;  %v58_v43 = vrot.slane %v57_v35, 2  ;;  %v77_v44 = vrot.slane %v76_v36, 4 }
   0xc   :  { %v31_v45 = vadd.f32 %v30_v37, %v29_v29  ;;  %v45_v46 = vadd.f32 %v44_v38, %v43_v30  ;;  %v65_v47 = vrot.slane %v64_v39, 2  ;;  %v72_v48 = vrot.slane %v71_v40, 2 }
   0xd   :  { %v38_v49 = vadd.f32 %v37_v41, %v36_v33  ;;  %v52_v50 = vadd.f32 %v51_v42, %v50_v34  ;;  %v59_v51 = vadd.f32 %v58_v43, %v57_v35  ;;  %v78_v52 = vadd.f32 %v77_v44, %v76_v36 }
   0xe   :  { %v32_v53 = vrot.slane %v31_v45, 1  ;;  %v46_v54 = vrot.slane %v45_v46, 1  ;;  %v66_v55 = vadd.f32 %v65_v47, %v64_v39  ;;  %v73_v56 = vadd.f32 %v72_v48, %v71_v40 }
   0xf   :  { %v39_v57 = vrot.slane %v38_v49, 1  ;;  %v53_v58 = vrot.slane %v52_v50, 1  ;;  %v60_v59 = vrot.slane %v59_v51, 1  ;;  %v79_v60 = vrot.slane %v78_v52, 2 }
  0x10   :  { %v33_v61 = vadd.f32 %v32_v53, %v31_v45  ;;  %v47_v62 = vadd.f32 %v46_v54, %v45_v46  ;;  %v67_v63 = vrot.slane %v66_v55, 1  ;;  %v74_v0 = vrot.slane %v73_v56, 1 }
  0x11   :  { %v40_v1 = vadd.f32 %v39_v57, %v38_v49  ;;  %v54_v2 = vadd.f32 %v53_v58, %v52_v50  ;;  %v61_v3 = vadd.f32 %v60_v59, %v59_v51  ;;  %v80_v5 = vadd.f32 %v79_v60, %v78_v52 }
  0x12   :  { %v68_v6 = vadd.f32 %v67_v63, %v66_v55  ;;  %v75_v7 = vadd.f32 %v74_v0, %v73_v56  ;;  %v84_v8 = vmul.f32 0.25, %v33_v61  ;;  %v86_v11 = vmul.f32 0.25, %v47_v62 }
  0x13   :  { %v81_v13 = vrot.slane %v80_v5, 1  ;;  %v85_v14 = vmul.f32 0.25, %v40_v1  ;;  %v87_v15 = vmul.f32 0.25, %v54_v2  ;;  %v88_v16 = vmul.f32 0.25, %v61_v3 }
  0x14   :  { %v89_v17 = vmul.f32 0.25, %v68_v6  ;;  %v90_v18 = vmul.f32 0.25, %v75_v7  ;;  %v115_v22 = vsub.s32 %v112_v9, %v275_v10  ;;  %v158_v27 = vunpack.c.0.s8 %v277_v12 }
  0x15   :  { %v82_v19 = vadd.f32 %v81_v13, %v80_v5  ;;  %v247_v20 = vpack.c.bf16 %v85_v14, %v84_v8  ;;  %v248_v21 = vpack.c.bf16 %v87_v15, %v86_v11 }
  0x16   :  { %v249_v23 = vpack.c.bf16 %v89_v17, %v88_v16  ;;  %v161_v33 = vsub.s32 %v158_v27, %v275_v10 }
  0x17   :  { %v91_v24 = vmul.f32 0.25, %v82_v19  ;;  %v116_v25 = vrot.slane %v247_v20, %v115_v22  ;;  %v123_v26 = vrot.slane %v248_v21, %v115_v22 }
  0x18   :  { %v140_v30 = vrot.slane %v249_v23, %v115_v22 }
  0x19   :  { %v124_v28 = vcombine.low %v116_v25, %v123_v26  ;;  %v250_v29 = vpack.c.bf16 %v91_v24, %v90_v18 }
  0x1b   :  { %v131_v31 = vrot.slane %v124_v28, %v115_v22  ;;  %v147_v32 = vrot.slane %v250_v29, %v115_v22 }
  0x1d   :  { %v148_v34 = vcombine.low %v140_v30, %v147_v32  ;;  %v162_v35 = vrot.slane %v131_v31, %v161_v33 }
  0x1f   :  { %v155_v36 = vrot.slane %v148_v34, %v115_v22  ;;  %v163_v37 = vcombine.high %v162_v35, %v162_v35  ;;  %v170_v38 = vrot.slane %v162_v35, %v161_v33 }
  0x21   :  { %v184_v4 = vrot.slane %v155_v36, %v161_v33  ;;  %v177_v9 = vrot.slane %v163_v37, %v161_v33  ;;  %v200_v41 = vunpack.c.l.b16 %v170_v38  ;;  %v201_v43 = vunpack.c.h.b16 %v170_v38 }
  0x23   :  { %v185_v39 = vcombine.high %v184_v4, %v184_v4  ;;  %v192_v40 = vrot.slane %v184_v4, %v161_v33  ;;  %v202_v45 = vunpack.c.l.b16 %v177_v9  ;;  %v203_v46 = vunpack.c.h.b16 %v177_v9 }
  0x25   :  { %v199_v42 = vrot.slane %v185_v39, %v161_v33  ;;  %v204_v12 = vunpack.c.l.b16 %v192_v40  ;;  %v205_v44 = vunpack.c.h.b16 %v192_v40 }
  0x27   :  { %v206_v47 = vunpack.c.l.b16 %v199_v42  ;;  %v207_v48 = vunpack.c.h.b16 %v199_v42  ;;  %v208_v10 = vrot.slane %v204_v12, 7  ;;  %v211_v49 = vrot.slane %v205_v44, 7 }
  0x29   :  { %v210_v50 = vsel %vm209_vm1, %v208_v10, %v200_v41  ;;  %v212_v51 = vsel %vm209_vm1, %v211_v49, %v201_v43  ;;  %v213_v52 = vrot.slane %v206_v47, 7  ;;  %v215_v53 = vrot.slane %v207_v48, 7 }
  0x2a   :  { %v217_v54 = vpack.c.b16 %v212_v51, %v210_v50 }
  0x2b   :  { %v214_v55 = vsel %vm209_vm1, %v213_v52, %v202_v45  ;;  %v216_v56 = vsel %vm209_vm1, %v215_v53, %v203_v46 }
  0x2c   :  { %v218_v57 = vpack.c.b16 %v216_v56, %v214_v55  ;;  %v225_v58 = vrot.slane %v217_v54, %v115_v22 }
  0x2e   :  { %v232_v59 = vrot.slane %v218_v57, %v115_v22 }
  0x30   :  { %v233_v60 = vcombine.low %v225_v58, %v232_v59 }
  0x32   :  { %251 = vst.sshfl [vmem:[%s296_s1] sm:$0x55 pattern:$0x73625140] %v233_v60 }

// kernel: hand_gesture_forward.25
= control target key start
LH: loop header
LB: loop body
LE: loop exit
PB: predicated region body
PF: predicated region fallthrough
CT: control target
= control target key end

     0   :  { %s1011_s1 = inlined_call_operand.vmem [shape: bf16[256,512], index: 1, kind: input, shape index: {}]   ;;  %s1012_s0 = inlined_call_operand.vmem [shape: bf16[16,256], index: 0, kind: input, shape index: {}]   ;;  %s1013_s2 = inlined_call_operand.vmem [shape: f32[1,512], index: 2, kind: input, shape index: {}]   ;;  %s1014_s3 = inlined_call_operand.vmem [shape: bf16[16,512], index: 3, kind: output, shape index: {}]  }
   0x1   :  { %v679_v0 = vld [vmem:[%s1011_s1 + $0x4] ss:$16 sps:$4 sm:$0xff]   ;;  %v681_v1 = vld [vmem:[%s1011_s1 + $0xc] ss:$16 sps:$4 sm:$0xff]   ;;  %v683_v2 = vld [vmem:[%s1011_s1] ss:$16 sps:$4 sm:$0xff]  }
   0x2   :  { %430 = vmatprep.subr.bf16.mxu0 %v679_v0  ;;  %v684_v3 = vld [vmem:[%s1011_s1 + $0x8] ss:$16 sps:$4 sm:$0xff]   ;;  %473 = vmatprep.subr.bf16.mxu1 %v681_v1  ;;  %v685_v4 = vld [vmem:[%s1011_s1 + $0x24] ss:$16 sps:$4 sm:$0xff]   ;;  %v687_v5 = vld [vmem:[%s1011_s1 + $0x2c] ss:$16 sps:$4 sm:$0xff]  }
   0x3   :  { %431 = vmatpush1.bf16.msra.mxu0 %v683_v2  ;;  %474 = vmatpush1.bf16.msra.mxu1 %v684_v3  ;;  %v689_v6 = vld [vmem:[%s1011_s1 + $0x20] ss:$16 sps:$4 sm:$0xff]   ;;  %v690_v7 = vld [vmem:[%s1011_s1 + $0x28] ss:$16 sps:$4 sm:$0xff]   ;;  %v691_v8 = vld [vmem:[%s1011_s1 + $0x44] ss:$16 sps:$4 sm:$0xff]   ;;  %v545_v2 = vlaneseq }
   0x4   :  { %432 = vmatprep.subr.bf16.mxu0 %v685_v4  ;;  %475 = vmatprep.subr.bf16.mxu1 %v687_v5  ;;  %v693_v9 = vld [vmem:[%s1011_s1 + $0x4c] ss:$16 sps:$4 sm:$0xff]   ;;  %v695_v10 = vld [vmem:[%s1011_s1 + $0x40] ss:$16 sps:$4 sm:$0xff]   ;;  %v696_v11 = vld [vmem:[%s1011_s1 + $0x48] ss:$16 sps:$4 sm:$0xff]  }
   0x5   :  { %v697_v12 = vld [vmem:[%s1011_s1 + $0x64] ss:$16 sps:$4 sm:$0xff]   ;;  %v699_v13 = vld [vmem:[%s1011_s1 + $0x6c] ss:$16 sps:$4 sm:$0xff]   ;;  %v701_v14 = vld [vmem:[%s1011_s1 + $0x60] ss:$16 sps:$4 sm:$0xff]  }
   0x6   :  { %v702_v15 = vld [vmem:[%s1011_s1 + $0x68] ss:$16 sps:$4 sm:$0xff]   ;;  %v703_v16 = vld [vmem:[%s1011_s1 + $0x84] ss:$16 sps:$4 sm:$0xff]   ;;  %v705_v17 = vld [vmem:[%s1011_s1 + $0x8c] ss:$16 sps:$4 sm:$0xff]  }
   0x7   :  { %433 = vmatpush1.bf16.msra.mxu0 %v689_v6  ;;  %476 = vmatpush1.bf16.msra.mxu1 %v690_v7  ;;  %v707_v18 = vld [vmem:[%s1011_s1 + $0x80] ss:$16 sps:$4 sm:$0xff]   ;;  %v708_v19 = vld [vmem:[%s1011_s1 + $0x88] ss:$16 sps:$4 sm:$0xff]   ;;  %v709_v20 = vld [vmem:[%s1011_s1 + $0xa4] ss:$16 sps:$4 sm:$0xff]  }
   0x8   :  { %434 = vmatprep.subr.bf16.mxu0 %v691_v8  ;;  %477 = vmatprep.subr.bf16.mxu1 %v693_v9  ;;  %v711_v21 = vld [vmem:[%s1011_s1 + $0xac] ss:$16 sps:$4 sm:$0xff]   ;;  %v713_v22 = vld [vmem:[%s1011_s1 + $0xa0] ss:$16 sps:$4 sm:$0xff]   ;;  %v714_v23 = vld [vmem:[%s1011_s1 + $0xa8] ss:$16 sps:$4 sm:$0xff]  }
   0x9   :  { %v715_v24 = vld [vmem:[%s1011_s1 + $0xc4] ss:$16 sps:$4 sm:$0xff]   ;;  %v717_v25 = vld [vmem:[%s1011_s1 + $0xcc] ss:$16 sps:$4 sm:$0xff]   ;;  %v719_v26 = vld [vmem:[%s1011_s1 + $0xc0] ss:$16 sps:$4 sm:$0xff]  }
   0xa   :  { %v720_v27 = vld [vmem:[%s1011_s1 + $0xc8] ss:$16 sps:$4 sm:$0xff]   ;;  %v721_v28 = vld [vmem:[%s1011_s1 + $0xe4] ss:$16 sps:$4 sm:$0xff]   ;;  %v723_v29 = vld [vmem:[%s1011_s1 + $0xec] ss:$16 sps:$4 sm:$0xff]  }
   0xb   :  { %435 = vmatpush1.bf16.msra.mxu0 %v695_v10  ;;  %478 = vmatpush1.bf16.msra.mxu1 %v696_v11  ;;  %v725_v30 = vld [vmem:[%s1011_s1 + $0xe0] ss:$16 sps:$4 sm:$0xff]   ;;  %v726_v31 = vld [vmem:[%s1011_s1 + $0xe8] ss:$16 sps:$4 sm:$0xff]   ;;  %v727_v32 = vld [vmem:[%s1011_s1 + $0x104] ss:$16 sps:$4 sm:$0xff]  }
   0xc   :  { %436 = vmatprep.subr.bf16.mxu0 %v697_v12  ;;  %479 = vmatprep.subr.bf16.mxu1 %v699_v13  ;;  %v729_v33 = vld [vmem:[%s1011_s1 + $0x10c] ss:$16 sps:$4 sm:$0xff]   ;;  %v731_v34 = vld [vmem:[%s1011_s1 + $0x100] ss:$16 sps:$4 sm:$0xff]   ;;  %v732_v35 = vld [vmem:[%s1011_s1 + $0x108] ss:$16 sps:$4 sm:$0xff]  }
   0xd   :  { %v733_v36 = vld [vmem:[%s1011_s1 + $0x124] ss:$16 sps:$4 sm:$0xff]   ;;  %v735_v37 = vld [vmem:[%s1011_s1 + $0x12c] ss:$16 sps:$4 sm:$0xff]   ;;  %v737_v38 = vld [vmem:[%s1011_s1 + $0x120] ss:$16 sps:$4 sm:$0xff]  }
   0xe   :  { %v738_v39 = vld [vmem:[%s1011_s1 + $0x128] ss:$16 sps:$4 sm:$0xff]   ;;  %v739_v40 = vld [vmem:[%s1011_s1 + $0x144] ss:$16 sps:$4 sm:$0xff]   ;;  %v741_v41 = vld [vmem:[%s1011_s1 + $0x14c] ss:$16 sps:$4 sm:$0xff]  }
   0xf   :  { %437 = vmatpush1.bf16.msra.mxu0 %v701_v14  ;;  %480 = vmatpush1.bf16.msra.mxu1 %v702_v15  ;;  %v743_v42 = vld [vmem:[%s1011_s1 + $0x140] ss:$16 sps:$4 sm:$0xff]   ;;  %v744_v43 = vld [vmem:[%s1011_s1 + $0x148] ss:$16 sps:$4 sm:$0xff]   ;;  %v745_v44 = vld [vmem:[%s1011_s1 + $0x164] ss:$16 sps:$4 sm:$0xff]  }
  0x10   :  { %438 = vmatprep.subr.bf16.mxu0 %v703_v16  ;;  %481 = vmatprep.subr.bf16.mxu1 %v705_v17  ;;  %v747_v45 = vld [vmem:[%s1011_s1 + $0x16c] ss:$16 sps:$4 sm:$0xff]   ;;  %v749_v47 = vld [vmem:[%s1011_s1 + $0x160] ss:$16 sps:$4 sm:$0xff]   ;;  %v750_v48 = vld [vmem:[%s1011_s1 + $0x168] ss:$16 sps:$4 sm:$0xff]  }
  0x11   :  { %v777_v46 = vld [vmem:[%s1012_s0 + $0x4] ss:$8 sps:$4 sm:$0xff]   ;;  %v755_v51 = vld [vmem:[%s1011_s1 + $0x180] ss:$16 sps:$4 sm:$0xff]   ;;  %v756_v52 = vld [vmem:[%s1011_s1 + $0x188] ss:$16 sps:$4 sm:$0xff]  }
  0x12   :  { %v751_v49 = vld [vmem:[%s1011_s1 + $0x184] ss:$16 sps:$4 sm:$0xff]   ;;  %v753_v50 = vld [vmem:[%s1011_s1 + $0x18c] ss:$16 sps:$4 sm:$0xff]   ;;  %462 = vmatprep.mubr.bf16.mxu0 %v777_v46  ;;  %505 = vmatprep.mubr.bf16.mxu1 %v777_v46  ;;  %v761_v55 = vld [vmem:[%s1011_s1 + $0x1a0] ss:$16 sps:$4 sm:$0xff]  }
  0x13   :  { %439 = vmatpush1.bf16.msra.mxu0 %v707_v18  ;;  %482 = vmatpush1.bf16.msra.mxu1 %v708_v19  ;;  %v757_v53 = vld [vmem:[%s1011_s1 + $0x1a4] ss:$16 sps:$4 sm:$0xff]   ;;  %v759_v54 = vld [vmem:[%s1011_s1 + $0x1ac] ss:$16 sps:$4 sm:$0xff]   ;;  %v762_v56 = vld [vmem:[%s1011_s1 + $0x1a8] ss:$16 sps:$4 sm:$0xff]  }
  0x14   :  { %440 = vmatprep.subr.bf16.mxu0 %v709_v20  ;;  %483 = vmatprep.subr.bf16.mxu1 %v711_v21  ;;  %v763_v57 = vld [vmem:[%s1011_s1 + $0x1c4] ss:$16 sps:$4 sm:$0xff]   ;;  %v765_v58 = vld [vmem:[%s1011_s1 + $0x1cc] ss:$16 sps:$4 sm:$0xff]   ;;  %v767_v59 = vld [vmem:[%s1011_s1 + $0x1c0] ss:$16 sps:$4 sm:$0xff]  }
  0x15   :  { %v768_v60 = vld [vmem:[%s1011_s1 + $0x1c8] ss:$16 sps:$4 sm:$0xff]   ;;  %v769_v61 = vld [vmem:[%s1011_s1 + $0x1e4] ss:$16 sps:$4 sm:$0xff]   ;;  %v771_v62 = vld [vmem:[%s1011_s1 + $0x1ec] ss:$16 sps:$4 sm:$0xff]  }
  0x16   :  { %v773_v63 = vld [vmem:[%s1011_s1 + $0x1e0] ss:$16 sps:$4 sm:$0xff]   ;;  %v774_v0 = vld [vmem:[%s1011_s1 + $0x1e8] ss:$16 sps:$4 sm:$0xff]   ;;  %v546_v3 = vshrl.u32 %v545_v2, 7 }
  0x17   :  { %441 = vmatpush1.bf16.msra.mxu0 %v713_v22  ;;  %484 = vmatpush1.bf16.msra.mxu1 %v714_v23  ;;  %v775_v1 = vld [vmem:[%s1012_s0] ss:$8 sps:$4 sm:$0xff]  }
  0x18   :  { %442 = vmatprep.subr.bf16.mxu0 %v715_v24  ;;  %485 = vmatprep.subr.bf16.mxu1 %v717_v25  ;;  %v547_v4 = vsub.s32 0, %v546_v3  ;;  %v555_v5 = vsub.s32 2, %v546_v3  ;;  %v543_v6 = vld [vmem:[%s1013_s2] sm:$0xf]  ;;  %v551_v7 = vsub.s32 1, %v546_v3  ;;  %v559_v8 = vsub.s32 3, %v546_v3 }
  0x1a   :  { %v548_v9 = vrot.slane %v543_v6, %v547_v4  ;;  %v556_v10 = vrot.slane %v543_v6, %v555_v5  ;;  %v552_v11 = vrot.slane %v543_v6, %v551_v7  ;;  %v560_v12 = vrot.slane %v543_v6, %v559_v8 }
  0x1b   :  { %443 = vmatpush1.bf16.msra.mxu0 %v719_v26  ;;  %486 = vmatpush1.bf16.msra.mxu1 %v720_v27 }
  0x1c   :  { %444 = vmatprep.subr.bf16.mxu0 %v721_v28  ;;  %487 = vmatprep.subr.bf16.mxu1 %v723_v29 }
  0x1f   :  { %445 = vmatpush1.bf16.msra.mxu0 %v725_v30  ;;  %488 = vmatpush1.bf16.msra.mxu1 %v726_v31 }
  0x20   :  { %446 = vmatprep.subr.bf16.mxu0 %v727_v32  ;;  %489 = vmatprep.subr.bf16.mxu1 %v729_v33 }
  0x23   :  { %447 = vmatpush1.bf16.msra.mxu0 %v731_v34  ;;  %490 = vmatpush1.bf16.msra.mxu1 %v732_v35 }
  0x24   :  { %448 = vmatprep.subr.bf16.mxu0 %v733_v36  ;;  %491 = vmatprep.subr.bf16.mxu1 %v735_v37 }
  0x27   :  { %449 = vmatpush1.bf16.msra.mxu0 %v737_v38  ;;  %492 = vmatpush1.bf16.msra.mxu1 %v738_v39 }
  0x28   :  { %450 = vmatprep.subr.bf16.mxu0 %v739_v40  ;;  %493 = vmatprep.subr.bf16.mxu1 %v741_v41 }
  0x2b   :  { %451 = vmatpush1.bf16.msra.mxu0 %v743_v42  ;;  %494 = vmatpush1.bf16.msra.mxu1 %v744_v43 }
  0x2c   :  { %452 = vmatprep.subr.bf16.mxu0 %v745_v44  ;;  %495 = vmatprep.subr.bf16.mxu1 %v747_v45 }
  0x2f   :  { %453 = vmatpush1.bf16.msra.mxu0 %v749_v47  ;;  %496 = vmatpush1.bf16.msra.mxu1 %v750_v48 }
  0x30   :  { %454 = vmatprep.subr.bf16.mxu0 %v751_v49  ;;  %497 = vmatprep.subr.bf16.mxu1 %v753_v50 }
  0x33   :  { %455 = vmatpush1.bf16.msra.mxu0 %v755_v51  ;;  %498 = vmatpush1.bf16.msra.mxu1 %v756_v52 }
  0x34   :  { %456 = vmatprep.subr.bf16.mxu0 %v757_v53  ;;  %499 = vmatprep.subr.bf16.mxu1 %v759_v54 }
  0x37   :  { %457 = vmatpush1.bf16.msra.mxu0 %v761_v55  ;;  %500 = vmatpush1.bf16.msra.mxu1 %v762_v56 }
  0x38   :  { %458 = vmatprep.subr.bf16.mxu0 %v763_v57  ;;  %501 = vmatprep.subr.bf16.mxu1 %v765_v58 }
  0x3b   :  { %459 = vmatpush1.bf16.msra.mxu0 %v767_v59  ;;  %502 = vmatpush1.bf16.msra.mxu1 %v768_v60 }
  0x3c   :  { %460 = vmatprep.subr.bf16.mxu0 %v769_v61  ;;  %503 = vmatprep.subr.bf16.mxu1 %v771_v62 }
  0x3f   :  { %461 = vmatpush1.bf16.msra.mxu0 %v773_v63  ;;  %504 = vmatpush1.bf16.msra.mxu1 %v774_v0 }
  0x42   :  { %463 = vmatmul.mubr.bf16.vlgmr.msra.gmra.mrb[0].mxu0 %v775_v1  ;;  %506 = vmatmul.mubr.bf16.vlgmr.msra.gmra.mrb[0].mxu1 %v775_v1 }
 0x115   :  { %v464_v13 = vpop.f32.mrb[0].mxu0  ;;  %v507_v14 = vpop.f32.mrb[0].mxu1 }
 0x116   :  { %v565_v15 = vadd.f32 %v548_v9, %v464_v13  ;;  %v567_v16 = vadd.f32 %v556_v10, %v507_v14  ;;  %v466_v17 = vpop.f32.mrb[1].mxu0  ;;  %v509_v18 = vpop.f32.mrb[1].mxu1 }
 0x117   :  { %v566_v19 = vadd.f32 %v552_v11, %v466_v17  ;;  %v568_v20 = vadd.f32 %v560_v12, %v509_v18  ;;  %v468_v21 = vpop.f32.mrb[2].mxu0  ;;  %v511_v22 = vpop.f32.mrb[2].mxu1 }
 0x118   :  { %v569_v23 = vadd.f32 %v548_v9, %v468_v21  ;;  %v571_v24 = vadd.f32 %v556_v10, %v511_v22  ;;  %v470_v25 = vpop.f32.mrb[3].mxu0  ;;  %v513_v26 = vpop.f32.mrb[3].mxu1 }
 0x119   :  { %v675_v27 = vpack.c.bf16 %v566_v19, %v565_v15  ;;  %v676_v28 = vpack.c.bf16 %v568_v20, %v567_v16  ;;  %v570_v29 = vadd.f32 %v552_v11, %v470_v25  ;;  %v572_v30 = vadd.f32 %v560_v12, %v513_v26 }
 0x11b   :  { %597 = vst [vmem:[%s1014_s3] sm:$0xff] %v675_v27  ;;  %598 = vst [vmem:[%s1014_s3 + $0x8] sm:$0xff] %v676_v28  ;;  %v677_v31 = vpack.c.bf16 %v570_v29, %v569_v23  ;;  %v678_v32 = vpack.c.bf16 %v572_v30, %v571_v24 }
 0x11d   :  { %599 = vst [vmem:[%s1014_s3 + $0x10] sm:$0xff] %v677_v31  ;;  %600 = vst [vmem:[%s1014_s3 + $0x18] sm:$0xff] %v678_v32 }

// kernel: hand_gesture_forward.26
= control target key start
LH: loop header
LB: loop body
LE: loop exit
PB: predicated region body
PF: predicated region fallthrough
CT: control target
= control target key end

     0   :  { %s2081_s15 = smov 0   ;;  %s2083_s16 = smov 0   ;;  %s2311_s0 = inlined_call_operand.vmem [shape: bf16[16,4608], index: 0, kind: input, shape index: {}]   ;;  %s2312_s1 = inlined_call_operand.vmem [shape: bf16[4608,512], index: 1, kind: input, shape index: {}]   ;;  %s2313_s2 = inlined_call_operand.vmem [shape: f32[1,512], index: 2, kind: input, shape index: {}]   ;;  %s2314_s3 = inlined_call_operand.vmem [shape: bf16[16,512], index: 3, kind: input, shape index: {}]   ;;  %s2315_s4 = inlined_call_operand.vmem [shape: bf16[16,512], index: 4, kind: output, shape index: {}]  }
   0x1   :  { %s2085_s17 = smov 0   ;;  %s2087_s18 = smov 0  }
   0x2   :  { %s2089_s19 = smov 0  }
   0x3 LB: > { %s26_s20 = sadd.s32 1, %s2049_s18  ;;  %p49_p1 = scmp.ne.s32.totalorder %s2041_s16, %s2037_s15  ;;  %s2053_s19 = sphi %s2089_s19, %s14_s19   ;;  %s2049_s18 = sphi %s2087_s18, %s2319_s18   ;;  %s2045_s17 = sphi %s2085_s17, %s2318_s17   ;;  %s2041_s16 = sphi %s2083_s16, %s2317_s16   ;;  %s2037_s15 = sphi %s2081_s15, %s2316_s15  }
   0x4   : > { %p27_p0 = scmp.ge.s32.totalorder %s26_s20, 9  ;;  %p50_p2 = scmp.eq.s32.totalorder %s2053_s19, 0 }
   0x5   : > { %s42_s22 = sadd.s32 1, %s2041_s16  ;;  %p1611_p5 = scmp.ge.s32.totalorder %s2053_s19, 9 }
   0x6   : > { %s2321_s20 = smov (%p27_p0, %s26_s20), 0  ;;  %p51_p3 = por %p50_p2, %p49_p1 }
   0x7   : > { %s38_s21 = ssub.s32 %s2049_s18, %s2321_s20  ;;  %208 = sbr.rel (%p1611_p5) target bundleno = 21 (0x15), region = 24 }
   0x8   : > { %p40_p4 = scmp.eq.s32.totalorder %s38_s21, 0 }
   0xa   : > { %s2116_s23 = scalar_select %p40_p4, %s2041_s16, %s42_s22  }
   0xe   : > { %211 = sbr.rel (!%p51_p3) target bundleno = 21 (0x15), region = 28  ;;  %s213_s24 = sand.u32 (%p51_p3), 1, %s2041_s16  }
   0xf   : > { %s1762_s25 = sshll.u32 (%p51_p3), %s2049_s18, 4  ;;  %s1612_s26 = sshll.u32 (%p51_p3), %s213_s24, 5 }
  0x10   : > { %s221_s29 = scalar_lea.vmem (%p51_p3), %s2311_s0, %s1762_s25  ;;  %s215_s30 = scalar_lea.vmem (%p51_p3), [#allocation3], %s1612_s26 }
  0x11   : > { %v234_v0 = vld [vmem:[%s221_s29] sm:$0xff] (%p51_p3)  ;;  %v236_v1 = vld [vmem:[%s221_s29 + $0x8] sm:$0xff] (%p51_p3)  ;;  %v238_v2 = vld [vmem:[%s221_s29 + $0x90] sm:$0xff] (%p51_p3) }
  0x12   : > { %235 = vst [vmem:[%s215_s30] sm:$0xff] (%p51_p3), %v234_v0  ;;  %237 = vst [vmem:[%s215_s30 + $0x8] sm:$0xff] (%p51_p3), %v236_v1  ;;  %v240_v3 = vld [vmem:[%s221_s29 + $0x98] sm:$0xff] (%p51_p3) }
  0x13   : > { %239 = vst [vmem:[%s215_s30 + $0x10] sm:$0xff] (%p51_p3), %v238_v2  ;;  %241 = vst [vmem:[%s215_s30 + $0x18] sm:$0xff] (%p51_p3), %v240_v3 }
  0x15 PF: > { %p1615_p6 = scmp.ge.s32.totalorder %s2053_s19, 1  ;;  %p261_p7 = scmp.lt.s32.totalorder %s2053_s19, 10 }
  0x17   : > { %p262_p8 = pnand %p1615_p6, %p261_p7 }
  0x18   : > { %s268_s5 = sand.u32 (!%p262_p8), 1, %s2037_s15   ;;  %s1617_s6 = sshll.u32 (!%p262_p8), %s2045_s17, 6 }
  0x19   : > { %265 = sbr.rel (%p262_p8) target bundleno = 402 (0x192), region = 55  ;;  %s1616_s7 = sshll.u32 (!%p262_p8), %s268_s5, 5 }
  0x1a   : > { %p326_p9 = scmp.lt.s32.totalorder (!%p262_p8), %s1617_s6, 575  ;;  %s2133_s12 = scalar_lea.vmem (!%p262_p8), [#allocation3], %s1616_s7 }
  0x1b   : > { %p1620_p10 = scmp.ne.s32.totalorder (!%p262_p8), %s2045_s17, 0 }
  0x20   : > { %s2323_s6 = smov (!%p326_p9, %s1617_s6), 575  ;;  %368 = sbr.rel (%p1620_p10) target bundleno = 39 (0x27), region = 63 }
  0x21   : > { %s1763_s8 = sshll.u32 %s2323_s6, 4  ;;  %v2055_v4 = vmov (!%p1620_p10), 0.0  }
  0x22   : > { %s2131_s11 = scalar_lea.vmem %s2312_s1, %s1763_s8  ;;  %369 = vst [vmem:[#allocation2] sm:$0xff] (!%p1620_p10), %v2055_v4  ;;  %370 = vst [vmem:[#allocation2 + $0x8] sm:$0xff] (!%p1620_p10), %v2055_v4 }
  0x23   : > { %371 = vst [vmem:[#allocation2 + $0x10] sm:$0xff] (!%p1620_p10), %v2055_v4  ;;  %372 = vst [vmem:[#allocation2 + $0x18] sm:$0xff] (!%p1620_p10), %v2055_v4 }
  0x24   : > { %373 = vst [vmem:[#allocation2 + $0x20] sm:$0xff] (!%p1620_p10), %v2055_v4  ;;  %374 = vst [vmem:[#allocation2 + $0x28] sm:$0xff] (!%p1620_p10), %v2055_v4 }
  0x25   : > { %375 = vst [vmem:[#allocation2 + $0x30] sm:$0xff] (!%p1620_p10), %v2055_v4  ;;  %376 = vst [vmem:[#allocation2 + $0x38] sm:$0xff] (!%p1620_p10), %v2055_v4 }
  0x27 PF: > { %v1817_v5 = vld [vmem:[%s2131_s11 + $0x4] ss:$16 sps:$4 sm:$0xff]   ;;  %v1819_v6 = vld [vmem:[%s2131_s11 + $0xc] ss:$16 sps:$4 sm:$0xff]   ;;  %v1821_v7 = vld [vmem:[%s2131_s11] ss:$16 sps:$4 sm:$0xff]  }
  0x28   : > { %1177 = vmatprep.subr.bf16.mxu0 %v1817_v5  ;;  %v1822_v8 = vld [vmem:[%s2131_s11 + $0x8] ss:$16 sps:$4 sm:$0xff]   ;;  %1263 = vmatprep.subr.bf16.mxu1 %v1819_v6  ;;  %v1823_v9 = vld [vmem:[%s2131_s11 + $0x24] ss:$16 sps:$4 sm:$0xff]   ;;  %v1825_v10 = vld [vmem:[%s2131_s11 + $0x2c] ss:$16 sps:$4 sm:$0xff]  }
  0x29   : > { %1178 = vmatpush1.bf16.msra.mxu0 %v1821_v7  ;;  %1264 = vmatpush1.bf16.msra.mxu1 %v1822_v8  ;;  %v1827_v11 = vld [vmem:[%s2131_s11 + $0x20] ss:$16 sps:$4 sm:$0xff]   ;;  %v1828_v12 = vld [vmem:[%s2131_s11 + $0x28] ss:$16 sps:$4 sm:$0xff]   ;;  %v1829_v13 = vld [vmem:[%s2131_s11 + $0x44] ss:$16 sps:$4 sm:$0xff]  }
  0x2a   : > { %1179 = vmatprep.subr.bf16.mxu0 %v1823_v9  ;;  %1265 = vmatprep.subr.bf16.mxu1 %v1825_v10  ;;  %v1831_v14 = vld [vmem:[%s2131_s11 + $0x4c] ss:$16 sps:$4 sm:$0xff]   ;;  %v1833_v15 = vld [vmem:[%s2131_s11 + $0x40] ss:$16 sps:$4 sm:$0xff]   ;;  %v1834_v16 = vld [vmem:[%s2131_s11 + $0x48] ss:$16 sps:$4 sm:$0xff]  }
  0x2b   : > { %v1835_v17 = vld [vmem:[%s2131_s11 + $0x64] ss:$16 sps:$4 sm:$0xff]   ;;  %v1837_v18 = vld [vmem:[%s2131_s11 + $0x6c] ss:$16 sps:$4 sm:$0xff]   ;;  %v1839_v19 = vld [vmem:[%s2131_s11 + $0x60] ss:$16 sps:$4 sm:$0xff]  }
  0x2c   : > { %v1840_v20 = vld [vmem:[%s2131_s11 + $0x68] ss:$16 sps:$4 sm:$0xff]   ;;  %v1841_v21 = vld [vmem:[%s2131_s11 + $0x84] ss:$16 sps:$4 sm:$0xff]   ;;  %v1843_v22 = vld [vmem:[%s2131_s11 + $0x8c] ss:$16 sps:$4 sm:$0xff]  }
  0x2d   : > { %1180 = vmatpush1.bf16.msra.mxu0 %v1827_v11  ;;  %1266 = vmatpush1.bf16.msra.mxu1 %v1828_v12  ;;  %v1845_v23 = vld [vmem:[%s2131_s11 + $0x80] ss:$16 sps:$4 sm:$0xff]   ;;  %v1846_v24 = vld [vmem:[%s2131_s11 + $0x88] ss:$16 sps:$4 sm:$0xff]   ;;  %v1847_v25 = vld [vmem:[%s2131_s11 + $0xa4] ss:$16 sps:$4 sm:$0xff]  }
  0x2e   : > { %1181 = vmatprep.subr.bf16.mxu0 %v1829_v13  ;;  %1267 = vmatprep.subr.bf16.mxu1 %v1831_v14  ;;  %v1849_v26 = vld [vmem:[%s2131_s11 + $0xac] ss:$16 sps:$4 sm:$0xff]   ;;  %v1851_v27 = vld [vmem:[%s2131_s11 + $0xa0] ss:$16 sps:$4 sm:$0xff]   ;;  %v1852_v28 = vld [vmem:[%s2131_s11 + $0xa8] ss:$16 sps:$4 sm:$0xff]  }
  0x2f   : > { %v1853_v29 = vld [vmem:[%s2131_s11 + $0xc4] ss:$16 sps:$4 sm:$0xff]   ;;  %v1855_v30 = vld [vmem:[%s2131_s11 + $0xcc] ss:$16 sps:$4 sm:$0xff]   ;;  %v1857_v31 = vld [vmem:[%s2131_s11 + $0xc0] ss:$16 sps:$4 sm:$0xff]  }
  0x30   : > { %v1858_v32 = vld [vmem:[%s2131_s11 + $0xc8] ss:$16 sps:$4 sm:$0xff]   ;;  %v1859_v33 = vld [vmem:[%s2131_s11 + $0xe4] ss:$16 sps:$4 sm:$0xff]   ;;  %v1861_v34 = vld [vmem:[%s2131_s11 + $0xec] ss:$16 sps:$4 sm:$0xff]  }
  0x31   : > { %1182 = vmatpush1.bf16.msra.mxu0 %v1833_v15  ;;  %1268 = vmatpush1.bf16.msra.mxu1 %v1834_v16  ;;  %v1863_v35 = vld [vmem:[%s2131_s11 + $0xe0] ss:$16 sps:$4 sm:$0xff]   ;;  %v1864_v36 = vld [vmem:[%s2131_s11 + $0xe8] ss:$16 sps:$4 sm:$0xff]   ;;  %v1865_v37 = vld [vmem:[%s2131_s11 + $0x104] ss:$16 sps:$4 sm:$0xff]  }
  0x32   : > { %1183 = vmatprep.subr.bf16.mxu0 %v1835_v17  ;;  %1269 = vmatprep.subr.bf16.mxu1 %v1837_v18  ;;  %v1867_v38 = vld [vmem:[%s2131_s11 + $0x10c] ss:$16 sps:$4 sm:$0xff]   ;;  %v1869_v39 = vld [vmem:[%s2131_s11 + $0x100] ss:$16 sps:$4 sm:$0xff]   ;;  %v1870_v40 = vld [vmem:[%s2131_s11 + $0x108] ss:$16 sps:$4 sm:$0xff]  }
  0x33   : > { %v1871_v41 = vld [vmem:[%s2131_s11 + $0x124] ss:$16 sps:$4 sm:$0xff]   ;;  %v1873_v42 = vld [vmem:[%s2131_s11 + $0x12c] ss:$16 sps:$4 sm:$0xff]   ;;  %v1875_v43 = vld [vmem:[%s2131_s11 + $0x120] ss:$16 sps:$4 sm:$0xff]  }
  0x34   : > { %v1876_v44 = vld [vmem:[%s2131_s11 + $0x128] ss:$16 sps:$4 sm:$0xff]   ;;  %v1877_v45 = vld [vmem:[%s2131_s11 + $0x144] ss:$16 sps:$4 sm:$0xff]   ;;  %v1879_v46 = vld [vmem:[%s2131_s11 + $0x14c] ss:$16 sps:$4 sm:$0xff]  }
  0x35   : > { %1184 = vmatpush1.bf16.msra.mxu0 %v1839_v19  ;;  %1270 = vmatpush1.bf16.msra.mxu1 %v1840_v20  ;;  %v1881_v47 = vld [vmem:[%s2131_s11 + $0x140] ss:$16 sps:$4 sm:$0xff]   ;;  %v1882_v48 = vld [vmem:[%s2131_s11 + $0x148] ss:$16 sps:$4 sm:$0xff]   ;;  %v1883_v49 = vld [vmem:[%s2131_s11 + $0x164] ss:$16 sps:$4 sm:$0xff]  }
  0x36   : > { %1185 = vmatprep.subr.bf16.mxu0 %v1841_v21  ;;  %1271 = vmatprep.subr.bf16.mxu1 %v1843_v22  ;;  %v1885_v50 = vld [vmem:[%s2131_s11 + $0x16c] ss:$16 sps:$4 sm:$0xff]   ;;  %v1887_v51 = vld [vmem:[%s2131_s11 + $0x160] ss:$16 sps:$4 sm:$0xff]   ;;  %v1888_v52 = vld [vmem:[%s2131_s11 + $0x168] ss:$16 sps:$4 sm:$0xff]  }
  0x37   : > { %v1915_v53 = vld [vmem:[%s2133_s12 + $0x4] ss:$16 sps:$4 sm:$0xff]   ;;  %v1891_v55 = vld [vmem:[%s2131_s11 + $0x18c] ss:$16 sps:$4 sm:$0xff]   ;;  %v1893_v56 = vld [vmem:[%s2131_s11 + $0x180] ss:$16 sps:$4 sm:$0xff]  }
  0x38   : > { %v1889_v54 = vld [vmem:[%s2131_s11 + $0x184] ss:$16 sps:$4 sm:$0xff]   ;;  %1209 = vmatprep.mubr.bf16.mxu0 %v1915_v53  ;;  %1295 = vmatprep.mubr.bf16.mxu1 %v1915_v53  ;;  %v1894_v57 = vld [vmem:[%s2131_s11 + $0x188] ss:$16 sps:$4 sm:$0xff]   ;;  %v1897_v59 = vld [vmem:[%s2131_s11 + $0x1ac] ss:$16 sps:$4 sm:$0xff]  }
  0x39   : > { %1186 = vmatpush1.bf16.msra.mxu0 %v1845_v23  ;;  %1272 = vmatpush1.bf16.msra.mxu1 %v1846_v24  ;;  %v1895_v58 = vld [vmem:[%s2131_s11 + $0x1a4] ss:$16 sps:$4 sm:$0xff]   ;;  %v1899_v60 = vld [vmem:[%s2131_s11 + $0x1a0] ss:$16 sps:$4 sm:$0xff]   ;;  %v1900_v61 = vld [vmem:[%s2131_s11 + $0x1a8] ss:$16 sps:$4 sm:$0xff]  }
  0x3a   : > { %1187 = vmatprep.subr.bf16.mxu0 %v1847_v25  ;;  %1273 = vmatprep.subr.bf16.mxu1 %v1849_v26  ;;  %v1901_v62 = vld [vmem:[%s2131_s11 + $0x1c4] ss:$16 sps:$4 sm:$0xff]   ;;  %v1903_v63 = vld [vmem:[%s2131_s11 + $0x1cc] ss:$16 sps:$4 sm:$0xff]   ;;  %v1905_v0 = vld [vmem:[%s2131_s11 + $0x1c0] ss:$16 sps:$4 sm:$0xff]  }
  0x3b   : > { %v1906_v1 = vld [vmem:[%s2131_s11 + $0x1c8] ss:$16 sps:$4 sm:$0xff]   ;;  %v1907_v2 = vld [vmem:[%s2131_s11 + $0x1e4] ss:$16 sps:$4 sm:$0xff]   ;;  %v1909_v3 = vld [vmem:[%s2131_s11 + $0x1ec] ss:$16 sps:$4 sm:$0xff]  }
  0x3c   : > { %v1911_v4 = vld [vmem:[%s2131_s11 + $0x1e0] ss:$16 sps:$4 sm:$0xff]   ;;  %v1912_v5 = vld [vmem:[%s2131_s11 + $0x1e8] ss:$16 sps:$4 sm:$0xff]   ;;  %v1918_v6 = vld [vmem:[%s2131_s11 + $0x204] ss:$16 sps:$4 sm:$0xff]  }
  0x3d   : > { %1188 = vmatpush1.bf16.msra.mxu0 %v1851_v27  ;;  %1274 = vmatpush1.bf16.msra.mxu1 %v1852_v28  ;;  %v1921_v7 = vld [vmem:[%s2131_s11 + $0x20c] ss:$16 sps:$4 sm:$0xff]   ;;  %v1913_v8 = vld [vmem:[%s2133_s12] ss:$16 sps:$4 sm:$0xff]   ;;  %v1919_v10 = vld [vmem:[%s2131_s11 + $0x208] ss:$16 sps:$4 sm:$0xff]  }
  0x3e   : > { %1189 = vmatprep.subr.bf16.mxu0 %v1853_v29  ;;  %1275 = vmatprep.subr.bf16.mxu1 %v1855_v30  ;;  %v1916_v9 = vld [vmem:[%s2131_s11 + $0x200] ss:$16 sps:$4 sm:$0xff]   ;;  %v1924_v11 = vld [vmem:[%s2131_s11 + $0x224] ss:$16 sps:$4 sm:$0xff]   ;;  %v1927_v12 = vld [vmem:[%s2131_s11 + $0x22c] ss:$16 sps:$4 sm:$0xff]  }
  0x3f   : > { %v1922_v13 = vld [vmem:[%s2131_s11 + $0x220] ss:$16 sps:$4 sm:$0xff]   ;;  %v1925_v14 = vld [vmem:[%s2131_s11 + $0x228] ss:$16 sps:$4 sm:$0xff]   ;;  %v1930_v15 = vld [vmem:[%s2131_s11 + $0x244] ss:$16 sps:$4 sm:$0xff]  }
  0x40   : > { %v1933_v16 = vld [vmem:[%s2131_s11 + $0x24c] ss:$16 sps:$4 sm:$0xff]   ;;  %v1928_v17 = vld [vmem:[%s2131_s11 + $0x240] ss:$16 sps:$4 sm:$0xff]   ;;  %v1931_v18 = vld [vmem:[%s2131_s11 + $0x248] ss:$16 sps:$4 sm:$0xff]  }
  0x41   : > { %1190 = vmatpush1.bf16.msra.mxu0 %v1857_v31  ;;  %1276 = vmatpush1.bf16.msra.mxu1 %v1858_v32  ;;  %v1936_v19 = vld [vmem:[%s2131_s11 + $0x264] ss:$16 sps:$4 sm:$0xff]   ;;  %v1939_v20 = vld [vmem:[%s2131_s11 + $0x26c] ss:$16 sps:$4 sm:$0xff]   ;;  %v1934_v21 = vld [vmem:[%s2131_s11 + $0x260] ss:$16 sps:$4 sm:$0xff]  }
  0x42   : > { %1191 = vmatprep.subr.bf16.mxu0 %v1859_v33  ;;  %1277 = vmatprep.subr.bf16.mxu1 %v1861_v34  ;;  %v1937_v22 = vld [vmem:[%s2131_s11 + $0x268] ss:$16 sps:$4 sm:$0xff]   ;;  %v1942_v23 = vld [vmem:[%s2131_s11 + $0x284] ss:$16 sps:$4 sm:$0xff]   ;;  %v1945_v24 = vld [vmem:[%s2131_s11 + $0x28c] ss:$16 sps:$4 sm:$0xff]  }
  0x43   : > { %v1940_v25 = vld [vmem:[%s2131_s11 + $0x280] ss:$16 sps:$4 sm:$0xff]   ;;  %v1943_v26 = vld [vmem:[%s2131_s11 + $0x288] ss:$16 sps:$4 sm:$0xff]   ;;  %v1948_v27 = vld [vmem:[%s2131_s11 + $0x2a4] ss:$16 sps:$4 sm:$0xff]  }
  0x44   : > { %v1951_v28 = vld [vmem:[%s2131_s11 + $0x2ac] ss:$16 sps:$4 sm:$0xff]   ;;  %v1946_v29 = vld [vmem:[%s2131_s11 + $0x2a0] ss:$16 sps:$4 sm:$0xff]   ;;  %v1949_v30 = vld [vmem:[%s2131_s11 + $0x2a8] ss:$16 sps:$4 sm:$0xff]  }
  0x45   : > { %1192 = vmatpush1.bf16.msra.mxu0 %v1863_v35  ;;  %1278 = vmatpush1.bf16.msra.mxu1 %v1864_v36  ;;  %v1954_v31 = vld [vmem:[%s2131_s11 + $0x2c4] ss:$16 sps:$4 sm:$0xff]   ;;  %v1957_v32 = vld [vmem:[%s2131_s11 + $0x2cc] ss:$16 sps:$4 sm:$0xff]   ;;  %v1952_v34 = vld [vmem:[%s2131_s11 + $0x2c0] ss:$16 sps:$4 sm:$0xff]  }
  0x46   : > { %1193 = vmatprep.subr.bf16.mxu0 %v1865_v37  ;;  %1279 = vmatprep.subr.bf16.mxu1 %v1867_v38  ;;  %v2014_v33 = vld [vmem:[%s2133_s12 + $0xc] ss:$16 sps:$4 sm:$0xff]   ;;  %v1955_v35 = vld [vmem:[%s2131_s11 + $0x2c8] ss:$16 sps:$4 sm:$0xff]   ;;  %v1960_v36 = vld [vmem:[%s2131_s11 + $0x2e4] ss:$16 sps:$4 sm:$0xff]  }
  0x47   : > { %v1963_v37 = vld [vmem:[%s2131_s11 + $0x2ec] ss:$16 sps:$4 sm:$0xff]   ;;  %v1958_v38 = vld [vmem:[%s2131_s11 + $0x2e0] ss:$16 sps:$4 sm:$0xff]   ;;  %p1753_p11 = scmp.ne.s32.totalorder %s2045_s17, 8 }
  0x48   : > { %v1987_v53 = vld [vmem:[%s2131_s11 + $0x36c] ss:$16 sps:$4 sm:$0xff]  }
  0x49   : > { %1194 = vmatpush1.bf16.msra.mxu0 %v1869_v39  ;;  %1280 = vmatpush1.bf16.msra.mxu1 %v1870_v40  ;;  %v1961_v39 = vld [vmem:[%s2131_s11 + $0x2e8] ss:$16 sps:$4 sm:$0xff]   ;;  %v1966_v40 = vld [vmem:[%s2131_s11 + $0x304] ss:$16 sps:$4 sm:$0xff]  }
  0x4a   : > { %1195 = vmatprep.subr.bf16.mxu0 %v1871_v41  ;;  %1281 = vmatprep.subr.bf16.mxu1 %v1873_v42  ;;  %v1969_v41 = vld [vmem:[%s2131_s11 + $0x30c] ss:$16 sps:$4 sm:$0xff]   ;;  %v1964_v42 = vld [vmem:[%s2131_s11 + $0x300] ss:$16 sps:$4 sm:$0xff]  }
  0x4d   : > { %1196 = vmatpush1.bf16.msra.mxu0 %v1875_v43  ;;  %1282 = vmatpush1.bf16.msra.mxu1 %v1876_v44  ;;  %v1967_v43 = vld [vmem:[%s2131_s11 + $0x308] ss:$16 sps:$4 sm:$0xff]   ;;  %v1972_v44 = vld [vmem:[%s2131_s11 + $0x324] ss:$16 sps:$4 sm:$0xff]  }
  0x4e   : > { %1197 = vmatprep.subr.bf16.mxu0 %v1877_v45  ;;  %1283 = vmatprep.subr.bf16.mxu1 %v1879_v46  ;;  %v1975_v45 = vld [vmem:[%s2131_s11 + $0x32c] ss:$16 sps:$4 sm:$0xff]   ;;  %v1970_v46 = vld [vmem:[%s2131_s11 + $0x320] ss:$16 sps:$4 sm:$0xff]  }
  0x51   : > { %1198 = vmatpush1.bf16.msra.mxu0 %v1881_v47  ;;  %1284 = vmatpush1.bf16.msra.mxu1 %v1882_v48  ;;  %v1973_v47 = vld [vmem:[%s2131_s11 + $0x328] ss:$16 sps:$4 sm:$0xff]   ;;  %v1978_v48 = vld [vmem:[%s2131_s11 + $0x344] ss:$16 sps:$4 sm:$0xff]  }
  0x52   : > { %1199 = vmatprep.subr.bf16.mxu0 %v1883_v49  ;;  %1285 = vmatprep.subr.bf16.mxu1 %v1885_v50  ;;  %v1981_v49 = vld [vmem:[%s2131_s11 + $0x34c] ss:$16 sps:$4 sm:$0xff]   ;;  %v1976_v50 = vld [vmem:[%s2131_s11 + $0x340] ss:$16 sps:$4 sm:$0xff]  }
  0x55   : > { %1200 = vmatpush1.bf16.msra.mxu0 %v1887_v51  ;;  %1286 = vmatpush1.bf16.msra.mxu1 %v1888_v52  ;;  %v1979_v51 = vld [vmem:[%s2131_s11 + $0x348] ss:$16 sps:$4 sm:$0xff]   ;;  %v1984_v52 = vld [vmem:[%s2131_s11 + $0x364] ss:$16 sps:$4 sm:$0xff]  }
  0x56   : > { %1201 = vmatprep.subr.bf16.mxu0 %v1889_v54  ;;  %1287 = vmatprep.subr.bf16.mxu1 %v1891_v55  ;;  %v1982_v54 = vld [vmem:[%s2131_s11 + $0x360] ss:$16 sps:$4 sm:$0xff]   ;;  %v1985_v55 = vld [vmem:[%s2131_s11 + $0x368] ss:$16 sps:$4 sm:$0xff]  }
  0x59   : > { %1202 = vmatpush1.bf16.msra.mxu0 %v1893_v56  ;;  %1288 = vmatpush1.bf16.msra.mxu1 %v1894_v57  ;;  %v1990_v56 = vld [vmem:[%s2131_s11 + $0x384] ss:$16 sps:$4 sm:$0xff]   ;;  %v1993_v57 = vld [vmem:[%s2131_s11 + $0x38c] ss:$16 sps:$4 sm:$0xff]  }
  0x5a   : > { %1203 = vmatprep.subr.bf16.mxu0 %v1895_v58  ;;  %1289 = vmatprep.subr.bf16.mxu1 %v1897_v59  ;;  %v1988_v58 = vld [vmem:[%s2131_s11 + $0x380] ss:$16 sps:$4 sm:$0xff]   ;;  %v1991_v59 = vld [vmem:[%s2131_s11 + $0x388] ss:$16 sps:$4 sm:$0xff]  }
  0x5d   : > { %1204 = vmatpush1.bf16.msra.mxu0 %v1899_v60  ;;  %1290 = vmatpush1.bf16.msra.mxu1 %v1900_v61  ;;  %v1996_v60 = vld [vmem:[%s2131_s11 + $0x3a4] ss:$16 sps:$4 sm:$0xff]   ;;  %v1999_v61 = vld [vmem:[%s2131_s11 + $0x3ac] ss:$16 sps:$4 sm:$0xff]  }
  0x5e   : > { %1205 = vmatprep.subr.bf16.mxu0 %v1901_v62  ;;  %1291 = vmatprep.subr.bf16.mxu1 %v1903_v63  ;;  %v1994_v62 = vld [vmem:[%s2131_s11 + $0x3a0] ss:$16 sps:$4 sm:$0xff]   ;;  %v1997_v63 = vld [vmem:[%s2131_s11 + $0x3a8] ss:$16 sps:$4 sm:$0xff]  }
  0x61   : > { %1206 = vmatpush1.bf16.msra.mxu0 %v1905_v0  ;;  %1292 = vmatpush1.bf16.msra.mxu1 %v1906_v1  ;;  %v2002_v0 = vld [vmem:[%s2131_s11 + $0x3c4] ss:$16 sps:$4 sm:$0xff]   ;;  %v2005_v1 = vld [vmem:[%s2131_s11 + $0x3cc] ss:$16 sps:$4 sm:$0xff]  }
  0x62   : > { %1207 = vmatprep.subr.bf16.mxu0 %v1907_v2  ;;  %1293 = vmatprep.subr.bf16.mxu1 %v1909_v3  ;;  %v2000_v2 = vld [vmem:[%s2131_s11 + $0x3c0] ss:$16 sps:$4 sm:$0xff]   ;;  %v2003_v3 = vld [vmem:[%s2131_s11 + $0x3c8] ss:$16 sps:$4 sm:$0xff]  }
  0x65   : > { %1208 = vmatpush1.bf16.msra.mxu0 %v1911_v4  ;;  %1294 = vmatpush1.bf16.msra.mxu1 %v1912_v5  ;;  %v2008_v4 = vld [vmem:[%s2131_s11 + $0x3e4] ss:$16 sps:$4 sm:$0xff]   ;;  %v2011_v5 = vld [vmem:[%s2131_s11 + $0x3ec] ss:$16 sps:$4 sm:$0xff]  }
  0x66   : > { %1220 = vmatprep.subr.bf16.mxu0 %v1918_v6  ;;  %1306 = vmatprep.subr.bf16.mxu1 %v1921_v7  ;;  %v2006_v6 = vld [vmem:[%s2131_s11 + $0x3e0] ss:$16 sps:$4 sm:$0xff]   ;;  %v2009_v7 = vld [vmem:[%s2131_s11 + $0x3e8] ss:$16 sps:$4 sm:$0xff]  }
  0x68   : > { %1210 = vmatmul.mubr.bf16.vlgmr.msra.gmra.mrb[0].mxu0 %v1913_v8  ;;  %1296 = vmatmul.mubr.bf16.vlgmr.msra.gmra.mrb[0].mxu1 %v1913_v8  ;;  %v2012_v8 = vld [vmem:[%s2133_s12 + $0x8] ss:$16 sps:$4 sm:$0xff]  }
  0x69   : > { %1221 = vmatpush1.bf16.msra.mxu0 %v1916_v9  ;;  %1307 = vmatpush1.bf16.msra.mxu1 %v1919_v10  ;;  %v377_v9 = vld [vmem:[#allocation2] sm:$0xff]  ;;  %v379_v10 = vld [vmem:[#allocation2 + $0x10] sm:$0xff] }
  0x6a   : > { %1222 = vmatprep.subr.bf16.mxu0 %v1924_v11  ;;  %1308 = vmatprep.subr.bf16.mxu1 %v1927_v12  ;;  %v378_v11 = vld [vmem:[#allocation2 + $0x8] sm:$0xff]  ;;  %v380_v12 = vld [vmem:[#allocation2 + $0x18] sm:$0xff] }
  0x6b   : > { %1252 = vmatprep.mubr.bf16.mxu0 %v2014_v33  ;;  %1338 = vmatprep.mubr.bf16.mxu1 %v2014_v33  ;;  %v1379_v33 = vlaneseq (!%p1753_p11) }
  0x6d   : > { %1223 = vmatpush1.bf16.msra.mxu0 %v1922_v13  ;;  %1309 = vmatpush1.bf16.msra.mxu1 %v1925_v14 }
  0x6e   : > { %1224 = vmatprep.subr.bf16.mxu0 %v1930_v15  ;;  %1310 = vmatprep.subr.bf16.mxu1 %v1933_v16  ;;  %v381_v15 = vld [vmem:[#allocation2 + $0x20] sm:$0xff]  ;;  %v383_v16 = vld [vmem:[#allocation2 + $0x30] sm:$0xff] }
  0x71   : > { %1225 = vmatpush1.bf16.msra.mxu0 %v1928_v17  ;;  %1311 = vmatpush1.bf16.msra.mxu1 %v1931_v18 }
  0x72   : > { %1226 = vmatprep.subr.bf16.mxu0 %v1936_v19  ;;  %1312 = vmatprep.subr.bf16.mxu1 %v1939_v20 }
  0x75   : > { %1227 = vmatpush1.bf16.msra.mxu0 %v1934_v21  ;;  %1313 = vmatpush1.bf16.msra.mxu1 %v1937_v22  ;;  %v382_v21 = vld [vmem:[#allocation2 + $0x28] sm:$0xff]  ;;  %v384_v22 = vld [vmem:[#allocation2 + $0x38] sm:$0xff] }
  0x76   : > { %1228 = vmatprep.subr.bf16.mxu0 %v1942_v23  ;;  %1314 = vmatprep.subr.bf16.mxu1 %v1945_v24 }
  0x79   : > { %1229 = vmatpush1.bf16.msra.mxu0 %v1940_v25  ;;  %1315 = vmatpush1.bf16.msra.mxu1 %v1943_v26 }
  0x7a   : > { %1230 = vmatprep.subr.bf16.mxu0 %v1948_v27  ;;  %1316 = vmatprep.subr.bf16.mxu1 %v1951_v28 }
  0x7d   : > { %1231 = vmatpush1.bf16.msra.mxu0 %v1946_v29  ;;  %1317 = vmatpush1.bf16.msra.mxu1 %v1949_v30 }
  0x7e   : > { %1232 = vmatprep.subr.bf16.mxu0 %v1954_v31  ;;  %1318 = vmatprep.subr.bf16.mxu1 %v1957_v32 }
  0x81   : > { %1233 = vmatpush1.bf16.msra.mxu0 %v1952_v34  ;;  %1319 = vmatpush1.bf16.msra.mxu1 %v1955_v35  ;;  %v1380_v34 = vshrl.u32 (!%p1753_p11), %v1379_v33, 7  ;;  %v1407_v35 = vld [vmem:[%s2314_s3] sm:$0xff] (!%p1753_p11) }
  0x82   : > { %1234 = vmatprep.subr.bf16.mxu0 %v1960_v36  ;;  %1320 = vmatprep.subr.bf16.mxu1 %v1963_v37  ;;  %v1408_v36 = vld [vmem:[%s2314_s3 + $0x8] sm:$0xff] (!%p1753_p11) }
  0x85   : > { %1235 = vmatpush1.bf16.msra.mxu0 %v1958_v38  ;;  %1321 = vmatpush1.bf16.msra.mxu1 %v1961_v39  ;;  %v1377_v39 = vld [vmem:[%s2313_s2] sm:$0xf] (!%p1753_p11) }
  0x86   : > { %1236 = vmatprep.subr.bf16.mxu0 %v1966_v40  ;;  %1322 = vmatprep.subr.bf16.mxu1 %v1969_v41  ;;  %v1381_v40 = vsub.s32 (!%p1753_p11), 0, %v1380_v34  ;;  %v1385_v41 = vsub.s32 (!%p1753_p11), 1, %v1380_v34 }
  0x89   : > { %1237 = vmatpush1.bf16.msra.mxu0 %v1964_v42  ;;  %1323 = vmatpush1.bf16.msra.mxu1 %v1967_v43  ;;  %v1389_v42 = vsub.s32 (!%p1753_p11), 2, %v1380_v34  ;;  %v1393_v43 = vsub.s32 (!%p1753_p11), 3, %v1380_v34 }
  0x8a   : > { %1238 = vmatprep.subr.bf16.mxu0 %v1972_v44  ;;  %1324 = vmatprep.subr.bf16.mxu1 %v1975_v45  ;;  %v1409_v44 = vld [vmem:[%s2314_s3 + $0x10] sm:$0xff] (!%p1753_p11)  ;;  %v1410_v45 = vld [vmem:[%s2314_s3 + $0x18] sm:$0xff] (!%p1753_p11) }
  0x8d   : > { %1239 = vmatpush1.bf16.msra.mxu0 %v1970_v46  ;;  %1325 = vmatpush1.bf16.msra.mxu1 %v1973_v47  ;;  %v1411_v46 = vunpack.c.l.bf16 (!%p1753_p11), %v1407_v35  ;;  %v1412_v47 = vunpack.c.h.bf16 (!%p1753_p11), %v1407_v35 }
  0x8e   : > { %1240 = vmatprep.subr.bf16.mxu0 %v1978_v48  ;;  %1326 = vmatprep.subr.bf16.mxu1 %v1981_v49 }
  0x91   : > { %1241 = vmatpush1.bf16.msra.mxu0 %v1976_v50  ;;  %1327 = vmatpush1.bf16.msra.mxu1 %v1979_v51  ;;  %v1413_v50 = vunpack.c.l.bf16 (!%p1753_p11), %v1408_v36  ;;  %v1414_v51 = vunpack.c.h.bf16 (!%p1753_p11), %v1408_v36 }
  0x92   : > { %1242 = vmatprep.subr.bf16.mxu0 %v1984_v52  ;;  %1328 = vmatprep.subr.bf16.mxu1 %v1987_v53  ;;  %v1382_v53 = vrot.slane (!%p1753_p11), %v1377_v39, %v1381_v40 }
  0x95   : > { %1243 = vmatpush1.bf16.msra.mxu0 %v1982_v54  ;;  %1329 = vmatpush1.bf16.msra.mxu1 %v1985_v55  ;;  %v1386_v54 = vrot.slane (!%p1753_p11), %v1377_v39, %v1385_v41  ;;  %v1390_v55 = vrot.slane (!%p1753_p11), %v1377_v39, %v1389_v42 }
  0x96   : > { %1244 = vmatprep.subr.bf16.mxu0 %v1990_v56  ;;  %1330 = vmatprep.subr.bf16.mxu1 %v1993_v57  ;;  %v1394_v56 = vrot.slane (!%p1753_p11), %v1377_v39, %v1393_v43 }
  0x99   : > { %1245 = vmatpush1.bf16.msra.mxu0 %v1988_v58  ;;  %1331 = vmatpush1.bf16.msra.mxu1 %v1991_v59 }
  0x9a   : > { %1246 = vmatprep.subr.bf16.mxu0 %v1996_v60  ;;  %1332 = vmatprep.subr.bf16.mxu1 %v1999_v61  ;;  %v1415_v60 = vunpack.c.l.bf16 (!%p1753_p11), %v1409_v44  ;;  %v1416_v61 = vunpack.c.h.bf16 (!%p1753_p11), %v1409_v44 }
  0x9d   : > { %1247 = vmatpush1.bf16.msra.mxu0 %v1994_v62  ;;  %1333 = vmatpush1.bf16.msra.mxu1 %v1997_v63  ;;  %v1417_v62 = vunpack.c.l.bf16 (!%p1753_p11), %v1410_v45  ;;  %v1418_v63 = vunpack.c.h.bf16 (!%p1753_p11), %v1410_v45 }
  0x9e   : > { %1248 = vmatprep.subr.bf16.mxu0 %v2002_v0  ;;  %1334 = vmatprep.subr.bf16.mxu1 %v2005_v1 }
  0xa1   : > { %1249 = vmatpush1.bf16.msra.mxu0 %v2000_v2  ;;  %1335 = vmatpush1.bf16.msra.mxu1 %v2003_v3 }
  0xa2   : > { %1250 = vmatprep.subr.bf16.mxu0 %v2008_v4  ;;  %1336 = vmatprep.subr.bf16.mxu1 %v2011_v5 }
  0xa5   : > { %1251 = vmatpush1.bf16.msra.mxu0 %v2006_v6  ;;  %1337 = vmatpush1.bf16.msra.mxu1 %v2009_v7 }
  0xa8   : > { %1253 = vmatmul.mubr.bf16.vlgmr.msra.gmra.mrb[0].mxu0 %v2012_v8  ;;  %1339 = vmatmul.mubr.bf16.vlgmr.msra.gmra.mrb[0].mxu1 %v2012_v8 }
 0x17b   : > { %v1254_v13 = vpop.f32.mrb[0].mxu0  ;;  %v1340_v14 = vpop.f32.mrb[0].mxu1  ;;  %1368 = sbr.rel (%p1753_p11) target bundleno = 402 (0x192), region = 67 }
 0x17c   : > { %v1349_v17 = vadd.f32 %v1254_v13, %v377_v9  ;;  %v1351_v18 = vadd.f32 %v1340_v14, %v379_v10  ;;  %v1256_v19 = vpop.f32.mrb[1].mxu0  ;;  %v1342_v20 = vpop.f32.mrb[1].mxu1 }
 0x17d   : > { %v1350_v23 = vadd.f32 %v1256_v19, %v378_v11  ;;  %v1352_v24 = vadd.f32 %v1342_v20, %v380_v12  ;;  %v1258_v25 = vpop.f32.mrb[2].mxu0  ;;  %v1344_v26 = vpop.f32.mrb[2].mxu1 }
 0x17e   : > { %1357 = vst [vmem:[#allocation2] sm:$0xff] %v1349_v17  ;;  %1359 = vst [vmem:[#allocation2 + $0x10] sm:$0xff] %v1351_v18  ;;  %v1353_v27 = vadd.f32 %v1258_v25, %v381_v15  ;;  %v1355_v28 = vadd.f32 %v1344_v26, %v383_v16  ;;  %v1260_v29 = vpop.f32.mrb[3].mxu0  ;;  %v1346_v30 = vpop.f32.mrb[3].mxu1 }
 0x17f   : > { %1358 = vst [vmem:[#allocation2 + $0x8] sm:$0xff] %v1350_v23  ;;  %1360 = vst [vmem:[#allocation2 + $0x18] sm:$0xff] %v1352_v24  ;;  %v1354_v31 = vadd.f32 %v1260_v29, %v382_v21  ;;  %v1356_v32 = vadd.f32 %v1346_v30, %v384_v22 }
 0x180   : > { %1361 = vst [vmem:[#allocation2 + $0x20] sm:$0xff] %v1353_v27  ;;  %1363 = vst [vmem:[#allocation2 + $0x30] sm:$0xff] %v1355_v28 }
 0x181   : > { %1362 = vst [vmem:[#allocation2 + $0x28] sm:$0xff] %v1354_v31  ;;  %1364 = vst [vmem:[#allocation2 + $0x38] sm:$0xff] %v1356_v32 }
 0x185   : > { %v1369_v37 = vld [vmem:[#allocation2] sm:$0xff]  ;;  %v1371_v48 = vld [vmem:[#allocation2 + $0x10] sm:$0xff] }
 0x186   : > { %v1370_v38 = vld [vmem:[#allocation2 + $0x8] sm:$0xff]  ;;  %v1372_v49 = vld [vmem:[#allocation2 + $0x18] sm:$0xff]  ;;  %v1399_v0 = vadd.f32 %v1382_v53, %v1369_v37  ;;  %v1401_v2 = vadd.f32 %v1390_v55, %v1371_v48 }
 0x187   : > { %v1373_v52 = vld [vmem:[#allocation2 + $0x20] sm:$0xff]  ;;  %v1375_v58 = vld [vmem:[#allocation2 + $0x30] sm:$0xff]  ;;  %v1400_v1 = vadd.f32 %v1386_v54, %v1370_v38  ;;  %v1402_v3 = vadd.f32 %v1394_v56, %v1372_v49 }
 0x188   : > { %v1374_v57 = vld [vmem:[#allocation2 + $0x28] sm:$0xff]  ;;  %v1376_v59 = vld [vmem:[#allocation2 + $0x38] sm:$0xff]  ;;  %v1403_v4 = vadd.f32 %v1382_v53, %v1373_v52  ;;  %v1405_v6 = vadd.f32 %v1390_v55, %v1375_v58  ;;  %v1419_v8 = vadd.f32 %v1411_v46, %v1399_v0  ;;  %v1421_v10 = vadd.f32 %v1413_v50, %v1401_v2 }
 0x189   : > { %v1404_v5 = vadd.f32 %v1386_v54, %v1374_v57  ;;  %v1406_v7 = vadd.f32 %v1394_v56, %v1376_v59  ;;  %v1420_v9 = vadd.f32 %v1412_v47, %v1400_v1  ;;  %v1422_v11 = vadd.f32 %v1414_v51, %v1402_v3 }
 0x18a   : > { %v1423_v12 = vadd.f32 %v1415_v60, %v1403_v4  ;;  %v1425_v14 = vadd.f32 %v1417_v62, %v1405_v6  ;;  %v1427_v16 = vmax.f32 %v1419_v8, 0.0  ;;  %v1429_v18 = vmax.f32 %v1421_v10, 0.0 }
 0x18b   : > { %v1424_v13 = vadd.f32 %v1416_v61, %v1404_v5  ;;  %v1426_v15 = vadd.f32 %v1418_v63, %v1406_v7  ;;  %v1428_v17 = vmax.f32 %v1420_v9, 0.0  ;;  %v1430_v19 = vmax.f32 %v1422_v11, 0.0 }
 0x18c   : > { %v1431_v20 = vmax.f32 %v1423_v12, 0.0  ;;  %v1433_v22 = vmax.f32 %v1425_v14, 0.0 }
 0x18d   : > { %v1432_v21 = vmax.f32 %v1424_v13, 0.0  ;;  %v1434_v23 = vmax.f32 %v1426_v15, 0.0  ;;  %v1764_v24 = vpack.c.bf16 %v1428_v17, %v1427_v16  ;;  %v1765_v25 = vpack.c.bf16 %v1430_v19, %v1429_v18 }
 0x18f   : > { %v1766_v26 = vpack.c.bf16 %v1432_v21, %v1431_v20  ;;  %v1767_v27 = vpack.c.bf16 %v1434_v23, %v1433_v22  ;;  %1459 = vst [vmem:[%s2315_s4] sm:$0xff] %v1764_v24  ;;  %1460 = vst [vmem:[%s2315_s4 + $0x8] sm:$0xff] %v1765_v25 }
 0x191   : > { %1461 = vst [vmem:[%s2315_s4 + $0x10] sm:$0xff] %v1766_v26  ;;  %1462 = vst [vmem:[%s2315_s4 + $0x18] sm:$0xff] %v1767_v27 }
 0x192 PF: > { %s14_s19 = sadd.s32 1, %s2053_s19   ;;  %s2316_s15 = smov %s2041_s16 }
 0x193   : > { %p11_p12 = scmp.ge.s32.totalorder %s14_s19, 11   ;;  %s2317_s16 = smov %s2116_s23 }
 0x194   : > { %s2318_s17 = smov %s2049_s18  ;;  %s2319_s18 = smov %s2321_s20 }
 0x195   :  { %13 = sbr.rel (!%p11_p12) target bundleno = 3 (0x3), region = 111 }

// kernel: hand_gesture_forward.28
= control target key start
LH: loop header
LB: loop body
LE: loop exit
PB: predicated region body
PF: predicated region fallthrough
CT: control target
= control target key end

     0   :  { %v620_v1 = vmov 0   ;;  %v621_v34 = vmov 0.0   ;;  %v46_v41 = vlaneseq  ;;  %vm622_vm0 = vmmov 0   ;;  %s798_s1 = inlined_call_operand.vmem [shape: bf16[128,256], index: 1, kind: input, shape index: {}]   ;;  %s799_s3 = inlined_call_operand.vmem [shape: bf16[256,128], index: 3, kind: input, shape index: {}]   ;;  %s800_s0 = inlined_call_operand.vmem [shape: bf16[8,128], index: 0, kind: input, shape index: {}]   ;;  %s801_s5 = inlined_call_operand.vmem [shape: bf16[128,128], index: 5, kind: input, shape index: {}]   ;;  %s802_s2 = inlined_call_operand.vmem [shape: f32[1,256], index: 2, kind: input, shape index: {}]   ;;  %s803_s4 = inlined_call_operand.vmem [shape: f32[1,128], index: 4, kind: input, shape index: {}]   ;;  %s804_s6 = inlined_call_operand.vmem [shape: f32[1,128], index: 6, kind: input, shape index: {}]   ;;  %s805_s7 = inlined_call_operand.vmem [shape: bf16[8,128], index: 7, kind: output, shape index: {}]  }
   0x1   :  { %v572_v0 = vld [vmem:[%s798_s1 + $0x4] ss:$8 sps:$4 sm:$0xff]   ;;  %168 = vmatprep.mubr.bf16.mxu0 %v620_v1  ;;  %v574_v2 = vld [vmem:[%s798_s1] ss:$8 sps:$4 sm:$0xff]   ;;  %v575_v3 = vld [vmem:[%s798_s1 + $0x14] ss:$8 sps:$4 sm:$0xff]  }
   0x2   :  { %136 = vmatprep.subr.bf16.mxu0 %v572_v0  ;;  %v577_v4 = vld [vmem:[%s798_s1 + $0x10] ss:$8 sps:$4 sm:$0xff]   ;;  %v578_v5 = vld [vmem:[%s798_s1 + $0x24] ss:$8 sps:$4 sm:$0xff]   ;;  %v580_v6 = vld [vmem:[%s798_s1 + $0x20] ss:$8 sps:$4 sm:$0xff]  }
   0x3   :  { %137 = vmatpush1.bf16.msra.mxu0 %v574_v2  ;;  %v581_v7 = vld [vmem:[%s798_s1 + $0x34] ss:$8 sps:$4 sm:$0xff]   ;;  %v583_v8 = vld [vmem:[%s798_s1 + $0x30] ss:$8 sps:$4 sm:$0xff]   ;;  %v584_v9 = vld [vmem:[%s798_s1 + $0x44] ss:$8 sps:$4 sm:$0xff]  }
   0x4   :  { %138 = vmatprep.subr.bf16.mxu0 %v575_v3  ;;  %v596_v10 = vld [vmem:[%s799_s3 + $0x40] sm:$0xff]   ;;  %v598_v13 = vld [vmem:[%s799_s3 + $0x48] sm:$0xff]   ;;  %v600_v15 = vld [vmem:[%s799_s3 + $0x50] sm:$0xff]   ;;  %v47_v42 = vshrl.u32 %v46_v41, 7 }
   0x5   :  { %v597_v11 = vld [vmem:[%s799_s3] sm:$0xff]   ;;  %518 = vmatprep.subr.bf16.mxu1 %v596_v10  ;;  %v599_v14 = vld [vmem:[%s799_s3 + $0x8] sm:$0xff]   ;;  %v587_v16 = vld [vmem:[%s798_s1 + $0x54] ss:$8 sps:$4 sm:$0xff]  }
   0x6   :  { %v586_v12 = vld [vmem:[%s798_s1 + $0x40] ss:$8 sps:$4 sm:$0xff]   ;;  %519 = vmatpush3.bf16.msra.mxu1 %v597_v11  ;;  %v589_v17 = vld [vmem:[%s798_s1 + $0x50] ss:$8 sps:$4 sm:$0xff]   ;;  %v590_v20 = vld [vmem:[%s798_s1 + $0x64] ss:$8 sps:$4 sm:$0xff]  }
   0x7   :  { %139 = vmatpush1.bf16.msra.mxu0 %v577_v4  ;;  %520 = vmatprep.subr.bf16.mxu1 %v598_v13  ;;  %v601_v18 = vld [vmem:[%s799_s3 + $0x10] sm:$0xff]   ;;  %v602_v19 = vld [vmem:[%s799_s3 + $0x58] sm:$0xff]   ;;  %v592_v21 = vld [vmem:[%s798_s1 + $0x60] ss:$8 sps:$4 sm:$0xff]   ;;  %v48_v43 = vsub.s32 0, %v47_v42  ;;  %v52_v45 = vsub.s32 1, %v47_v42 }
   0x8   :  { %140 = vmatprep.subr.bf16.mxu0 %v578_v5  ;;  %v593_v22 = vld [vmem:[%s798_s1 + $0x74] ss:$8 sps:$4 sm:$0xff]   ;;  %v604_v24 = vld [vmem:[%s799_s3 + $0x60] sm:$0xff]   ;;  %v595_v26 = vld [vmem:[%s798_s1 + $0x70] ss:$8 sps:$4 sm:$0xff]  }
   0x9   :  { %v603_v23 = vld [vmem:[%s799_s3 + $0x18] sm:$0xff]   ;;  %v605_v25 = vld [vmem:[%s799_s3 + $0x20] sm:$0xff]   ;;  %v606_v27 = vld [vmem:[%s799_s3 + $0x68] sm:$0xff]  }
   0xa   :  { %521 = vmatpush3.bf16.msra.mxu1 %v599_v14  ;;  %v607_v28 = vld [vmem:[%s799_s3 + $0x28] sm:$0xff]   ;;  %v27_v29 = vld [vmem:[%s800_s0] sm:$0xf]  ;;  %v608_v30 = vld [vmem:[%s799_s3 + $0x70] sm:$0xff]  }
   0xb   :  { %141 = vmatpush1.bf16.msra.mxu0 %v580_v6  ;;  %522 = vmatprep.subr.bf16.mxu1 %v600_v15  ;;  %v609_v31 = vld [vmem:[%s799_s3 + $0x30] sm:$0xff]   ;;  %v610_v32 = vld [vmem:[%s799_s3 + $0x78] sm:$0xff]   ;;  %v612_v35 = vld [vmem:[%s801_s5] sm:$0xff]  }
   0xc   :  { %142 = vmatprep.subr.bf16.mxu0 %v581_v7  ;;  %v611_v33 = vld [vmem:[%s799_s3 + $0x38] sm:$0xff]   ;;  %v613_v36 = vld [vmem:[%s801_s5 + $0x8] sm:$0xff]   ;;  %v614_v37 = vld [vmem:[%s801_s5 + $0x10] sm:$0xff]  }
   0xd   :  { %v615_v38 = vld [vmem:[%s801_s5 + $0x18] sm:$0xff]   ;;  %v616_v39 = vld [vmem:[%s801_s5 + $0x20] sm:$0xff]   ;;  %v617_v40 = vld [vmem:[%s801_s5 + $0x28] sm:$0xff]  }
   0xe   :  { %523 = vmatpush3.bf16.msra.mxu1 %v601_v18  ;;  %v44_v44 = vld [vmem:[%s802_s2] sm:$0x3]  ;;  %v618_v58 = vld [vmem:[%s801_s5 + $0x30] sm:$0xff]   ;;  %v619_v59 = vld [vmem:[%s801_s5 + $0x38] sm:$0xff]  }
   0xf   :  { %143 = vmatpush1.bf16.msra.mxu0 %v583_v8  ;;  %524 = vmatprep.subr.bf16.mxu1 %v602_v19  ;;  %v49_v46 = vrot.slane %v44_v44, %v48_v43  ;;  %v53_v47 = vrot.slane %v44_v44, %v52_v45  ;;  %v492_v61 = vld [vmem:[%s803_s4] ss:$0 sm:$0xff] }
  0x10   :  { %144 = vmatprep.subr.bf16.mxu0 %v584_v9  ;;  %v509_v5 = vld [vmem:[%s804_s6] ss:$0 sm:$0xff] }
  0x12   :  { %525 = vmatpush3.bf16.msra.mxu1 %v603_v23 }
  0x13   :  { %145 = vmatpush1.bf16.msra.mxu0 %v586_v12  ;;  %526 = vmatprep.subr.bf16.mxu1 %v604_v24 }
  0x14   :  { %146 = vmatprep.subr.bf16.mxu0 %v587_v16 }
  0x16   :  { %527 = vmatpush3.bf16.msra.mxu1 %v605_v25 }
  0x17   :  { %147 = vmatpush1.bf16.msra.mxu0 %v589_v17  ;;  %528 = vmatprep.subr.bf16.mxu1 %v606_v27 }
  0x18   :  { %148 = vmatprep.subr.bf16.mxu0 %v590_v20 }
  0x1a   :  { %529 = vmatpush3.bf16.msra.mxu1 %v607_v28 }
  0x1b   :  { %149 = vmatpush1.bf16.msra.mxu0 %v592_v21  ;;  %530 = vmatprep.subr.bf16.mxu1 %v608_v30 }
  0x1c   :  { %150 = vmatprep.subr.bf16.mxu0 %v593_v22 }
  0x1e   :  { %531 = vmatpush3.bf16.msra.mxu1 %v609_v31 }
  0x1f   :  { %151 = vmatpush1.bf16.msra.mxu0 %v595_v26  ;;  %532 = vmatprep.subr.bf16.mxu1 %v610_v32 }
  0x20   :  { %549 = vmatprep.subr.bf16.mxu0 %v621_v34 }
  0x22   :  { %169 = vmatmul.mubr.bf16.vlgmr.msra.gmra.mrb[0].mxu0 %v27_v29  ;;  %533 = vmatpush3.bf16.msra.mxu1 %v611_v33 }
  0x23   :  { %550 = vmatpush3.bf16.msra.mxu0 %v612_v35  ;;  %565 = vmatprep.mubr.msk.bf16.mxu0 %vm622_vm0, %v621_v34 }
  0x24   :  { %551 = vmatprep.subr.bf16.mxu0 %v621_v34 }
  0x27   :  { %552 = vmatpush3.bf16.msra.mxu0 %v613_v36 }
  0x28   :  { %553 = vmatprep.subr.bf16.mxu0 %v621_v34 }
  0x2b   :  { %554 = vmatpush3.bf16.msra.mxu0 %v614_v37 }
  0x2c   :  { %555 = vmatprep.subr.bf16.mxu0 %v621_v34 }
  0x2f   :  { %556 = vmatpush3.bf16.msra.mxu0 %v615_v38 }
  0x30   :  { %557 = vmatprep.subr.bf16.mxu0 %v621_v34 }
  0x33   :  { %558 = vmatpush3.bf16.msra.mxu0 %v616_v39 }
  0x34   :  { %559 = vmatprep.subr.bf16.mxu0 %v621_v34 }
  0x37   :  { %560 = vmatpush3.bf16.msra.mxu0 %v617_v40 }
  0x38   :  { %561 = vmatprep.subr.bf16.mxu0 %v621_v34 }
  0x3b   :  { %562 = vmatpush3.bf16.msra.mxu0 %v618_v58 }
  0x3c   :  { %563 = vmatprep.subr.bf16.mxu0 %v621_v34 }
  0x3f   :  { %564 = vmatpush3.bf16.msra.mxu0 %v619_v59 }
  0xf5   :  { %v170_v48 = vpop.f32.mrb[0].mxu0 }
  0xf6   :  { %v171_v49 = vadd.f32 %v170_v48, %v49_v46  ;;  %v172_v50 = vpop.f32.mrb[1].mxu0 }
  0xf7   :  { %v173_v51 = vadd.f32 %v172_v50, %v53_v47  ;;  %v174_v52 = vpop.f32.mrb[2].mxu0 }
  0xf8   :  { %v177_v53 = vmax.f32 %v171_v49, 0.0  ;;  %v175_v54 = vpop.f32.mrb[3].mxu0 }
  0xf9   :  { %v178_v55 = vmax.f32 %v173_v51, 0.0 }
  0xfa   :  { %v179_v57 = vpack.c.bf16 %v177_v53, %v177_v53 }
  0xfb   :  { %v180_v56 = vpack.c.bf16 %v178_v55, %v178_v55 }
  0xfd   :  { %348 = vmatprep.mubr.bf16.mxu1 %v180_v56 }
  0xfe   :  { %349 = vmatmul.mubr.bf16.vlgmr.msra.gmra.mrb[0].mxu1 %v179_v57 }
 0x1d1   :  { %v534_v60 = vpop.f32.mrb[0].mxu1 }
 0x1d2   :  { %v535_v62 = vpop.f32.mrb[1].mxu1 }
 0x1d3   :  { %v536_v63 = vadd.f32 %v535_v62, %v534_v60  ;;  %v537_v0 = vpop.f32.mrb[2].mxu1 }
 0x1d4   :  { %v538_v1 = vpop.f32.mrb[3].mxu1 }
 0x1d5   :  { %v351_v2 = vadd.f32 %v536_v63, %v492_v61 }
 0x1d7   :  { %v356_v3 = vmax.f32 %v351_v2, 0.0 }
 0x1d9   :  { %v357_v4 = vpack.c.bf16 %v356_v3, %v356_v3 }
 0x1db   :  { %566 = vmatmul.mubr.bf16.vlgmr.msra.gmra.mrb[4].mxu0 %v357_v4 }
 0x2ae   :  { %v463_v6 = vpop.f32.mrb[4].mxu0 }
 0x2af   :  { %v464_v7 = vadd.f32 %v509_v5, %v463_v6  ;;  %v567_v8 = vpop.f32.mrb[5].mxu0 }
 0x2b0   :  { %v466_v9 = vpop.f32.mrb[6].mxu0 }
 0x2b1   :  { %v469_v10 = vmax.f32 %v464_v7, 0.0  ;;  %v568_v11 = vpop.f32.mrb[7].mxu0 }
 0x2b3   :  { %v470_v12 = vpack.c.bf16 %v469_v10, %v469_v10 }
 0x2b5   :  { %471 = vst [vmem:[%s805_s7] sm:$0xf] %v470_v12 }

// kernel: hand_gesture_forward.29
= control target key start
LH: loop header
LB: loop body
LE: loop exit
PB: predicated region body
PF: predicated region fallthrough
CT: control target
= control target key end

     0   :  { %v1276_v1 = vmov 0   ;;  %vm1278_vm0 = vmmov 0   ;;  %s1668_s3 = inlined_call_operand.vmem [shape: bf16[128,256], index: 3, kind: input, shape index: {}]   ;;  %s1669_s2 = inlined_call_operand.vmem [shape: bf16[512,256], index: 2, kind: input, shape index: {}]   ;;  %s1670_s1 = inlined_call_operand.vmem [shape: bf16[8,128], index: 1, kind: input, shape index: {}]   ;;  %s1671_s0 = inlined_call_operand.vmem [shape: bf16[8,512], index: 0, kind: input, shape index: {}]   ;;  %s1672_s5 = inlined_call_operand.vmem [shape: bf16[256,128], index: 5, kind: input, shape index: {}]   ;;  %s1673_s7 = inlined_call_operand.vmem [shape: bf16[128,128], index: 7, kind: input, shape index: {}]   ;;  %s1674_s4 = inlined_call_operand.vmem [shape: f32[1,256], index: 4, kind: input, shape index: {}]   ;;  %s1675_s6 = inlined_call_operand.vmem [shape: f32[1,128], index: 6, kind: input, shape index: {}]   ;;  %s1676_s8 = inlined_call_operand.vmem [shape: f32[1,128], index: 8, kind: input, shape index: {}]   ;;  %s1677_s9 = inlined_call_operand.vmem [shape: f32[8,128], index: 9, kind: output, shape index: {}]  }
   0x1   :  { %v1128_v0 = vld [vmem:[%s1668_s3 + $0x4] ss:$8 sps:$4 sm:$0xff]   ;;  %228 = vmatprep.mubr.bf16.mxu0 %v1276_v1  ;;  %v1132_v3 = vld [vmem:[%s1668_s3] ss:$8 sps:$4 sm:$0xff]   ;;  %v1134_v5 = vld [vmem:[%s1668_s3 + $0x14] ss:$8 sps:$4 sm:$0xff]  }
   0x2   :  { %v1130_v2 = vld [vmem:[%s1669_s2 + $0x4] ss:$8 sps:$4 sm:$0xff]   ;;  %196 = vmatprep.subr.bf16.mxu0 %v1128_v0  ;;  %v1133_v4 = vld [vmem:[%s1669_s2] ss:$8 sps:$4 sm:$0xff]   ;;  %v1136_v6 = vld [vmem:[%s1669_s2 + $0x14] ss:$8 sps:$4 sm:$0xff]  }
   0x3   :  { %571 = vmatprep.subr.bf16.mxu1 %v1130_v2  ;;  %197 = vmatpush1.bf16.msra.mxu0 %v1132_v3  ;;  %v1138_v7 = vld [vmem:[%s1668_s3 + $0x10] ss:$8 sps:$4 sm:$0xff]   ;;  %v1140_v9 = vld [vmem:[%s1668_s3 + $0x24] ss:$8 sps:$4 sm:$0xff]   ;;  %v1144_v11 = vld [vmem:[%s1668_s3 + $0x20] ss:$8 sps:$4 sm:$0xff]  }
   0x4   :  { %572 = vmatpush1.bf16.msra.mxu1 %v1133_v4  ;;  %198 = vmatprep.subr.bf16.mxu0 %v1134_v5  ;;  %v1139_v8 = vld [vmem:[%s1669_s2 + $0x10] ss:$8 sps:$4 sm:$0xff]   ;;  %v1142_v10 = vld [vmem:[%s1669_s2 + $0x24] ss:$8 sps:$4 sm:$0xff]   ;;  %v1145_v12 = vld [vmem:[%s1669_s2 + $0x20] ss:$8 sps:$4 sm:$0xff]  }
   0x5   :  { %573 = vmatprep.subr.bf16.mxu1 %v1136_v6  ;;  %v1146_v13 = vld [vmem:[%s1668_s3 + $0x34] ss:$8 sps:$4 sm:$0xff]   ;;  %v1150_v15 = vld [vmem:[%s1668_s3 + $0x30] ss:$8 sps:$4 sm:$0xff]   ;;  %v1152_v17 = vld [vmem:[%s1668_s3 + $0x44] ss:$8 sps:$4 sm:$0xff]  }
   0x6   :  { %v1148_v14 = vld [vmem:[%s1669_s2 + $0x34] ss:$8 sps:$4 sm:$0xff]   ;;  %v1151_v16 = vld [vmem:[%s1669_s2 + $0x30] ss:$8 sps:$4 sm:$0xff]   ;;  %v1154_v18 = vld [vmem:[%s1669_s2 + $0x44] ss:$8 sps:$4 sm:$0xff]  }
   0x7   :  { %199 = vmatpush1.bf16.msra.mxu0 %v1138_v7  ;;  %v1156_v19 = vld [vmem:[%s1668_s3 + $0x40] ss:$8 sps:$4 sm:$0xff]   ;;  %v1158_v21 = vld [vmem:[%s1668_s3 + $0x54] ss:$8 sps:$4 sm:$0xff]   ;;  %v1162_v23 = vld [vmem:[%s1668_s3 + $0x50] ss:$8 sps:$4 sm:$0xff]  }
   0x8   :  { %574 = vmatpush1.bf16.msra.mxu1 %v1139_v8  ;;  %200 = vmatprep.subr.bf16.mxu0 %v1140_v9  ;;  %v1157_v20 = vld [vmem:[%s1669_s2 + $0x40] ss:$8 sps:$4 sm:$0xff]   ;;  %v1160_v22 = vld [vmem:[%s1669_s2 + $0x54] ss:$8 sps:$4 sm:$0xff]   ;;  %v1163_v24 = vld [vmem:[%s1669_s2 + $0x50] ss:$8 sps:$4 sm:$0xff]  }
   0x9   :  { %575 = vmatprep.subr.bf16.mxu1 %v1142_v10  ;;  %v1164_v25 = vld [vmem:[%s1668_s3 + $0x64] ss:$8 sps:$4 sm:$0xff]   ;;  %v1168_v27 = vld [vmem:[%s1668_s3 + $0x60] ss:$8 sps:$4 sm:$0xff]   ;;  %v1170_v29 = vld [vmem:[%s1668_s3 + $0x74] ss:$8 sps:$4 sm:$0xff]  }
   0xa   :  { %v1166_v26 = vld [vmem:[%s1669_s2 + $0x64] ss:$8 sps:$4 sm:$0xff]   ;;  %v1169_v28 = vld [vmem:[%s1669_s2 + $0x60] ss:$8 sps:$4 sm:$0xff]   ;;  %v1172_v30 = vld [vmem:[%s1669_s2 + $0x74] ss:$8 sps:$4 sm:$0xff]  }
   0xb   :  { %201 = vmatpush1.bf16.msra.mxu0 %v1144_v11  ;;  %v1174_v31 = vld [vmem:[%s1668_s3 + $0x70] ss:$8 sps:$4 sm:$0xff]   ;;  %v1176_v33 = vld [vmem:[%s1669_s2 + $0x84] ss:$8 sps:$4 sm:$0xff]   ;;  %v99_v35 = vld [vmem:[%s1670_s1] sm:$0xf] }
   0xc   :  { %576 = vmatpush1.bf16.msra.mxu1 %v1145_v12  ;;  %202 = vmatprep.subr.bf16.mxu0 %v1146_v13  ;;  %v1175_v32 = vld [vmem:[%s1669_s2 + $0x70] ss:$8 sps:$4 sm:$0xff]   ;;  %v1180_v34 = vld [vmem:[%s1669_s2 + $0x104] ss:$8 sps:$4 sm:$0xff]   ;;  %v1178_v36 = vld [vmem:[%s1669_s2 + $0x100] ss:$8 sps:$4 sm:$0xff]  }
   0xd   :  { %577 = vmatprep.subr.bf16.mxu1 %v1148_v14  ;;  %v1181_v37 = vld [vmem:[%s1669_s2 + $0x80] ss:$8 sps:$4 sm:$0xff]   ;;  %v1182_v38 = vld [vmem:[%s1669_s2 + $0x94] ss:$8 sps:$4 sm:$0xff]   ;;  %v1184_v40 = vld [vmem:[%s1669_s2 + $0x110] ss:$8 sps:$4 sm:$0xff]  }
   0xe   :  { %v1186_v39 = vld [vmem:[%s1669_s2 + $0x114] ss:$8 sps:$4 sm:$0xff]   ;;  %v1187_v41 = vld [vmem:[%s1669_s2 + $0x90] ss:$8 sps:$4 sm:$0xff]   ;;  %v1188_v42 = vld [vmem:[%s1669_s2 + $0xa4] ss:$8 sps:$4 sm:$0xff]  }
   0xf   :  { %203 = vmatpush1.bf16.msra.mxu0 %v1150_v15  ;;  %v1192_v43 = vld [vmem:[%s1669_s2 + $0x124] ss:$8 sps:$4 sm:$0xff]   ;;  %v1190_v44 = vld [vmem:[%s1669_s2 + $0x120] ss:$8 sps:$4 sm:$0xff]   ;;  %v1194_v46 = vld [vmem:[%s1669_s2 + $0xb4] ss:$8 sps:$4 sm:$0xff]  }
  0x10   :  { %578 = vmatpush1.bf16.msra.mxu1 %v1151_v16  ;;  %204 = vmatprep.subr.bf16.mxu0 %v1152_v17  ;;  %v1193_v45 = vld [vmem:[%s1669_s2 + $0xa0] ss:$8 sps:$4 sm:$0xff]   ;;  %v1198_v47 = vld [vmem:[%s1669_s2 + $0x134] ss:$8 sps:$4 sm:$0xff]   ;;  %v1196_v48 = vld [vmem:[%s1669_s2 + $0x130] ss:$8 sps:$4 sm:$0xff]  }
  0x11   :  { %579 = vmatprep.subr.bf16.mxu1 %v1154_v18  ;;  %v33_v49 = vld [vmem:[%s1671_s0] sm:$0xff]  ;;  %v1479_v50 = vld [vmem:[%s1671_s0 + $0x8] sm:$0xff]  ;;  %v1199_v51 = vld [vmem:[%s1669_s2 + $0xb0] ss:$8 sps:$4 sm:$0xff]  }
  0x12   :  { %v1200_v52 = vld [vmem:[%s1669_s2 + $0xc4] ss:$8 sps:$4 sm:$0xff]   ;;  %v981_v53 = vcombine.high %v33_v49, %v33_v49  ;;  %v983_v55 = vcombine.high %v1479_v50, %v1479_v50  ;;  %v1202_v56 = vld [vmem:[%s1669_s2 + $0x140] ss:$8 sps:$4 sm:$0xff]   ;;  %v1206_v58 = vld [vmem:[%s1669_s2 + $0xd4] ss:$8 sps:$4 sm:$0xff]   ;;  %v980_v7 = vcombine.low %v33_v49, %v33_v49 }
  0x13   :  { %205 = vmatpush1.bf16.msra.mxu0 %v1156_v19  ;;  %v1204_v54 = vld [vmem:[%s1669_s2 + $0x144] ss:$8 sps:$4 sm:$0xff]   ;;  %v1205_v57 = vld [vmem:[%s1669_s2 + $0xc0] ss:$8 sps:$4 sm:$0xff]   ;;  %v1210_v59 = vld [vmem:[%s1669_s2 + $0x154] ss:$8 sps:$4 sm:$0xff]  }
  0x14   :  { %580 = vmatpush1.bf16.msra.mxu1 %v1157_v20  ;;  %206 = vmatprep.subr.bf16.mxu0 %v1158_v21  ;;  %v1208_v60 = vld [vmem:[%s1669_s2 + $0x150] ss:$8 sps:$4 sm:$0xff]   ;;  %v1212_v62 = vld [vmem:[%s1669_s2 + $0xe4] ss:$8 sps:$4 sm:$0xff]   ;;  %v1214_v0 = vld [vmem:[%s1669_s2 + $0x160] ss:$8 sps:$4 sm:$0xff]  }
  0x15   :  { %581 = vmatprep.subr.bf16.mxu1 %v1160_v22  ;;  %603 = vmatprep.mubr.bf16.mxu1 %v981_v53  ;;  %v1211_v61 = vld [vmem:[%s1669_s2 + $0xd0] ss:$8 sps:$4 sm:$0xff]   ;;  %v1216_v63 = vld [vmem:[%s1669_s2 + $0x164] ss:$8 sps:$4 sm:$0xff]   ;;  %v1217_v1 = vld [vmem:[%s1669_s2 + $0xe0] ss:$8 sps:$4 sm:$0xff]  }
  0x16   :  { %v1218_v2 = vld [vmem:[%s1669_s2 + $0xf4] ss:$8 sps:$4 sm:$0xff]   ;;  %v1220_v4 = vld [vmem:[%s1669_s2 + $0x170] ss:$8 sps:$4 sm:$0xff]   ;;  %v1229_v6 = vld [vmem:[%s1669_s2 + $0x184] ss:$8 sps:$4 sm:$0xff]  }
  0x17   :  { %207 = vmatpush1.bf16.msra.mxu0 %v1162_v23  ;;  %v1222_v3 = vld [vmem:[%s1669_s2 + $0x174] ss:$8 sps:$4 sm:$0xff]   ;;  %v1223_v5 = vld [vmem:[%s1669_s2 + $0xf0] ss:$8 sps:$4 sm:$0xff]   ;;  %v1227_v8 = vld [vmem:[%s1669_s2 + $0x180] ss:$8 sps:$4 sm:$0xff]   ;;  %v982_v23 = vcombine.low %v1479_v50, %v1479_v50 }
  0x18   :  { %582 = vmatpush1.bf16.msra.mxu1 %v1163_v24  ;;  %208 = vmatprep.subr.bf16.mxu0 %v1164_v25  ;;  %v1232_v9 = vld [vmem:[%s1669_s2 + $0x194] ss:$8 sps:$4 sm:$0xff]   ;;  %v1230_v10 = vld [vmem:[%s1669_s2 + $0x190] ss:$8 sps:$4 sm:$0xff]   ;;  %v1235_v11 = vld [vmem:[%s1669_s2 + $0x1a4] ss:$8 sps:$4 sm:$0xff]  }
  0x19   :  { %583 = vmatprep.subr.bf16.mxu1 %v1166_v26  ;;  %v1233_v12 = vld [vmem:[%s1669_s2 + $0x1a0] ss:$8 sps:$4 sm:$0xff]   ;;  %v1238_v13 = vld [vmem:[%s1669_s2 + $0x1b4] ss:$8 sps:$4 sm:$0xff]   ;;  %v1236_v14 = vld [vmem:[%s1669_s2 + $0x1b0] ss:$8 sps:$4 sm:$0xff]  }
  0x1a   :  { %v1241_v15 = vld [vmem:[%s1669_s2 + $0x1c4] ss:$8 sps:$4 sm:$0xff]   ;;  %v1239_v16 = vld [vmem:[%s1669_s2 + $0x1c0] ss:$8 sps:$4 sm:$0xff]   ;;  %v1244_v17 = vld [vmem:[%s1669_s2 + $0x1d4] ss:$8 sps:$4 sm:$0xff]  }
  0x1b   :  { %209 = vmatpush1.bf16.msra.mxu0 %v1168_v27  ;;  %v1242_v18 = vld [vmem:[%s1669_s2 + $0x1d0] ss:$8 sps:$4 sm:$0xff]   ;;  %v1247_v19 = vld [vmem:[%s1669_s2 + $0x1e4] ss:$8 sps:$4 sm:$0xff]   ;;  %v1245_v20 = vld [vmem:[%s1669_s2 + $0x1e0] ss:$8 sps:$4 sm:$0xff]  }
  0x1c   :  { %584 = vmatpush1.bf16.msra.mxu1 %v1169_v28  ;;  %210 = vmatprep.subr.bf16.mxu0 %v1170_v29  ;;  %v1250_v21 = vld [vmem:[%s1669_s2 + $0x1f4] ss:$8 sps:$4 sm:$0xff]   ;;  %v1248_v22 = vld [vmem:[%s1669_s2 + $0x1f0] ss:$8 sps:$4 sm:$0xff]   ;;  %v1252_v24 = vld [vmem:[%s1672_s5 + $0x40] sm:$0xff]  }
  0x1d   :  { %585 = vmatprep.subr.bf16.mxu1 %v1172_v30  ;;  %v1253_v25 = vld [vmem:[%s1672_s5] sm:$0xff]   ;;  %v1254_v26 = vld [vmem:[%s1672_s5 + $0x48] sm:$0xff]   ;;  %v1256_v28 = vld [vmem:[%s1672_s5 + $0x50] sm:$0xff]  }
  0x1e   :  { %v1255_v27 = vld [vmem:[%s1672_s5 + $0x8] sm:$0xff]   ;;  %v1257_v29 = vld [vmem:[%s1672_s5 + $0x10] sm:$0xff]   ;;  %v1258_v30 = vld [vmem:[%s1672_s5 + $0x58] sm:$0xff]  }
  0x1f   :  { %211 = vmatpush1.bf16.msra.mxu0 %v1174_v31  ;;  %v1259_v31 = vld [vmem:[%s1672_s5 + $0x18] sm:$0xff]  }
  0x20   :  { %586 = vmatpush1.bf16.msra.mxu1 %v1175_v32  ;;  %612 = vmatprep.subr.bf16.mxu0 %v1180_v34  ;;  %v1260_v32 = vld [vmem:[%s1672_s5 + $0x60] sm:$0xff]   ;;  %v1262_v34 = vld [vmem:[%s1672_s5 + $0x68] sm:$0xff]  }
  0x21   :  { %587 = vmatprep.subr.bf16.mxu1 %v1176_v33  ;;  %v1261_v33 = vld [vmem:[%s1672_s5 + $0x20] sm:$0xff]  }
  0x22   :  { %229 = vmatmul.mubr.bf16.vlgmr.msra.gmra.mrb[0].mxu0 %v99_v35  ;;  %v1263_v35 = vld [vmem:[%s1672_s5 + $0x28] sm:$0xff]  }
  0x23   :  { %613 = vmatpush1.bf16.msra.mxu0 %v1178_v36  ;;  %644 = vmatprep.mubr.bf16.mxu0 %v983_v55  ;;  %v1264_v36 = vld [vmem:[%s1672_s5 + $0x70] sm:$0xff]  }
  0x24   :  { %588 = vmatpush1.bf16.msra.mxu1 %v1181_v37  ;;  %614 = vmatprep.subr.bf16.mxu0 %v1186_v39  ;;  %v1265_v37 = vld [vmem:[%s1672_s5 + $0x30] sm:$0xff]   ;;  %v1267_v39 = vld [vmem:[%s1672_s5 + $0x38] sm:$0xff]  }
  0x25   :  { %589 = vmatprep.subr.bf16.mxu1 %v1182_v38  ;;  %v1266_v38 = vld [vmem:[%s1672_s5 + $0x78] sm:$0xff]  }
  0x27   :  { %615 = vmatpush1.bf16.msra.mxu0 %v1184_v40  ;;  %v1277_v40 = vmov 0.0  }
  0x28   :  { %590 = vmatpush1.bf16.msra.mxu1 %v1187_v41  ;;  %616 = vmatprep.subr.bf16.mxu0 %v1192_v43  ;;  %v1268_v41 = vld [vmem:[%s1673_s7] sm:$0xff]   ;;  %v1270_v43 = vld [vmem:[%s1673_s7 + $0x10] sm:$0xff]  }
  0x29   :  { %591 = vmatprep.subr.bf16.mxu1 %v1188_v42  ;;  %v1269_v42 = vld [vmem:[%s1673_s7 + $0x8] sm:$0xff]  }
  0x2b   :  { %617 = vmatpush1.bf16.msra.mxu0 %v1190_v44  ;;  %v1271_v44 = vld [vmem:[%s1673_s7 + $0x18] sm:$0xff]  }
  0x2c   :  { %592 = vmatpush1.bf16.msra.mxu1 %v1193_v45  ;;  %618 = vmatprep.subr.bf16.mxu0 %v1198_v47  ;;  %v1272_v45 = vld [vmem:[%s1673_s7 + $0x20] sm:$0xff]  }
  0x2d   :  { %593 = vmatprep.subr.bf16.mxu1 %v1194_v46  ;;  %v1273_v46 = vld [vmem:[%s1673_s7 + $0x28] sm:$0xff]  }
  0x2f   :  { %619 = vmatpush1.bf16.msra.mxu0 %v1196_v48 }
  0x30   :  { %594 = vmatpush1.bf16.msra.mxu1 %v1199_v51  ;;  %620 = vmatprep.subr.bf16.mxu0 %v1204_v54 }
  0x31   :  { %595 = vmatprep.subr.bf16.mxu1 %v1200_v52 }
  0x33   :  { %621 = vmatpush1.bf16.msra.mxu0 %v1202_v56 }
  0x34   :  { %596 = vmatpush1.bf16.msra.mxu1 %v1205_v57  ;;  %622 = vmatprep.subr.bf16.mxu0 %v1210_v59  ;;  %v655_v57 = vlaneseq }
  0x35   :  { %597 = vmatprep.subr.bf16.mxu1 %v1206_v58 }
  0x36   :  { %v656_v58 = vshrl.u32 %v655_v57, 7 }
  0x37   :  { %623 = vmatpush1.bf16.msra.mxu0 %v1208_v60  ;;  %v653_v60 = vld [vmem:[%s1674_s4] sm:$0x3] }
  0x38   :  { %598 = vmatpush1.bf16.msra.mxu1 %v1211_v61  ;;  %624 = vmatprep.subr.bf16.mxu0 %v1216_v63  ;;  %v657_v59 = vsub.s32 0, %v656_v58  ;;  %v661_v61 = vsub.s32 1, %v656_v58 }
  0x39   :  { %599 = vmatprep.subr.bf16.mxu1 %v1212_v62 }
  0x3a   :  { %v658_v62 = vrot.slane %v653_v60, %v657_v59 }
  0x3b   :  { %625 = vmatpush1.bf16.msra.mxu0 %v1214_v0  ;;  %v662_v0 = vrot.slane %v653_v60, %v661_v61 }
  0x3c   :  { %600 = vmatpush1.bf16.msra.mxu1 %v1217_v1  ;;  %626 = vmatprep.subr.bf16.mxu0 %v1222_v3 }
  0x3d   :  { %601 = vmatprep.subr.bf16.mxu1 %v1218_v2 }
  0x3f   :  { %627 = vmatpush1.bf16.msra.mxu0 %v1220_v4 }
  0x40   :  { %602 = vmatpush1.bf16.msra.mxu1 %v1223_v5  ;;  %628 = vmatprep.subr.bf16.mxu0 %v1229_v6 }
  0x41   :  { %1074 = vmatprep.subr.bf16.mxu1 %v1252_v24 }
  0x43   :  { %604 = vmatmul.mubr.bf16.vlgmr.msra.gmra.mrb[0].mxu1 %v980_v7  ;;  %629 = vmatpush1.bf16.msra.mxu0 %v1227_v8 }
  0x44   :  { %630 = vmatprep.subr.bf16.mxu0 %v1232_v9  ;;  %1075 = vmatpush3.bf16.msra.mxu1 %v1253_v25 }
  0x45   :  { %1076 = vmatprep.subr.bf16.mxu1 %v1254_v26 }
  0x47   :  { %631 = vmatpush1.bf16.msra.mxu0 %v1230_v10 }
  0x48   :  { %632 = vmatprep.subr.bf16.mxu0 %v1235_v11  ;;  %1077 = vmatpush3.bf16.msra.mxu1 %v1255_v27 }
  0x49   :  { %1078 = vmatprep.subr.bf16.mxu1 %v1256_v28 }
  0x4b   :  { %633 = vmatpush1.bf16.msra.mxu0 %v1233_v12  ;;  %v1274_v12 = vld [vmem:[%s1673_s7 + $0x30] sm:$0xff]  }
  0x4c   :  { %634 = vmatprep.subr.bf16.mxu0 %v1238_v13  ;;  %1079 = vmatpush3.bf16.msra.mxu1 %v1257_v29  ;;  %v1275_v13 = vld [vmem:[%s1673_s7 + $0x38] sm:$0xff]  }
  0x4d   :  { %1080 = vmatprep.subr.bf16.mxu1 %v1258_v30 }
  0x4f   :  { %635 = vmatpush1.bf16.msra.mxu0 %v1236_v14 }
  0x50   :  { %636 = vmatprep.subr.bf16.mxu0 %v1241_v15  ;;  %1081 = vmatpush3.bf16.msra.mxu1 %v1259_v31  ;;  %v1048_v15 = vld [vmem:[%s1675_s6] ss:$0 sm:$0xff] }
  0x51   :  { %1082 = vmatprep.subr.bf16.mxu1 %v1260_v32 }
  0x53   :  { %637 = vmatpush1.bf16.msra.mxu0 %v1239_v16 }
  0x54   :  { %638 = vmatprep.subr.bf16.mxu0 %v1244_v17  ;;  %1083 = vmatpush3.bf16.msra.mxu1 %v1261_v33 }
  0x55   :  { %1084 = vmatprep.subr.bf16.mxu1 %v1262_v34 }
  0x57   :  { %639 = vmatpush1.bf16.msra.mxu0 %v1242_v18 }
  0x58   :  { %640 = vmatprep.subr.bf16.mxu0 %v1247_v19  ;;  %1085 = vmatpush3.bf16.msra.mxu1 %v1263_v35 }
  0x59   :  { %1086 = vmatprep.subr.bf16.mxu1 %v1264_v36 }
  0x5b   :  { %641 = vmatpush1.bf16.msra.mxu0 %v1245_v20 }
  0x5c   :  { %642 = vmatprep.subr.bf16.mxu0 %v1250_v21  ;;  %1087 = vmatpush3.bf16.msra.mxu1 %v1265_v37 }
  0x5d   :  { %1088 = vmatprep.subr.bf16.mxu1 %v1266_v38 }
  0x5f   :  { %643 = vmatpush1.bf16.msra.mxu0 %v1248_v22 }
  0x60   :  { %1089 = vmatpush3.bf16.msra.mxu1 %v1267_v39  ;;  %1105 = vmatprep.subr.bf16.mxu0 %v1277_v40 }
  0x62   :  { %645 = vmatmul.mubr.bf16.vlgmr.msra.gmra.mrb[4].mxu0 %v982_v23  ;;  %v1065_v23 = vld [vmem:[%s1676_s8] ss:$0 sm:$0xff] }
  0x63   :  { %1106 = vmatpush3.bf16.msra.mxu0 %v1268_v41  ;;  %1121 = vmatprep.mubr.msk.bf16.mxu0 %vm1278_vm0, %v1277_v40 }
  0x64   :  { %1107 = vmatprep.subr.bf16.mxu0 %v1277_v40 }
  0x67   :  { %1108 = vmatpush3.bf16.msra.mxu0 %v1269_v42 }
  0x68   :  { %1109 = vmatprep.subr.bf16.mxu0 %v1277_v40 }
  0x6b   :  { %1110 = vmatpush3.bf16.msra.mxu0 %v1270_v43 }
  0x6c   :  { %1111 = vmatprep.subr.bf16.mxu0 %v1277_v40 }
  0x6f   :  { %1112 = vmatpush3.bf16.msra.mxu0 %v1271_v44 }
  0x70   :  { %1113 = vmatprep.subr.bf16.mxu0 %v1277_v40 }
  0x73   :  { %1114 = vmatpush3.bf16.msra.mxu0 %v1272_v45 }
  0x74   :  { %1115 = vmatprep.subr.bf16.mxu0 %v1277_v40 }
  0x77   :  { %1116 = vmatpush3.bf16.msra.mxu0 %v1273_v46 }
  0x78   :  { %1117 = vmatprep.subr.bf16.mxu0 %v1277_v40 }
  0x7b   :  { %1118 = vmatpush3.bf16.msra.mxu0 %v1274_v12 }
  0x7c   :  { %1119 = vmatprep.subr.bf16.mxu0 %v1277_v40 }
  0x7f   :  { %1120 = vmatpush3.bf16.msra.mxu0 %v1275_v13 }
  0xf5   :  { %v230_v47 = vpop.f32.mrb[0].mxu0 }
  0xf6   :  { %v232_v48 = vpop.f32.mrb[1].mxu0 }
  0xf7   :  { %v234_v49 = vpop.f32.mrb[2].mxu0 }
  0xf8   :  { %v235_v50 = vpop.f32.mrb[3].mxu0 }
 0x116   :  { %v605_v51 = vpop.f32.mrb[0].mxu1 }
 0x117   :  { %v606_v52 = vadd.f32 %v605_v51, %v230_v47  ;;  %v607_v53 = vpop.f32.mrb[1].mxu1 }
 0x118   :  { %v608_v54 = vadd.f32 %v607_v53, %v232_v48  ;;  %v609_v55 = vpop.f32.mrb[2].mxu1 }
 0x119   :  { %v610_v56 = vpop.f32.mrb[3].mxu1 }
 0x135   :  { %v646_v63 = vpop.f32.mrb[4].mxu0 }
 0x136   :  { %v647_v1 = vadd.f32 %v646_v63, %v606_v52  ;;  %v648_v2 = vpop.f32.mrb[5].mxu0 }
 0x137   :  { %v649_v3 = vadd.f32 %v648_v2, %v608_v54  ;;  %v650_v4 = vpop.f32.mrb[6].mxu0 }
 0x138   :  { %v665_v5 = vadd.f32 %v658_v62, %v647_v1  ;;  %v651_v6 = vpop.f32.mrb[7].mxu0 }
 0x139   :  { %v666_v7 = vadd.f32 %v662_v0, %v649_v3 }
 0x13a   :  { %v667_v8 = vmax.f32 %v665_v5, 0.0 }
 0x13b   :  { %v668_v9 = vmax.f32 %v666_v7, 0.0 }
 0x13c   :  { %v669_v11 = vpack.c.bf16 %v667_v8, %v667_v8 }
 0x13d   :  { %v670_v10 = vpack.c.bf16 %v668_v9, %v668_v9 }
 0x13f   :  { %838 = vmatprep.mubr.bf16.mxu1 %v670_v10 }
 0x140   :  { %839 = vmatmul.mubr.bf16.vlgmr.msra.gmra.mrb[4].mxu1 %v669_v11 }
 0x213   :  { %v1090_v14 = vpop.f32.mrb[4].mxu1 }
 0x214   :  { %v1091_v16 = vpop.f32.mrb[5].mxu1 }
 0x215   :  { %v1092_v17 = vadd.f32 %v1091_v16, %v1090_v14  ;;  %v1093_v18 = vpop.f32.mrb[6].mxu1 }
 0x216   :  { %v1094_v19 = vpop.f32.mrb[7].mxu1 }
 0x217   :  { %v841_v20 = vadd.f32 %v1092_v17, %v1048_v15 }
 0x219   :  { %v846_v21 = vmax.f32 %v841_v20, 0.0 }
 0x21b   :  { %v847_v22 = vpack.c.bf16 %v846_v21, %v846_v21 }
 0x21d   :  { %1122 = vmatmul.mubr.bf16.vlgmr.msra.gmra.mrb[8].mxu0 %v847_v22 }
 0x2f0   :  { %v953_v24 = vpop.f32.mrb[8].mxu0 }
 0x2f1   :  { %v954_v25 = vadd.f32 %v1065_v23, %v953_v24  ;;  %v1123_v26 = vpop.f32.mrb[9].mxu0 }
 0x2f2   :  { %v956_v27 = vpop.f32.mrb[10].mxu0 }
 0x2f3   :  { %959 = vst [vmem:[%s1677_s9] sm:$0xff] %v954_v25  ;;  %v1124_v28 = vpop.f32.mrb[11].mxu0 }

</bundles_post_ra>
